<compile_context>
chip_gen: v7x
topology: tpu7x:2x2x1
jax: 0.10.0
libtpu: 0.0.40
codegen_flags: <defaults>
</compile_context>

<pallas_src>
import functools
import math

import jax
import jax.numpy as jnp
from jax.experimental import pallas as pl
from jax.experimental.pallas import tpu as pltpu

# Layers with Cin >= this use 9 accumulated K=Cin matmuls (no patch concat);
# smaller layers use one im2col matmul with K = 9*Cin.
_PER_TAP_MIN_CIN = 128


@functools.lru_cache(maxsize=1)
def _compiler_params():
    """Generation-aware VMEM budget; grid axis (batch) is 'parallel'."""
    try:
        kind = jax.devices()[0].device_kind.lower()
    except Exception:  # pragma: no cover
        kind = ""
    if "v7" in kind:
        vmem = 40 * 1024 * 1024          # 64 MiB physical on v7x, keep headroom
    elif "v5" in kind or "v6" in kind:
        vmem = 96 * 1024 * 1024          # 128 MiB physical on v5e / v6e
    else:
        vmem = 32 * 1024 * 1024
    return pltpu.CompilerParams(
        dimension_semantics=("parallel",),
        vmem_limit_bytes=vmem,
    )


# ----------------------------- in-kernel helpers ---------------------------

def _fill_padded(dst_ref, interior):
    """Zero-fill a (H+2, W+2, C) VMEM halo scratch and write the interior.

    Replaces the former wrapper-side jnp.pad (which cost a full HBM round
    trip); everything stays in VMEM.
    """
    H, W = interior.shape[0], interior.shape[1]
    dst_ref[...] = jnp.zeros(dst_ref.shape, dst_ref.dtype)
    dst_ref[1:H + 1, 1:W + 1, :] = interior


def _conv3x3_from_padded(xpad_ref, w, *, Ho, Wo, stride_h, per_tap):
    """3x3 conv (W-stride 1, H-stride stride_h) from a padded VMEM scratch ref.

    xpad_ref: VMEM ref (Hp, Wp, Cin) f32;  w: (9*Cin, Cout) bf16 value.
    Returns (Ho*Wo, Cout) f32 (MXU, f32 accumulation).
    """
    Cin = xpad_ref.shape[-1]
    Cout = w.shape[-1]

    def rows_for(kh):
        if stride_h == 1:
            return xpad_ref[kh:kh + Ho, :, :]                     # (Ho, Wp, Cin)
        # single strided read (replaces the old per-row concat gather)
        return xpad_ref[pl.ds(kh, Ho, stride=stride_h), :, :]     # (Ho, Wp, Cin)

    if per_tap:
        # Large Cin: 9 accumulated matmuls, K = Cin (no patch materialization).
        acc = jnp.zeros((Ho * Wo, Cout), jnp.float32)
        for kh in range(3):
            rows = rows_for(kh)
            for kw in range(3):
                tap = rows[:, kw:kw + Wo, :].reshape(Ho * Wo, Cin)
                wk = w[(kh * 3 + kw) * Cin:(kh * 3 + kw + 1) * Cin, :]
                acc = acc + jnp.dot(tap.astype(jnp.bfloat16), wk,
                                    preferred_element_type=jnp.float32)
        return acc

    # Small Cin: single im2col matmul with K = 9*Cin.
    pieces = []
    for kh in range(3):
        rows = rows_for(kh)
        for kw in range(3):
            pieces.append(rows[:, kw:kw + Wo, :])                 # (Ho, Wo, Cin)
    patch = jnp.concatenate(pieces, axis=-1).reshape(Ho * Wo, 9 * Cin)
    return jnp.dot(patch.astype(jnp.bfloat16), w,
                   preferred_element_type=jnp.float32)


# ------------------------------ Pallas kernels -----------------------------

def _head_kernel(x_ref, ge_ref, be_ref, go_ref, bo_ref, w_ref, bias_ref,
                 sc_ref, sh_ref, o_ref, *, apply_log):
    """Fused trunk head: log-mel + InstanceNorm1d + conv1(3x3, stride (2,1),
    pad 1, Cin=1) + bias + ReLU + bn1.  Halo handled in-register."""
    _, Ho, Wo, Cout = o_ref.shape
    T = x_ref.shape[2]

    def _norm(rows, g, b):                 # rows: (Ho, T); g/b: (Ho, 1)
        if apply_log:
            rows = jnp.log(rows + 1e-6)
            rows = rows - jnp.mean(rows, axis=-1, keepdims=True)
        mu = jnp.mean(rows, axis=-1, keepdims=True)
        var = jnp.mean((rows - mu) ** 2, axis=-1, keepdims=True)
        return (rows - mu) * jax.lax.rsqrt(var + 1e-5) * g + b

    # Strided reads split the mel rows by parity (H-stride 2 conv consumes
    # exactly these sets); instance-norm is per-row so the split is exact.
    xr = x_ref.at[0]                                             # (H, T) sub-ref
    even = _norm(xr[pl.ds(0, Ho, stride=2), :], ge_ref[...], be_ref[...])
    odd = _norm(xr[pl.ds(1, Ho, stride=2), :], go_ref[...], bo_ref[...])

    zrow = jnp.zeros((1, T), jnp.float32)
    taps_h = [jnp.concatenate([zrow, odd[:Ho - 1, :]], axis=0),  # kh = 0
              even,                                              # kh = 1
              odd]                                               # kh = 2
    zcol = jnp.zeros((Ho, 1), jnp.float32)
    pieces = []
    for th in taps_h:
        thp = jnp.concatenate([zcol, th, zcol], axis=1)          # (Ho, T+2)
        for kw in range(3):
            pieces.append(thp[:, kw:kw + Wo][..., None])         # (Ho, Wo, 1)
    patch = jnp.concatenate(pieces, axis=-1)                     # (Ho, Wo, 9)

    acc = jnp.dot(patch.reshape(Ho * Wo, 9).astype(jnp.bfloat16), w_ref[...],
                  preferred_element_type=jnp.float32)            # (Ho*Wo, Cout)
    acc = jnp.maximum(acc + bias_ref[...], 0.0)                  # +bias, ReLU
    o_ref[...] = (acc * sc_ref[...] + sh_ref[...]).reshape(1, Ho, Wo, Cout)


def _se_block_kernel(*refs, H, W, per_tap1, per_tap2, has_down):
    """One FULLY fused SEBasicBlock:
    conv1 -> ReLU -> bn1 -> conv2 -> bn2 -> SE -> +residual[/1x1+BN] -> ReLU.
    Intermediate `h` lives only in the halo'd VMEM scratch (no HBM writeback)."""
    if has_down:
        (x_ref, w1_ref, sc1_ref, sh1_ref, w2_ref, sc2_ref, sh2_ref,
         sw1_ref, sb1_ref, sw2_ref, sb2_ref,
         dw_ref, dsc_ref, dsh_ref, o_ref, xpad_s, hpad_s) = refs
    else:
        (x_ref, w1_ref, sc1_ref, sh1_ref, w2_ref, sc2_ref, sh2_ref,
         sw1_ref, sb1_ref, sw2_ref, sb2_ref, o_ref, xpad_s, hpad_s) = refs
    Cout = o_ref.shape[-1]
    Cmid = hpad_s.shape[-1]

    # conv1 -> ReLU -> bn1 (stride 1)
    _fill_padded(xpad_s, x_ref[0])
    h = _conv3x3_from_padded(xpad_s, w1_ref[...], Ho=H, Wo=W,
                             stride_h=1, per_tap=per_tap1)
    h = jnp.maximum(h, 0.0) * sc1_ref[...] + sh1_ref[...]        # (H*W, Cmid)

    # conv2 -> bn2 (stride 1), `h` stays in VMEM
    _fill_padded(hpad_s, h.reshape(H, W, Cmid))
    out = _conv3x3_from_padded(hpad_s, w2_ref[...], Ho=H, Wo=W,
                               stride_h=1, per_tap=per_tap2)
    out = out * sc2_ref[...] + sh2_ref[...]                      # (H*W, Cout)

    # Squeeze-Excite on the in-VMEM activation.
    pooled = jnp.mean(out, axis=0, keepdims=True)                # (1, Cout)
    hid = jnp.maximum(
        jnp.dot(pooled, sw1_ref[...], preferred_element_type=jnp.float32)
        + sb1_ref[...], 0.0)
    s = jax.nn.sigmoid(
        jnp.dot(hid, sw2_ref[...], preferred_element_type=jnp.float32)
        + sb2_ref[...])                                          # (1, Cout)

    # Residual (optionally 1x1 conv + BN downsample), then ReLU.
    x = x_ref[0]
    if has_down:
        res = jnp.dot(x.reshape(H * W, -1).astype(jnp.bfloat16), dw_ref[...],
                      preferred_element_type=jnp.float32)
        res = res * dsc_ref[...] + dsh_ref[...]
    else:
        res = x.reshape(H * W, Cout)
    o_ref[...] = jnp.maximum(out * s + res, 0.0).reshape(1, H, W, Cout)


def _conv_bn_kernel(x_ref, w_ref, bias_ref, sc_ref, sh_ref, o_ref, xpad_s, *,
                    stride_h, per_tap):
    """Trunk conv2: 3x3 conv (stride (stride_h,1), pad 1) + bias -> ReLU -> BN."""
    _, Ho, Wo, Cout = o_ref.shape
    _fill_padded(xpad_s, x_ref[0])
    acc = _conv3x3_from_padded(xpad_s, w_ref[...], Ho=Ho, Wo=Wo,
                               stride_h=stride_h, per_tap=per_tap)
    acc = jnp.maximum(acc + bias_ref[...], 0.0)
    o_ref[...] = (acc * sc_ref[...] + sh_ref[...]).reshape(1, Ho, Wo, Cout)


# ------------------------------- thin wrappers ------------------------------

def _bn_scale_shift(bn, eps=1e-5):
    gamma, beta, rmean, rvar = bn
    inv = gamma * jax.lax.rsqrt(rvar + eps)
    return inv, beta - rmean * inv


def head_instnorm_conv_bn(x, gamma, beta, w, bias, bn, *, apply_log):
    """Fused (log-mel + InstanceNorm1d) + conv1 + ReLU + bn1."""
    B, H, T = x.shape
    assert H % 2 == 0, "n_mels must be even for the fused stride-2 head"
    C1 = w.shape[-1]
    Ho, Wo = H // 2, T                       # (H + 2 - 3)//2 + 1 == H//2 (H even)
    w9 = w.reshape(9, C1).astype(jnp.bfloat16)
    sc, sh = _bn_scale_shift(bn)
    ge, go = gamma[0::2].reshape(Ho, 1), gamma[1::2].reshape(Ho, 1)
    be, bo = beta[0::2].reshape(Ho, 1), beta[1::2].reshape(Ho, 1)
    flops = 2 * B * Ho * Wo * 9 * C1
    bytes_acc = 4 * B * (H * T + Ho * Wo * C1) + 2 * 9 * C1
    vspec = pl.BlockSpec((1, C1), lambda b: (0, 0))
    return pl.pallas_call(
        functools.partial(_head_kernel, apply_log=apply_log),
        out_shape=jax.ShapeDtypeStruct((B, Ho, Wo, C1), jnp.float32),
        grid=(B,),
        in_specs=[pl.BlockSpec((1, H, T), lambda b: (b, 0, 0)),
                  pl.BlockSpec((Ho, 1), lambda b: (0, 0)),
                  pl.BlockSpec((Ho, 1), lambda b: (0, 0)),
                  pl.BlockSpec((Ho, 1), lambda b: (0, 0)),
                  pl.BlockSpec((Ho, 1), lambda b: (0, 0)),
                  pl.BlockSpec((9, C1), lambda b: (0, 0)),
                  vspec, vspec, vspec],
        out_specs=pl.BlockSpec((1, Ho, Wo, C1), lambda b: (b, 0, 0, 0)),
        compiler_params=_compiler_params(),
        cost_estimate=pl.CostEstimate(flops=flops,
                                      transcendentals=B * H * T,
                                      bytes_accessed=bytes_acc),
    )(x, ge, be, go, bo, w9,
      bias.reshape(1, C1).astype(jnp.float32),
      sc.reshape(1, C1), sh.reshape(1, C1))


def se_basic_block(x, p):
    """Whole SEBasicBlock as ONE fused Pallas kernel."""
    B, H, W, Cin = x.shape
    Cmid = p['conv1_w'].shape[-1]
    Cout = p['conv2_w'].shape[-1]
    cse = p['se_w1'].shape[-1]
    w1 = p['conv1_w'].reshape(9 * Cin, Cmid).astype(jnp.bfloat16)
    w2 = p['conv2_w'].reshape(9 * Cmid, Cout).astype(jnp.bfloat16)
    sc1, sh1 = _bn_scale_shift(p['bn1'])
    sc2, sh2 = _bn_scale_shift(p['bn2'])

    args = [x, w1, sc1.reshape(1, Cmid), sh1.reshape(1, Cmid),
            w2, sc2.reshape(1, Cout), sh2.reshape(1, Cout),
            p['se_w1'], p['se_b1'].reshape(1, cse),
            p['se_w2'], p['se_b2'].reshape(1, Cout)]
    in_specs = [pl.BlockSpec((1, H, W, Cin), lambda b: (b, 0, 0, 0)),
                pl.BlockSpec((9 * Cin, Cmid), lambda b: (0, 0)),
                pl.BlockSpec((1, Cmid), lambda b: (0, 0)),
                pl.BlockSpec((1, Cmid), lambda b: (0, 0)),
                pl.BlockSpec((9 * Cmid, Cout), lambda b: (0, 0)),
                pl.BlockSpec((1, Cout), lambda b: (0, 0)),
                pl.BlockSpec((1, Cout), lambda b: (0, 0)),
                pl.BlockSpec((Cout, cse), lambda b: (0, 0)),
                pl.BlockSpec((1, cse), lambda b: (0, 0)),
                pl.BlockSpec((cse, Cout), lambda b: (0, 0)),
                pl.BlockSpec((1, Cout), lambda b: (0, 0))]

    has_down = p['down_w'] is not None
    if has_down:
        dw = p['down_w'].reshape(Cin, Cout).astype(jnp.bfloat16)
        dsc, dsh = _bn_scale_shift(p['down_bn'])
        args += [dw, dsc.reshape(1, Cout), dsh.reshape(1, Cout)]
        in_specs += [pl.BlockSpec((Cin, Cout), lambda b: (0, 0)),
                     pl.BlockSpec((1, Cout), lambda b: (0, 0)),
                     pl.BlockSpec((1, Cout), lambda b: (0, 0))]

    flops = 2 * B * H * W * 9 * (Cin * Cmid + Cmid * Cout)
    if has_down:
        flops += 2 * B * H * W * Cin * Cout
    bytes_acc = 4 * B * H * W * (Cin + Cout) + 2 * (w1.size + w2.size)

    return pl.pallas_call(
        functools.partial(_se_block_kernel, H=H, W=W,
                          per_tap1=(Cin >= _PER_TAP_MIN_CIN),
                          per_tap2=(Cmid >= _PER_TAP_MIN_CIN),
                          has_down=has_down),
        out_shape=jax.ShapeDtypeStruct((B, H, W, Cout), jnp.float32),
        grid=(B,),
        in_specs=in_specs,
        out_specs=pl.BlockSpec((1, H, W, Cout), lambda b: (b, 0, 0, 0)),
        scratch_shapes=[pltpu.VMEM((H + 2, W + 2, Cin), jnp.float32),
                        pltpu.VMEM((H + 2, W + 2, Cmid), jnp.float32)],
        compiler_params=_compiler_params(),
        cost_estimate=pl.CostEstimate(flops=flops, transcendentals=B * Cout,
                                      bytes_accessed=bytes_acc),
    )(*args)


def conv2d_bn(x, w, bias, bn, *, stride_h):
    """Trunk conv (3x3, stride (stride_h,1), pad 1) + bias -> ReLU -> eval-BN."""
    B, H, W, Cin = x.shape
    Cout = w.shape[-1]
    Ho = (H + 2 - 3) // stride_h + 1
    Wo = W
    w9 = w.reshape(9 * Cin, Cout).astype(jnp.bfloat16)
    sc, sh = _bn_scale_shift(bn)
    flops = 2 * B * Ho * Wo * 9 * Cin * Cout
    bytes_acc = 4 * B * (H * W * Cin + Ho * Wo * Cout) + 2 * 9 * Cin * Cout
    return pl.pallas_call(
        functools.partial(_conv_bn_kernel, stride_h=stride_h,
                          per_tap=(Cin >= _PER_TAP_MIN_CIN)),
        out_shape=jax.ShapeDtypeStruct((B, Ho, Wo, Cout), jnp.float32),
        grid=(B,),
        in_specs=[pl.BlockSpec((1, H, W, Cin), lambda b: (b, 0, 0, 0)),
                  pl.BlockSpec((9 * Cin, Cout), lambda b: (0, 0)),
                  pl.BlockSpec((1, Cout), lambda b: (0, 0)),
                  pl.BlockSpec((1, Cout), lambda b: (0, 0)),
                  pl.BlockSpec((1, Cout), lambda b: (0, 0))],
        out_specs=pl.BlockSpec((1, Ho, Wo, Cout), lambda b: (b, 0, 0, 0)),
        scratch_shapes=[pltpu.VMEM((H + 2, W + 2, Cin), jnp.float32)],
        compiler_params=_compiler_params(),
        cost_estimate=pl.CostEstimate(flops=flops, transcendentals=0,
                                      bytes_accessed=bytes_acc),
    )(x, w9, bias.reshape(1, Cout).astype(jnp.float32),
      sc.reshape(1, Cout), sh.reshape(1, Cout))


# ---------------------------- parameter creation ----------------------------

def _kaiming_conv(key, kh, kw, cin, cout):
    fan_out = cout * kh * kw                  # kaiming_normal_, fan_out, relu
    return math.sqrt(2.0 / fan_out) * jax.random.normal(
        key, (kh, kw, cin, cout), jnp.float32)


def _bn_params(c):
    # (gamma=1, beta=0, running_mean=0, running_var=1) as after __init__
    return (jnp.ones((c,), jnp.float32), jnp.zeros((c,), jnp.float32),
            jnp.zeros((c,), jnp.float32), jnp.ones((c,), jnp.float32))


def _make_se_block_params(key, cin, cout, reduction=8):
    ks = jax.random.split(key, 6)
    cmid = max(cout // reduction, 1)
    p = dict(
        conv1_w=_kaiming_conv(ks[0], 3, 3, cin, cout), bn1=_bn_params(cout),
        conv2_w=_kaiming_conv(ks[1], 3, 3, cout, cout), bn2=_bn_params(cout),
        se_w1=0.1 * jax.random.normal(ks[2], (cout, cmid), jnp.float32),
        se_b1=0.1 * jax.random.normal(ks[3], (cmid,), jnp.float32),
        se_w2=0.1 * jax.random.normal(ks[4], (cmid, cout), jnp.float32),
        se_b2=0.1 * jax.random.normal(ks[5], (cout,), jnp.float32),
        down_w=None, down_bn=None)
    if cin != cout:                           # 1x1 downsample conv + BN
        p['down_w'] = _kaiming_conv(jax.random.fold_in(key, 99), 1, 1, cin, cout)
        p['down_bn'] = _bn_params(cout)
    return p


def init_params(key, num_filters, layers, nOut, n_mels):
    keys = jax.random.split(key, 5)
    params = dict(
        in_gamma=jnp.ones((n_mels,), jnp.float32),
        in_beta=jnp.zeros((n_mels,), jnp.float32),
        conv1_w=_kaiming_conv(keys[0], 3, 3, 1, num_filters[0]),
        conv1_b=0.01 * jax.random.normal(keys[1], (num_filters[0],), jnp.float32),
        bn1=_bn_params(num_filters[0]),
        conv2_w=_kaiming_conv(keys[2], 3, 3, num_filters[-1], nOut),
        conv2_b=0.01 * jax.random.normal(keys[3], (nOut,), jnp.float32),
        bn2=_bn_params(nOut),
        blocks=[])
    inplanes = num_filters[0]
    bk = keys[4]
    for li, (planes, nblocks) in enumerate(zip(num_filters, layers)):
        for bi in range(nblocks):
            bk = jax.random.fold_in(bk, li * 100 + bi)
            params['blocks'].append(_make_se_block_params(bk, inplanes, planes))
            inplanes = planes
    return params


# --------------------------------- forward ----------------------------------

def resnet_se_no_head(x, params, *, features='melspectrogram'):
    # x: (B, n_mels, T), positive mel energies
    x = head_instnorm_conv_bn(x, params['in_gamma'], params['in_beta'],
                              params['conv1_w'], params['conv1_b'], params['bn1'],
                              apply_log=(features == 'melspectrogram'))
    for bp in params['blocks']:
        x = se_basic_block(x, bp)
    x = conv2d_bn(x, params['conv2_w'], params['conv2_b'], params['bn2'],
                  stride_h=2)
    return x                                  # NHWC; NCHW == transpose(0,3,1,2)


# --------------------------- pure-JAX reference ------------------------------

def _ref_conv_bn(x, w, bias, bn, *, stride_h, pad, relu_before_bn, eps=1e-5):
    y = jax.lax.conv_general_dilated(
        x, w, window_strides=(stride_h, 1), padding=((pad, pad), (pad, pad)),
        dimension_numbers=('NHWC', 'HWIO', 'NHWC'))
    if bias is not None:
        y = y + bias.reshape(1, 1, 1, -1)
    if relu_before_bn:
        y = jnp.maximum(y, 0.0)
    gamma, beta, rmean, rvar = bn
    inv = gamma / jnp.sqrt(rvar + eps)
    return y * inv + (beta - rmean * inv)


def _ref_block(x, p):
    h = _ref_conv_bn(x, p['conv1_w'], None, p['bn1'],
                     stride_h=1, pad=1, relu_before_bn=True)
    out = _ref_conv_bn(h, p['conv2_w'], None, p['bn2'],
                       stride_h=1, pad=1, relu_before_bn=False)
    pooled = jnp.mean(out, axis=(1, 2))
    hid = jnp.maximum(pooled @ p['se_w1'] + p['se_b1'], 0.0)
    s = jax.nn.sigmoid(hid @ p['se_w2'] + p['se_b2'])
    out = out * s[:, None, None, :]
    res = x
    if p['down_w'] is not None:
        res = _ref_conv_bn(x, p['down_w'], None, p['down_bn'],
                           stride_h=1, pad=0, relu_before_bn=False)
    return jnp.maximum(out + res, 0.0)


def _ref_forward(x, params, *, features='melspectrogram'):
    if features == 'melspectrogram':
        x = jnp.log(x + 1e-6)
        x = x - jnp.mean(x, axis=-1, keepdims=True)
    mu = jnp.mean(x, axis=-1, keepdims=True)
    var = jnp.mean((x - mu) ** 2, axis=-1, keepdims=True)
    x = (x - mu) / jnp.sqrt(var + 1e-5)
    x = x * params['in_gamma'].reshape(1, -1, 1) + params['in_beta'].reshape(1, -1, 1)
    x = x[:, :, :, None]
    x = _ref_conv_bn(x, params['conv1_w'], params['conv1_b'], params['bn1'],
                     stride_h=2, pad=1, relu_before_bn=True)
    for bp in params['blocks']:
        x = _ref_block(x, bp)
    x = _ref_conv_bn(x, params['conv2_w'], params['conv2_b'], params['bn2'],
                     stride_h=2, pad=1, relu_before_bn=True)
    return x


if __name__ == "__main__":
    key = jax.random.PRNGKey(0)
    k_in, k_p = jax.random.split(key)

    # small, forward-consistent shapes
    B, n_mels, T = 2, 16, 16
    num_filters, layers_cfg, nOut = [8, 16], [1, 1], 32

    x = jax.random.uniform(k_in, (B, n_mels, T), jnp.float32, minval=0.1, maxval=2.0)
    params = init_params(k_p, num_filters, layers_cfg, nOut, n_mels)

    out = jax.jit(resnet_se_no_head)(x, params)
    out = jax.block_until_ready(out)

    # conv1 (H stride 2): 16->8 ; conv2 (H stride 2): 8->4 ; W (time) unchanged
    assert out.shape == (B, 4, T, nOut), out.shape
    assert bool(jnp.all(jnp.isfinite(out)))

    # correctness vs. pure-JAX f32 reference (bf16 MXU path -> loose tolerance)
    ref = _ref_forward(x, params)
    assert bool(jnp.allclose(out, ref, atol=1e-1, rtol=1e-1)), \
        float(jnp.max(jnp.abs(out - ref)))

    print("KERNEL_OK")
</pallas_src>

<mosaic_0001>
module attributes {stable_mosaic.version = 11 : i64} {
  func.func @_head_kernel(%arg0: i32, %arg1: memref<1x16x16xf32, #tpu.memory_space<vmem>>, %arg2: memref<8x1xf32, #tpu.memory_space<vmem>>, %arg3: memref<8x1xf32, #tpu.memory_space<vmem>>, %arg4: memref<8x1xf32, #tpu.memory_space<vmem>>, %arg5: memref<8x1xf32, #tpu.memory_space<vmem>>, %arg6: memref<9x8xbf16, #tpu.memory_space<vmem>>, %arg7: memref<1x8xf32, #tpu.memory_space<vmem>>, %arg8: memref<1x8xf32, #tpu.memory_space<vmem>>, %arg9: memref<1x8xf32, #tpu.memory_space<vmem>>, %arg10: memref<1x8x16x8xf32, #tpu.memory_space<vmem>>) attributes {dimension_semantics = [#tpu.dimension_semantics<parallel>], iteration_bounds = array<i64: 2>, scalar_prefetch = 0 : i64, scratch_operands = 0 : i64, tpu.core_type = #tpu.core_type<tc>, window_params = [{transform_indices = @transform_0, window_bounds = array<i64: 1, 16, 16>}, {pipeline_mode = #tpu.pipeline_mode<synchronous>, transform_indices = @transform_1, window_bounds = array<i64: 8, 1>}, {pipeline_mode = #tpu.pipeline_mode<synchronous>, transform_indices = @transform_2, window_bounds = array<i64: 8, 1>}, {pipeline_mode = #tpu.pipeline_mode<synchronous>, transform_indices = @transform_3, window_bounds = array<i64: 8, 1>}, {pipeline_mode = #tpu.pipeline_mode<synchronous>, transform_indices = @transform_4, window_bounds = array<i64: 8, 1>}, {pipeline_mode = #tpu.pipeline_mode<synchronous>, transform_indices = @transform_5, window_bounds = array<i64: 9, 8>}, {pipeline_mode = #tpu.pipeline_mode<synchronous>, transform_indices = @transform_6, window_bounds = array<i64: 1, 8>}, {pipeline_mode = #tpu.pipeline_mode<synchronous>, transform_indices = @transform_7, window_bounds = array<i64: 1, 8>}, {pipeline_mode = #tpu.pipeline_mode<synchronous>, transform_indices = @transform_8, window_bounds = array<i64: 1, 8>}, {transform_indices = @transform_9, window_bounds = array<i64: 1, 8, 16, 8>}]} {
    %c0_i32 = arith.constant 0 : i32
    %c0_i32_0 = arith.constant 0 : i32
    %c0_i32_1 = arith.constant 0 : i32
    %0 = tpu.memref_slice %arg1[%c0_i32, %c0_i32_0, %c0_i32_1] : memref<1x16x16xf32, #tpu.memory_space<vmem>> -> memref<1x16x16xf32, #tpu.memory_space<vmem>>
    %1 = tpu.memref_squeeze %0 : memref<1x16x16xf32, #tpu.memory_space<vmem>> -> memref<16x16xf32, #tpu.memory_space<vmem>>
    %c0 = arith.constant 0 : index
    %c0_2 = arith.constant 0 : index
    %2 = tpu.strided_load %1[%c0, %c0_2] {strides = array<i32: 2, 1>} : memref<16x16xf32, #tpu.memory_space<vmem>>, vector<8x16xf32>
    %c0_3 = arith.constant 0 : index
    %c0_4 = arith.constant 0 : index
    %3 = vector.load %arg2[%c0_3, %c0_4] : memref<8x1xf32, #tpu.memory_space<vmem>>, vector<8x1xf32>
    %c0_5 = arith.constant 0 : index
    %c0_6 = arith.constant 0 : index
    %4 = vector.load %arg3[%c0_5, %c0_6] : memref<8x1xf32, #tpu.memory_space<vmem>>, vector<8x1xf32>
    %cst = arith.constant 9.99999997E-7 : f32
    %5 = vector.broadcast %cst : f32 to vector<8x16xf32>
    %6 = arith.addf %2, %5 : vector<8x16xf32>
    %7 = math.log %6 : vector<8x16xf32>
    %cst_7 = arith.constant dense<0.000000e+00> : vector<8xf32>
    %8 = vector.multi_reduction <add>, %7, %cst_7 [1] : vector<8x16xf32> to vector<8xf32>
    %9 = vector.shape_cast %8 : vector<8xf32> to vector<8x1xf32>
    %cst_8 = arith.constant 1.600000e+01 : f32
    %10 = vector.broadcast %cst_8 : f32 to vector<8x1xf32>
    %11 = arith.divf %9, %10 : vector<8x1xf32>
    %12 = vector.broadcast %11 : vector<8x1xf32> to vector<8x16xf32>
    %13 = arith.subf %7, %12 : vector<8x16xf32>
    %cst_9 = arith.constant dense<0.000000e+00> : vector<8xf32>
    %14 = vector.multi_reduction <add>, %13, %cst_9 [1] : vector<8x16xf32> to vector<8xf32>
    %15 = vector.shape_cast %14 : vector<8xf32> to vector<8x1xf32>
    %cst_10 = arith.constant 1.600000e+01 : f32
    %16 = vector.broadcast %cst_10 : f32 to vector<8x1xf32>
    %17 = arith.divf %15, %16 : vector<8x1xf32>
    %18 = vector.broadcast %17 : vector<8x1xf32> to vector<8x16xf32>
    %19 = arith.subf %13, %18 : vector<8x16xf32>
    %20 = arith.mulf %19, %19 : vector<8x16xf32>
    %cst_11 = arith.constant dense<0.000000e+00> : vector<8xf32>
    %21 = vector.multi_reduction <add>, %20, %cst_11 [1] : vector<8x16xf32> to vector<8xf32>
    %22 = vector.shape_cast %21 : vector<8xf32> to vector<8x1xf32>
    %cst_12 = arith.constant 1.600000e+01 : f32
    %23 = vector.broadcast %cst_12 : f32 to vector<8x1xf32>
    %24 = arith.divf %22, %23 : vector<8x1xf32>
    %25 = vector.broadcast %17 : vector<8x1xf32> to vector<8x16xf32>
    %26 = arith.subf %13, %25 : vector<8x16xf32>
    %cst_13 = arith.constant 9.99999974E-6 : f32
    %27 = vector.broadcast %cst_13 : f32 to vector<8x1xf32>
    %28 = arith.addf %24, %27 : vector<8x1xf32>
    %29 = math.rsqrt %28 : vector<8x1xf32>
    %30 = vector.broadcast %29 : vector<8x1xf32> to vector<8x16xf32>
    %31 = arith.mulf %26, %30 : vector<8x16xf32>
    %32 = vector.broadcast %3 : vector<8x1xf32> to vector<8x16xf32>
    %33 = arith.mulf %31, %32 : vector<8x16xf32>
    %34 = vector.broadcast %4 : vector<8x1xf32> to vector<8x16xf32>
    %35 = arith.addf %33, %34 : vector<8x16xf32>
    %c0_i32_14 = arith.constant 0 : i32
    %c0_i32_15 = arith.constant 0 : i32
    %c0_i32_16 = arith.constant 0 : i32
    %36 = tpu.memref_slice %arg1[%c0_i32_14, %c0_i32_15, %c0_i32_16] : memref<1x16x16xf32, #tpu.memory_space<vmem>> -> memref<1x16x16xf32, #tpu.memory_space<vmem>>
    %37 = tpu.memref_squeeze %36 : memref<1x16x16xf32, #tpu.memory_space<vmem>> -> memref<16x16xf32, #tpu.memory_space<vmem>>
    %c1 = arith.constant 1 : index
    %c0_17 = arith.constant 0 : index
    %38 = tpu.strided_load %37[%c1, %c0_17] {strides = array<i32: 2, 1>} : memref<16x16xf32, #tpu.memory_space<vmem>>, vector<8x16xf32>
    %c0_18 = arith.constant 0 : index
    %c0_19 = arith.constant 0 : index
    %39 = vector.load %arg4[%c0_18, %c0_19] : memref<8x1xf32, #tpu.memory_space<vmem>>, vector<8x1xf32>
    %c0_20 = arith.constant 0 : index
    %c0_21 = arith.constant 0 : index
    %40 = vector.load %arg5[%c0_20, %c0_21] : memref<8x1xf32, #tpu.memory_space<vmem>>, vector<8x1xf32>
    %cst_22 = arith.constant 9.99999997E-7 : f32
    %41 = vector.broadcast %cst_22 : f32 to vector<8x16xf32>
    %42 = arith.addf %38, %41 : vector<8x16xf32>
    %43 = math.log %42 : vector<8x16xf32>
    %cst_23 = arith.constant dense<0.000000e+00> : vector<8xf32>
    %44 = vector.multi_reduction <add>, %43, %cst_23 [1] : vector<8x16xf32> to vector<8xf32>
    %45 = vector.shape_cast %44 : vector<8xf32> to vector<8x1xf32>
    %cst_24 = arith.constant 1.600000e+01 : f32
    %46 = vector.broadcast %cst_24 : f32 to vector<8x1xf32>
    %47 = arith.divf %45, %46 : vector<8x1xf32>
    %48 = vector.broadcast %47 : vector<8x1xf32> to vector<8x16xf32>
    %49 = arith.subf %43, %48 : vector<8x16xf32>
    %cst_25 = arith.constant dense<0.000000e+00> : vector<8xf32>
    %50 = vector.multi_reduction <add>, %49, %cst_25 [1] : vector<8x16xf32> to vector<8xf32>
    %51 = vector.shape_cast %50 : vector<8xf32> to vector<8x1xf32>
    %cst_26 = arith.constant 1.600000e+01 : f32
    %52 = vector.broadcast %cst_26 : f32 to vector<8x1xf32>
    %53 = arith.divf %51, %52 : vector<8x1xf32>
    %54 = vector.broadcast %53 : vector<8x1xf32> to vector<8x16xf32>
    %55 = arith.subf %49, %54 : vector<8x16xf32>
    %56 = arith.mulf %55, %55 : vector<8x16xf32>
    %cst_27 = arith.constant dense<0.000000e+00> : vector<8xf32>
    %57 = vector.multi_reduction <add>, %56, %cst_27 [1] : vector<8x16xf32> to vector<8xf32>
    %58 = vector.shape_cast %57 : vector<8xf32> to vector<8x1xf32>
    %cst_28 = arith.constant 1.600000e+01 : f32
    %59 = vector.broadcast %cst_28 : f32 to vector<8x1xf32>
    %60 = arith.divf %58, %59 : vector<8x1xf32>
    %61 = vector.broadcast %53 : vector<8x1xf32> to vector<8x16xf32>
    %62 = arith.subf %49, %61 : vector<8x16xf32>
    %cst_29 = arith.constant 9.99999974E-6 : f32
    %63 = vector.broadcast %cst_29 : f32 to vector<8x1xf32>
    %64 = arith.addf %60, %63 : vector<8x1xf32>
    %65 = math.rsqrt %64 : vector<8x1xf32>
    %66 = vector.broadcast %65 : vector<8x1xf32> to vector<8x16xf32>
    %67 = arith.mulf %62, %66 : vector<8x16xf32>
    %68 = vector.broadcast %39 : vector<8x1xf32> to vector<8x16xf32>
    %69 = arith.mulf %67, %68 : vector<8x16xf32>
    %70 = vector.broadcast %40 : vector<8x1xf32> to vector<8x16xf32>
    %71 = arith.addf %69, %70 : vector<8x16xf32>
    %cst_30 = arith.constant 0.000000e+00 : f32
    %72 = vector.broadcast %cst_30 : f32 to vector<1x16xf32>
    %73 = vector.extract_strided_slice %71 {offsets = [0, 0], sizes = [7, 16], strides = [1, 1]} : vector<8x16xf32> to vector<7x16xf32>
    %74 = tpu.concatenate %72, %73 in 0 : vector<1x16xf32>, vector<7x16xf32> -> vector<8x16xf32>
    %cst_31 = arith.constant 0.000000e+00 : f32
    %75 = vector.broadcast %cst_31 : f32 to vector<8x1xf32>
    %76 = tpu.concatenate %75, %74, %75 in 1 : vector<8x1xf32>, vector<8x16xf32>, vector<8x1xf32> -> vector<8x18xf32>
    %77 = vector.extract_strided_slice %76 {offsets = [0, 0], sizes = [8, 16], strides = [1, 1]} : vector<8x18xf32> to vector<8x16xf32>
    %78 = vector.shape_cast %77 : vector<8x16xf32> to vector<8x16x1xf32>
    %79 = vector.extract_strided_slice %76 {offsets = [0, 1], sizes = [8, 16], strides = [1, 1]} : vector<8x18xf32> to vector<8x16xf32>
    %80 = vector.shape_cast %79 : vector<8x16xf32> to vector<8x16x1xf32>
    %81 = vector.extract_strided_slice %76 {offsets = [0, 2], sizes = [8, 16], strides = [1, 1]} : vector<8x18xf32> to vector<8x16xf32>
    %82 = vector.shape_cast %81 : vector<8x16xf32> to vector<8x16x1xf32>
    %83 = tpu.concatenate %75, %35, %75 in 1 : vector<8x1xf32>, vector<8x16xf32>, vector<8x1xf32> -> vector<8x18xf32>
    %84 = vector.extract_strided_slice %83 {offsets = [0, 0], sizes = [8, 16], strides = [1, 1]} : vector<8x18xf32> to vector<8x16xf32>
    %85 = vector.shape_cast %84 : vector<8x16xf32> to vector<8x16x1xf32>
    %86 = vector.extract_strided_slice %83 {offsets = [0, 1], sizes = [8, 16], strides = [1, 1]} : vector<8x18xf32> to vector<8x16xf32>
    %87 = vector.shape_cast %86 : vector<8x16xf32> to vector<8x16x1xf32>
    %88 = vector.extract_strided_slice %83 {offsets = [0, 2], sizes = [8, 16], strides = [1, 1]} : vector<8x18xf32> to vector<8x16xf32>
    %89 = vector.shape_cast %88 : vector<8x16xf32> to vector<8x16x1xf32>
    %90 = tpu.concatenate %75, %71, %75 in 1 : vector<8x1xf32>, vector<8x16xf32>, vector<8x1xf32> -> vector<8x18xf32>
    %91 = vector.extract_strided_slice %90 {offsets = [0, 0], sizes = [8, 16], strides = [1, 1]} : vector<8x18xf32> to vector<8x16xf32>
    %92 = vector.shape_cast %91 : vector<8x16xf32> to vector<8x16x1xf32>
    %93 = vector.extract_strided_slice %90 {offsets = [0, 1], sizes = [8, 16], strides = [1, 1]} : vector<8x18xf32> to vector<8x16xf32>
    %94 = vector.shape_cast %93 : vector<8x16xf32> to vector<8x16x1xf32>
    %95 = vector.extract_strided_slice %90 {offsets = [0, 2], sizes = [8, 16], strides = [1, 1]} : vector<8x18xf32> to vector<8x16xf32>
    %96 = vector.shape_cast %95 : vector<8x16xf32> to vector<8x16x1xf32>
    %97 = tpu.concatenate %78, %80, %82, %85, %87, %89, %92, %94, %96 in 2 : vector<8x16x1xf32>, vector<8x16x1xf32>, vector<8x16x1xf32>, vector<8x16x1xf32>, vector<8x16x1xf32>, vector<8x16x1xf32>, vector<8x16x1xf32>, vector<8x16x1xf32>, vector<8x16x1xf32> -> vector<8x16x9xf32>
    %98 = vector.shape_cast %97 : vector<8x16x9xf32> to vector<128x9xf32>
    %99 = arith.truncf %98 : vector<128x9xf32> to vector<128x9xbf16>
    %c0_32 = arith.constant 0 : index
    %c0_33 = arith.constant 0 : index
    %100 = vector.load %arg6[%c0_32, %c0_33] : memref<9x8xbf16, #tpu.memory_space<vmem>>, vector<9x8xbf16>
    %cst_34 = arith.constant dense<0.000000e+00> : vector<128x8xf32>
    %101 = tpu.matmul %99, %100, %cst_34 {dimension_numbers = #tpu.dot_dimension_numbers<[1], [0], [0], [1], [0, 0, 1, 1], [], []>} : vector<128x9xbf16>, vector<9x8xbf16>, vector<128x8xf32> -> vector<128x8xf32>
    %c0_35 = arith.constant 0 : index
    %c0_36 = arith.constant 0 : index
    %102 = vector.load %arg7[%c0_35, %c0_36] : memref<1x8xf32, #tpu.memory_space<vmem>>, vector<1x8xf32>
    %103 = vector.broadcast %102 : vector<1x8xf32> to vector<128x8xf32>
    %104 = arith.addf %101, %103 : vector<128x8xf32>
    %cst_37 = arith.constant 0.000000e+00 : f32
    %105 = vector.broadcast %cst_37 : f32 to vector<128x8xf32>
    %106 = arith.maximumf %104, %105 : vector<128x8xf32>
    %c0_38 = arith.constant 0 : index
    %c0_39 = arith.constant 0 : index
    %107 = vector.load %arg8[%c0_38, %c0_39] : memref<1x8xf32, #tpu.memory_space<vmem>>, vector<1x8xf32>
    %108 = vector.broadcast %107 : vector<1x8xf32> to vector<128x8xf32>
    %109 = arith.mulf %106, %108 : vector<128x8xf32>
    %c0_40 = arith.constant 0 : index
    %c0_41 = arith.constant 0 : index
    %110 = vector.load %arg9[%c0_40, %c0_41] : memref<1x8xf32, #tpu.memory_space<vmem>>, vector<1x8xf32>
    %111 = vector.broadcast %110 : vector<1x8xf32> to vector<128x8xf32>
    %112 = arith.addf %109, %111 : vector<128x8xf32>
    %113 = vector.shape_cast %112 : vector<128x8xf32> to vector<1x8x16x8xf32>
    %c0_42 = arith.constant 0 : index
    %c0_43 = arith.constant 0 : index
    %c0_44 = arith.constant 0 : index
    %c0_45 = arith.constant 0 : index
    %114 = vector.load %arg10[%c0_42, %c0_43, %c0_44, %c0_45] : memref<1x8x16x8xf32, #tpu.memory_space<vmem>>, vector<1x8x16x8xf32>
    tpu.vector_store %arg10[%c0_42, %c0_43, %c0_44, %c0_45], %113 {strides = array<i32>} : memref<1x8x16x8xf32, #tpu.memory_space<vmem>>, vector<1x8x16x8xf32>,
    return
  }
  func.func @transform_0(%arg0: i32) -> (i32, i32, i32) {
    %c0_i32 = arith.constant 0 : i32
    %c0_i32_0 = arith.constant 0 : i32
    %c0_i32_1 = arith.constant 0 : i32
    return %arg0, %c0_i32, %c0_i32_0 : i32, i32, i32
  }
  func.func @transform_1(%arg0: i32) -> (i32, i32) {
    %c0_i32 = arith.constant 0 : i32
    %c0_i32_0 = arith.constant 0 : i32
    %c0_i32_1 = arith.constant 0 : i32
    return %c0_i32, %c0_i32_0 : i32, i32
  }
  func.func @transform_2(%arg0: i32) -> (i32, i32) {
    %c0_i32 = arith.constant 0 : i32
    %c0_i32_0 = arith.constant 0 : i32
    %c0_i32_1 = arith.constant 0 : i32
    return %c0_i32, %c0_i32_0 : i32, i32
  }
  func.func @transform_3(%arg0: i32) -> (i32, i32) {
    %c0_i32 = arith.constant 0 : i32
    %c0_i32_0 = arith.constant 0 : i32
    %c0_i32_1 = arith.constant 0 : i32
    return %c0_i32, %c0_i32_0 : i32, i32
  }
  func.func @transform_4(%arg0: i32) -> (i32, i32) {
    %c0_i32 = arith.constant 0 : i32
    %c0_i32_0 = arith.constant 0 : i32
    %c0_i32_1 = arith.constant 0 : i32
    return %c0_i32, %c0_i32_0 : i32, i32
  }
  func.func @transform_5(%arg0: i32) -> (i32, i32) {
    %c0_i32 = arith.constant 0 : i32
    %c0_i32_0 = arith.constant 0 : i32
    %c0_i32_1 = arith.constant 0 : i32
    return %c0_i32, %c0_i32_0 : i32, i32
  }
  func.func @transform_6(%arg0: i32) -> (i32, i32) {
    %c0_i32 = arith.constant 0 : i32
    %c0_i32_0 = arith.constant 0 : i32
    %c0_i32_1 = arith.constant 0 : i32
    return %c0_i32, %c0_i32_0 : i32, i32
  }
  func.func @transform_7(%arg0: i32) -> (i32, i32) {
    %c0_i32 = arith.constant 0 : i32
    %c0_i32_0 = arith.constant 0 : i32
    %c0_i32_1 = arith.constant 0 : i32
    return %c0_i32, %c0_i32_0 : i32, i32
  }
  func.func @transform_8(%arg0: i32) -> (i32, i32) {
    %c0_i32 = arith.constant 0 : i32
    %c0_i32_0 = arith.constant 0 : i32
    %c0_i32_1 = arith.constant 0 : i32
    return %c0_i32, %c0_i32_0 : i32, i32
  }
  func.func @transform_9(%arg0: i32) -> (i32, i32, i32, i32) {
    %c0_i32 = arith.constant 0 : i32
    %c0_i32_0 = arith.constant 0 : i32
    %c0_i32_1 = arith.constant 0 : i32
    %c0_i32_2 = arith.constant 0 : i32
    return %arg0, %c0_i32, %c0_i32_0, %c0_i32_1 : i32, i32, i32, i32
  }
}

module attributes {stable_mosaic.version = 11 : i64} {
  func.func @_se_block_kernel(%arg0: i32, %arg1: memref<1x8x16x8xf32, #tpu.memory_space<vmem>>, %arg2: memref<72x8xbf16, #tpu.memory_space<vmem>>, %arg3: memref<1x8xf32, #tpu.memory_space<vmem>>, %arg4: memref<1x8xf32, #tpu.memory_space<vmem>>, %arg5: memref<72x8xbf16, #tpu.memory_space<vmem>>, %arg6: memref<1x8xf32, #tpu.memory_space<vmem>>, %arg7: memref<1x8xf32, #tpu.memory_space<vmem>>, %arg8: memref<8x1xf32, #tpu.memory_space<vmem>>, %arg9: memref<1x1xf32, #tpu.memory_space<vmem>>, %arg10: memref<1x8xf32, #tpu.memory_space<vmem>>, %arg11: memref<1x8xf32, #tpu.memory_space<vmem>>, %arg12: memref<1x8x16x8xf32, #tpu.memory_space<vmem>>, %arg13: memref<10x18x8xf32, #tpu.memory_space<vmem>>, %arg14: memref<10x18x8xf32, #tpu.memory_space<vmem>>) attributes {dimension_semantics = [#tpu.dimension_semantics<parallel>], iteration_bounds = array<i64: 2>, scalar_prefetch = 0 : i64, scratch_operands = 2 : i64, tpu.core_type = #tpu.core_type<tc>, window_params = [{transform_indices = @transform_0, window_bounds = array<i64: 1, 8, 16, 8>}, {pipeline_mode = #tpu.pipeline_mode<synchronous>, transform_indices = @transform_1, window_bounds = array<i64: 72, 8>}, {pipeline_mode = #tpu.pipeline_mode<synchronous>, transform_indices = @transform_2, window_bounds = array<i64: 1, 8>}, {pipeline_mode = #tpu.pipeline_mode<synchronous>, transform_indices = @transform_3, window_bounds = array<i64: 1, 8>}, {pipeline_mode = #tpu.pipeline_mode<synchronous>, transform_indices = @transform_4, window_bounds = array<i64: 72, 8>}, {pipeline_mode = #tpu.pipeline_mode<synchronous>, transform_indices = @transform_5, window_bounds = array<i64: 1, 8>}, {pipeline_mode = #tpu.pipeline_mode<synchronous>, transform_indices = @transform_6, window_bounds = array<i64: 1, 8>}, {pipeline_mode = #tpu.pipeline_mode<synchronous>, transform_indices = @transform_7, window_bounds = array<i64: 8, 1>}, {pipeline_mode = #tpu.pipeline_mode<synchronous>, transform_indices = @transform_8, window_bounds = array<i64: 1, 1>}, {pipeline_mode = #tpu.pipeline_mode<synchronous>, transform_indices = @transform_9, window_bounds = array<i64: 1, 8>}, {pipeline_mode = #tpu.pipeline_mode<synchronous>, transform_indices = @transform_10, window_bounds = array<i64: 1, 8>}, {transform_indices = @transform_11, window_bounds = array<i64: 1, 8, 16, 8>}]} {
    %c0 = arith.constant 0 : index
    %c0_0 = arith.constant 0 : index
    %c0_1 = arith.constant 0 : index
    %c0_2 = arith.constant 0 : index
    %0 = vector.load %arg1[%c0, %c0_0, %c0_1, %c0_2] : memref<1x8x16x8xf32, #tpu.memory_space<vmem>>, vector<1x8x16x8xf32>
    %1 = vector.shape_cast %0 : vector<1x8x16x8xf32> to vector<8x16x8xf32>
    %cst = arith.constant 0.000000e+00 : f32
    %2 = vector.broadcast %cst : f32 to vector<10x18x8xf32>
    %c0_3 = arith.constant 0 : index
    %c0_4 = arith.constant 0 : index
    %c0_5 = arith.constant 0 : index
    %3 = vector.load %arg13[%c0_3, %c0_4, %c0_5] : memref<10x18x8xf32, #tpu.memory_space<vmem>>, vector<10x18x8xf32>
    tpu.vector_store %arg13[%c0_3, %c0_4, %c0_5], %2 {strides = array<i32>} : memref<10x18x8xf32, #tpu.memory_space<vmem>>, vector<10x18x8xf32>,
    %c1 = arith.constant 1 : index
    %c1_6 = arith.constant 1 : index
    %c0_7 = arith.constant 0 : index
    %4 = vector.load %arg13[%c1, %c1_6, %c0_7] : memref<10x18x8xf32, #tpu.memory_space<vmem>>, vector<8x16x8xf32>
    tpu.vector_store %arg13[%c1, %c1_6, %c0_7], %1 {strides = array<i32>} : memref<10x18x8xf32, #tpu.memory_space<vmem>>, vector<8x16x8xf32>,
    %c0_8 = arith.constant 0 : index
    %c0_9 = arith.constant 0 : index
    %5 = vector.load %arg2[%c0_8, %c0_9] : memref<72x8xbf16, #tpu.memory_space<vmem>>, vector<72x8xbf16>
    %c0_10 = arith.constant 0 : index
    %c0_11 = arith.constant 0 : index
    %c0_12 = arith.constant 0 : index
    %6 = vector.load %arg13[%c0_10, %c0_11, %c0_12] : memref<10x18x8xf32, #tpu.memory_space<vmem>>, vector<8x18x8xf32>
    %7 = vector.extract_strided_slice %6 {offsets = [0, 0, 0], sizes = [8, 16, 8], strides = [1, 1, 1]} : vector<8x18x8xf32> to vector<8x16x8xf32>
    %8 = vector.extract_strided_slice %6 {offsets = [0, 1, 0], sizes = [8, 16, 8], strides = [1, 1, 1]} : vector<8x18x8xf32> to vector<8x16x8xf32>
    %9 = vector.extract_strided_slice %6 {offsets = [0, 2, 0], sizes = [8, 16, 8], strides = [1, 1, 1]} : vector<8x18x8xf32> to vector<8x16x8xf32>
    %c1_13 = arith.constant 1 : index
    %c0_14 = arith.constant 0 : index
    %c0_15 = arith.constant 0 : index
    %10 = vector.load %arg13[%c1_13, %c0_14, %c0_15] : memref<10x18x8xf32, #tpu.memory_space<vmem>>, vector<8x18x8xf32>
    %11 = vector.extract_strided_slice %10 {offsets = [0, 0, 0], sizes = [8, 16, 8], strides = [1, 1, 1]} : vector<8x18x8xf32> to vector<8x16x8xf32>
    %12 = vector.extract_strided_slice %10 {offsets = [0, 1, 0], sizes = [8, 16, 8], strides = [1, 1, 1]} : vector<8x18x8xf32> to vector<8x16x8xf32>
    %13 = vector.extract_strided_slice %10 {offsets = [0, 2, 0], sizes = [8, 16, 8], strides = [1, 1, 1]} : vector<8x18x8xf32> to vector<8x16x8xf32>
    %c2 = arith.constant 2 : index
    %c0_16 = arith.constant 0 : index
    %c0_17 = arith.constant 0 : index
    %14 = vector.load %arg13[%c2, %c0_16, %c0_17] : memref<10x18x8xf32, #tpu.memory_space<vmem>>, vector<8x18x8xf32>
    %15 = vector.extract_strided_slice %14 {offsets = [0, 0, 0], sizes = [8, 16, 8], strides = [1, 1, 1]} : vector<8x18x8xf32> to vector<8x16x8xf32>
    %16 = vector.extract_strided_slice %14 {offsets = [0, 1, 0], sizes = [8, 16, 8], strides = [1, 1, 1]} : vector<8x18x8xf32> to vector<8x16x8xf32>
    %17 = vector.extract_strided_slice %14 {offsets = [0, 2, 0], sizes = [8, 16, 8], strides = [1, 1, 1]} : vector<8x18x8xf32> to vector<8x16x8xf32>
    %18 = tpu.concatenate %7, %8, %9, %11, %12, %13, %15, %16, %17 in 2 : vector<8x16x8xf32>, vector<8x16x8xf32>, vector<8x16x8xf32>, vector<8x16x8xf32>, vector<8x16x8xf32>, vector<8x16x8xf32>, vector<8x16x8xf32>, vector<8x16x8xf32>, vector<8x16x8xf32> -> vector<8x16x72xf32>
    %19 = vector.shape_cast %18 : vector<8x16x72xf32> to vector<128x72xf32>
    %20 = arith.truncf %19 : vector<128x72xf32> to vector<128x72xbf16>
    %cst_18 = arith.constant dense<0.000000e+00> : vector<128x8xf32>
    %21 = tpu.matmul %20, %5, %cst_18 {dimension_numbers = #tpu.dot_dimension_numbers<[1], [0], [0], [1], [0, 0, 1, 1], [], []>} : vector<128x72xbf16>, vector<72x8xbf16>, vector<128x8xf32> -> vector<128x8xf32>
    %cst_19 = arith.constant 0.000000e+00 : f32
    %22 = vector.broadcast %cst_19 : f32 to vector<128x8xf32>
    %23 = arith.maximumf %21, %22 : vector<128x8xf32>
    %c0_20 = arith.constant 0 : index
    %c0_21 = arith.constant 0 : index
    %24 = vector.load %arg3[%c0_20, %c0_21] : memref<1x8xf32, #tpu.memory_space<vmem>>, vector<1x8xf32>
    %25 = vector.broadcast %24 : vector<1x8xf32> to vector<128x8xf32>
    %26 = arith.mulf %23, %25 : vector<128x8xf32>
    %c0_22 = arith.constant 0 : index
    %c0_23 = arith.constant 0 : index
    %27 = vector.load %arg4[%c0_22, %c0_23] : memref<1x8xf32, #tpu.memory_space<vmem>>, vector<1x8xf32>
    %28 = vector.broadcast %27 : vector<1x8xf32> to vector<128x8xf32>
    %29 = arith.addf %26, %28 : vector<128x8xf32>
    %30 = vector.shape_cast %29 : vector<128x8xf32> to vector<8x16x8xf32>
    %cst_24 = arith.constant 0.000000e+00 : f32
    %31 = vector.broadcast %cst_24 : f32 to vector<10x18x8xf32>
    %c0_25 = arith.constant 0 : index
    %c0_26 = arith.constant 0 : index
    %c0_27 = arith.constant 0 : index
    %32 = vector.load %arg14[%c0_25, %c0_26, %c0_27] : memref<10x18x8xf32, #tpu.memory_space<vmem>>, vector<10x18x8xf32>
    tpu.vector_store %arg14[%c0_25, %c0_26, %c0_27], %31 {strides = array<i32>} : memref<10x18x8xf32, #tpu.memory_space<vmem>>, vector<10x18x8xf32>,
    %c1_28 = arith.constant 1 : index
    %c1_29 = arith.constant 1 : index
    %c0_30 = arith.constant 0 : index
    %33 = vector.load %arg14[%c1_28, %c1_29, %c0_30] : memref<10x18x8xf32, #tpu.memory_space<vmem>>, vector<8x16x8xf32>
    tpu.vector_store %arg14[%c1_28, %c1_29, %c0_30], %30 {strides = array<i32>} : memref<10x18x8xf32, #tpu.memory_space<vmem>>, vector<8x16x8xf32>,
    %c0_31 = arith.constant 0 : index
    %c0_32 = arith.constant 0 : index
    %34 = vector.load %arg5[%c0_31, %c0_32] : memref<72x8xbf16, #tpu.memory_space<vmem>>, vector<72x8xbf16>
    %c0_33 = arith.constant 0 : index
    %c0_34 = arith.constant 0 : index
    %c0_35 = arith.constant 0 : index
    %35 = vector.load %arg14[%c0_33, %c0_34, %c0_35] : memref<10x18x8xf32, #tpu.memory_space<vmem>>, vector<8x18x8xf32>
    %36 = vector.extract_strided_slice %35 {offsets = [0, 0, 0], sizes = [8, 16, 8], strides = [1, 1, 1]} : vector<8x18x8xf32> to vector<8x16x8xf32>
    %37 = vector.extract_strided_slice %35 {offsets = [0, 1, 0], sizes = [8, 16, 8], strides = [1, 1, 1]} : vector<8x18x8xf32> to vector<8x16x8xf32>
    %38 = vector.extract_strided_slice %35 {offsets = [0, 2, 0], sizes = [8, 16, 8], strides = [1, 1, 1]} : vector<8x18x8xf32> to vector<8x16x8xf32>
    %c1_36 = arith.constant 1 : index
    %c0_37 = arith.constant 0 : index
    %c0_38 = arith.constant 0 : index
    %39 = vector.load %arg14[%c1_36, %c0_37, %c0_38] : memref<10x18x8xf32, #tpu.memory_space<vmem>>, vector<8x18x8xf32>
    %40 = vector.extract_strided_slice %39 {offsets = [0, 0, 0], sizes = [8, 16, 8], strides = [1, 1, 1]} : vector<8x18x8xf32> to vector<8x16x8xf32>
    %41 = vector.extract_strided_slice %39 {offsets = [0, 1, 0], sizes = [8, 16, 8], strides = [1, 1, 1]} : vector<8x18x8xf32> to vector<8x16x8xf32>
    %42 = vector.extract_strided_slice %39 {offsets = [0, 2, 0], sizes = [8, 16, 8], strides = [1, 1, 1]} : vector<8x18x8xf32> to vector<8x16x8xf32>
    %c2_39 = arith.constant 2 : index
    %c0_40 = arith.constant 0 : index
    %c0_41 = arith.constant 0 : index
    %43 = vector.load %arg14[%c2_39, %c0_40, %c0_41] : memref<10x18x8xf32, #tpu.memory_space<vmem>>, vector<8x18x8xf32>
    %44 = vector.extract_strided_slice %43 {offsets = [0, 0, 0], sizes = [8, 16, 8], strides = [1, 1, 1]} : vector<8x18x8xf32> to vector<8x16x8xf32>
    %45 = vector.extract_strided_slice %43 {offsets = [0, 1, 0], sizes = [8, 16, 8], strides = [1, 1, 1]} : vector<8x18x8xf32> to vector<8x16x8xf32>
    %46 = vector.extract_strided_slice %43 {offsets = [0, 2, 0], sizes = [8, 16, 8], strides = [1, 1, 1]} : vector<8x18x8xf32> to vector<8x16x8xf32>
    %47 = tpu.concatenate %36, %37, %38, %40, %41, %42, %44, %45, %46 in 2 : vector<8x16x8xf32>, vector<8x16x8xf32>, vector<8x16x8xf32>, vector<8x16x8xf32>, vector<8x16x8xf32>, vector<8x16x8xf32>, vector<8x16x8xf32>, vector<8x16x8xf32>, vector<8x16x8xf32> -> vector<8x16x72xf32>
    %48 = vector.shape_cast %47 : vector<8x16x72xf32> to vector<128x72xf32>
    %49 = arith.truncf %48 : vector<128x72xf32> to vector<128x72xbf16>
    %cst_42 = arith.constant dense<0.000000e+00> : vector<128x8xf32>
    %50 = tpu.matmul %49, %34, %cst_42 {dimension_numbers = #tpu.dot_dimension_numbers<[1], [0], [0], [1], [0, 0, 1, 1], [], []>} : vector<128x72xbf16>, vector<72x8xbf16>, vector<128x8xf32> -> vector<128x8xf32>
    %c0_43 = arith.constant 0 : index
    %c0_44 = arith.constant 0 : index
    %51 = vector.load %arg6[%c0_43, %c0_44] : memref<1x8xf32, #tpu.memory_space<vmem>>, vector<1x8xf32>
    %52 = vector.broadcast %51 : vector<1x8xf32> to vector<128x8xf32>
    %53 = arith.mulf %50, %52 : vector<128x8xf32>
    %c0_45 = arith.constant 0 : index
    %c0_46 = arith.constant 0 : index
    %54 = vector.load %arg7[%c0_45, %c0_46] : memref<1x8xf32, #tpu.memory_space<vmem>>, vector<1x8xf32>
    %55 = vector.broadcast %54 : vector<1x8xf32> to vector<128x8xf32>
    %56 = arith.addf %53, %55 : vector<128x8xf32>
    %cst_47 = arith.constant dense<0.000000e+00> : vector<8xf32>
    %57 = vector.multi_reduction <add>, %56, %cst_47 [0] : vector<128x8xf32> to vector<8xf32>
    %58 = vector.shape_cast %57 : vector<8xf32> to vector<1x8xf32>
    %cst_48 = arith.constant 1.280000e+02 : f32
    %59 = vector.broadcast %cst_48 : f32 to vector<1x8xf32>
    %60 = arith.divf %58, %59 : vector<1x8xf32>
    %c0_49 = arith.constant 0 : index
    %c0_50 = arith.constant 0 : index
    %61 = vector.load %arg8[%c0_49, %c0_50] : memref<8x1xf32, #tpu.memory_space<vmem>>, vector<8x1xf32>
    %cst_51 = arith.constant dense<0.000000e+00> : vector<1x1xf32>
    %62 = tpu.matmul %60, %61, %cst_51 {dimension_numbers = #tpu.dot_dimension_numbers<[1], [0], [0], [1], [0, 0, 1, 1], [], []>} : vector<1x8xf32>, vector<8x1xf32>, vector<1x1xf32> -> vector<1x1xf32>
    %c0_52 = arith.constant 0 : index
    %c0_53 = arith.constant 0 : index
    %63 = vector.load %arg9[%c0_52, %c0_53] : memref<1x1xf32, #tpu.memory_space<vmem>>, vector<1x1xf32>
    %64 = arith.addf %62, %63 : vector<1x1xf32>
    %cst_54 = arith.constant 0.000000e+00 : f32
    %65 = vector.broadcast %cst_54 : f32 to vector<1x1xf32>
    %66 = arith.maximumf %64, %65 : vector<1x1xf32>
    %c0_55 = arith.constant 0 : index
    %c0_56 = arith.constant 0 : index
    %67 = vector.load %arg10[%c0_55, %c0_56] : memref<1x8xf32, #tpu.memory_space<vmem>>, vector<1x8xf32>
    %cst_57 = arith.constant dense<0.000000e+00> : vector<1x8xf32>
    %68 = tpu.matmul %66, %67, %cst_57 {dimension_numbers = #tpu.dot_dimension_numbers<[1], [0], [0], [1], [0, 0, 1, 1], [], []>} : vector<1x1xf32>, vector<1x8xf32>, vector<1x8xf32> -> vector<1x8xf32>
    %c0_58 = arith.constant 0 : index
    %c0_59 = arith.constant 0 : index
    %69 = vector.load %arg11[%c0_58, %c0_59] : memref<1x8xf32, #tpu.memory_space<vmem>>, vector<1x8xf32>
    %70 = arith.addf %68, %69 : vector<1x8xf32>
    %71 = arith.negf %70 : vector<1x8xf32>
    %72 = math.exp %71 : vector<1x8xf32>
    %cst_60 = arith.constant 1.000000e+00 : f32
    %73 = vector.broadcast %cst_60 : f32 to vector<1x8xf32>
    %74 = arith.addf %73, %72 : vector<1x8xf32>
    %75 = arith.divf %73, %74 : vector<1x8xf32>
    %c0_61 = arith.constant 0 : index
    %c0_62 = arith.constant 0 : index
    %c0_63 = arith.constant 0 : index
    %c0_64 = arith.constant 0 : index
    %76 = vector.load %arg1[%c0_61, %c0_62, %c0_63, %c0_64] : memref<1x8x16x8xf32, #tpu.memory_space<vmem>>, vector<1x8x16x8xf32>
    %77 = vector.shape_cast %76 : vector<1x8x16x8xf32> to vector<8x16x8xf32>
    %78 = vector.shape_cast %77 : vector<8x16x8xf32> to vector<128x8xf32>
    %79 = vector.broadcast %75 : vector<1x8xf32> to vector<128x8xf32>
    %80 = arith.mulf %56, %79 : vector<128x8xf32>
    %81 = arith.addf %80, %78 : vector<128x8xf32>
    %cst_65 = arith.constant 0.000000e+00 : f32
    %82 = vector.broadcast %cst_65 : f32 to vector<128x8xf32>
    %83 = arith.maximumf %81, %82 : vector<128x8xf32>
    %84 = vector.shape_cast %83 : vector<128x8xf32> to vector<1x8x16x8xf32>
    %c0_66 = arith.constant 0 : index
    %c0_67 = arith.constant 0 : index
    %c0_68 = arith.constant 0 : index
    %c0_69 = arith.constant 0 : index
    %85 = vector.load %arg12[%c0_66, %c0_67, %c0_68, %c0_69] : memref<1x8x16x8xf32, #tpu.memory_space<vmem>>, vector<1x8x16x8xf32>
    tpu.vector_store %arg12[%c0_66, %c0_67, %c0_68, %c0_69], %84 {strides = array<i32>} : memref<1x8x16x8xf32, #tpu.memory_space<vmem>>, vector<1x8x16x8xf32>,
    return
  }
  func.func @transform_0(%arg0: i32) -> (i32, i32, i32, i32) {
    %c0_i32 = arith.constant 0 : i32
    %c0_i32_0 = arith.constant 0 : i32
    %c0_i32_1 = arith.constant 0 : i32
    %c0_i32_2 = arith.constant 0 : i32
    return %arg0, %c0_i32, %c0_i32_0, %c0_i32_1 : i32, i32, i32, i32
  }
  func.func @transform_1(%arg0: i32) -> (i32, i32) {
    %c0_i32 = arith.constant 0 : i32
    %c0_i32_0 = arith.constant 0 : i32
    %c0_i32_1 = arith.constant 0 : i32
    return %c0_i32, %c0_i32_0 : i32, i32
  }
  func.func @transform_2(%arg0: i32) -> (i32, i32) {
    %c0_i32 = arith.constant 0 : i32
    %c0_i32_0 = arith.constant 0 : i32
    %c0_i32_1 = arith.constant 0 : i32
    return %c0_i32, %c0_i32_0 : i32, i32
  }
  func.func @transform_3(%arg0: i32) -> (i32, i32) {
    %c0_i32 = arith.constant 0 : i32
    %c0_i32_0 = arith.constant 0 : i32
    %c0_i32_1 = arith.constant 0 : i32
    return %c0_i32, %c0_i32_0 : i32, i32
  }
  func.func @transform_4(%arg0: i32) -> (i32, i32) {
    %c0_i32 = arith.constant 0 : i32
    %c0_i32_0 = arith.constant 0 : i32
    %c0_i32_1 = arith.constant 0 : i32
    return %c0_i32, %c0_i32_0 : i32, i32
  }
  func.func @transform_5(%arg0: i32) -> (i32, i32) {
    %c0_i32 = arith.constant 0 : i32
    %c0_i32_0 = arith.constant 0 : i32
    %c0_i32_1 = arith.constant 0 : i32
    return %c0_i32, %c0_i32_0 : i32, i32
  }
  func.func @transform_6(%arg0: i32) -> (i32, i32) {
    %c0_i32 = arith.constant 0 : i32
    %c0_i32_0 = arith.constant 0 : i32
    %c0_i32_1 = arith.constant 0 : i32
    return %c0_i32, %c0_i32_0 : i32, i32
  }
  func.func @transform_7(%arg0: i32) -> (i32, i32) {
    %c0_i32 = arith.constant 0 : i32
    %c0_i32_0 = arith.constant 0 : i32
    %c0_i32_1 = arith.constant 0 : i32
    return %c0_i32, %c0_i32_0 : i32, i32
  }
  func.func @transform_8(%arg0: i32) -> (i32, i32) {
    %c0_i32 = arith.constant 0 : i32
    %c0_i32_0 = arith.constant 0 : i32
    %c0_i32_1 = arith.constant 0 : i32
    return %c0_i32, %c0_i32_0 : i32, i32
  }
  func.func @transform_9(%arg0: i32) -> (i32, i32) {
    %c0_i32 = arith.constant 0 : i32
    %c0_i32_0 = arith.constant 0 : i32
    %c0_i32_1 = arith.constant 0 : i32
    return %c0_i32, %c0_i32_0 : i32, i32
  }
  func.func @transform_10(%arg0: i32) -> (i32, i32) {
    %c0_i32 = arith.constant 0 : i32
    %c0_i32_0 = arith.constant 0 : i32
    %c0_i32_1 = arith.constant 0 : i32
    return %c0_i32, %c0_i32_0 : i32, i32
  }
  func.func @transform_11(%arg0: i32) -> (i32, i32, i32, i32) {
    %c0_i32 = arith.constant 0 : i32
    %c0_i32_0 = arith.constant 0 : i32
    %c0_i32_1 = arith.constant 0 : i32
    %c0_i32_2 = arith.constant 0 : i32
    return %arg0, %c0_i32, %c0_i32_0, %c0_i32_1 : i32, i32, i32, i32
  }
}

module attributes {stable_mosaic.version = 11 : i64} {
  func.func @_se_block_kernel(%arg0: i32, %arg1: memref<1x8x16x8xf32, #tpu.memory_space<vmem>>, %arg2: memref<72x16xbf16, #tpu.memory_space<vmem>>, %arg3: memref<1x16xf32, #tpu.memory_space<vmem>>, %arg4: memref<1x16xf32, #tpu.memory_space<vmem>>, %arg5: memref<144x16xbf16, #tpu.memory_space<vmem>>, %arg6: memref<1x16xf32, #tpu.memory_space<vmem>>, %arg7: memref<1x16xf32, #tpu.memory_space<vmem>>, %arg8: memref<16x2xf32, #tpu.memory_space<vmem>>, %arg9: memref<1x2xf32, #tpu.memory_space<vmem>>, %arg10: memref<2x16xf32, #tpu.memory_space<vmem>>, %arg11: memref<1x16xf32, #tpu.memory_space<vmem>>, %arg12: memref<8x16xbf16, #tpu.memory_space<vmem>>, %arg13: memref<1x16xf32, #tpu.memory_space<vmem>>, %arg14: memref<1x16xf32, #tpu.memory_space<vmem>>, %arg15: memref<1x8x16x16xf32, #tpu.memory_space<vmem>>, %arg16: memref<10x18x8xf32, #tpu.memory_space<vmem>>, %arg17: memref<10x18x16xf32, #tpu.memory_space<vmem>>) attributes {dimension_semantics = [#tpu.dimension_semantics<parallel>], iteration_bounds = array<i64: 2>, scalar_prefetch = 0 : i64, scratch_operands = 2 : i64, tpu.core_type = #tpu.core_type<tc>, window_params = [{transform_indices = @transform_0, window_bounds = array<i64: 1, 8, 16, 8>}, {pipeline_mode = #tpu.pipeline_mode<synchronous>, transform_indices = @transform_1, window_bounds = array<i64: 72, 16>}, {pipeline_mode = #tpu.pipeline_mode<synchronous>, transform_indices = @transform_2, window_bounds = array<i64: 1, 16>}, {pipeline_mode = #tpu.pipeline_mode<synchronous>, transform_indices = @transform_3, window_bounds = array<i64: 1, 16>}, {pipeline_mode = #tpu.pipeline_mode<synchronous>, transform_indices = @transform_4, window_bounds = array<i64: 144, 16>}, {pipeline_mode = #tpu.pipeline_mode<synchronous>, transform_indices = @transform_5, window_bounds = array<i64: 1, 16>}, {pipeline_mode = #tpu.pipeline_mode<synchronous>, transform_indices = @transform_6, window_bounds = array<i64: 1, 16>}, {pipeline_mode = #tpu.pipeline_mode<synchronous>, transform_indices = @transform_7, window_bounds = array<i64: 16, 2>}, {pipeline_mode = #tpu.pipeline_mode<synchronous>, transform_indices = @transform_8, window_bounds = array<i64: 1, 2>}, {pipeline_mode = #tpu.pipeline_mode<synchronous>, transform_indices = @transform_9, window_bounds = array<i64: 2, 16>}, {pipeline_mode = #tpu.pipeline_mode<synchronous>, transform_indices = @transform_10, window_bounds = array<i64: 1, 16>}, {pipeline_mode = #tpu.pipeline_mode<synchronous>, transform_indices = @transform_11, window_bounds = array<i64: 8, 16>}, {pipeline_mode = #tpu.pipeline_mode<synchronous>, transform_indices = @transform_12, window_bounds = array<i64: 1, 16>}, {pipeline_mode = #tpu.pipeline_mode<synchronous>, transform_indices = @transform_13, window_bounds = array<i64: 1, 16>}, {transform_indices = @transform_14, window_bounds = array<i64: 1, 8, 16, 16>}]} {
    %c0 = arith.constant 0 : index
    %c0_0 = arith.constant 0 : index
    %c0_1 = arith.constant 0 : index
    %c0_2 = arith.constant 0 : index
    %0 = vector.load %arg1[%c0, %c0_0, %c0_1, %c0_2] : memref<1x8x16x8xf32, #tpu.memory_space<vmem>>, vector<1x8x16x8xf32>
    %1 = vector.shape_cast %0 : vector<1x8x16x8xf32> to vector<8x16x8xf32>
    %cst = arith.constant 0.000000e+00 : f32
    %2 = vector.broadcast %cst : f32 to vector<10x18x8xf32>
    %c0_3 = arith.constant 0 : index
    %c0_4 = arith.constant 0 : index
    %c0_5 = arith.constant 0 : index
    %3 = vector.load %arg16[%c0_3, %c0_4, %c0_5] : memref<10x18x8xf32, #tpu.memory_space<vmem>>, vector<10x18x8xf32>
    tpu.vector_store %arg16[%c0_3, %c0_4, %c0_5], %2 {strides = array<i32>} : memref<10x18x8xf32, #tpu.memory_space<vmem>>, vector<10x18x8xf32>,
    %c1 = arith.constant 1 : index
    %c1_6 = arith.constant 1 : index
    %c0_7 = arith.constant 0 : index
    %4 = vector.load %arg16[%c1, %c1_6, %c0_7] : memref<10x18x8xf32, #tpu.memory_space<vmem>>, vector<8x16x8xf32>
    tpu.vector_store %arg16[%c1, %c1_6, %c0_7], %1 {strides = array<i32>} : memref<10x18x8xf32, #tpu.memory_space<vmem>>, vector<8x16x8xf32>,
    %c0_8 = arith.constant 0 : index
    %c0_9 = arith.constant 0 : index
    %5 = vector.load %arg2[%c0_8, %c0_9] : memref<72x16xbf16, #tpu.memory_space<vmem>>, vector<72x16xbf16>
    %c0_10 = arith.constant 0 : index
    %c0_11 = arith.constant 0 : index
    %c0_12 = arith.constant 0 : index
    %6 = vector.load %arg16[%c0_10, %c0_11, %c0_12] : memref<10x18x8xf32, #tpu.memory_space<vmem>>, vector<8x18x8xf32>
    %7 = vector.extract_strided_slice %6 {offsets = [0, 0, 0], sizes = [8, 16, 8], strides = [1, 1, 1]} : vector<8x18x8xf32> to vector<8x16x8xf32>
    %8 = vector.extract_strided_slice %6 {offsets = [0, 1, 0], sizes = [8, 16, 8], strides = [1, 1, 1]} : vector<8x18x8xf32> to vector<8x16x8xf32>
    %9 = vector.extract_strided_slice %6 {offsets = [0, 2, 0], sizes = [8, 16, 8], strides = [1, 1, 1]} : vector<8x18x8xf32> to vector<8x16x8xf32>
    %c1_13 = arith.constant 1 : index
    %c0_14 = arith.constant 0 : index
    %c0_15 = arith.constant 0 : index
    %10 = vector.load %arg16[%c1_13, %c0_14, %c0_15] : memref<10x18x8xf32, #tpu.memory_space<vmem>>, vector<8x18x8xf32>
    %11 = vector.extract_strided_slice %10 {offsets = [0, 0, 0], sizes = [8, 16, 8], strides = [1, 1, 1]} : vector<8x18x8xf32> to vector<8x16x8xf32>
    %12 = vector.extract_strided_slice %10 {offsets = [0, 1, 0], sizes = [8, 16, 8], strides = [1, 1, 1]} : vector<8x18x8xf32> to vector<8x16x8xf32>
    %13 = vector.extract_strided_slice %10 {offsets = [0, 2, 0], sizes = [8, 16, 8], strides = [1, 1, 1]} : vector<8x18x8xf32> to vector<8x16x8xf32>
    %c2 = arith.constant 2 : index
    %c0_16 = arith.constant 0 : index
    %c0_17 = arith.constant 0 : index
    %14 = vector.load %arg16[%c2, %c0_16, %c0_17] : memref<10x18x8xf32, #tpu.memory_space<vmem>>, vector<8x18x8xf32>
    %15 = vector.extract_strided_slice %14 {offsets = [0, 0, 0], sizes = [8, 16, 8], strides = [1, 1, 1]} : vector<8x18x8xf32> to vector<8x16x8xf32>
    %16 = vector.extract_strided_slice %14 {offsets = [0, 1, 0], sizes = [8, 16, 8], strides = [1, 1, 1]} : vector<8x18x8xf32> to vector<8x16x8xf32>
    %17 = vector.extract_strided_slice %14 {offsets = [0, 2, 0], sizes = [8, 16, 8], strides = [1, 1, 1]} : vector<8x18x8xf32> to vector<8x16x8xf32>
    %18 = tpu.concatenate %7, %8, %9, %11, %12, %13, %15, %16, %17 in 2 : vector<8x16x8xf32>, vector<8x16x8xf32>, vector<8x16x8xf32>, vector<8x16x8xf32>, vector<8x16x8xf32>, vector<8x16x8xf32>, vector<8x16x8xf32>, vector<8x16x8xf32>, vector<8x16x8xf32> -> vector<8x16x72xf32>
    %19 = vector.shape_cast %18 : vector<8x16x72xf32> to vector<128x72xf32>
    %20 = arith.truncf %19 : vector<128x72xf32> to vector<128x72xbf16>
    %cst_18 = arith.constant dense<0.000000e+00> : vector<128x16xf32>
    %21 = tpu.matmul %20, %5, %cst_18 {dimension_numbers = #tpu.dot_dimension_numbers<[1], [0], [0], [1], [0, 0, 1, 1], [], []>} : vector<128x72xbf16>, vector<72x16xbf16>, vector<128x16xf32> -> vector<128x16xf32>
    %cst_19 = arith.constant 0.000000e+00 : f32
    %22 = vector.broadcast %cst_19 : f32 to vector<128x16xf32>
    %23 = arith.maximumf %21, %22 : vector<128x16xf32>
    %c0_20 = arith.constant 0 : index
    %c0_21 = arith.constant 0 : index
    %24 = vector.load %arg3[%c0_20, %c0_21] : memref<1x16xf32, #tpu.memory_space<vmem>>, vector<1x16xf32>
    %25 = vector.broadcast %24 : vector<1x16xf32> to vector<128x16xf32>
    %26 = arith.mulf %23, %25 : vector<128x16xf32>
    %c0_22 = arith.constant 0 : index
    %c0_23 = arith.constant 0 : index
    %27 = vector.load %arg4[%c0_22, %c0_23] : memref<1x16xf32, #tpu.memory_space<vmem>>, vector<1x16xf32>
    %28 = vector.broadcast %27 : vector<1x16xf32> to vector<128x16xf32>
    %29 = arith.addf %26, %28 : vector<128x16xf32>
    %30 = vector.shape_cast %29 : vector<128x16xf32> to vector<8x16x16xf32>
    %cst_24 = arith.constant 0.000000e+00 : f32
    %31 = vector.broadcast %cst_24 : f32 to vector<10x18x16xf32>
    %c0_25 = arith.constant 0 : index
    %c0_26 = arith.constant 0 : index
    %c0_27 = arith.constant 0 : index
    %32 = vector.load %arg17[%c0_25, %c0_26, %c0_27] : memref<10x18x16xf32, #tpu.memory_space<vmem>>, vector<10x18x16xf32>
    tpu.vector_store %arg17[%c0_25, %c0_26, %c0_27], %31 {strides = array<i32>} : memref<10x18x16xf32, #tpu.memory_space<vmem>>, vector<10x18x16xf32>,
    %c1_28 = arith.constant 1 : index
    %c1_29 = arith.constant 1 : index
    %c0_30 = arith.constant 0 : index
    %33 = vector.load %arg17[%c1_28, %c1_29, %c0_30] : memref<10x18x16xf32, #tpu.memory_space<vmem>>, vector<8x16x16xf32>
    tpu.vector_store %arg17[%c1_28, %c1_29, %c0_30], %30 {strides = array<i32>} : memref<10x18x16xf32, #tpu.memory_space<vmem>>, vector<8x16x16xf32>,
    %c0_31 = arith.constant 0 : index
    %c0_32 = arith.constant 0 : index
    %34 = vector.load %arg5[%c0_31, %c0_32] : memref<144x16xbf16, #tpu.memory_space<vmem>>, vector<144x16xbf16>
    %c0_33 = arith.constant 0 : index
    %c0_34 = arith.constant 0 : index
    %c0_35 = arith.constant 0 : index
    %35 = vector.load %arg17[%c0_33, %c0_34, %c0_35] : memref<10x18x16xf32, #tpu.memory_space<vmem>>, vector<8x18x16xf32>
    %36 = vector.extract_strided_slice %35 {offsets = [0, 0, 0], sizes = [8, 16, 16], strides = [1, 1, 1]} : vector<8x18x16xf32> to vector<8x16x16xf32>
    %37 = vector.extract_strided_slice %35 {offsets = [0, 1, 0], sizes = [8, 16, 16], strides = [1, 1, 1]} : vector<8x18x16xf32> to vector<8x16x16xf32>
    %38 = vector.extract_strided_slice %35 {offsets = [0, 2, 0], sizes = [8, 16, 16], strides = [1, 1, 1]} : vector<8x18x16xf32> to vector<8x16x16xf32>
    %c1_36 = arith.constant 1 : index
    %c0_37 = arith.constant 0 : index
    %c0_38 = arith.constant 0 : index
    %39 = vector.load %arg17[%c1_36, %c0_37, %c0_38] : memref<10x18x16xf32, #tpu.memory_space<vmem>>, vector<8x18x16xf32>
    %40 = vector.extract_strided_slice %39 {offsets = [0, 0, 0], sizes = [8, 16, 16], strides = [1, 1, 1]} : vector<8x18x16xf32> to vector<8x16x16xf32>
    %41 = vector.extract_strided_slice %39 {offsets = [0, 1, 0], sizes = [8, 16, 16], strides = [1, 1, 1]} : vector<8x18x16xf32> to vector<8x16x16xf32>
    %42 = vector.extract_strided_slice %39 {offsets = [0, 2, 0], sizes = [8, 16, 16], strides = [1, 1, 1]} : vector<8x18x16xf32> to vector<8x16x16xf32>
    %c2_39 = arith.constant 2 : index
    %c0_40 = arith.constant 0 : index
    %c0_41 = arith.constant 0 : index
    %43 = vector.load %arg17[%c2_39, %c0_40, %c0_41] : memref<10x18x16xf32, #tpu.memory_space<vmem>>, vector<8x18x16xf32>
    %44 = vector.extract_strided_slice %43 {offsets = [0, 0, 0], sizes = [8, 16, 16], strides = [1, 1, 1]} : vector<8x18x16xf32> to vector<8x16x16xf32>
    %45 = vector.extract_strided_slice %43 {offsets = [0, 1, 0], sizes = [8, 16, 16], strides = [1, 1, 1]} : vector<8x18x16xf32> to vector<8x16x16xf32>
    %46 = vector.extract_strided_slice %43 {offsets = [0, 2, 0], sizes = [8, 16, 16], strides = [1, 1, 1]} : vector<8x18x16xf32> to vector<8x16x16xf32>
    %47 = tpu.concatenate %36, %37, %38, %40, %41, %42, %44, %45, %46 in 2 : vector<8x16x16xf32>, vector<8x16x16xf32>, vector<8x16x16xf32>, vector<8x16x16xf32>, vector<8x16x16xf32>, vector<8x16x16xf32>, vector<8x16x16xf32>, vector<8x16x16xf32>, vector<8x16x16xf32> -> vector<8x16x144xf32>
    %48 = vector.shape_cast %47 : vector<8x16x144xf32> to vector<128x144xf32>
    %49 = arith.truncf %48 : vector<128x144xf32> to vector<128x144xbf16>
    %cst_42 = arith.constant dense<0.000000e+00> : vector<128x16xf32>
    %50 = tpu.matmul %49, %34, %cst_42 {dimension_numbers = #tpu.dot_dimension_numbers<[1], [0], [0], [1], [0, 0, 1, 1], [], []>} : vector<128x144xbf16>, vector<144x16xbf16>, vector<128x16xf32> -> vector<128x16xf32>
    %c0_43 = arith.constant 0 : index
    %c0_44 = arith.constant 0 : index
    %51 = vector.load %arg6[%c0_43, %c0_44] : memref<1x16xf32, #tpu.memory_space<vmem>>, vector<1x16xf32>
    %52 = vector.broadcast %51 : vector<1x16xf32> to vector<128x16xf32>
    %53 = arith.mulf %50, %52 : vector<128x16xf32>
    %c0_45 = arith.constant 0 : index
    %c0_46 = arith.constant 0 : index
    %54 = vector.load %arg7[%c0_45, %c0_46] : memref<1x16xf32, #tpu.memory_space<vmem>>, vector<1x16xf32>
    %55 = vector.broadcast %54 : vector<1x16xf32> to vector<128x16xf32>
    %56 = arith.addf %53, %55 : vector<128x16xf32>
    %cst_47 = arith.constant dense<0.000000e+00> : vector<16xf32>
    %57 = vector.multi_reduction <add>, %56, %cst_47 [0] : vector<128x16xf32> to vector<16xf32>
    %58 = vector.shape_cast %57 : vector<16xf32> to vector<1x16xf32>
    %cst_48 = arith.constant 1.280000e+02 : f32
    %59 = vector.broadcast %cst_48 : f32 to vector<1x16xf32>
    %60 = arith.divf %58, %59 : vector<1x16xf32>
    %c0_49 = arith.constant 0 : index
    %c0_50 = arith.constant 0 : index
    %61 = vector.load %arg8[%c0_49, %c0_50] : memref<16x2xf32, #tpu.memory_space<vmem>>, vector<16x2xf32>
    %cst_51 = arith.constant dense<0.000000e+00> : vector<1x2xf32>
    %62 = tpu.matmul %60, %61, %cst_51 {dimension_numbers = #tpu.dot_dimension_numbers<[1], [0], [0], [1], [0, 0, 1, 1], [], []>} : vector<1x16xf32>, vector<16x2xf32>, vector<1x2xf32> -> vector<1x2xf32>
    %c0_52 = arith.constant 0 : index
    %c0_53 = arith.constant 0 : index
    %63 = vector.load %arg9[%c0_52, %c0_53] : memref<1x2xf32, #tpu.memory_space<vmem>>, vector<1x2xf32>
    %64 = arith.addf %62, %63 : vector<1x2xf32>
    %cst_54 = arith.constant 0.000000e+00 : f32
    %65 = vector.broadcast %cst_54 : f32 to vector<1x2xf32>
    %66 = arith.maximumf %64, %65 : vector<1x2xf32>
    %c0_55 = arith.constant 0 : index
    %c0_56 = arith.constant 0 : index
    %67 = vector.load %arg10[%c0_55, %c0_56] : memref<2x16xf32, #tpu.memory_space<vmem>>, vector<2x16xf32>
    %cst_57 = arith.constant dense<0.000000e+00> : vector<1x16xf32>
    %68 = tpu.matmul %66, %67, %cst_57 {dimension_numbers = #tpu.dot_dimension_numbers<[1], [0], [0], [1], [0, 0, 1, 1], [], []>} : vector<1x2xf32>, vector<2x16xf32>, vector<1x16xf32> -> vector<1x16xf32>
    %c0_58 = arith.constant 0 : index
    %c0_59 = arith.constant 0 : index
    %69 = vector.load %arg11[%c0_58, %c0_59] : memref<1x16xf32, #tpu.memory_space<vmem>>, vector<1x16xf32>
    %70 = arith.addf %68, %69 : vector<1x16xf32>
    %71 = arith.negf %70 : vector<1x16xf32>
    %72 = math.exp %71 : vector<1x16xf32>
    %cst_60 = arith.constant 1.000000e+00 : f32
    %73 = vector.broadcast %cst_60 : f32 to vector<1x16xf32>
    %74 = arith.addf %73, %72 : vector<1x16xf32>
    %75 = arith.divf %73, %74 : vector<1x16xf32>
    %c0_61 = arith.constant 0 : index
    %c0_62 = arith.constant 0 : index
    %c0_63 = arith.constant 0 : index
    %c0_64 = arith.constant 0 : index
    %76 = vector.load %arg1[%c0_61, %c0_62, %c0_63, %c0_64] : memref<1x8x16x8xf32, #tpu.memory_space<vmem>>, vector<1x8x16x8xf32>
    %77 = vector.shape_cast %76 : vector<1x8x16x8xf32> to vector<8x16x8xf32>
    %78 = vector.shape_cast %77 : vector<8x16x8xf32> to vector<128x8xf32>
    %79 = arith.truncf %78 : vector<128x8xf32> to vector<128x8xbf16>
    %c0_65 = arith.constant 0 : index
    %c0_66 = arith.constant 0 : index
    %80 = vector.load %arg12[%c0_65, %c0_66] : memref<8x16xbf16, #tpu.memory_space<vmem>>, vector<8x16xbf16>
    %cst_67 = arith.constant dense<0.000000e+00> : vector<128x16xf32>
    %81 = tpu.matmul %79, %80, %cst_67 {dimension_numbers = #tpu.dot_dimension_numbers<[1], [0], [0], [1], [0, 0, 1, 1], [], []>} : vector<128x8xbf16>, vector<8x16xbf16>, vector<128x16xf32> -> vector<128x16xf32>
    %c0_68 = arith.constant 0 : index
    %c0_69 = arith.constant 0 : index
    %82 = vector.load %arg13[%c0_68, %c0_69] : memref<1x16xf32, #tpu.memory_space<vmem>>, vector<1x16xf32>
    %83 = vector.broadcast %82 : vector<1x16xf32> to vector<128x16xf32>
    %84 = arith.mulf %81, %83 : vector<128x16xf32>
    %c0_70 = arith.constant 0 : index
    %c0_71 = arith.constant 0 : index
    %85 = vector.load %arg14[%c0_70, %c0_71] : memref<1x16xf32, #tpu.memory_space<vmem>>, vector<1x16xf32>
    %86 = vector.broadcast %85 : vector<1x16xf32> to vector<128x16xf32>
    %87 = arith.addf %84, %86 : vector<128x16xf32>
    %88 = vector.broadcast %75 : vector<1x16xf32> to vector<128x16xf32>
    %89 = arith.mulf %56, %88 : vector<128x16xf32>
    %90 = arith.addf %89, %87 : vector<128x16xf32>
    %cst_72 = arith.constant 0.000000e+00 : f32
    %91 = vector.broadcast %cst_72 : f32 to vector<128x16xf32>
    %92 = arith.maximumf %90, %91 : vector<128x16xf32>
    %93 = vector.shape_cast %92 : vector<128x16xf32> to vector<1x8x16x16xf32>
    %c0_73 = arith.constant 0 : index
    %c0_74 = arith.constant 0 : index
    %c0_75 = arith.constant 0 : index
    %c0_76 = arith.constant 0 : index
    %94 = vector.load %arg15[%c0_73, %c0_74, %c0_75, %c0_76] : memref<1x8x16x16xf32, #tpu.memory_space<vmem>>, vector<1x8x16x16xf32>
    tpu.vector_store %arg15[%c0_73, %c0_74, %c0_75, %c0_76], %93 {strides = array<i32>} : memref<1x8x16x16xf32, #tpu.memory_space<vmem>>, vector<1x8x16x16xf32>,
    return
  }
  func.func @transform_0(%arg0: i32) -> (i32, i32, i32, i32) {
    %c0_i32 = arith.constant 0 : i32
    %c0_i32_0 = arith.constant 0 : i32
    %c0_i32_1 = arith.constant 0 : i32
    %c0_i32_2 = arith.constant 0 : i32
    return %arg0, %c0_i32, %c0_i32_0, %c0_i32_1 : i32, i32, i32, i32
  }
  func.func @transform_1(%arg0: i32) -> (i32, i32) {
    %c0_i32 = arith.constant 0 : i32
    %c0_i32_0 = arith.constant 0 : i32
    %c0_i32_1 = arith.constant 0 : i32
    return %c0_i32, %c0_i32_0 : i32, i32
  }
  func.func @transform_2(%arg0: i32) -> (i32, i32) {
    %c0_i32 = arith.constant 0 : i32
    %c0_i32_0 = arith.constant 0 : i32
    %c0_i32_1 = arith.constant 0 : i32
    return %c0_i32, %c0_i32_0 : i32, i32
  }
  func.func @transform_3(%arg0: i32) -> (i32, i32) {
    %c0_i32 = arith.constant 0 : i32
    %c0_i32_0 = arith.constant 0 : i32
    %c0_i32_1 = arith.constant 0 : i32
    return %c0_i32, %c0_i32_0 : i32, i32
  }
  func.func @transform_4(%arg0: i32) -> (i32, i32) {
    %c0_i32 = arith.constant 0 : i32
    %c0_i32_0 = arith.constant 0 : i32
    %c0_i32_1 = arith.constant 0 : i32
    return %c0_i32, %c0_i32_0 : i32, i32
  }
  func.func @transform_5(%arg0: i32) -> (i32, i32) {
    %c0_i32 = arith.constant 0 : i32
    %c0_i32_0 = arith.constant 0 : i32
    %c0_i32_1 = arith.constant 0 : i32
    return %c0_i32, %c0_i32_0 : i32, i32
  }
  func.func @transform_6(%arg0: i32) -> (i32, i32) {
    %c0_i32 = arith.constant 0 : i32
    %c0_i32_0 = arith.constant 0 : i32
    %c0_i32_1 = arith.constant 0 : i32
    return %c0_i32, %c0_i32_0 : i32, i32
  }
  func.func @transform_7(%arg0: i32) -> (i32, i32) {
    %c0_i32 = arith.constant 0 : i32
    %c0_i32_0 = arith.constant 0 : i32
    %c0_i32_1 = arith.constant 0 : i32
    return %c0_i32, %c0_i32_0 : i32, i32
  }
  func.func @transform_8(%arg0: i32) -> (i32, i32) {
    %c0_i32 = arith.constant 0 : i32
    %c0_i32_0 = arith.constant 0 : i32
    %c0_i32_1 = arith.constant 0 : i32
    return %c0_i32, %c0_i32_0 : i32, i32
  }
  func.func @transform_9(%arg0: i32) -> (i32, i32) {
    %c0_i32 = arith.constant 0 : i32
    %c0_i32_0 = arith.constant 0 : i32
    %c0_i32_1 = arith.constant 0 : i32
    return %c0_i32, %c0_i32_0 : i32, i32
  }
  func.func @transform_10(%arg0: i32) -> (i32, i32) {
    %c0_i32 = arith.constant 0 : i32
    %c0_i32_0 = arith.constant 0 : i32
    %c0_i32_1 = arith.constant 0 : i32
    return %c0_i32, %c0_i32_0 : i32, i32
  }
  func.func @transform_11(%arg0: i32) -> (i32, i32) {
    %c0_i32 = arith.constant 0 : i32
    %c0_i32_0 = arith.constant 0 : i32
    %c0_i32_1 = arith.constant 0 : i32
    return %c0_i32, %c0_i32_0 : i32, i32
  }
  func.func @transform_12(%arg0: i32) -> (i32, i32) {
    %c0_i32 = arith.constant 0 : i32
    %c0_i32_0 = arith.constant 0 : i32
    %c0_i32_1 = arith.constant 0 : i32
    return %c0_i32, %c0_i32_0 : i32, i32
  }
  func.func @transform_13(%arg0: i32) -> (i32, i32) {
    %c0_i32 = arith.constant 0 : i32
    %c0_i32_0 = arith.constant 0 : i32
    %c0_i32_1 = arith.constant 0 : i32
    return %c0_i32, %c0_i32_0 : i32, i32
  }
  func.func @transform_14(%arg0: i32) -> (i32, i32, i32, i32) {
    %c0_i32 = arith.constant 0 : i32
    %c0_i32_0 = arith.constant 0 : i32
    %c0_i32_1 = arith.constant 0 : i32
    %c0_i32_2 = arith.constant 0 : i32
    return %arg0, %c0_i32, %c0_i32_0, %c0_i32_1 : i32, i32, i32, i32
  }
}

module attributes {stable_mosaic.version = 11 : i64} {
  func.func @_conv_bn_kernel(%arg0: i32, %arg1: memref<1x8x16x16xf32, #tpu.memory_space<vmem>>, %arg2: memref<144x32xbf16, #tpu.memory_space<vmem>>, %arg3: memref<1x32xf32, #tpu.memory_space<vmem>>, %arg4: memref<1x32xf32, #tpu.memory_space<vmem>>, %arg5: memref<1x32xf32, #tpu.memory_space<vmem>>, %arg6: memref<1x4x16x32xf32, #tpu.memory_space<vmem>>, %arg7: memref<10x18x16xf32, #tpu.memory_space<vmem>>) attributes {dimension_semantics = [#tpu.dimension_semantics<parallel>], iteration_bounds = array<i64: 2>, scalar_prefetch = 0 : i64, scratch_operands = 1 : i64, tpu.core_type = #tpu.core_type<tc>, window_params = [{transform_indices = @transform_0, window_bounds = array<i64: 1, 8, 16, 16>}, {pipeline_mode = #tpu.pipeline_mode<synchronous>, transform_indices = @transform_1, window_bounds = array<i64: 144, 32>}, {pipeline_mode = #tpu.pipeline_mode<synchronous>, transform_indices = @transform_2, window_bounds = array<i64: 1, 32>}, {pipeline_mode = #tpu.pipeline_mode<synchronous>, transform_indices = @transform_3, window_bounds = array<i64: 1, 32>}, {pipeline_mode = #tpu.pipeline_mode<synchronous>, transform_indices = @transform_4, window_bounds = array<i64: 1, 32>}, {transform_indices = @transform_5, window_bounds = array<i64: 1, 4, 16, 32>}]} {
    %c0 = arith.constant 0 : index
    %c0_0 = arith.constant 0 : index
    %c0_1 = arith.constant 0 : index
    %c0_2 = arith.constant 0 : index
    %0 = vector.load %arg1[%c0, %c0_0, %c0_1, %c0_2] : memref<1x8x16x16xf32, #tpu.memory_space<vmem>>, vector<1x8x16x16xf32>
    %1 = vector.shape_cast %0 : vector<1x8x16x16xf32> to vector<8x16x16xf32>
    %cst = arith.constant 0.000000e+00 : f32
    %2 = vector.broadcast %cst : f32 to vector<10x18x16xf32>
    %c0_3 = arith.constant 0 : index
    %c0_4 = arith.constant 0 : index
    %c0_5 = arith.constant 0 : index
    %3 = vector.load %arg7[%c0_3, %c0_4, %c0_5] : memref<10x18x16xf32, #tpu.memory_space<vmem>>, vector<10x18x16xf32>
    tpu.vector_store %arg7[%c0_3, %c0_4, %c0_5], %2 {strides = array<i32>} : memref<10x18x16xf32, #tpu.memory_space<vmem>>, vector<10x18x16xf32>,
    %c1 = arith.constant 1 : index
    %c1_6 = arith.constant 1 : index
    %c0_7 = arith.constant 0 : index
    %4 = vector.load %arg7[%c1, %c1_6, %c0_7] : memref<10x18x16xf32, #tpu.memory_space<vmem>>, vector<8x16x16xf32>
    tpu.vector_store %arg7[%c1, %c1_6, %c0_7], %1 {strides = array<i32>} : memref<10x18x16xf32, #tpu.memory_space<vmem>>, vector<8x16x16xf32>,
    %c0_8 = arith.constant 0 : index
    %c0_9 = arith.constant 0 : index
    %5 = vector.load %arg2[%c0_8, %c0_9] : memref<144x32xbf16, #tpu.memory_space<vmem>>, vector<144x32xbf16>
    %c0_10 = arith.constant 0 : index
    %c0_11 = arith.constant 0 : index
    %c0_12 = arith.constant 0 : index
    %6 = tpu.strided_load %arg7[%c0_10, %c0_11, %c0_12] {strides = array<i32: 2, 1, 1>} : memref<10x18x16xf32, #tpu.memory_space<vmem>>, vector<4x18x16xf32>
    %7 = vector.extract_strided_slice %6 {offsets = [0, 0, 0], sizes = [4, 16, 16], strides = [1, 1, 1]} : vector<4x18x16xf32> to vector<4x16x16xf32>
    %8 = vector.extract_strided_slice %6 {offsets = [0, 1, 0], sizes = [4, 16, 16], strides = [1, 1, 1]} : vector<4x18x16xf32> to vector<4x16x16xf32>
    %9 = vector.extract_strided_slice %6 {offsets = [0, 2, 0], sizes = [4, 16, 16], strides = [1, 1, 1]} : vector<4x18x16xf32> to vector<4x16x16xf32>
    %c1_13 = arith.constant 1 : index
    %c0_14 = arith.constant 0 : index
    %c0_15 = arith.constant 0 : index
    %10 = tpu.strided_load %arg7[%c1_13, %c0_14, %c0_15] {strides = array<i32: 2, 1, 1>} : memref<10x18x16xf32, #tpu.memory_space<vmem>>, vector<4x18x16xf32>
    %11 = vector.extract_strided_slice %10 {offsets = [0, 0, 0], sizes = [4, 16, 16], strides = [1, 1, 1]} : vector<4x18x16xf32> to vector<4x16x16xf32>
    %12 = vector.extract_strided_slice %10 {offsets = [0, 1, 0], sizes = [4, 16, 16], strides = [1, 1, 1]} : vector<4x18x16xf32> to vector<4x16x16xf32>
    %13 = vector.extract_strided_slice %10 {offsets = [0, 2, 0], sizes = [4, 16, 16], strides = [1, 1, 1]} : vector<4x18x16xf32> to vector<4x16x16xf32>
    %c2 = arith.constant 2 : index
    %c0_16 = arith.constant 0 : index
    %c0_17 = arith.constant 0 : index
    %14 = tpu.strided_load %arg7[%c2, %c0_16, %c0_17] {strides = array<i32: 2, 1, 1>} : memref<10x18x16xf32, #tpu.memory_space<vmem>>, vector<4x18x16xf32>
    %15 = vector.extract_strided_slice %14 {offsets = [0, 0, 0], sizes = [4, 16, 16], strides = [1, 1, 1]} : vector<4x18x16xf32> to vector<4x16x16xf32>
    %16 = vector.extract_strided_slice %14 {offsets = [0, 1, 0], sizes = [4, 16, 16], strides = [1, 1, 1]} : vector<4x18x16xf32> to vector<4x16x16xf32>
    %17 = vector.extract_strided_slice %14 {offsets = [0, 2, 0], sizes = [4, 16, 16], strides = [1, 1, 1]} : vector<4x18x16xf32> to vector<4x16x16xf32>
    %18 = tpu.concatenate %7, %8, %9, %11, %12, %13, %15, %16, %17 in 2 : vector<4x16x16xf32>, vector<4x16x16xf32>, vector<4x16x16xf32>, vector<4x16x16xf32>, vector<4x16x16xf32>, vector<4x16x16xf32>, vector<4x16x16xf32>, vector<4x16x16xf32>, vector<4x16x16xf32> -> vector<4x16x144xf32>
    %19 = vector.shape_cast %18 : vector<4x16x144xf32> to vector<64x144xf32>
    %20 = arith.truncf %19 : vector<64x144xf32> to vector<64x144xbf16>
    %cst_18 = arith.constant dense<0.000000e+00> : vector<64x32xf32>
    %21 = tpu.matmul %20, %5, %cst_18 {dimension_numbers = #tpu.dot_dimension_numbers<[1], [0], [0], [1], [0, 0, 1, 1], [], []>} : vector<64x144xbf16>, vector<144x32xbf16>, vector<64x32xf32> -> vector<64x32xf32>
    %c0_19 = arith.constant 0 : index
    %c0_20 = arith.constant 0 : index
    %22 = vector.load %arg3[%c0_19, %c0_20] : memref<1x32xf32, #tpu.memory_space<vmem>>, vector<1x32xf32>
    %23 = vector.broadcast %22 : vector<1x32xf32> to vector<64x32xf32>
    %24 = arith.addf %21, %23 : vector<64x32xf32>
    %cst_21 = arith.constant 0.000000e+00 : f32
    %25 = vector.broadcast %cst_21 : f32 to vector<64x32xf32>
    %26 = arith.maximumf %24, %25 : vector<64x32xf32>
    %c0_22 = arith.constant 0 : index
    %c0_23 = arith.constant 0 : index
    %27 = vector.load %arg4[%c0_22, %c0_23] : memref<1x32xf32, #tpu.memory_space<vmem>>, vector<1x32xf32>
    %28 = vector.broadcast %27 : vector<1x32xf32> to vector<64x32xf32>
    %29 = arith.mulf %26, %28 : vector<64x32xf32>
    %c0_24 = arith.constant 0 : index
    %c0_25 = arith.constant 0 : index
    %30 = vector.load %arg5[%c0_24, %c0_25] : memref<1x32xf32, #tpu.memory_space<vmem>>, vector<1x32xf32>
    %31 = vector.broadcast %30 : vector<1x32xf32> to vector<64x32xf32>
    %32 = arith.addf %29, %31 : vector<64x32xf32>
    %33 = vector.shape_cast %32 : vector<64x32xf32> to vector<1x4x16x32xf32>
    %c0_26 = arith.constant 0 : index
    %c0_27 = arith.constant 0 : index
    %c0_28 = arith.constant 0 : index
    %c0_29 = arith.constant 0 : index
    %34 = vector.load %arg6[%c0_26, %c0_27, %c0_28, %c0_29] : memref<1x4x16x32xf32, #tpu.memory_space<vmem>>, vector<1x4x16x32xf32>
    tpu.vector_store %arg6[%c0_26, %c0_27, %c0_28, %c0_29], %33 {strides = array<i32>} : memref<1x4x16x32xf32, #tpu.memory_space<vmem>>, vector<1x4x16x32xf32>,
    return
  }
  func.func @transform_0(%arg0: i32) -> (i32, i32, i32, i32) {
    %c0_i32 = arith.constant 0 : i32
    %c0_i32_0 = arith.constant 0 : i32
    %c0_i32_1 = arith.constant 0 : i32
    %c0_i32_2 = arith.constant 0 : i32
    return %arg0, %c0_i32, %c0_i32_0, %c0_i32_1 : i32, i32, i32, i32
  }
  func.func @transform_1(%arg0: i32) -> (i32, i32) {
    %c0_i32 = arith.constant 0 : i32
    %c0_i32_0 = arith.constant 0 : i32
    %c0_i32_1 = arith.constant 0 : i32
    return %c0_i32, %c0_i32_0 : i32, i32
  }
  func.func @transform_2(%arg0: i32) -> (i32, i32) {
    %c0_i32 = arith.constant 0 : i32
    %c0_i32_0 = arith.constant 0 : i32
    %c0_i32_1 = arith.constant 0 : i32
    return %c0_i32, %c0_i32_0 : i32, i32
  }
  func.func @transform_3(%arg0: i32) -> (i32, i32) {
    %c0_i32 = arith.constant 0 : i32
    %c0_i32_0 = arith.constant 0 : i32
    %c0_i32_1 = arith.constant 0 : i32
    return %c0_i32, %c0_i32_0 : i32, i32
  }
  func.func @transform_4(%arg0: i32) -> (i32, i32) {
    %c0_i32 = arith.constant 0 : i32
    %c0_i32_0 = arith.constant 0 : i32
    %c0_i32_1 = arith.constant 0 : i32
    return %c0_i32, %c0_i32_0 : i32, i32
  }
  func.func @transform_5(%arg0: i32) -> (i32, i32, i32, i32) {
    %c0_i32 = arith.constant 0 : i32
    %c0_i32_0 = arith.constant 0 : i32
    %c0_i32_1 = arith.constant 0 : i32
    %c0_i32_2 = arith.constant 0 : i32
    return %arg0, %c0_i32, %c0_i32_0, %c0_i32_1 : i32, i32, i32, i32
  }
}

</mosaic_0001>

<bundles_post_ra>
// kernel: resnet_se_no_head.4
= control target key start
LH: loop header
LB: loop body
LE: loop exit
PB: predicated region body
PF: predicated region fallthrough
CT: control target
= control target key end

     0   :  { %s1643_s30 = smov 0   ;;  %s2356_s0 = inlined_call_operand.vmem [shape: f32[2,16,16], index: 0, kind: input, shape index: {}]   ;;  %s2357_s1 = inlined_call_operand.vmem [shape: f32[8,1], index: 1, kind: input, shape index: {}]   ;;  %s2358_s2 = inlined_call_operand.vmem [shape: f32[8,1], index: 2, kind: input, shape index: {}]   ;;  %s2359_s3 = inlined_call_operand.vmem [shape: f32[8,1], index: 3, kind: input, shape index: {}]   ;;  %s2360_s4 = inlined_call_operand.vmem [shape: f32[8,1], index: 4, kind: input, shape index: {}]   ;;  %s2361_s5 = inlined_call_operand.vmem [shape: bf16[9,8], index: 5, kind: input, shape index: {}]   ;;  %s2362_s6 = inlined_call_operand.vmem [shape: f32[1,8], index: 6, kind: input, shape index: {}]   ;;  %s2363_s7 = inlined_call_operand.vmem [shape: f32[1,8], index: 7, kind: input, shape index: {}]   ;;  %s2364_s8 = inlined_call_operand.vmem [shape: f32[1,8], index: 8, kind: input, shape index: {}]   ;;  %s2365_s9 = inlined_call_operand.vmem [shape: f32[2,8,16,8], index: 9, kind: output, shape index: {}]  }
   0x1 LB: > { %s1500_s10 = sadd.s32 4294967295, %s1588_s30   ;;  %p1504_p0 = scmp.ge.s32.totalorder %s1588_s30, 1  ;;  %s1588_s30 = sphi %s1643_s30, %s19_s30  }
   0x2   : > { %p287_p1 = scmp.lt.s32.totalorder %s1588_s30, 3 }
   0x4   : > { %p288_p2 = pnand %p1504_p0, %p287_p1 }
   0x6   : > { %291 = sbr.rel (%p288_p2) target bundleno = 1251 (0x4e3), region = 56 }
   0xd   : > { %p323_p3 = scmp.lt.s32.totalorder %s1500_s10, 1  ;;  %v375_v0 = vld [vmem:[%s2360_s4] sm:$0xff]  ;;  %v1590_v1 = vmov 0   ;;  %vm340_vm0 = vcmask 130048   ;;  %vm412_vm1 = vcmask 1040384   ;;  %s1591_s23 = smov 1   ;;  %v422_v54 = vlaneseq }
   0xe   : > { %1567 = vset.pattern.permute.xlu1 %v1590_v1  ;;  %1566 = vset.pattern.permute.xlu0 %v1590_v1  ;;  %v335_v2 = vld [vmem:[%s2357_s1] sm:$0xff]  ;;  %vm418_vm2 = vcmask 7168   ;;  %vm420_vm3 = vcmask 138240   ;;  %vm1263_vm4 = vcmask 1043456   ;;  %vm1264_vm5 = vcmask 1044480  }
   0xf   : > { %s2479_s10 = smov (!%p323_p3, %s1500_s10), 1  ;;  %405 = vperm.xlu1 %1567, %v375_v0   ;;  %v336_v7 = vld [vmem:[%s2358_s2] sm:$0xff]  ;;  %v423_v55 = vshrl.u32 %v422_v54, 7  ;;  %vm1097_vm6 = vcmask 15360   ;;  %vm1114_vm7 = vcmask 23552   ;;  %vm1131_vm8 = vcmask 31744  }
  0x10   : > { %s1524_s15 = sshll.u32 %s2479_s10, 4  ;;  %v374_v14 = vld [vmem:[%s2359_s3] sm:$0xff]  ;;  %vm1148_vm9 = vcmask 39936   ;;  %vm1165_vm10 = vcmask 48128   ;;  %vm1182_vm11 = vcmask 56320   ;;  %vm1199_vm12 = vcmask 64512  }
  0x11   : > { %s327_s18 = scalar_lea.vmem %s2356_s0, %s1524_s15  ;;  %v446_v57 = vsub.s32 2, %v423_v55  ;;  %v490_v58 = vsub.s32 6, %v423_v55  ;;  %v457_v59 = vsub.s32 3, %v423_v55  ;;  %v501_v60 = vsub.s32 7, %v423_v55  ;;  %s1525_s11 = sshll.u32 %s2479_s10, 7 }
  0x12   : > { %v1509_v3 = vld [vmem:[%s327_s18 + $0x1] ss:$2 sm:$0xff]  ;;  %v334_v4 = vld [vmem:[%s327_s18] ss:$2 sm:$0xff]  ;;  %vm1238_vm13 = vcmask 72704   ;;  %s2277_s15 = scalar_lea.vmem %s2365_s9, %s1525_s11 }
  0x13   : > { %362 = vperm.xlu1 %1567, %v335_v2   ;;  %v376_v5 = vadd.f32 1e-06, %v1509_v3  ;;  %v337_v6 = vadd.f32 1e-06, %v334_v4 }
  0x15   : > { %1574 = vlog2.f32 %v376_v5 }
  0x16   : > { %1576 = vlog2.f32 %v337_v6 }
  0x17   : > { %368 = vperm.xlu1 %1567, %v336_v7  }
  0x1f   : > { %v1575_v8 = vpop.eup %1574 }
  0x20   : > { %v1577_v9 = vpop.eup %1576  ;;  %v378_v10 = vmul.f32 0.6931472, %v1575_v8  ;;  %v424_v8 = vsub.s32 0, %v423_v55 }
  0x21   : > { %v339_v11 = vmul.f32 0.6931472, %v1577_v9 }
  0x22   : > { %v379_v12 = vsel %vm340_vm0, %v378_v10, 0.0 }
  0x23   : > { %380 = vadd.xlane.f32.xlu0 %v379_v12  ;;  %v341_v13 = vsel %vm340_vm0, %v339_v11, 0.0  ;;  %v468_v12 = vsub.s32 4, %v423_v55 }
  0x27   : > { %342 = vadd.xlane.f32.xlu0 %v341_v13  ;;  %v435_v13 = vsub.s32 1, %v423_v55 }
  0x3d   : > { %399 = vperm.xlu0 %1566, %v374_v14   ;;  %v479_v14 = vsub.s32 5, %v423_v55 }
  0x8e   : > { %v406_v23 = vpop.permute.xlu1 %405 }
  0x92   : > { %v363_v24 = vpop.permute.xlu1 %362 }
  0x96   : > { %v369_v25 = vpop.permute.xlu1 %368 }
  0xb0   : > { %v381_v15 = vpop.xlane.xlu0 %380 }
  0xb1   : > { %v382_v16 = vmul.f32 0.0625, %v381_v15 }
  0xb3   : > { %v383_v17 = vsub.f32 %v378_v10, %v382_v16 }
  0xb4   : > { %v343_v18 = vpop.xlane.xlu0 %342 }
  0xb5   : > { %v345_v19 = vmul.f32 0.0625, %v343_v18  ;;  %v384_v20 = vsel %vm340_vm0, %v383_v17, 0.0 }
  0xb6   : > { %385 = vadd.xlane.f32.xlu1 %v384_v20 }
  0xb7   : > { %v346_v21 = vsub.f32 %v339_v11, %v345_v19 }
  0xb9   : > { %v347_v22 = vsel %vm340_vm0, %v346_v21, 0.0 }
  0xba   : > { %348 = vadd.xlane.f32.xlu1 %v347_v22 }
  0xbc   : > { %v400_v36 = vpop.permute.xlu0 %399 }
 0x143   : > { %v386_v26 = vpop.xlane.xlu1 %385 }
 0x144   : > { %v387_v27 = vmul.f32 0.0625, %v386_v26 }
 0x146   : > { %v388_v28 = vsub.f32 %v383_v17, %v387_v27 }
 0x147   : > { %v349_v29 = vpop.xlane.xlu1 %348 }
 0x148   : > { %v350_v30 = vmul.f32 0.0625, %v349_v29  ;;  %v389_v31 = vmul.f32 %v388_v28, %v388_v28 }
 0x14a   : > { %v351_v32 = vsub.f32 %v346_v21, %v350_v30  ;;  %v390_v33 = vsel %vm340_vm0, %v389_v31, 0.0 }
 0x14b   : > { %391 = vadd.xlane.f32.xlu0 %v390_v33 }
 0x14c   : > { %v352_v34 = vmul.f32 %v351_v32, %v351_v32 }
 0x14e   : > { %v353_v35 = vsel %vm340_vm0, %v352_v34, 0.0 }
 0x14f   : > { %354 = vadd.xlane.f32.xlu1 %v353_v35 }
 0x1d8   : > { %v392_v37 = vpop.xlane.xlu0 %391 }
 0x1d9   : > { %v393_v38 = vmul.f32 0.0625, %v392_v37 }
 0x1db   : > { %v394_v39 = vadd.f32 1e-05, %v393_v38 }
 0x1dc   : > { %v355_v40 = vpop.xlane.xlu1 %354 }
 0x1dd   : > { %1578 = vrsqrt.f32 %v394_v39  ;;  %v356_v41 = vmul.f32 0.0625, %v355_v40 }
 0x1df   : > { %v357_v42 = vadd.f32 1e-05, %v356_v41 }
 0x1e1   : > { %1580 = vrsqrt.f32 %v357_v42 }
 0x1e7   : > { %v1579_v43 = vpop.eup %1578 }
 0x1e8   : > { %v396_v44 = vmul.f32 %v1579_v43, %v388_v28 }
 0x1ea   : > { %v402_v45 = vmul.f32 %v400_v36, %v396_v44 }
 0x1eb   : > { %v1581_v46 = vpop.eup %1580 }
 0x1ec   : > { %v408_v47 = vadd.f32 %v406_v23, %v402_v45  ;;  %v359_v48 = vmul.f32 %v1581_v46, %v351_v32 }
 0x1ee   : > { %860 = vrot.lane.b32.xlu1 %v408_v47, %s1591_s23  ;;  %v410_v49 = vrot.slane %v408_v47, 7  ;;  %v365_v50 = vmul.f32 %v363_v24, %v359_v48 }
 0x1f0   : > { %v371_v51 = vadd.f32 %v369_v25, %v365_v50  ;;  %v413_v52 = vsel %vm412_vm1, 0.0, %v410_v49 }
 0x1f2   : > { %v1568_v53 = vpack.i.bf16 %v371_v51, %v413_v52 }
 0x1f4   : > { %1569 = vrot.lane.b32.xlu1 %v1568_v53, %s1591_s23 }
 0x260   : > { %v861_v56 = vpop.permute.xlu1 %860 }
 0x261   : > { %v863_v61 = vsel %vm418_vm2, 0.0, %v861_v56 }
 0x262   : > { %v1677_v62 = vsel %vm420_vm3, %v863_v61, 0.0 }
 0x263   : > { %v1680_v63 = vrot.slane %v1677_v62, %v446_v57  ;;  %v1683_v0 = vrot.slane %v1677_v62, %v490_v58  ;;  %v1686_v1 = vrot.slane %v1677_v62, %v457_v59  ;;  %v1689_v2 = vrot.slane %v1677_v62, %v501_v60 }
 0x264   : > { %v868_v30 = vrot.slane %v1677_v62, %v424_v8  ;;  %v912_v31 = vrot.slane %v1677_v62, %v468_v12  ;;  %v879_v32 = vrot.slane %v1677_v62, %v435_v13  ;;  %v923_v33 = vrot.slane %v1677_v62, %v479_v14 }
 0x266   : > { %v1570_v3 = vpop.permute.xlu1 %1569 }
 0x267   : > { %v1572_v4 = vunpack.i.h.bf16 %v1570_v3  ;;  %v1571_v5 = vunpack.i.l.bf16 %v1570_v3 }
 0x269   : > { %v642_v6 = vsel %vm418_vm2, 0.0, %v1572_v4  ;;  %v419_v7 = vsel %vm418_vm2, 0.0, %v1571_v5 }
 0x26a   : > { %v643_v9 = vsel %vm420_vm3, %v642_v6, 0.0  ;;  %v421_v10 = vsel %vm420_vm3, %v419_v7, 0.0 }
 0x26b   : > { %v647_v11 = vrot.slane %v643_v9, %v424_v8  ;;  %v1695_v15 = vrot.slane %v643_v9, %v446_v57  ;;  %v1697_v16 = vrot.slane %v643_v9, %v490_v58  ;;  %v1699_v17 = vrot.slane %v643_v9, %v457_v59 }
 0x26c   : > { %v1701_v18 = vrot.slane %v643_v9, %v501_v60  ;;  %v1703_v19 = vrot.slane %v421_v10, %v435_v13  ;;  %v1705_v20 = vrot.slane %v421_v10, %v424_v8  ;;  %v1707_v21 = vrot.slane %v421_v10, %v446_v57 }
 0x26d   : > { %653 = vbcast.lane.b32.xlu0 %v647_v11, 264  ;;  %649 = vbcast.lane.b32.xlu1 %v647_v11, 256  ;;  %v1709_v22 = vrot.slane %v421_v10, %v457_v59  ;;  %v1711_v23 = vrot.slane %v421_v10, %v468_v12  ;;  %v1713_v24 = vrot.slane %v421_v10, %v479_v14 }
 0x26e   : > { %v1715_v25 = vrot.slane %v421_v10, %v490_v58  ;;  %v691_v26 = vrot.slane %v643_v9, %v468_v12  ;;  %v1717_v27 = vrot.slane %v421_v10, %v501_v60  ;;  %v658_v28 = vrot.slane %v643_v9, %v435_v13 }
 0x26f   : > { %v702_v29 = vrot.slane %v643_v9, %v479_v14 }
 0x271   : > { %697 = vbcast.lane.b32.xlu0 %v691_v26, 264  ;;  %693 = vbcast.lane.b32.xlu1 %v691_v26, 256 }
 0x275   : > { %664 = vbcast.lane.b32.xlu0 %v658_v28, 264  ;;  %660 = vbcast.lane.b32.xlu1 %v658_v28, 256 }
 0x279   : > { %708 = vbcast.lane.b32.xlu0 %v702_v29, 264  ;;  %704 = vbcast.lane.b32.xlu1 %v702_v29, 256 }
 0x27d   : > { %738 = vbcast.lane.b32.xlu0 %v647_v11, 265  ;;  %734 = vbcast.lane.b32.xlu1 %v647_v11, 257 }
 0x281   : > { %770 = vbcast.lane.b32.xlu0 %v691_v26, 265  ;;  %766 = vbcast.lane.b32.xlu1 %v691_v26, 257 }
 0x285   : > { %746 = vbcast.lane.b32.xlu0 %v658_v28, 265  ;;  %742 = vbcast.lane.b32.xlu1 %v658_v28, 257 }
 0x289   : > { %778 = vbcast.lane.b32.xlu0 %v702_v29, 265  ;;  %774 = vbcast.lane.b32.xlu1 %v702_v29, 257 }
 0x28d   : > { %802 = vbcast.lane.b32.xlu0 %v647_v11, 266  ;;  %798 = vbcast.lane.b32.xlu1 %v647_v11, 258 }
 0x291   : > { %834 = vbcast.lane.b32.xlu0 %v691_v26, 266  ;;  %830 = vbcast.lane.b32.xlu1 %v691_v26, 258 }
 0x295   : > { %810 = vbcast.lane.b32.xlu0 %v658_v28, 266  ;;  %806 = vbcast.lane.b32.xlu1 %v658_v28, 258 }
 0x299   : > { %842 = vbcast.lane.b32.xlu0 %v702_v29, 266  ;;  %838 = vbcast.lane.b32.xlu1 %v702_v29, 258 }
 0x29d   : > { %874 = vbcast.lane.b32.xlu0 %v868_v30, 264  ;;  %870 = vbcast.lane.b32.xlu1 %v868_v30, 256 }
 0x2a1   : > { %918 = vbcast.lane.b32.xlu0 %v912_v31, 264  ;;  %914 = vbcast.lane.b32.xlu1 %v912_v31, 256 }
 0x2a5   : > { %885 = vbcast.lane.b32.xlu0 %v879_v32, 264  ;;  %881 = vbcast.lane.b32.xlu1 %v879_v32, 256 }
 0x2a9   : > { %929 = vbcast.lane.b32.xlu0 %v923_v33, 264  ;;  %925 = vbcast.lane.b32.xlu1 %v923_v33, 256 }
 0x2ad   : > { %959 = vbcast.lane.b32.xlu0 %v868_v30, 265  ;;  %955 = vbcast.lane.b32.xlu1 %v868_v30, 257 }
 0x2b1   : > { %991 = vbcast.lane.b32.xlu0 %v912_v31, 265  ;;  %987 = vbcast.lane.b32.xlu1 %v912_v31, 257 }
 0x2b5   : > { %967 = vbcast.lane.b32.xlu0 %v879_v32, 265  ;;  %963 = vbcast.lane.b32.xlu1 %v879_v32, 257 }
 0x2b9   : > { %999 = vbcast.lane.b32.xlu0 %v923_v33, 265  ;;  %995 = vbcast.lane.b32.xlu1 %v923_v33, 257 }
 0x2bd   : > { %1023 = vbcast.lane.b32.xlu0 %v868_v30, 266  ;;  %1019 = vbcast.lane.b32.xlu1 %v868_v30, 258 }
 0x2c1   : > { %1055 = vbcast.lane.b32.xlu0 %v912_v31, 266  ;;  %1051 = vbcast.lane.b32.xlu1 %v912_v31, 258 }
 0x2c5   : > { %1031 = vbcast.lane.b32.xlu0 %v879_v32, 266  ;;  %1027 = vbcast.lane.b32.xlu1 %v879_v32, 258 }
 0x2c9   : > { %1063 = vbcast.lane.b32.xlu0 %v923_v33, 266  ;;  %1059 = vbcast.lane.b32.xlu1 %v923_v33, 258 }
 0x2cd   : > { %675 = vbcast.lane.b32.xlu0 %v1695_v15, 264  ;;  %671 = vbcast.lane.b32.xlu1 %v1695_v15, 256 }
 0x2d1   : > { %719 = vbcast.lane.b32.xlu0 %v1697_v16, 264  ;;  %715 = vbcast.lane.b32.xlu1 %v1697_v16, 256 }
 0x2d5   : > { %686 = vbcast.lane.b32.xlu0 %v1699_v17, 264  ;;  %682 = vbcast.lane.b32.xlu1 %v1699_v17, 256 }
 0x2d9   : > { %730 = vbcast.lane.b32.xlu0 %v1701_v18, 264  ;;  %726 = vbcast.lane.b32.xlu1 %v1701_v18, 256 }
 0x2dd   : > { %754 = vbcast.lane.b32.xlu0 %v1695_v15, 265  ;;  %750 = vbcast.lane.b32.xlu1 %v1695_v15, 257 }
 0x2df   : > { %v1733_v34 = vpop.permute.xlu0 %653  ;;  %v1735_v35 = vpop.permute.xlu1 %649 }
 0x2e1   : > { %786 = vbcast.lane.b32.xlu0 %v1697_v16, 265  ;;  %782 = vbcast.lane.b32.xlu1 %v1697_v16, 257 }
 0x2e3   : > { %v1739_v36 = vpop.permute.xlu0 %697  ;;  %v1741_v37 = vpop.permute.xlu1 %693 }
 0x2e5   : > { %762 = vbcast.lane.b32.xlu0 %v1699_v17, 265  ;;  %758 = vbcast.lane.b32.xlu1 %v1699_v17, 257 }
 0x2e7   : > { %v1745_v38 = vpop.permute.xlu0 %664  ;;  %v1747_v39 = vpop.permute.xlu1 %660 }
 0x2e9   : > { %794 = vbcast.lane.b32.xlu0 %v1701_v18, 265  ;;  %790 = vbcast.lane.b32.xlu1 %v1701_v18, 257 }
 0x2eb   : > { %v1751_v40 = vpop.permute.xlu0 %708  ;;  %v1753_v41 = vpop.permute.xlu1 %704 }
 0x2ed   : > { %818 = vbcast.lane.b32.xlu0 %v1695_v15, 266  ;;  %814 = vbcast.lane.b32.xlu1 %v1695_v15, 258 }
 0x2ef   : > { %v1757_v42 = vpop.permute.xlu0 %738  ;;  %v1759_v43 = vpop.permute.xlu1 %734 }
 0x2f1   : > { %850 = vbcast.lane.b32.xlu0 %v1697_v16, 266  ;;  %846 = vbcast.lane.b32.xlu1 %v1697_v16, 258 }
 0x2f3   : > { %v1763_v44 = vpop.permute.xlu0 %770  ;;  %v1765_v45 = vpop.permute.xlu1 %766 }
 0x2f5   : > { %826 = vbcast.lane.b32.xlu0 %v1699_v17, 266  ;;  %822 = vbcast.lane.b32.xlu1 %v1699_v17, 258 }
 0x2f7   : > { %v1769_v46 = vpop.permute.xlu0 %746  ;;  %v1771_v47 = vpop.permute.xlu1 %742 }
 0x2f9   : > { %858 = vbcast.lane.b32.xlu0 %v1701_v18, 266  ;;  %854 = vbcast.lane.b32.xlu1 %v1701_v18, 258 }
 0x2fb   : > { %v1775_v48 = vpop.permute.xlu0 %778  ;;  %v1777_v49 = vpop.permute.xlu1 %774 }
 0x2fd   : > { %896 = vbcast.lane.b32.xlu0 %v1680_v63, 264  ;;  %892 = vbcast.lane.b32.xlu1 %v1680_v63, 256 }
 0x2ff   : > { %v1781_v50 = vpop.permute.xlu0 %802  ;;  %v1783_v51 = vpop.permute.xlu1 %798 }
 0x301   : > { %940 = vbcast.lane.b32.xlu0 %v1683_v0, 264  ;;  %936 = vbcast.lane.b32.xlu1 %v1683_v0, 256 }
 0x303   : > { %v1787_v52 = vpop.permute.xlu0 %834  ;;  %v1789_v53 = vpop.permute.xlu1 %830 }
 0x305   : > { %907 = vbcast.lane.b32.xlu0 %v1686_v1, 264  ;;  %903 = vbcast.lane.b32.xlu1 %v1686_v1, 256 }
 0x307   : > { %v1793_v54 = vpop.permute.xlu0 %810  ;;  %v1795_v55 = vpop.permute.xlu1 %806 }
 0x309   : > { %951 = vbcast.lane.b32.xlu0 %v1689_v2, 264  ;;  %947 = vbcast.lane.b32.xlu1 %v1689_v2, 256 }
 0x30b   : > { %v1799_v56 = vpop.permute.xlu0 %842  ;;  %v1801_v57 = vpop.permute.xlu1 %838 }
 0x30c   : > { %2366 = vst [vmem:[#allocation2_spill] sm:$0xff] %v1801_v57 }
 0x30d   : > { %975 = vbcast.lane.b32.xlu0 %v1680_v63, 265  ;;  %971 = vbcast.lane.b32.xlu1 %v1680_v63, 257 }
 0x30f   : > { %v1805_v58 = vpop.permute.xlu0 %874  ;;  %v1807_v59 = vpop.permute.xlu1 %870 }
 0x311   : > { %1007 = vbcast.lane.b32.xlu0 %v1683_v0, 265  ;;  %1003 = vbcast.lane.b32.xlu1 %v1683_v0, 257 }
 0x313   : > { %v1811_v60 = vpop.permute.xlu0 %918  ;;  %v1813_v61 = vpop.permute.xlu1 %914 }
 0x315   : > { %983 = vbcast.lane.b32.xlu0 %v1686_v1, 265  ;;  %979 = vbcast.lane.b32.xlu1 %v1686_v1, 257 }
 0x317   : > { %v1817_v62 = vpop.permute.xlu0 %885  ;;  %v1819_v3 = vpop.permute.xlu1 %881 }
 0x319   : > { %1015 = vbcast.lane.b32.xlu0 %v1689_v2, 265  ;;  %1011 = vbcast.lane.b32.xlu1 %v1689_v2, 257 }
 0x31b   : > { %v1823_v4 = vpop.permute.xlu0 %929  ;;  %v1825_v5 = vpop.permute.xlu1 %925 }
 0x31c   : > { %2367 = vst [vmem:[#allocation3_spill] sm:$0xff] %v1825_v5 }
 0x31d   : > { %1039 = vbcast.lane.b32.xlu0 %v1680_v63, 266  ;;  %1035 = vbcast.lane.b32.xlu1 %v1680_v63, 258 }
 0x31f   : > { %v1829_v6 = vpop.permute.xlu0 %959  ;;  %v1831_v7 = vpop.permute.xlu1 %955 }
 0x321   : > { %1071 = vbcast.lane.b32.xlu0 %v1683_v0, 266  ;;  %1067 = vbcast.lane.b32.xlu1 %v1683_v0, 258 }
 0x323   : > { %v1835_v8 = vpop.permute.xlu0 %991  ;;  %v1837_v9 = vpop.permute.xlu1 %987 }
 0x325   : > { %442 = vbcast.lane.b32.xlu0 %v1703_v19, 264  ;;  %427 = vbcast.lane.b32.xlu1 %v1705_v20, 256 }
 0x327   : > { %v1841_v10 = vpop.permute.xlu0 %967  ;;  %v1843_v11 = vpop.permute.xlu1 %963 }
 0x329   : > { %453 = vbcast.lane.b32.xlu0 %v1707_v21, 264  ;;  %431 = vbcast.lane.b32.xlu1 %v1705_v20, 264 }
 0x32b   : > { %v1847_v63 = vpop.permute.xlu0 %999  ;;  %v1849_v12 = vpop.permute.xlu1 %995 }
 0x32c   : > { %2368 = vst [vmem:[#allocation4_spill] sm:$0xff] %v1847_v63  ;;  %2369 = vst [vmem:[#allocation5_spill] sm:$0xff] %v1849_v12 }
 0x32d   : > { %464 = vbcast.lane.b32.xlu0 %v1709_v22, 264  ;;  %438 = vbcast.lane.b32.xlu1 %v1703_v19, 256 }
 0x32f   : > { %v1853_v0 = vpop.permute.xlu0 %1023  ;;  %v1855_v13 = vpop.permute.xlu1 %1019 }
 0x331   : > { %475 = vbcast.lane.b32.xlu0 %v1711_v23, 264  ;;  %449 = vbcast.lane.b32.xlu1 %v1707_v21, 256 }
 0x333   : > { %v1859_v14 = vpop.permute.xlu0 %1055  ;;  %v1861_v15 = vpop.permute.xlu1 %1051 }
 0x335   : > { %516 = vbcast.lane.b32.xlu0 %v1705_v20, 265  ;;  %460 = vbcast.lane.b32.xlu1 %v1709_v22, 256 }
 0x337   : > { %v1865_v16 = vpop.permute.xlu0 %1031  ;;  %v1867_v17 = vpop.permute.xlu1 %1027 }
 0x338   : > { %2370 = vst [vmem:[#allocation6_spill] sm:$0xff] %v1865_v16  ;;  %2371 = vst [vmem:[#allocation7_spill] sm:$0xff] %v1867_v17 }
 0x339   : > { %548 = vbcast.lane.b32.xlu0 %v1711_v23, 265  ;;  %471 = vbcast.lane.b32.xlu1 %v1711_v23, 256 }
 0x33b   : > { %v1871_v18 = vpop.permute.xlu0 %1063  ;;  %v1873_v26 = vpop.permute.xlu1 %1059 }
 0x33c   : > { %2372 = vst [vmem:[#allocation8_spill] sm:$0xff] %v1871_v18  ;;  %2373 = vst [vmem:[#allocation9_spill] sm:$0xff] %v1873_v26 }
 0x33d   : > { %486 = vbcast.lane.b32.xlu0 %v1713_v24, 264  ;;  %512 = vbcast.lane.b32.xlu1 %v1705_v20, 257 }
 0x33f   : > { %v1877_v28 = vpop.permute.xlu0 %675  ;;  %v1879_v29 = vpop.permute.xlu1 %671 }
 0x340   : > { %2374 = vst [vmem:[#allocation10_spill] sm:$0xff] %v1877_v28  ;;  %2375 = vst [vmem:[#allocation11_spill] sm:$0xff] %v1879_v29 }
 0x341   : > { %524 = vbcast.lane.b32.xlu0 %v1703_v19, 265  ;;  %544 = vbcast.lane.b32.xlu1 %v1711_v23, 257 }
 0x343   : > { %v1883_v30 = vpop.permute.xlu0 %719  ;;  %v1885_v31 = vpop.permute.xlu1 %715 }
 0x344   : > { %2376 = vst [vmem:[#allocation12_spill] sm:$0xff] %v1883_v30  ;;  %2377 = vst [vmem:[#allocation13_spill] sm:$0xff] %v1885_v31 }
 0x345   : > { %556 = vbcast.lane.b32.xlu0 %v1713_v24, 265  ;;  %482 = vbcast.lane.b32.xlu1 %v1713_v24, 256 }
 0x347   : > { %v1889_v32 = vpop.permute.xlu0 %686  ;;  %v1891_v33 = vpop.permute.xlu1 %682 }
 0x348   : > { %2378 = vst [vmem:[#allocation14_spill] sm:$0xff] %v1889_v32  ;;  %2379 = vst [vmem:[#allocation15_spill] sm:$0xff] %v1891_v33  ;;  %v1573_v33 = vld [vmem:[%s2361_s5] sm:$0x1f]  }
 0x349   : > { %580 = vbcast.lane.b32.xlu0 %v1705_v20, 266  ;;  %520 = vbcast.lane.b32.xlu1 %v1703_v19, 257 }
 0x34b   : > { %v1895_v29 = vpop.permute.xlu0 %730  ;;  %v1897_v28 = vpop.permute.xlu1 %726 }
 0x34c   : > { %2380 = vst [vmem:[#allocation16_spill] sm:$0xff] %v1895_v29  ;;  %2381 = vst [vmem:[#allocation17_spill] sm:$0xff] %v1897_v28  ;;  %v1592_v29 = vmov 65535  }
 0x34d   : > { %612 = vbcast.lane.b32.xlu0 %v1711_v23, 266  ;;  %552 = vbcast.lane.b32.xlu1 %v1713_v24, 257  ;;  %v1265_v28 = vsel %vm1263_vm4, 4294967295, %v1592_v29 }
 0x34e   : > { %v1266_v32 = vsel %vm1264_vm5, %v1265_v28, 0 }
 0x34f   : > { %v1901_v31 = vpop.permute.xlu0 %754  ;;  %v1903_v30 = vpop.permute.xlu1 %750 }
 0x350   : > { %2382 = vst [vmem:[#allocation18_spill] sm:$0xff] %v1901_v31  ;;  %2383 = vst [vmem:[#allocation19_spill] sm:$0xff] %v1903_v30  ;;  %v1268_v31 = vand.u32 %v1573_v33, %v1266_v32 }
 0x351   : > { %588 = vbcast.lane.b32.xlu0 %v1703_v19, 266  ;;  %576 = vbcast.lane.b32.xlu1 %v1705_v20, 258 }
 0x352   : > { %1535 = vmatprep.subr.bf16.mxu0 %v1268_v31  ;;  %1553 = vmatprep.subr.bf16.mxu1 %v1268_v31 }
 0x353   : > { %v1910_v18 = vpop.permute.xlu0 %786  ;;  %v1912_v26 = vpop.permute.xlu1 %782  ;;  %1536 = vmatpush3.bf16.msra.mxu0 %v1268_v31  ;;  %1554 = vmatpush3.bf16.msra.mxu1 %v1268_v31 }
 0x354   : > { %2384 = vst [vmem:[#allocation20_spill] sm:$0xff] %v1910_v18  ;;  %2385 = vst [vmem:[#allocation21_spill] sm:$0xff] %v1912_v26 }
 0x355   : > { %620 = vbcast.lane.b32.xlu0 %v1713_v24, 266  ;;  %608 = vbcast.lane.b32.xlu1 %v1711_v23, 258 }
 0x357   : > { %v1916_v20 = vpop.permute.xlu0 %762  ;;  %v1918_v30 = vpop.permute.xlu1 %758 }
 0x358   : > { %2386 = vst [vmem:[#allocation22_spill] sm:$0xff] %v1916_v20  ;;  %2387 = vst [vmem:[#allocation23_spill] sm:$0xff] %v1918_v30 }
 0x359   : > { %497 = vbcast.lane.b32.xlu0 %v1715_v25, 264  ;;  %584 = vbcast.lane.b32.xlu1 %v1703_v19, 258 }
 0x35b   : > { %v1922_v28 = vpop.permute.xlu0 %794  ;;  %v1924_v29 = vpop.permute.xlu1 %790 }
 0x35c   : > { %2388 = vst [vmem:[#allocation24_spill] sm:$0xff] %v1922_v28  ;;  %2389 = vst [vmem:[#allocation25_spill] sm:$0xff] %v1924_v29 }
 0x35d   : > { %532 = vbcast.lane.b32.xlu0 %v1707_v21, 265  ;;  %616 = vbcast.lane.b32.xlu1 %v1713_v24, 258 }
 0x35f   : > { %v1928_v23 = vpop.permute.xlu0 %818  ;;  %v1930_v32 = vpop.permute.xlu1 %814 }
 0x360   : > { %2390 = vst [vmem:[#allocation26_spill] sm:$0xff] %v1928_v23  ;;  %2391 = vst [vmem:[#allocation27_spill] sm:$0xff] %v1930_v32 }
 0x361   : > { %564 = vbcast.lane.b32.xlu0 %v1715_v25, 265  ;;  %493 = vbcast.lane.b32.xlu1 %v1715_v25, 256 }
 0x363   : > { %v1934_v31 = vpop.permute.xlu0 %850  ;;  %v1936_v33 = vpop.permute.xlu1 %846 }
 0x364   : > { %2392 = vst [vmem:[#allocation28_spill] sm:$0xff] %v1934_v31  ;;  %2393 = vst [vmem:[#allocation29_spill] sm:$0xff] %v1936_v33 }
 0x365   : > { %508 = vbcast.lane.b32.xlu0 %v1717_v27, 264  ;;  %528 = vbcast.lane.b32.xlu1 %v1707_v21, 257 }
 0x367   : > { %v1940_v19 = vpop.permute.xlu0 %826  ;;  %v1942_v29 = vpop.permute.xlu1 %822 }
 0x368   : > { %2394 = vst [vmem:[#allocation30_spill] sm:$0xff] %v1940_v19  ;;  %2395 = vst [vmem:[#allocation31_spill] sm:$0xff] %v1942_v29 }
 0x369   : > { %540 = vbcast.lane.b32.xlu0 %v1709_v22, 265  ;;  %560 = vbcast.lane.b32.xlu1 %v1715_v25, 257 }
 0x36b   : > { %v1946_v24 = vpop.permute.xlu0 %858  ;;  %v1948_v30 = vpop.permute.xlu1 %854 }
 0x36c   : > { %2396 = vst [vmem:[#allocation32_spill] sm:$0xff] %v1946_v24  ;;  %2397 = vst [vmem:[#allocation33_spill] sm:$0xff] %v1948_v30 }
 0x36d   : > { %572 = vbcast.lane.b32.xlu0 %v1717_v27, 265  ;;  %504 = vbcast.lane.b32.xlu1 %v1717_v27, 256 }
 0x36f   : > { %v1952_v28 = vpop.permute.xlu0 %896  ;;  %v1954_v33 = vpop.permute.xlu1 %892 }
 0x370   : > { %2398 = vst [vmem:[#allocation34_spill] sm:$0xff] %v1952_v28  ;;  %2399 = vst [vmem:[#allocation35_spill] sm:$0xff] %v1954_v33 }
 0x371   : > { %596 = vbcast.lane.b32.xlu0 %v1707_v21, 266  ;;  %536 = vbcast.lane.b32.xlu1 %v1709_v22, 257 }
 0x373   : > { %v1958_v29 = vpop.permute.xlu0 %940  ;;  %v1960_v19 = vpop.permute.xlu1 %936 }
 0x374   : > { %2400 = vst [vmem:[#allocation36_spill] sm:$0xff] %v1958_v29  ;;  %2401 = vst [vmem:[#allocation37_spill] sm:$0xff] %v1960_v19 }
 0x375   : > { %628 = vbcast.lane.b32.xlu0 %v1715_v25, 266  ;;  %568 = vbcast.lane.b32.xlu1 %v1717_v27, 257 }
 0x377   : > { %v1964_v30 = vpop.permute.xlu0 %907  ;;  %v1966_v24 = vpop.permute.xlu1 %903 }
 0x378   : > { %2402 = vst [vmem:[#allocation38_spill] sm:$0xff] %v1964_v30  ;;  %2403 = vst [vmem:[#allocation39_spill] sm:$0xff] %v1966_v24 }
 0x379   : > { %604 = vbcast.lane.b32.xlu0 %v1709_v22, 266  ;;  %592 = vbcast.lane.b32.xlu1 %v1707_v21, 258 }
 0x37b   : > { %v1970_v26 = vpop.permute.xlu0 %951  ;;  %v1972_v20 = vpop.permute.xlu1 %947 }
 0x37c   : > { %2404 = vst [vmem:[#allocation40_spill] sm:$0xff] %v1970_v26  ;;  %2405 = vst [vmem:[#allocation41_spill] sm:$0xff] %v1972_v20 }
 0x37d   : > { %636 = vbcast.lane.b32.xlu0 %v1717_v27, 266  ;;  %624 = vbcast.lane.b32.xlu1 %v1715_v25, 258 }
 0x37f   : > { %v1976_v19 = vpop.permute.xlu0 %975  ;;  %v1978_v33 = vpop.permute.xlu1 %971 }
 0x380   : > { %2406 = vst [vmem:[#allocation42_spill] sm:$0xff] %v1976_v19  ;;  %2407 = vst [vmem:[#allocation43_spill] sm:$0xff] %v1978_v33 }
 0x381   : > { %1047 = vbcast.lane.b32.xlu0 %v1686_v1, 266  ;;  %600 = vbcast.lane.b32.xlu1 %v1709_v22, 258 }
 0x383   : > { %v1982_v24 = vpop.permute.xlu0 %1007  ;;  %v1984_v30 = vpop.permute.xlu1 %1003 }
 0x384   : > { %2408 = vst [vmem:[#allocation44_spill] sm:$0xff] %v1982_v24  ;;  %2409 = vst [vmem:[#allocation45_spill] sm:$0xff] %v1984_v30 }
 0x385   : > { %1079 = vbcast.lane.b32.xlu0 %v1689_v2, 266  ;;  %632 = vbcast.lane.b32.xlu1 %v1717_v27, 258 }
 0x387   : > { %v1988_v21 = vpop.permute.xlu0 %983  ;;  %v1990_v20 = vpop.permute.xlu1 %979 }
 0x388   : > { %2410 = vst [vmem:[#allocation46_spill] sm:$0xff] %v1988_v21  ;;  %2411 = vst [vmem:[#allocation47_spill] sm:$0xff] %v1990_v20 }
 0x389   : > { %1043 = vbcast.lane.b32.xlu1 %v1686_v1, 258 }
 0x38b   : > { %v1993_v25 = vpop.permute.xlu0 %1015  ;;  %v1995_v26 = vpop.permute.xlu1 %1011 }
 0x38c   : > { %2412 = vst [vmem:[#allocation48_spill] sm:$0xff] %v1993_v25  ;;  %2413 = vst [vmem:[#allocation49_spill] sm:$0xff] %v1995_v26 }
 0x38d   : > { %1075 = vbcast.lane.b32.xlu1 %v1689_v2, 258 }
 0x38f   : > { %v1998_v22 = vpop.permute.xlu0 %1039  ;;  %v2000_v24 = vpop.permute.xlu1 %1035 }
 0x390   : > { %2414 = vst [vmem:[#allocation50_spill] sm:$0xff] %v1998_v22  ;;  %2415 = vst [vmem:[#allocation51_spill] sm:$0xff] %v2000_v24 }
 0x393   : > { %v2002_v30 = vpop.permute.xlu0 %1071  ;;  %v2004_v33 = vpop.permute.xlu1 %1067 }
 0x394   : > { %2416 = vst [vmem:[#allocation52_spill] sm:$0xff] %v2002_v30  ;;  %2417 = vst [vmem:[#allocation53_spill] sm:$0xff] %v2004_v33 }
 0x397   : > { %v443_v27 = vpop.permute.xlu0 %442  ;;  %v428_v21 = vpop.permute.xlu1 %427 }
 0x39b   : > { %v2006_v29 = vpop.permute.xlu0 %453  ;;  %v432_v20 = vpop.permute.xlu1 %431 }
 0x39c   : > { %2418 = vst [vmem:[#allocation54_spill] sm:$0xff] %v2006_v29 }
 0x39f   : > { %v2008_v1 = vpop.permute.xlu0 %464  ;;  %v2010_v25 = vpop.permute.xlu1 %438 }
 0x3a0   : > { %2419 = vst [vmem:[#allocation55_spill] sm:$0xff] %v2008_v1 }
 0x3a3   : > { %v476_v26 = vpop.permute.xlu0 %475  ;;  %v2012_v19 = vpop.permute.xlu1 %449 }
 0x3a4   : > { %2420 = vst [vmem:[#allocation56_spill] sm:$0xff] %v2012_v19 }
 0x3a7   : > { %v517_v2 = vpop.permute.xlu0 %516  ;;  %v2014_v22 = vpop.permute.xlu1 %460 }
 0x3a8   : > { %2421 = vst [vmem:[#allocation57_spill] sm:$0xff] %v2014_v22  ;;  %v1082_v1 = vsel %vm418_vm2, %v432_v20, %v517_v2 }
 0x3ab   : > { %v549_v24 = vpop.permute.xlu0 %548  ;;  %v472_v32 = vpop.permute.xlu1 %471 }
 0x3ac   : > { %v1090_v63 = vsel %vm418_vm2, %v476_v26, %v549_v24 }
 0x3af   : > { %v487_v30 = vpop.permute.xlu0 %486  ;;  %v513_v31 = vpop.permute.xlu1 %512 }
 0x3b3   : > { %v525_v33 = vpop.permute.xlu0 %524  ;;  %v545_v28 = vpop.permute.xlu1 %544 }
 0x3b7   : > { %v557_v18 = vpop.permute.xlu0 %556  ;;  %v2016_v23 = vpop.permute.xlu1 %482 }
 0x3bb   : > { %v581_v29 = vpop.permute.xlu0 %580  ;;  %v521_v12 = vpop.permute.xlu1 %520 }
 0x3bc   : > { %v1099_v19 = vsel %vm1097_vm6, %v1082_v1, %v581_v29  ;;  %v1081_v29 = vsel %vm418_vm2, %v428_v21, %v513_v31  ;;  %v1092_v31 = vsel %vm418_vm2, %v487_v30, %v557_v18 }
 0x3bd   : > { %v1116_v22 = vsel %vm1114_vm7, %v1099_v19, %v1733_v34 }
 0x3be   : > { %v1133_v5 = vsel %vm1131_vm8, %v1116_v22, %v1757_v42  ;;  %v1084_v42 = vsel %vm418_vm2, %v443_v27, %v525_v33 }
 0x3bf   : > { %v613_v57 = vpop.permute.xlu0 %612  ;;  %v553_v16 = vpop.permute.xlu1 %552  ;;  %v1150_v20 = vsel %vm1148_vm9, %v1133_v5, %v1781_v50 }
 0x3c0   : > { %v1107_v17 = vsel %vm1097_vm6, %v1090_v63, %v613_v57  ;;  %v1167_v50 = vsel %vm1165_vm10, %v1150_v20, %v1805_v58  ;;  %v1089_v58 = vsel %vm418_vm2, %v472_v32, %v545_v28 }
 0x3c1   : > { %v1124_v2 = vsel %vm1114_vm7, %v1107_v17, %v1739_v36 }
 0x3c2   : > { %v1141_v34 = vsel %vm1131_vm8, %v1124_v2, %v1763_v44 }
 0x3c3   : > { %v589_v19 = vpop.permute.xlu0 %588  ;;  %v577_v26 = vpop.permute.xlu1 %576  ;;  %v1158_v36 = vsel %vm1148_vm9, %v1141_v34, %v1787_v52 }
 0x3c4   : > { %v1101_v24 = vsel %vm1097_vm6, %v1084_v42, %v589_v19  ;;  %v1098_v57 = vsel %vm1097_vm6, %v1081_v29, %v577_v26  ;;  %v1175_v28 = vsel %vm1165_vm10, %v1158_v36, %v1811_v60 }
 0x3c5   : > { %v1118_v44 = vsel %vm1114_vm7, %v1101_v24, %v1745_v38  ;;  %v1115_v5 = vsel %vm1114_vm7, %v1098_v57, %v1735_v35  ;;  %v1184_v35 = vsel %vm1182_vm11, %v1167_v50, %v1829_v6  ;;  %v2425_v24 = vld [vmem:[#allocation4_spill] sm:$0xff]  ;;  %v2426_v50 = vld [vmem:[#allocation3_spill] sm:$0xff] }
 0x3c6   : > { %v1135_v63 = vsel %vm1131_vm8, %v1118_v44, %v1769_v46  ;;  %v1132_v17 = vsel %vm1131_vm8, %v1115_v5, %v1759_v43  ;;  %v2428_v44 = vld [vmem:[#allocation9_spill] sm:$0xff] }
 0x3c7   : > { %v1149_v52 = vsel %vm1148_vm9, %v1132_v17, %v1783_v51  ;;  %v621_v33 = vpop.permute.xlu0 %620  ;;  %v609_v38 = vpop.permute.xlu1 %608  ;;  %v1152_v18 = vsel %vm1148_vm9, %v1135_v63, %v1793_v54  ;;  %v1201_v54 = vsel %vm1199_vm12, %v1184_v35, %v1853_v0  ;;  %v2429_v63 = vld [vmem:[#allocation8_spill] sm:$0xff] }
 0x3c8   : > { %v1109_v21 = vsel %vm1097_vm6, %v1092_v31, %v621_v33  ;;  %v1106_v46 = vsel %vm1097_vm6, %v1089_v58, %v609_v38  ;;  %v1166_v43 = vsel %vm1165_vm10, %v1149_v52, %v1807_v59 }
 0x3c9   : > { %v1126_v51 = vsel %vm1114_vm7, %v1109_v21, %v1751_v40  ;;  %v1123_v30 = vsel %vm1114_vm7, %v1106_v46, %v1741_v37  ;;  %v1183_v6 = vsel %vm1182_vm11, %v1166_v43, %v1831_v7  ;;  %v1083_v40 = vsel %vm418_vm2, %v2010_v25, %v521_v12  ;;  %v2430_v46 = vld [vmem:[#allocation54_spill] sm:$0xff] }
 0x3ca   : > { %v1143_v32 = vsel %vm1131_vm8, %v1126_v51, %v1775_v48  ;;  %v1140_v59 = vsel %vm1131_vm8, %v1123_v30, %v1765_v45  ;;  %v1200_v60 = vsel %vm1199_vm12, %v1183_v6, %v1855_v13  ;;  %v1192_v48 = vsel %vm1182_vm11, %v1175_v28, %v1835_v8  ;;  %v2431_v30 = vld [vmem:[#allocation10_spill] sm:$0xff] }
 0x3cb   : > { %v1157_v37 = vsel %vm1148_vm9, %v1140_v59, %v1789_v53  ;;  %v498_v22 = vpop.permute.xlu0 %497  ;;  %v585_v7 = vpop.permute.xlu1 %584  ;;  %v1216_v27 = vpack.c.bf16 %v1201_v54, %v1200_v60  ;;  %v1169_v45 = vsel %vm1165_vm10, %v1152_v18, %v1817_v62  ;;  %v1160_v12 = vsel %vm1148_vm9, %v1143_v32, %v1799_v56  ;;  %v2432_v32 = vld [vmem:[#allocation18_spill] sm:$0xff] }
 0x3cc   : > { %v1100_v13 = vsel %vm1097_vm6, %v1083_v40, %v585_v7  ;;  %v1174_v0 = vsel %vm1165_vm10, %v1157_v37, %v1813_v61  ;;  %v1209_v61 = vsel %vm1199_vm12, %v1192_v48, %v1859_v14  ;;  %v1091_v56 = vsel %vm418_vm2, %v2016_v23, %v553_v16  ;;  %v2433_v7 = vld [vmem:[#allocation26_spill] sm:$0xff]  ;;  %v2434_v48 = vld [vmem:[#allocation12_spill] sm:$0xff] }
 0x3cd   : > { %v1117_v53 = vsel %vm1114_vm7, %v1100_v13, %v1747_v39  ;;  %1537 = vmatprep.mubr.msk.bf16.mxu0 %vm1238_vm13, %v1216_v27  ;;  %v1191_v25 = vsel %vm1182_vm11, %v1174_v0, %v1837_v9  ;;  %v1186_v9 = vsel %vm1182_vm11, %v1169_v45, %v1841_v10  ;;  %v2422_v10 = vld [vmem:[#allocation7_spill] sm:$0xff]  ;;  %v2435_v13 = vld [vmem:[#allocation20_spill] sm:$0xff] }
 0x3ce   : > { %v1134_v8 = vsel %vm1131_vm8, %v1117_v53, %v1771_v47  ;;  %v1208_v62 = vsel %vm1199_vm12, %v1191_v25, %v1861_v15  ;;  %v1177_v47 = vsel %vm1165_vm10, %v1160_v12, %v1823_v4  ;;  %v2423_v4 = vld [vmem:[#allocation6_spill] sm:$0xff]  ;;  %v2436_v12 = vld [vmem:[#allocation56_spill] sm:$0xff]  ;;  %v2437_v25 = vld [vmem:[#allocation55_spill] sm:$0xff] }
 0x3cf   : > { %v1151_v39 = vsel %vm1148_vm9, %v1134_v8, %v1795_v55  ;;  %v533_v1 = vpop.permute.xlu0 %532  ;;  %v617_v20 = vpop.permute.xlu1 %616  ;;  %v1220_v2 = vpack.c.bf16 %v1209_v61, %v1208_v62  ;;  %v1203_v29 = vsel %vm1199_vm12, %v1186_v9, %v2423_v4  ;;  %v1194_v57 = vsel %vm1182_vm11, %v1177_v47, %v2425_v24  ;;  %v2438_v61 = vld [vmem:[#allocation34_spill] sm:$0xff]  ;;  %v2440_v9 = vld [vmem:[#allocation11_spill] sm:$0xff] }
 0x3d0   : > { %v1168_v15 = vsel %vm1165_vm10, %v1151_v39, %v1819_v3  ;;  %v1108_v14 = vsel %vm1097_vm6, %v1091_v56, %v617_v20  ;;  %v2424_v3 = vld [vmem:[#allocation2_spill] sm:$0xff]  ;;  %v1211_v17 = vsel %vm1199_vm12, %v1194_v57, %v2429_v63  ;;  %v1086_v43 = vsel %vm418_vm2, %v2430_v46, %v533_v1  ;;  %v2439_v20 = vld [vmem:[#allocation28_spill] sm:$0xff]  ;;  %v2449_v63 = vld [vmem:[#allocation43_spill] sm:$0xff] }
 0x3d1   : > { %v1125_v16 = vsel %vm1114_vm7, %v1108_v14, %v1753_v41  ;;  %1545 = vmatprep.mubr.msk.bf16.mxu1 %vm1238_vm13, %v1220_v2  ;;  %v1185_v55 = vsel %vm1182_vm11, %v1168_v15, %v1843_v11  ;;  %v2441_v14 = vld [vmem:[#allocation19_spill] sm:$0xff]  ;;  %v2453_v46 = vld [vmem:[#allocation50_spill] sm:$0xff] }
 0x3d2   : > { %v1142_v23 = vsel %vm1131_vm8, %v1125_v16, %v1777_v49  ;;  %v1202_v34 = vsel %vm1199_vm12, %v1185_v55, %v2422_v10  ;;  %v2427_v49 = vld [vmem:[#allocation5_spill] sm:$0xff] }
 0x3d3   : > { %v1159_v42 = vsel %vm1148_vm9, %v1142_v23, %v2424_v3  ;;  %v565_v19 = vpop.permute.xlu0 %564  ;;  %v494_v26 = vpop.permute.xlu1 %493  ;;  %v1217_v41 = vpack.c.bf16 %v1203_v29, %v1202_v34  ;;  %v2442_v23 = vld [vmem:[#allocation14_spill] sm:$0xff]  ;;  %v2443_v34 = vld [vmem:[#allocation27_spill] sm:$0xff] }
 0x3d4   : > { %v1176_v11 = vsel %vm1165_vm10, %v1159_v42, %v2426_v50  ;;  %v1094_v60 = vsel %vm418_vm2, %v498_v22, %v565_v19  ;;  %v2444_v42 = vld [vmem:[#allocation42_spill] sm:$0xff] }
 0x3d5   : > { %1538 = vmatmul.mubr.msk.bf16.vlgmr.msra.gmra.mrb[0].mxu0 %vm1238_vm13, %v1217_v41  ;;  %v1193_v36 = vsel %vm1182_vm11, %v1176_v11, %v2427_v49  ;;  %v2445_v41 = vld [vmem:[#allocation36_spill] sm:$0xff]  ;;  %v2447_v49 = vld [vmem:[#allocation57_spill] sm:$0xff] }
 0x3d6   : > { %v1210_v5 = vsel %vm1199_vm12, %v1193_v36, %v2428_v44  ;;  %v2448_v44 = vld [vmem:[#allocation13_spill] sm:$0xff] }
 0x3d7   : > { %v509_v58 = vpop.permute.xlu0 %508  ;;  %v529_v31 = vpop.permute.xlu1 %528  ;;  %v1221_v52 = vpack.c.bf16 %v1211_v17, %v1210_v5 }
 0x3d8   : > { %v1085_v53 = vsel %vm418_vm2, %v2436_v12, %v529_v31 }
 0x3d9   : > { %1546 = vmatmul.mubr.msk.bf16.vlgmr.msra.gmra.mrb[0].mxu1 %vm1238_vm13, %v1221_v52  ;;  %v2451_v52 = vld [vmem:[#allocation21_spill] sm:$0xff] }
 0x3db   : > { %v541_v33 = vpop.permute.xlu0 %540  ;;  %v561_v38 = vpop.permute.xlu1 %560 }
 0x3dc   : > { %v1088_v8 = vsel %vm418_vm2, %v2437_v25, %v541_v33  ;;  %v1093_v15 = vsel %vm418_vm2, %v494_v26, %v561_v38  ;;  %v2446_v26 = vld [vmem:[#allocation35_spill] sm:$0xff] }
 0x3dd   : > { %v2452_v38 = vld [vmem:[#allocation51_spill] sm:$0xff] }
 0x3df   : > { %v573_v35 = vpop.permute.xlu0 %572  ;;  %v505_v21 = vpop.permute.xlu1 %504 }
 0x3e0   : > { %v1096_v55 = vsel %vm418_vm2, %v509_v58, %v573_v35  ;;  %v2450_v58 = vld [vmem:[#allocation22_spill] sm:$0xff] }
 0x3e3   : > { %v597_v28 = vpop.permute.xlu0 %596  ;;  %v537_v18 = vpop.permute.xlu1 %536 }
 0x3e4   : > { %v1103_v51 = vsel %vm1097_vm6, %v1086_v43, %v597_v28  ;;  %v1087_v36 = vsel %vm418_vm2, %v2447_v49, %v537_v18  ;;  %v2454_v28 = vld [vmem:[#allocation16_spill] sm:$0xff] }
 0x3e5   : > { %v1120_v6 = vsel %vm1114_vm7, %v1103_v51, %v2431_v30  ;;  %v2455_v51 = vld [vmem:[#allocation29_spill] sm:$0xff]  ;;  %v2474_v49 = vld [vmem:[#allocation40_spill] sm:$0xff] }
 0x3e6   : > { %v1137_v59 = vsel %vm1131_vm8, %v1120_v6, %v2432_v32 }
 0x3e7   : > { %v629_v54 = vpop.permute.xlu0 %628  ;;  %v569_v40 = vpop.permute.xlu1 %568  ;;  %v1154_v27 = vsel %vm1148_vm9, %v1137_v59, %v2433_v7  ;;  %v2456_v59 = vld [vmem:[#allocation44_spill] sm:$0xff] }
 0x3e8   : > { %v1111_v37 = vsel %vm1097_vm6, %v1094_v60, %v629_v54  ;;  %v1171_v56 = vsel %vm1165_vm10, %v1154_v27, %v2438_v61  ;;  %v2457_v54 = vld [vmem:[#allocation37_spill] sm:$0xff]  ;;  %v2458_v27 = vld [vmem:[#allocation30_spill] sm:$0xff] }
 0x3e9   : > { %v1128_v45 = vsel %vm1114_vm7, %v1111_v37, %v2434_v48  ;;  %v1188_v19 = vsel %vm1182_vm11, %v1171_v56, %v2444_v42  ;;  %v2464_v56 = vld [vmem:[#allocation52_spill] sm:$0xff]  ;;  %v2471_v42 = vld [vmem:[#allocation46_spill] sm:$0xff] }
 0x3ea   : > { %v1145_v0 = vsel %vm1131_vm8, %v1128_v45, %v2435_v13  ;;  %v1205_v43 = vsel %vm1199_vm12, %v1188_v19, %v2453_v46  ;;  %v2459_v45 = vld [vmem:[#allocation15_spill] sm:$0xff] }
 0x3eb   : > { %v605_v22 = vpop.permute.xlu0 %604  ;;  %v593_v62 = vpop.permute.xlu1 %592  ;;  %v1162_v2 = vsel %vm1148_vm9, %v1145_v0, %v2439_v20  ;;  %v2460_v0 = vld [vmem:[#allocation45_spill] sm:$0xff] }
 0x3ec   : > { %v1105_v39 = vsel %vm1097_vm6, %v1088_v8, %v605_v22  ;;  %v1102_v1 = vsel %vm1097_vm6, %v1085_v53, %v593_v62  ;;  %v1179_v24 = vsel %vm1165_vm10, %v1162_v2, %v2445_v41  ;;  %v2461_v53 = vld [vmem:[#allocation24_spill] sm:$0xff]  ;;  %v2462_v8 = vld [vmem:[#allocation23_spill] sm:$0xff]  ;;  %v2463_v62 = vld [vmem:[#allocation53_spill] sm:$0xff] }
 0x3ed   : > { %v1119_v47 = vsel %vm1114_vm7, %v1102_v1, %v2440_v9  ;;  %v1122_v10 = vsel %vm1114_vm7, %v1105_v39, %v2442_v23  ;;  %v1196_v60 = vsel %vm1182_vm11, %v1179_v24, %v2456_v59  ;;  %v1095_v1 = vsel %vm418_vm2, %v505_v21, %v569_v40  ;;  %v2467_v23 = vld [vmem:[#allocation39_spill] sm:$0xff]  ;;  %v2470_v40 = vld [vmem:[#allocation25_spill] sm:$0xff] }
 0x3ee   : > { %v1136_v16 = vsel %vm1131_vm8, %v1119_v47, %v2441_v14  ;;  %v1139_v31 = vsel %vm1131_vm8, %v1122_v10, %v2450_v58  ;;  %v1213_v39 = vsel %vm1199_vm12, %v1196_v60, %v2464_v56  ;;  %v2465_v47 = vld [vmem:[#allocation31_spill] sm:$0xff]  ;;  %v2466_v14 = vld [vmem:[#allocation38_spill] sm:$0xff] }
 0x3ef   : > { %v1153_v4 = vsel %vm1148_vm9, %v1136_v16, %v2443_v34  ;;  %v637_v29 = vpop.permute.xlu0 %636  ;;  %v625_v3 = vpop.permute.xlu1 %624  ;;  %v1156_v48 = vsel %vm1148_vm9, %v1139_v31, %v2458_v27  ;;  %v2468_v34 = vld [vmem:[#allocation32_spill] sm:$0xff]  ;;  %v2472_v41 = vld [vmem:[#allocation47_spill] sm:$0xff]  ;;  %v2269_v27 = vld [vmem:[%s2364_s8] ss:$0 sm:$0xff] }
 0x3f0   : > { %v1170_v57 = vsel %vm1165_vm10, %v1153_v4, %v2446_v26  ;;  %v1113_v50 = vsel %vm1097_vm6, %v1096_v55, %v637_v29  ;;  %v1110_v11 = vsel %vm1097_vm6, %v1093_v15, %v625_v3  ;;  %v1173_v16 = vsel %vm1165_vm10, %v1156_v48, %v2466_v14  ;;  %v2469_v29 = vld [vmem:[#allocation17_spill] sm:$0xff]  ;;  %v2476_v31 = vld [vmem:[#allocation48_spill] sm:$0xff] }
 0x3f1   : > { %v1127_v5 = vsel %vm1114_vm7, %v1110_v11, %v2448_v44  ;;  %v1187_v17 = vsel %vm1182_vm11, %v1170_v57, %v2449_v63  ;;  %v1130_v18 = vsel %vm1114_vm7, %v1113_v50, %v2454_v28  ;;  %v1190_v19 = vsel %vm1182_vm11, %v1173_v16, %v2471_v42  ;;  %v2473_v57 = vld [vmem:[#allocation33_spill] sm:$0xff] }
 0x3f2   : > { %v1144_v33 = vsel %vm1131_vm8, %v1127_v5, %v2451_v52  ;;  %v1204_v35 = vsel %vm1199_vm12, %v1187_v17, %v2452_v38  ;;  %v1147_v25 = vsel %vm1131_vm8, %v1130_v18, %v2461_v53  ;;  %v2475_v5 = vld [vmem:[#allocation41_spill] sm:$0xff]  ;;  %v2255_v18 = vld [vmem:[%s2362_s6] ss:$0 sm:$0xff] }
 0x3f3   : > { %v1161_v30 = vsel %vm1148_vm9, %v1144_v33, %v2455_v51  ;;  %v601_v6 = vpop.permute.xlu1 %600  ;;  %v1218_v32 = vpack.c.bf16 %v1205_v43, %v1204_v35  ;;  %v1048_v20 = vpop.permute.xlu0 %1047  ;;  %v1164_v4 = vsel %vm1148_vm9, %v1147_v25, %v2468_v34  ;;  %v2477_v33 = vld [vmem:[#allocation49_spill] sm:$0xff] }
 0x3f4   : > { %v1178_v37 = vsel %vm1165_vm10, %v1161_v30, %v2457_v54  ;;  %v1104_v7 = vsel %vm1097_vm6, %v1087_v36, %v601_v6  ;;  %v1207_v11 = vsel %vm1199_vm12, %v1190_v19, %v1048_v20  ;;  %v1181_v36 = vsel %vm1165_vm10, %v1164_v4, %v2474_v49 }
 0x3f5   : > { %v1121_v13 = vsel %vm1114_vm7, %v1104_v7, %v2459_v45  ;;  %1541 = vmatprep.mubr.msk.bf16.mxu0 %vm1238_vm13, %v1218_v32  ;;  %v1195_v12 = vsel %vm1182_vm11, %v1178_v37, %v2460_v0  ;;  %v1198_v52 = vsel %vm1182_vm11, %v1181_v36, %v2476_v31  ;;  %v2261_v32 = vld [vmem:[%s2363_s7] ss:$0 sm:$0xff] }
 0x3f6   : > { %v1138_v22 = vsel %vm1131_vm8, %v1121_v13, %v2462_v8  ;;  %v1212_v61 = vsel %vm1199_vm12, %v1195_v12, %v2463_v62 }
 0x3f7   : > { %v633_v2 = vpop.permute.xlu1 %632  ;;  %v1222_v9 = vpack.c.bf16 %v1213_v39, %v1212_v61  ;;  %v1155_v15 = vsel %vm1148_vm9, %v1138_v22, %v2465_v47  ;;  %v1080_v17 = vpop.permute.xlu0 %1079 }
 0x3f8   : > { %v1112_v55 = vsel %vm1097_vm6, %v1095_v1, %v633_v2  ;;  %v1172_v10 = vsel %vm1165_vm10, %v1155_v15, %v2467_v23  ;;  %v1215_v46 = vsel %vm1199_vm12, %v1198_v52, %v1080_v17 }
 0x3f9   : > { %v1129_v21 = vsel %vm1114_vm7, %v1112_v55, %v2469_v29  ;;  %1549 = vmatprep.mubr.msk.bf16.mxu1 %vm1238_vm13, %v1222_v9  ;;  %v1189_v24 = vsel %vm1182_vm11, %v1172_v10, %v2472_v41 }
 0x3fa   : > { %v1146_v3 = vsel %vm1131_vm8, %v1129_v21, %v2470_v40 }
 0x3fb   : > { %v1044_v26 = vpop.permute.xlu1 %1043  ;;  %v1163_v50 = vsel %vm1148_vm9, %v1146_v3, %v2473_v57 }
 0x3fc   : > { %v1206_v44 = vsel %vm1199_vm12, %v1189_v24, %v1044_v26  ;;  %v1180_v63 = vsel %vm1165_vm10, %v1163_v50, %v2475_v5 }
 0x3fd   : > { %v1219_v58 = vpack.c.bf16 %v1207_v11, %v1206_v44  ;;  %v1197_v38 = vsel %vm1182_vm11, %v1180_v63, %v2477_v33 }
 0x3ff   : > { %1542 = vmatmul.mubr.msk.bf16.gmra.mrb[4].mxu0 %vm1238_vm13, %v1219_v58  ;;  %v1076_v35 = vpop.permute.xlu1 %1075 }
 0x400   : > { %v1214_v43 = vsel %vm1199_vm12, %v1197_v38, %v1076_v35 }
 0x401   : > { %v1223_v28 = vpack.c.bf16 %v1215_v46, %v1214_v43 }
 0x403   : > { %1550 = vmatmul.mubr.msk.bf16.gmra.mrb[4].mxu1 %vm1238_vm13, %v1223_v28 }
 0x4a8   : > { %v1539_v51 = vpop.f32.mrb[0].mxu0 }
 0x4a9   : > { %v1313_v30 = vadd.f32 %v1539_v51, %v2255_v18  ;;  %v1304_v6 = vpop.f32.mrb[1].mxu0 }
 0x4aa   : > { %v1305_v59 = vadd.f32 %v2255_v18, %v1304_v6  ;;  %v1540_v60 = vpop.f32.mrb[2].mxu0 }
 0x4ab   : > { %v1369_v54 = vmax.f32 %v1313_v30, 0.0  ;;  %v1316_v37 = vadd.f32 %v1540_v60, %v2255_v18  ;;  %v1307_v7 = vpop.f32.mrb[3].mxu0 }
 0x4ac   : > { %v1367_v48 = vmax.f32 %v1305_v59, 0.0  ;;  %v1308_v45 = vadd.f32 %v2255_v18, %v1307_v7  ;;  %v1547_v13 = vpop.f32.mrb[0].mxu1 }
 0x4ad   : > { %v1392_v0 = vmul.f32 %v2261_v32, %v1369_v54  ;;  %v1370_v12 = vmax.f32 %v1316_v37, 0.0  ;;  %v1345_v53 = vadd.f32 %v1547_v13, %v2255_v18  ;;  %v1336_v25 = vpop.f32.mrb[1].mxu1 }
 0x4ae   : > { %v1390_v8 = vmul.f32 %v2261_v32, %v1367_v48  ;;  %v1368_v22 = vmax.f32 %v1308_v45, 0.0  ;;  %v1337_v62 = vadd.f32 %v2255_v18, %v1336_v25  ;;  %v1548_v61 = vpop.f32.mrb[2].mxu1 }
 0x4af   : > { %v1415_v56 = vadd.f32 %v2269_v27, %v1392_v0  ;;  %v1393_v39 = vmul.f32 %v2261_v32, %v1370_v12  ;;  %v1377_v1 = vmax.f32 %v1345_v53, 0.0  ;;  %v1348_v20 = vadd.f32 %v1548_v61, %v2255_v18  ;;  %v1339_v2 = vpop.f32.mrb[3].mxu1 }
 0x4b0   : > { %v1413_v9 = vadd.f32 %v2269_v27, %v1390_v8  ;;  %v1391_v47 = vmul.f32 %v2261_v32, %v1368_v22  ;;  %v1375_v15 = vmax.f32 %v1337_v62, 0.0  ;;  %v1340_v14 = vadd.f32 %v2255_v18, %v1339_v2 }
 0x4b1   : > { %1431 = vst.msk [vmem:[%s2277_s15 + $0x10] sm:$0xff] %vm1199_vm12, %v1415_v56  ;;  %v1416_v16 = vadd.f32 %v2269_v27, %v1393_v39  ;;  %v1400_v55 = vmul.f32 %v2261_v32, %v1377_v1  ;;  %v1378_v23 = vmax.f32 %v1348_v20, 0.0 }
 0x4b2   : > { %1429 = vst.msk [vmem:[%s2277_s15] sm:$0xff] %vm1199_vm12, %v1413_v9  ;;  %v1414_v10 = vadd.f32 %v2269_v27, %v1391_v47  ;;  %v1398_v34 = vmul.f32 %v2261_v32, %v1375_v15  ;;  %v1376_v4 = vmax.f32 %v1340_v14, 0.0 }
 0x4b3   : > { %1432 = vst.msk [vmem:[%s2277_s15 + $0x18] sm:$0xff] %vm1199_vm12, %v1416_v16  ;;  %v1423_v29 = vadd.f32 %v2269_v27, %v1400_v55  ;;  %v1401_v21 = vmul.f32 %v2261_v32, %v1378_v23 }
 0x4b4   : > { %1430 = vst.msk [vmem:[%s2277_s15 + $0x8] sm:$0xff] %vm1199_vm12, %v1414_v10  ;;  %v1421_v40 = vadd.f32 %v2269_v27, %v1398_v34  ;;  %v1399_v3 = vmul.f32 %v2261_v32, %v1376_v4 }
 0x4b5   : > { %1439 = vst.msk [vmem:[%s2277_s15 + $0x50] sm:$0xff] %vm1199_vm12, %v1423_v29  ;;  %v1424_v42 = vadd.f32 %v2269_v27, %v1401_v21 }
 0x4b6   : > { %1437 = vst.msk [vmem:[%s2277_s15 + $0x40] sm:$0xff] %vm1199_vm12, %v1421_v40  ;;  %v1422_v19 = vadd.f32 %v2269_v27, %v1399_v3 }
 0x4b7   : > { %1440 = vst.msk [vmem:[%s2277_s15 + $0x58] sm:$0xff] %vm1199_vm12, %v1424_v42 }
 0x4b8   : > { %1438 = vst.msk [vmem:[%s2277_s15 + $0x48] sm:$0xff] %vm1199_vm12, %v1422_v19 }
 0x4d2   : > { %v1543_v41 = vpop.f32.mrb[4].mxu0 }
 0x4d3   : > { %v1329_v24 = vadd.f32 %v1543_v41, %v2255_v18  ;;  %v1320_v26 = vpop.f32.mrb[5].mxu0 }
 0x4d4   : > { %v1321_v57 = vadd.f32 %v2255_v18, %v1320_v26  ;;  %v1544_v50 = vpop.f32.mrb[6].mxu0 }
 0x4d5   : > { %v1373_v11 = vmax.f32 %v1329_v24, 0.0  ;;  %v1332_v49 = vadd.f32 %v1544_v50, %v2255_v18  ;;  %v1323_v36 = vpop.f32.mrb[7].mxu0 }
 0x4d6   : > { %v1371_v44 = vmax.f32 %v1321_v57, 0.0  ;;  %v1324_v5 = vadd.f32 %v2255_v18, %v1323_v36  ;;  %v1551_v63 = vpop.f32.mrb[4].mxu1 }
 0x4d7   : > { %v1396_v17 = vmul.f32 %v2261_v32, %v1373_v11  ;;  %v1374_v58 = vmax.f32 %v1332_v49, 0.0  ;;  %v1361_v31 = vadd.f32 %v1551_v63, %v2255_v18  ;;  %v1352_v52 = vpop.f32.mrb[5].mxu1 }
 0x4d8   : > { %v1394_v33 = vmul.f32 %v2261_v32, %v1371_v44  ;;  %v1372_v38 = vmax.f32 %v1324_v5, 0.0  ;;  %v1353_v35 = vadd.f32 %v2255_v18, %v1352_v52  ;;  %v1552_v46 = vpop.f32.mrb[6].mxu1 }
 0x4d9   : > { %v1419_v43 = vadd.f32 %v2269_v27, %v1396_v17  ;;  %v1397_v28 = vmul.f32 %v2261_v32, %v1374_v58  ;;  %v1381_v51 = vmax.f32 %v1361_v31, 0.0  ;;  %v1364_v30 = vadd.f32 %v1552_v46, %v2255_v18  ;;  %v1355_v6 = vpop.f32.mrb[7].mxu1 }
 0x4da   : > { %v1417_v59 = vadd.f32 %v2269_v27, %v1394_v33  ;;  %v1395_v60 = vmul.f32 %v2261_v32, %v1372_v38  ;;  %v1379_v54 = vmax.f32 %v1353_v35, 0.0  ;;  %v1356_v37 = vadd.f32 %v2255_v18, %v1355_v6 }
 0x4db   : > { %1435 = vst.msk [vmem:[%s2277_s15 + $0x30] sm:$0xff] %vm1199_vm12, %v1419_v43  ;;  %v1420_v7 = vadd.f32 %v2269_v27, %v1397_v28  ;;  %v1404_v48 = vmul.f32 %v2261_v32, %v1381_v51  ;;  %v1382_v45 = vmax.f32 %v1364_v30, 0.0 }
 0x4dc   : > { %1433 = vst.msk [vmem:[%s2277_s15 + $0x20] sm:$0xff] %vm1199_vm12, %v1417_v59  ;;  %v1418_v13 = vadd.f32 %v2269_v27, %v1395_v60  ;;  %v1402_v0 = vmul.f32 %v2261_v32, %v1379_v54  ;;  %v1380_v12 = vmax.f32 %v1356_v37, 0.0 }
 0x4dd   : > { %1436 = vst.msk [vmem:[%s2277_s15 + $0x38] sm:$0xff] %vm1199_vm12, %v1420_v7  ;;  %v1427_v18 = vadd.f32 %v2269_v27, %v1404_v48  ;;  %v1405_v53 = vmul.f32 %v2261_v32, %v1382_v45 }
 0x4de   : > { %1434 = vst.msk [vmem:[%s2277_s15 + $0x28] sm:$0xff] %vm1199_vm12, %v1418_v13  ;;  %v1425_v25 = vadd.f32 %v2269_v27, %v1402_v0  ;;  %v1403_v8 = vmul.f32 %v2261_v32, %v1380_v12 }
 0x4df   : > { %1443 = vst.msk [vmem:[%s2277_s15 + $0x70] sm:$0xff] %vm1199_vm12, %v1427_v18  ;;  %v1428_v22 = vadd.f32 %v2269_v27, %v1405_v53 }
 0x4e0   : > { %1441 = vst.msk [vmem:[%s2277_s15 + $0x60] sm:$0xff] %vm1199_vm12, %v1425_v25  ;;  %v1426_v62 = vadd.f32 %v2269_v27, %v1403_v8 }
 0x4e1   : > { %1444 = vst.msk [vmem:[%s2277_s15 + $0x78] sm:$0xff] %vm1199_vm12, %v1428_v22 }
 0x4e2   : > { %1442 = vst.msk [vmem:[%s2277_s15 + $0x68] sm:$0xff] %vm1199_vm12, %v1426_v62 }
 0x4e3 PF: > { %s19_s30 = sadd.s32 1, %s1588_s30  }
 0x4e4   : > { %p16_p4 = scmp.ge.s32.totalorder %s19_s30, 4  }
 0x4e6   :  { %18 = sbr.rel (!%p16_p4) target bundleno = 1 (0x1), region = 87 }

// kernel: resnet_se_no_head.7
= control target key start
LH: loop header
LB: loop body
LE: loop exit
PB: predicated region body
PF: predicated region fallthrough
CT: control target
= control target key end

     0   :  { %10 = vsyncpa [#allocation4], 0  ;;  %s1824_s0 = inlined_call_operand.vmem [shape: f32[2,8,16,16], index: 0, kind: input, shape index: {}]   ;;  %s1825_s1 = inlined_call_operand.vmem [shape: bf16[144,32], index: 1, kind: input, shape index: {}]   ;;  %s1826_s2 = inlined_call_operand.vmem [shape: f32[1,32], index: 2, kind: input, shape index: {}]   ;;  %s1827_s3 = inlined_call_operand.vmem [shape: f32[1,32], index: 3, kind: input, shape index: {}]   ;;  %s1828_s4 = inlined_call_operand.vmem [shape: f32[1,32], index: 4, kind: input, shape index: {}]   ;;  %s1829_s5 = inlined_call_operand.hbm [shape: f32[2,4,16,32], index: 5, kind: output, shape index: {}]  }
   0x1   :  { %12 = vsyncpa [#allocation4 + $0x1], 0  ;;  %s1361_s18 = smov 0   ;;  %s1363_s19 = smov 0  }
   0x2   :  { %s1365_s20 = smov 0   ;;  %s1367_s21 = smov 0  }
   0x3 LB: > { %s1382_s22 = sadd.s32 4294967295, %s1317_s21   ;;  %s1008_s23 = sadd.s32 4294967294, %s1317_s21   ;;  %s1317_s21 = sphi %s1367_s21, %s1835_s21   ;;  %s1313_s20 = sphi %s1365_s20, %s1834_s20   ;;  %s1309_s19 = sphi %s1363_s19, %s1833_s19   ;;  %s1305_s18 = sphi %s1361_s18, %s1832_s18  }
   0x4   : > { %s1386_s24 = sadd.s32 1, %s1317_s21   ;;  %s135_s25 = sadd.s32 1, %s1313_s20 }
   0x5   : > { %s132_s26 = ssub.s32 %s1317_s21, %s1386_s24  ;;  %p145_p0 = scmp.ne.s32.totalorder %s1313_s20, %s1309_s19 }
   0x6   : > { %p133_p1 = scmp.eq.s32.totalorder %s132_s26, 0  ;;  %p146_p2 = scmp.eq.s32.totalorder %s1382_s22, 1 }
   0x7   : > { %p151_p3 = scmp.ne.s32.totalorder %s1309_s19, %s1305_s18  ;;  %p152_p4 = scmp.eq.s32.totalorder %s1008_s23, 1 }
   0x8   : > { %s1397_s27 = scalar_select %p133_p1, %s1313_s20, %s135_s25  }
   0x9   : > { %p1399_p5 = por %p146_p2, %p145_p0  ;;  %p1403_p6 = por %p152_p4, %p151_p3 }
   0xa   : > { %p1011_p7 = scmp.ge.s32.totalorder %s1317_s21, 1  ;;  %p190_p8 = scmp.lt.s32.totalorder %s1317_s21, 3 }
   0xc   : > { %p191_p9 = pnand %p1011_p7, %p190_p8 }
   0xd   : > { %vm240_vm0 = vcmask (!%p191_p9), 130048   ;;  %vm243_vm1 = vcmask (!%p191_p9), 123904   ;;  %v1319_v0 = vmov (!%p191_p9), 0.0   ;;  %p218_p10 = scmp.lt.s32.totalorder (!%p191_p9), %s1382_s22, 1  ;;  %v1320_v1 = vmov (!%p191_p9), 0   ;;  %v1246_v2 = vld [vmem:[%s1825_s1] sm:$0xff] (!%p191_p9)  }
   0xe   : > { %194 = sbr.rel (%p191_p9) target bundleno = 446 (0x1be), region = 40  ;;  %241 = vst.msk [vmem:[#allocation2] sm:$0xff] (!%p191_p9), %vm240_vm0, %v1319_v0  ;;  %242 = vst.msk [vmem:[#allocation2 + $0x8] sm:$0xff] (!%p191_p9), %vm240_vm0, %v1319_v0  ;;  %821 = vmatprep.subr.bf16.mxu0 (!%p191_p9), %v1320_v1  ;;  %1038 = vmatprep.subr.bf16.mxu1 (!%p191_p9), %v1320_v1  ;;  %v1247_v3 = vld [vmem:[%s1825_s1 + $0x8] sm:$0xff] (!%p191_p9)   ;;  %v1248_v4 = vld [vmem:[%s1825_s1 + $0x10] sm:$0xff] (!%p191_p9)   ;;  %vm401_vm2 = vcmask (!%p191_p9), 1045504  }
   0xf   : > { %244 = vst.msk [vmem:[#allocation2 + $0x10] sm:$0x3] (!%p191_p9), %vm243_vm1, %v1319_v0  ;;  %247 = vst.msk [vmem:[#allocation2 + $0x28] sm:$0x3] (!%p191_p9), %vm243_vm1, %v1319_v0  ;;  %822 = vmatpush1.bf16.msra.mxu0 (!%p191_p9), %v1246_v2  ;;  %1047 = vmatpush1.bf16.msra.mxu1 (!%p191_p9), %v1246_v2  ;;  %vm356_vm3 = vcmask (!%p191_p9), 1046528   ;;  %v1249_v36 = vld [vmem:[%s1825_s1 + $0x18] sm:$0xff] (!%p191_p9)  }
  0x10   : > { %245 = vst.msk [vmem:[#allocation2 + $0x18] sm:$0xff] (!%p191_p9), %vm240_vm0, %v1319_v0  ;;  %246 = vst.msk [vmem:[#allocation2 + $0x20] sm:$0xff] (!%p191_p9), %vm240_vm0, %v1319_v0  ;;  %823 = vmatprep.subr.bf16.mxu0 (!%p191_p9), %v1320_v1  ;;  %1039 = vmatprep.subr.bf16.mxu1 (!%p191_p9), %v1320_v1  ;;  %s1321_s23 = smov (!%p191_p9), 32   ;;  %s1322_s25 = smov (!%p191_p9), 16   ;;  %v1250_v44 = vld [vmem:[%s1825_s1 + $0x20] sm:$0xff] (!%p191_p9)   ;;  %v1251_v2 = vld [vmem:[%s1825_s1 + $0x28] sm:$0xff] (!%p191_p9)  }
  0x11   : > { %248 = vst.msk [vmem:[#allocation2 + $0x30] sm:$0xff] (!%p191_p9), %vm240_vm0, %v1319_v0  ;;  %249 = vst.msk [vmem:[#allocation2 + $0x38] sm:$0xff] (!%p191_p9), %vm240_vm0, %v1319_v0  ;;  %s1323_s6 = smov (!%p191_p9), 48   ;;  %s1324_s11 = smov (!%p191_p9), 64   ;;  %vm686_vm4 = vcmask (!%p191_p9), 261120   ;;  %vm695_vm5 = vcmask (!%p191_p9), 392192  }
  0x12   : > { %250 = vst.msk [vmem:[#allocation2 + $0x40] sm:$0x3] (!%p191_p9), %vm243_vm1, %v1319_v0  ;;  %253 = vst.msk [vmem:[#allocation2 + $0x58] sm:$0x3] (!%p191_p9), %vm243_vm1, %v1319_v0  ;;  %s1325_s14 = smov (!%p191_p9), 80   ;;  %s1326_s17 = smov (!%p191_p9), 96  }
  0x13   : > { %251 = vst.msk [vmem:[#allocation2 + $0x48] sm:$0xff] (!%p191_p9), %vm240_vm0, %v1319_v0  ;;  %252 = vst.msk [vmem:[#allocation2 + $0x50] sm:$0xff] (!%p191_p9), %vm240_vm0, %v1319_v0  ;;  %824 = vmatpush1.bf16.msra.mxu0 (!%p191_p9), %v1247_v3  ;;  %1048 = vmatpush1.bf16.msra.mxu1 (!%p191_p9), %v1247_v3  ;;  %s1327_s26 = smov (!%p191_p9), 112   ;;  %vm704_vm6 = vcmask (!%p191_p9), 523264   ;;  %vm713_vm7 = vcmask (!%p191_p9), 654336   ;;  %vm722_vm8 = vcmask (!%p191_p9), 785408  }
  0x14   : > { %254 = vst.msk [vmem:[#allocation2 + $0x60] sm:$0xff] (!%p191_p9), %vm240_vm0, %v1319_v0  ;;  %255 = vst.msk [vmem:[#allocation2 + $0x68] sm:$0xff] (!%p191_p9), %vm240_vm0, %v1319_v0  ;;  %825 = vmatprep.subr.bf16.mxu0 (!%p191_p9), %v1320_v1  ;;  %1040 = vmatprep.subr.bf16.mxu1 (!%p191_p9), %v1320_v1  ;;  %vm731_vm9 = vcmask (!%p191_p9), 916480   ;;  %s215_s30 = sand.u32 (!%p191_p9), 1, %s1309_s19   ;;  %s1037_s12 = sshll.u32 (!%p191_p9), %s1382_s22, 10 }
  0x15   : > { %256 = vst.msk [vmem:[#allocation2 + $0x70] sm:$0x3] %vm243_vm1, %v1319_v0  ;;  %259 = vst.msk [vmem:[#allocation2 + $0x88] sm:$0x3] %vm243_vm1, %v1319_v0  ;;  %s219_s7 = scalar_select %p218_p10, %s1382_s22, 1  ;;  %v1459_v8 = vld [vmem:[#allocation2] sm:$0xff] }
  0x16   : > { %257 = vst.msk [vmem:[#allocation2 + $0x78] sm:$0xff] %vm240_vm0, %v1319_v0  ;;  %258 = vst.msk [vmem:[#allocation2 + $0x80] sm:$0xff] %vm240_vm0, %v1319_v0  ;;  %v1461_v9 = vld [vmem:[#allocation2 + $0x8] sm:$0xff]  ;;  %v309_v10 = vld [vmem:[#allocation2 + $0x10] sm:$0x3]  ;;  %v402_v11 = vrot.slane %v1459_v8, 2  ;;  %s1771_s16 = scalar_lea.hbm %s1829_s5, %s1037_s12 }
  0x17   : > { %260 = vst.msk [vmem:[#allocation2 + $0x90] sm:$0xff] %vm240_vm0, %v1319_v0  ;;  %261 = vst.msk [vmem:[#allocation2 + $0x98] sm:$0xff] %vm240_vm0, %v1319_v0  ;;  %s1036_s10 = sshll.u32 %s219_s7, 7  ;;  %v403_v12 = vrot.slane %v1461_v9, 2  ;;  %v405_v13 = vrot.slane %v309_v10, 2  ;;  %v357_v14 = vrot.slane %v1459_v8, 1  ;;  %826 = vmatpush1.bf16.msra.mxu0 %v1248_v4  ;;  %1049 = vmatpush1.bf16.msra.mxu1 %v1248_v4 }
  0x18   : > { %262 = vst.msk [vmem:[#allocation2 + $0xa0] sm:$0x3] %vm243_vm1, %v1319_v0  ;;  %265 = vst.msk [vmem:[#allocation2 + $0xb8] sm:$0x3] %vm243_vm1, %v1319_v0  ;;  %s1451_s13 = scalar_lea.vmem %s1824_s0, %s1036_s10  ;;  %v358_v17 = vrot.slane %v1461_v9, 1  ;;  %v360_v18 = vrot.slane %v309_v10, 1  ;;  %827 = vmatprep.subr.bf16.mxu0 %v1320_v1  ;;  %1041 = vmatprep.subr.bf16.mxu1 %v1320_v1 }
  0x19   : > { %263 = vst.msk [vmem:[#allocation2 + $0xa8] sm:$0xff] %vm240_vm0, %v1319_v0  ;;  %264 = vst.msk [vmem:[#allocation2 + $0xb0] sm:$0xff] %vm240_vm0, %v1319_v0  ;;  %v232_v5 = vld [vmem:[%s1451_s13 + $0x40] sm:$0xff]  ;;  %v233_v6 = vld [vmem:[%s1451_s13 + $0x48] sm:$0xff]  ;;  %v404_v22 = vsel %vm401_vm2, %v402_v11, %v403_v12  ;;  %v406_v23 = vsel %vm401_vm2, %v403_v12, %v405_v13  ;;  %s1012_s8 = sshll.u32 %s215_s30, 6  ;;  %s1783_s22 = scalar_lea.sflag [#allocation4], %s215_s30 }
  0x1a   : > { %266 = vst.msk [vmem:[#allocation2 + $0xc0] sm:$0xff] %vm240_vm0, %v1319_v0  ;;  %267 = vst.msk [vmem:[#allocation2 + $0xc8] sm:$0xff] %vm240_vm0, %v1319_v0  ;;  %v224_v7 = vld [vmem:[%s1451_s13] sm:$0xff]  ;;  %v225_v15 = vld [vmem:[%s1451_s13 + $0x8] sm:$0xff]  ;;  %v1111_v27 = vpack.i.bf16 %v406_v23, %v404_v22  ;;  %v359_v28 = vsel %vm356_vm3, %v357_v14, %v358_v17  ;;  %v361_v29 = vsel %vm356_vm3, %v358_v17, %v360_v18 }
  0x1b   : > { %268 = vst.msk [vmem:[#allocation2 + $0xd0] sm:$0x3] %vm243_vm1, %v1319_v0  ;;  %v230_v16 = vld [vmem:[%s1451_s13 + $0x30] sm:$0xff]  ;;  %v231_v19 = vld [vmem:[%s1451_s13 + $0x38] sm:$0xff]  ;;  %v236_v26 = vld [vmem:[%s1451_s13 + $0x60] sm:$0xff]  ;;  %v1106_v33 = vpack.i.bf16 %v361_v29, %v359_v28  ;;  %828 = vmatpush1.bf16.msra.mxu0 %v1249_v36  ;;  %1050 = vmatpush1.bf16.msra.mxu1 %v1249_v36 }
  0x1c   : > { %281 = vst.msk [vmem:[#allocation2 + $0x79] sm:$0xff] %vm240_vm0, %v232_v5  ;;  %282 = vst.msk [vmem:[#allocation2 + $0x81] sm:$0xff] %vm240_vm0, %v233_v6  ;;  %v234_v20 = vld [vmem:[%s1451_s13 + $0x50] sm:$0xff]  ;;  %v235_v21 = vld [vmem:[%s1451_s13 + $0x58] sm:$0xff]  ;;  %1112 = vrot.lane.b32.xlu1 %v1111_v27, %s1321_s23  ;;  %829 = vmatprep.subr.bf16.mxu0 %v1320_v1 }
  0x1d   : > { %273 = vst.msk [vmem:[#allocation2 + $0x19] sm:$0xff] %vm240_vm0, %v224_v7  ;;  %274 = vst.msk [vmem:[#allocation2 + $0x21] sm:$0xff] %vm240_vm0, %v225_v15  ;;  %v226_v24 = vld [vmem:[%s1451_s13 + $0x10] sm:$0xff]  ;;  %v227_v25 = vld [vmem:[%s1451_s13 + $0x18] sm:$0xff]  ;;  %1107 = vrot.lane.b32.xlu0 %v1106_v33, %s1322_s25  ;;  %1042 = vmatprep.subr.bf16.mxu1 %v1320_v1 }
  0x1e   : > { %279 = vst.msk [vmem:[#allocation2 + $0x61] sm:$0xff] %vm240_vm0, %v230_v16  ;;  %280 = vst.msk [vmem:[#allocation2 + $0x69] sm:$0xff] %vm240_vm0, %v231_v19  ;;  %v237_v30 = vld [vmem:[%s1451_s13 + $0x68] sm:$0xff]  ;;  %v228_v31 = vld [vmem:[%s1451_s13 + $0x20] sm:$0xff] }
  0x1f   : > { %283 = vst.msk [vmem:[#allocation2 + $0x91] sm:$0xff] %vm240_vm0, %v234_v20  ;;  %284 = vst.msk [vmem:[#allocation2 + $0x99] sm:$0xff] %vm240_vm0, %v235_v21  ;;  %v229_v32 = vld [vmem:[%s1451_s13 + $0x28] sm:$0xff]  ;;  %v238_v34 = vld [vmem:[%s1451_s13 + $0x70] sm:$0xff]  ;;  %830 = vmatpush1.bf16.msra.mxu0 %v1250_v44  ;;  %1051 = vmatpush1.bf16.msra.mxu1 %v1250_v44 }
  0x20   : > { %275 = vst.msk [vmem:[#allocation2 + $0x31] sm:$0xff] %vm240_vm0, %v226_v24  ;;  %276 = vst.msk [vmem:[#allocation2 + $0x39] sm:$0xff] %vm240_vm0, %v227_v25  ;;  %v239_v35 = vld [vmem:[%s1451_s13 + $0x78] sm:$0xff]  ;;  %831 = vmatprep.subr.bf16.mxu0 %v1320_v1  ;;  %1043 = vmatprep.subr.bf16.mxu1 %v1320_v1  ;;  %v1252_v27 = vld [vmem:[%s1825_s1 + $0x30] sm:$0xff]  }
  0x21   : > { %285 = vst.msk [vmem:[#allocation2 + $0xa9] sm:$0xff] %vm240_vm0, %v236_v26  ;;  %286 = vst.msk [vmem:[#allocation2 + $0xb1] sm:$0xff] %vm240_vm0, %v237_v30  ;;  %v1253_v33 = vld [vmem:[%s1825_s1 + $0x38] sm:$0xff]  }
  0x22   : > { %277 = vst.msk [vmem:[#allocation2 + $0x49] sm:$0xff] %vm240_vm0, %v228_v31  ;;  %278 = vst.msk [vmem:[#allocation2 + $0x51] sm:$0xff] %vm240_vm0, %v229_v32 }
  0x23   : > { %287 = vst.msk [vmem:[#allocation2 + $0xc1] sm:$0xff] %vm240_vm0, %v238_v34  ;;  %288 = vst.msk [vmem:[#allocation2 + $0xc9] sm:$0xff] %vm240_vm0, %v239_v35  ;;  %v325_v37 = vld [vmem:[#allocation2 + $0x78] sm:$0xff]  ;;  %v326_v38 = vld [vmem:[#allocation2 + $0x80] sm:$0xff]  ;;  %832 = vmatpush1.bf16.msra.mxu0 %v1251_v2  ;;  %1052 = vmatpush1.bf16.msra.mxu1 %v1251_v2 }
  0x24   : > { %v1509_v39 = vld [vmem:[#allocation2 + $0x18] sm:$0xff]  ;;  %v493_v40 = vrot.slane %v326_v38, 1  ;;  %v1121_v41 = vpack.i.bf16 %v326_v38, %v325_v37  ;;  %v492_v42 = vrot.slane %v325_v37, 1  ;;  %v327_v43 = vld [vmem:[#allocation2 + $0x88] sm:$0x3]  ;;  %v537_v45 = vrot.slane %v326_v38, 2  ;;  %833 = vmatprep.subr.bf16.mxu0 %v1320_v1  ;;  %1044 = vmatprep.subr.bf16.mxu1 %v1320_v1 }
  0x25   : > { %v536_v46 = vrot.slane %v325_v37, 2  ;;  %v320_v47 = vld [vmem:[#allocation2 + $0x20] sm:$0xff]  ;;  %v495_v49 = vrot.slane %v327_v43, 1  ;;  %v482_v52 = vrot.slane %v1509_v39, 1  ;;  %v1521_v53 = vld [vmem:[#allocation2 + $0x68] sm:$0xff]  ;;  %v526_v62 = vrot.slane %v1509_v39, 2 }
  0x26   : > { %v1514_v48 = vld [vmem:[#allocation2 + $0x60] sm:$0xff]  ;;  %1122 = vrot.lane.b32.xlu1 %v1121_v41, %s1323_s6  ;;  %v483_v50 = vrot.slane %v320_v47, 1  ;;  %v1116_v51 = vpack.i.bf16 %v320_v47, %v1509_v39  ;;  %v315_v54 = vld [vmem:[#allocation2 + $0x70] sm:$0x3]  ;;  %v1525_v56 = vrot.slane %v1521_v53, 2  ;;  %v1529_v59 = vrot.slane %v1521_v53, 1 }
  0x27   : > { %v412_v55 = vrot.slane %v1514_v48, 2  ;;  %v415_v57 = vrot.slane %v315_v54, 2  ;;  %v367_v58 = vrot.slane %v1514_v48, 1  ;;  %v321_v60 = vld [vmem:[#allocation2 + $0x28] sm:$0x3]  ;;  %v527_v61 = vrot.slane %v320_v47, 2  ;;  %834 = vmatpush1.bf16.msra.mxu0 %v1252_v27  ;;  %1053 = vmatpush1.bf16.msra.mxu1 %v1252_v27 }
  0x28   : > { %1117 = vrot.lane.b32.xlu0 %v1116_v51, %s1323_s6  ;;  %v370_v63 = vrot.slane %v315_v54, 1  ;;  %v494_v0 = vsel %vm356_vm3, %v492_v42, %v493_v40  ;;  %v496_v6 = vsel %vm356_vm3, %v493_v40, %v495_v49  ;;  %v484_v11 = vsel %vm356_vm3, %v482_v52, %v483_v50  ;;  %v1560_v21 = vld [vmem:[#allocation2 + $0x90] sm:$0xff]  ;;  %v1562_v22 = vld [vmem:[#allocation2 + $0x98] sm:$0xff]  ;;  %v1568_v26 = vld [vmem:[#allocation2 + $0xa0] sm:$0x3]  ;;  %835 = vmatprep.subr.bf16.mxu0 %v1320_v1 }
  0x29   : > { %v1539_v3 = vsel %vm401_vm2, %v412_v55, %v1525_v56  ;;  %v416_v4 = vsel %vm401_vm2, %v1525_v56, %v415_v57  ;;  %v1545_v5 = vsel %vm356_vm3, %v367_v58, %v1529_v59  ;;  %v485_v12 = vrot.slane %v321_v60, 1  ;;  %v1564_v23 = vld [vmem:[#allocation2 + $0x30] sm:$0xff]  ;;  %v1575_v28 = vld [vmem:[#allocation2 + $0x38] sm:$0xff]  ;;  %v1577_v29 = vld [vmem:[#allocation2 + $0x40] sm:$0x3]  ;;  %1045 = vmatprep.subr.bf16.mxu1 %v1320_v1 }
  0x2a   : > { %v1131_v7 = vpack.i.bf16 %v416_v4, %v1539_v3  ;;  %v371_v10 = vsel %vm356_vm3, %v1529_v59, %v370_v63  ;;  %v539_v14 = vrot.slane %v327_v43, 2  ;;  %v529_v15 = vrot.slane %v321_v60, 2  ;;  %v318_v32 = vld [vmem:[#allocation2 + $0xa0] sm:$0x3] }
  0x2b   : > { %v1126_v13 = vpack.i.bf16 %v371_v10, %v1545_v5  ;;  %v1141_v16 = vpack.i.bf16 %v496_v6, %v494_v0  ;;  %v486_v17 = vsel %vm356_vm3, %v483_v50, %v485_v12  ;;  %v538_v19 = vsel %vm401_vm2, %v536_v46, %v537_v45  ;;  %v312_v40 = vld [vmem:[#allocation2 + $0x40] sm:$0x3]  ;;  %836 = vmatpush1.bf16.msra.mxu0 %v1253_v33  ;;  %v328_v6 = vld [vmem:[#allocation2 + $0xa8] sm:$0xff]  ;;  %v330_v10 = vld [vmem:[#allocation2 + $0xb8] sm:$0x3] }
  0x2c   : > { %1132 = vrot.lane.b32.xlu1 %v1131_v7, %s1321_s23  ;;  %v1136_v18 = vpack.i.bf16 %v486_v17, %v484_v11  ;;  %v540_v20 = vsel %vm401_vm2, %v537_v45, %v539_v14  ;;  %v528_v24 = vsel %vm401_vm2, %v526_v62, %v527_v61  ;;  %v530_v25 = vsel %vm401_vm2, %v527_v61, %v529_v15  ;;  %v1254_v42 = vld [vmem:[%s1825_s1 + $0x40] sm:$0xff]   ;;  %v329_v7 = vld [vmem:[#allocation2 + $0xb0] sm:$0xff]  ;;  %v322_v14 = vld [vmem:[#allocation2 + $0x48] sm:$0xff] }
  0x2d   : > { %1127 = vrot.lane.b32.xlu0 %v1126_v13, %s1322_s25  ;;  %v1156_v30 = vpack.i.bf16 %v540_v20, %v538_v19  ;;  %v617_v31 = vrot.slane %v1562_v22, 1  ;;  %v1146_v34 = vpack.i.bf16 %v530_v25, %v528_v24  ;;  %v616_v35 = vrot.slane %v1560_v21, 1  ;;  %1054 = vmatpush1.bf16.msra.mxu1 %v1253_v33  ;;  %v323_v13 = vld [vmem:[#allocation2 + $0x50] sm:$0xff]  ;;  %v324_v15 = vld [vmem:[#allocation2 + $0x58] sm:$0x3] }
  0x2e   : > { %v619_v36 = vrot.slane %v1568_v26, 1  ;;  %v607_v37 = vrot.slane %v1575_v28, 1  ;;  %v606_v38 = vrot.slane %v1564_v23, 1  ;;  %v609_v39 = vrot.slane %v1577_v29, 1  ;;  %837 = vmatprep.subr.bf16.mxu0 %v1320_v1  ;;  %1046 = vmatprep.subr.bf16.mxu1 %v1320_v1 }
  0x2f   : > { %v1161_v41 = vpack.i.bf16 %v1562_v22, %v1560_v21  ;;  %v1151_v43 = vpack.i.bf16 %v1575_v28, %v1564_v23  ;;  %v618_v44 = vsel %vm356_vm3, %v616_v35, %v617_v31  ;;  %v375_v46 = vrot.slane %v318_v32, 1  ;;  %838 = vmatpush1.bf16.msra.mxu0 %v1254_v42 }
  0x30   : > { %1142 = vrot.lane.b32.xlu1 %v1141_v16, %s1324_s11  ;;  %v620_v45 = vsel %vm356_vm3, %v617_v31, %v619_v36  ;;  %v608_v47 = vsel %vm356_vm3, %v606_v38, %v607_v37  ;;  %v610_v49 = vsel %vm356_vm3, %v607_v37, %v609_v39  ;;  %v365_v50 = vrot.slane %v312_v40, 1 }
  0x31   : > { %1137 = vrot.lane.b32.xlu0 %v1136_v18, %s1324_s11  ;;  %v1171_v51 = vpack.i.bf16 %v620_v45, %v618_v44  ;;  %v417_v52 = vrot.slane %v1560_v21, 2  ;;  %v1166_v54 = vpack.i.bf16 %v610_v49, %v608_v47  ;;  %v376_v55 = vsel %vm356_vm3, %v617_v31, %v375_v46  ;;  %1055 = vmatpush1.bf16.msra.mxu1 %v1254_v42  ;;  %v342_v46 = vld [vmem:[#allocation2 + $0xc8] sm:$0xff] }
  0x32   : > { %v418_v57 = vrot.slane %v1562_v22, 2  ;;  %v420_v58 = vrot.slane %v318_v32, 2  ;;  %v366_v60 = vsel %vm356_vm3, %v607_v37, %v365_v50  ;;  %v407_v1 = vrot.slane %v1564_v23, 2  ;;  %v341_v50 = vld [vmem:[#allocation2 + $0xc0] sm:$0xff] }
  0x33   : > { %v408_v61 = vrot.slane %v1575_v28, 2  ;;  %v410_v62 = vrot.slane %v312_v40, 2  ;;  %v1181_v63 = vpack.i.bf16 %v376_v55, %v618_v44  ;;  %v1176_v0 = vpack.i.bf16 %v366_v60, %v608_v47 }
  0x34   : > { %1157 = vrot.lane.b32.xlu1 %v1156_v30, %s1325_s14  ;;  %v419_v2 = vsel %vm401_vm2, %v417_v52, %v418_v57  ;;  %v421_v4 = vsel %vm401_vm2, %v418_v57, %v420_v58  ;;  %v653_v16 = vrot.slane %v1577_v29, 2  ;;  %v663_v17 = vrot.slane %v1568_v26, 2  ;;  %v343_v52 = vld [vmem:[#allocation2 + $0xd0] sm:$0x3] }
  0x35   : > { %1147 = vrot.lane.b32.xlu0 %v1146_v34, %s1325_s14  ;;  %v409_v11 = vsel %vm401_vm2, %v407_v1, %v408_v61  ;;  %v411_v12 = vsel %vm401_vm2, %v408_v61, %v410_v62  ;;  %v1191_v18 = vpack.i.bf16 %v421_v4, %v419_v2  ;;  %v498_v19 = vrot.slane %v329_v7, 1 }
  0x36   : > { %v497_v20 = vrot.slane %v328_v6, 1  ;;  %v500_v24 = vrot.slane %v330_v10, 1  ;;  %v1186_v25 = vpack.i.bf16 %v411_v12, %v409_v11  ;;  %v488_v27 = vrot.slane %v323_v13, 1 }
  0x37   : > { %v654_v30 = vsel %vm401_vm2, %v408_v61, %v653_v16  ;;  %v664_v31 = vsel %vm401_vm2, %v418_v57, %v663_v17  ;;  %v487_v32 = vrot.slane %v322_v14, 1  ;;  %v490_v33 = vrot.slane %v324_v15, 1 }
  0x38   : > { %1162 = vrot.lane.b32.xlu1 %v1161_v41, %s1326_s17  ;;  %v741_v34 = vpack.c.bf16 %v654_v30, %v409_v11  ;;  %v745_v29 = vpack.c.bf16 %v664_v31, %v419_v2  ;;  %v542_v35 = vrot.slane %v329_v7, 2  ;;  %v541_v26 = vrot.slane %v328_v6, 2 }
  0x39   : > { %1152 = vrot.lane.b32.xlu0 %v1151_v43, %s1326_s17  ;;  %v1201_v36 = vpack.i.bf16 %v329_v7, %v328_v6  ;;  %v499_v37 = vsel %vm356_vm3, %v497_v20, %v498_v19  ;;  %v501_v38 = vsel %vm356_vm3, %v498_v19, %v500_v24  ;;  %v544_v39 = vrot.slane %v330_v10, 2 }
  0x3a   : > { %1025 = vmatprep.mubr.msk.bf16.mxu0 %vm240_vm0, %v741_v34  ;;  %v532_v40 = vrot.slane %v323_v13, 2  ;;  %v1196_v41 = vpack.i.bf16 %v323_v13, %v322_v14  ;;  %v531_v42 = vrot.slane %v322_v14, 2  ;;  %v534_v43 = vrot.slane %v324_v15, 2  ;;  %1027 = vmatprep.mubr.msk.bf16.mxu1 %vm240_vm0, %v745_v29 }
  0x3b   : > { %v489_v44 = vsel %vm356_vm3, %v487_v32, %v488_v27  ;;  %v491_v45 = vsel %vm356_vm3, %v488_v27, %v490_v33  ;;  %v1211_v47 = vpack.i.bf16 %v501_v38, %v499_v37  ;;  %v543_v49 = vsel %vm401_vm2, %v541_v26, %v542_v35 }
  0x3c   : > { %1172 = vrot.lane.b32.xlu1 %v1171_v51, %s1327_s26  ;;  %v666_v51 = vrot.slane %v342_v46, 2  ;;  %v545_v55 = vsel %vm401_vm2, %v542_v35, %v544_v39  ;;  %v665_v57 = vrot.slane %v341_v50, 2  ;;  %v668_v58 = vrot.slane %v343_v52, 2 }
  0x3d   : > { %1167 = vrot.lane.b32.xlu0 %v1166_v54, %s1327_s26  ;;  %v337_v54 = vld [vmem:[#allocation2 + $0x70] sm:$0x3]  ;;  %v1206_v1 = vpack.i.bf16 %v491_v45, %v489_v44  ;;  %v533_v61 = vsel %vm401_vm2, %v531_v42, %v532_v40  ;;  %v535_v62 = vsel %vm401_vm2, %v532_v40, %v534_v43  ;;  %v621_v10 = vrot.slane %v341_v50, 1 }
  0x3e   : > { %v658_v60 = vrot.slane %v337_v54, 2  ;;  %v1216_v2 = vpack.i.bf16 %v535_v62, %v533_v61  ;;  %v1647_v6 = vsel %vm401_vm2, %v665_v57, %v666_v51  ;;  %v1650_v7 = vsel %vm401_vm2, %v666_v51, %v668_v58 }
  0x3f   : > { %v624_v11 = vrot.slane %v343_v52, 1  ;;  %v747_v13 = vpack.c.bf16 %v1650_v7, %v1647_v6  ;;  %v614_v14 = vrot.slane %v337_v54, 1  ;;  %v1226_v15 = vpack.i.bf16 %v1521_v53, %v1514_v48 }
  0x40   : > { %1182 = vrot.lane.b32.xlu1 %v1181_v63, %s1322_s25  ;;  %v1221_v63 = vpack.i.bf16 %v545_v55, %v543_v49  ;;  %v1644_v4 = vsel %vm401_vm2, %v1525_v56, %v658_v60  ;;  %v1231_v56 = vpack.i.bf16 %v342_v46, %v341_v50 }
  0x41   : > { %1177 = vrot.lane.b32.xlu0 %v1176_v0, %s1322_s25  ;;  %v622_v0 = vrot.slane %v342_v46, 1  ;;  %v743_v12 = vpack.c.bf16 %v1644_v4, %v1539_v3 }
  0x43   : > { %v623_v16 = vsel %vm356_vm3, %v621_v10, %v622_v0  ;;  %v625_v17 = vsel %vm356_vm3, %v622_v0, %v624_v11 }
  0x44   : > { %1192 = vrot.lane.b32.xlu1 %v1191_v18, %s1321_s23  ;;  %v615_v18 = vsel %vm356_vm3, %v1529_v59, %v614_v14  ;;  %v1241_v19 = vpack.i.bf16 %v625_v17, %v623_v16 }
  0x45   : > { %1187 = vrot.lane.b32.xlu0 %v1186_v25, %s1321_s23  ;;  %v1236_v20 = vpack.i.bf16 %v615_v18, %v1545_v5 }
  0x48   : > { %1202 = vrot.lane.b32.xlu1 %v1201_v36, %s1323_s6 }
  0x49   : > { %1197 = vrot.lane.b32.xlu0 %v1196_v41, %s1323_s6 }
  0x4c   : > { %1212 = vrot.lane.b32.xlu1 %v1211_v47, %s1324_s11 }
  0x4d   : > { %1207 = vrot.lane.b32.xlu0 %v1206_v1, %s1324_s11  ;;  %s1754_s11 = scalar_lea.vmem [#allocation3], %s1012_s8 }
  0x4e   : > { %s946_s13 = sshll.u32 %s1754_s11, 4  ;;  %s1773_s13 = int_to_ptr.vmem [resolvable:$true] %s946_s13 }
  0x50   : > { %1222 = vrot.lane.b32.xlu1 %v1221_v63, %s1325_s14 }
  0x51   : > { %1217 = vrot.lane.b32.xlu0 %v1216_v2, %s1325_s14 }
  0x54   : > { %1232 = vrot.lane.b32.xlu1 %v1231_v56, %s1326_s17 }
  0x55   : > { %1227 = vrot.lane.b32.xlu0 %v1226_v15, %s1326_s17  ;;  %s1255_s17 = scalar_lea.vmem %s1773_s13, 1024 }
  0x56   : > { %p1256_p11 = scmp.ne.s32.totalorder %s1773_s13, %s1255_s17 }
  0x58   : > { %1242 = vrot.lane.b32.xlu1 %v1241_v19, %s1327_s26  ;;  %p1257_p12 = pnand %p1256_p11, %p1399_p5 }
  0x59   : > { %1237 = vrot.lane.b32.xlu0 %v1236_v20, %s1327_s26  ;;  %s1328_s26 = smov [#allocation3]  }
  0x5a   : > { %p1258_p13 = pneg %p1257_p12  ;;  %s1259_s23 = sshll.u32 %s1328_s26, 4  ;;  %s1260_s23 = int_to_ptr.vmem [resolvable:$false] %s1259_s23 }
  0x5b   : > { %s1261_s25 = scalar_lea.vmem %s1260_s23, 2048  ;;  %p1262_p0 = scmp.lt.s32.totalorder %s1773_s13, %s1260_s23 }
  0x5c   : > { %p1263_p1 = scmp.lt.s32.totalorder %s1261_s25, %s1255_s17 }
  0x5e   : > { %p1264_p2 = por %p1263_p1, %p1262_p0 }
  0x60   : > { %p1265_p3 = pnand %p1264_p2, %p1258_p13 }
  0x8e   : > { %v1113_v24 = vpop.permute.xlu1 %1112 }
  0x8f   : > { %v1108_v25 = vpop.permute.xlu0 %1107  ;;  %v1115_v42 = vunpack.i.h.bf16 %v1113_v24  ;;  %v1114_v43 = vunpack.i.l.bf16 %v1113_v24 }
  0x90   : > { %v1110_v37 = vunpack.i.h.bf16 %v1108_v25  ;;  %v1109_v38 = vunpack.i.l.bf16 %v1108_v25 }
  0x92   : > { %v678_v46 = vsel %vm240_vm0, %v1459_v8, %v1109_v38 }
  0x93   : > { %v687_v61 = vsel %vm686_vm4, %v678_v46, %v1114_v43 }
  0x98   : > { %v1123_v27 = vpop.permute.xlu1 %1122 }
  0x99   : > { %v1124_v44 = vunpack.i.l.bf16 %v1123_v27 }
  0x9a   : > { %v1118_v30 = vpop.permute.xlu0 %1117 }
  0x9b   : > { %v1120_v47 = vunpack.i.h.bf16 %v1118_v30  ;;  %v1119_v49 = vunpack.i.l.bf16 %v1118_v30 }
  0x9d   : > { %v696_v2 = vsel %vm695_vm5, %v687_v61, %v1119_v49 }
  0x9e   : > { %v1133_v31 = vpop.permute.xlu1 %1132 }
  0x9f   : > { %v1128_v32 = vpop.permute.xlu0 %1127  ;;  %v1135_v59 = vunpack.i.h.bf16 %v1133_v31  ;;  %v1134_v29 = vunpack.i.l.bf16 %v1133_v31 }
  0xa0   : > { %v1130_v33 = vunpack.i.h.bf16 %v1128_v32  ;;  %v1129_v34 = vunpack.i.l.bf16 %v1128_v32 }
  0xa2   : > { %v1143_v35 = vpop.permute.xlu1 %1142  ;;  %v683_v26 = vsel %vm240_vm0, %v1521_v53, %v1130_v33  ;;  %v682_v5 = vsel %vm240_vm0, %v1514_v48, %v1129_v34  ;;  %v1125_v53 = vunpack.i.h.bf16 %v1123_v27  ;;  %v679_v48 = vsel %vm240_vm0, %v1461_v9, %v1110_v37 }
  0xa3   : > { %v1138_v36 = vpop.permute.xlu0 %1137  ;;  %v692_v39 = vsel %vm686_vm4, %v683_v26, %v1135_v59  ;;  %v691_v40 = vsel %vm686_vm4, %v682_v5, %v1134_v29  ;;  %v1145_v50 = vunpack.i.h.bf16 %v1143_v35  ;;  %v1144_v51 = vunpack.i.l.bf16 %v1143_v35 }
  0xa4   : > { %v700_v52 = vsel %vm695_vm5, %v691_v40, %v1124_v44  ;;  %v701_v54 = vsel %vm695_vm5, %v692_v39, %v1125_v53  ;;  %v1140_v55 = vunpack.i.h.bf16 %v1138_v36  ;;  %v1139_v57 = vunpack.i.l.bf16 %v1138_v36 }
  0xa5   : > { %v688_v9 = vsel %vm686_vm4, %v679_v48, %v1115_v42  ;;  %v709_v14 = vsel %vm704_vm6, %v700_v52, %v1144_v51  ;;  %v710_v56 = vsel %vm704_vm6, %v701_v54, %v1145_v50 }
  0xa6   : > { %v1158_v41 = vpop.permute.xlu1 %1157  ;;  %v697_v0 = vsel %vm695_vm5, %v688_v9, %v1120_v47  ;;  %v705_v18 = vsel %vm704_vm6, %v696_v2, %v1139_v57 }
  0xa7   : > { %v1148_v45 = vpop.permute.xlu0 %1147  ;;  %v1160_v58 = vunpack.i.h.bf16 %v1158_v41  ;;  %v1159_v60 = vunpack.i.l.bf16 %v1158_v41  ;;  %v706_v17 = vsel %vm704_vm6, %v697_v0, %v1140_v55 }
  0xa8   : > { %v1150_v62 = vunpack.i.h.bf16 %v1148_v45  ;;  %v1149_v63 = vunpack.i.l.bf16 %v1148_v45 }
  0xa9   : > { %v718_v19 = vsel %vm713_vm7, %v709_v14, %v1159_v60  ;;  %v719_v20 = vsel %vm713_vm7, %v710_v56, %v1160_v58 }
  0xaa   : > { %v1163_v1 = vpop.permute.xlu1 %1162  ;;  %v714_v25 = vsel %vm713_vm7, %v705_v18, %v1149_v63  ;;  %v715_v27 = vsel %vm713_vm7, %v706_v17, %v1150_v62 }
  0xab   : > { %v1153_v8 = vpop.permute.xlu0 %1152  ;;  %v1165_v10 = vunpack.i.h.bf16 %v1163_v1  ;;  %v1164_v11 = vunpack.i.l.bf16 %v1163_v1 }
  0xac   : > { %v1155_v15 = vunpack.i.h.bf16 %v1153_v8  ;;  %v1154_v16 = vunpack.i.l.bf16 %v1153_v8 }
  0xad   : > { %v727_v33 = vsel %vm722_vm8, %v718_v19, %v1164_v11  ;;  %v728_v34 = vsel %vm722_vm8, %v719_v20, %v1165_v10 }
  0xae   : > { %v1173_v24 = vpop.permute.xlu1 %1172  ;;  %v723_v35 = vsel %vm722_vm8, %v714_v25, %v1154_v16  ;;  %v724_v26 = vsel %vm722_vm8, %v715_v27, %v1155_v15 }
  0xaf   : > { %v1175_v30 = vunpack.i.h.bf16 %v1173_v24  ;;  %v1174_v31 = vunpack.i.l.bf16 %v1173_v24  ;;  %v1168_v32 = vpop.permute.xlu0 %1167 }
  0xb0   : > { %v1170_v59 = vunpack.i.h.bf16 %v1168_v32  ;;  %v1169_v29 = vunpack.i.l.bf16 %v1168_v32 }
  0xb1   : > { %v736_v5 = vsel %vm731_vm9, %v727_v33, %v1174_v31  ;;  %v737_v36 = vsel %vm731_vm9, %v728_v34, %v1175_v30 }
  0xb2   : > { %v1183_v37 = vpop.permute.xlu1 %1182  ;;  %v732_v38 = vsel %vm731_vm9, %v723_v35, %v1169_v29  ;;  %v733_v39 = vsel %vm731_vm9, %v724_v26, %v1170_v59  ;;  %v744_v40 = vpack.c.bf16 %v737_v36, %v736_v5 }
  0xb3   : > { %v1178_v41 = vpop.permute.xlu0 %1177  ;;  %v740_v42 = vpack.c.bf16 %v733_v39, %v732_v38  ;;  %v1185_v48 = vunpack.i.h.bf16 %v1183_v37  ;;  %v1184_v46 = vunpack.i.l.bf16 %v1183_v37 }
  0xb4   : > { %870 = vmatmul.mubr.bf16.vlgmr.msra.gmra.mrb[0].mxu1 %v744_v40  ;;  %v1180_v49 = vunpack.i.h.bf16 %v1178_v41  ;;  %v1179_v50 = vunpack.i.l.bf16 %v1178_v41 }
  0xb5   : > { %854 = vmatmul.mubr.bf16.vlgmr.msra.gmra.mrb[0].mxu0 %v740_v42  ;;  %1028 = vmatprep.mubr.msk.bf16.mxu1 %vm240_vm0, %v747_v13  ;;  %v685_v13 = vsel %vm240_vm0, %v1562_v22, %v1185_v48  ;;  %v684_v3 = vsel %vm240_vm0, %v1560_v21, %v1184_v46 }
  0xb6   : > { %v1193_v43 = vpop.permute.xlu1 %1192  ;;  %1026 = vmatprep.mubr.msk.bf16.mxu0 %vm240_vm0, %v743_v12  ;;  %v681_v12 = vsel %vm240_vm0, %v1575_v28, %v1180_v49  ;;  %v680_v55 = vsel %vm240_vm0, %v1564_v23, %v1179_v50 }
  0xb7   : > { %v1188_v53 = vpop.permute.xlu0 %1187  ;;  %v1195_v52 = vunpack.i.h.bf16 %v1193_v43  ;;  %v1194_v54 = vunpack.i.l.bf16 %v1193_v43 }
  0xb8   : > { %v1190_v6 = vunpack.i.h.bf16 %v1188_v53  ;;  %v1189_v7 = vunpack.i.l.bf16 %v1188_v53 }
  0xb9   : > { %v693_v1 = vsel %vm686_vm4, %v684_v3, %v1194_v54  ;;  %v694_v61 = vsel %vm686_vm4, %v685_v13, %v1195_v52 }
  0xba   : > { %v1203_v44 = vpop.permute.xlu1 %1202  ;;  %v689_v22 = vsel %vm686_vm4, %v680_v55, %v1189_v7  ;;  %v690_v21 = vsel %vm686_vm4, %v681_v12, %v1190_v6  ;;  %v1029_v6 = vld [vmem:[%s1827_s3] ss:$0 sm:$0xff] }
  0xbb   : > { %v1198_v45 = vpop.permute.xlu0 %1197  ;;  %v1205_v57 = vunpack.i.h.bf16 %v1203_v44  ;;  %v1204_v58 = vunpack.i.l.bf16 %v1203_v44 }
  0xbc   : > { %v1200_v9 = vunpack.i.h.bf16 %v1198_v45  ;;  %v1199_v62 = vunpack.i.l.bf16 %v1198_v45 }
  0xbd   : > { %v702_v11 = vsel %vm695_vm5, %v693_v1, %v1204_v58  ;;  %v703_v14 = vsel %vm695_vm5, %v694_v61, %v1205_v57  ;;  %v1030_v58 = vld [vmem:[%s1828_s4] ss:$0 sm:$0xff] }
  0xbe   : > { %v1213_v47 = vpop.permute.xlu1 %1212  ;;  %v698_v17 = vsel %vm695_vm5, %v689_v22, %v1199_v62  ;;  %v699_v18 = vsel %vm695_vm5, %v690_v21, %v1200_v9 }
  0xbf   : > { %v1208_v51 = vpop.permute.xlu0 %1207  ;;  %v1215_v63 = vunpack.i.h.bf16 %v1213_v47  ;;  %v1214_v8 = vunpack.i.l.bf16 %v1213_v47  ;;  %v1015_v47 = vld [vmem:[%s1826_s2] ss:$0 sm:$0xff] }
  0xc0   : > { %v1210_v0 = vunpack.i.h.bf16 %v1208_v51  ;;  %v1209_v28 = vunpack.i.l.bf16 %v1208_v51 }
  0xc1   : > { %v711_v24 = vsel %vm704_vm6, %v702_v11, %v1214_v8  ;;  %v712_v25 = vsel %vm704_vm6, %v703_v14, %v1215_v63 }
  0xc2   : > { %v1223_v4 = vpop.permute.xlu1 %1222  ;;  %v707_v31 = vsel %vm704_vm6, %v698_v17, %v1209_v28  ;;  %v708_v32 = vsel %vm704_vm6, %v699_v18, %v1210_v0 }
  0xc3   : > { %v1218_v60 = vpop.permute.xlu0 %1217  ;;  %v1225_v2 = vunpack.i.h.bf16 %v1223_v4  ;;  %v1224_v10 = vunpack.i.l.bf16 %v1223_v4 }
  0xc4   : > { %v1220_v56 = vunpack.i.h.bf16 %v1218_v60  ;;  %v1219_v15 = vunpack.i.l.bf16 %v1218_v60 }
  0xc5   : > { %v720_v33 = vsel %vm713_vm7, %v711_v24, %v1224_v10  ;;  %v721_v34 = vsel %vm713_vm7, %v712_v25, %v1225_v2 }
  0xc6   : > { %v1233_v23 = vpop.permute.xlu1 %1232  ;;  %v716_v29 = vsel %vm713_vm7, %v707_v31, %v1219_v15  ;;  %v717_v35 = vsel %vm713_vm7, %v708_v32, %v1220_v56 }
  0xc7   : > { %v1228_v16 = vpop.permute.xlu0 %1227  ;;  %v1235_v19 = vunpack.i.h.bf16 %v1233_v23  ;;  %v1234_v20 = vunpack.i.l.bf16 %v1233_v23 }
  0xc8   : > { %v1230_v27 = vunpack.i.h.bf16 %v1228_v16  ;;  %v1229_v30 = vunpack.i.l.bf16 %v1228_v16 }
  0xc9   : > { %v729_v37 = vsel %vm722_vm8, %v720_v33, %v1234_v20  ;;  %v730_v38 = vsel %vm722_vm8, %v721_v34, %v1235_v19 }
  0xca   : > { %v1243_v59 = vpop.permute.xlu1 %1242  ;;  %v725_v41 = vsel %vm722_vm8, %v716_v29, %v1229_v30  ;;  %v726_v42 = vsel %vm722_vm8, %v717_v35, %v1230_v27 }
  0xcb   : > { %v1245_v26 = vunpack.i.h.bf16 %v1243_v59  ;;  %v1244_v5 = vunpack.i.l.bf16 %v1243_v59  ;;  %v1238_v36 = vpop.permute.xlu0 %1237 }
  0xcc   : > { %v1240_v39 = vunpack.i.h.bf16 %v1238_v36  ;;  %v1239_v40 = vunpack.i.l.bf16 %v1238_v36 }
  0xcd   : > { %v738_v43 = vsel %vm731_vm9, %v729_v37, %v1244_v5  ;;  %v739_v53 = vsel %vm731_vm9, %v730_v38, %v1245_v26 }
  0xce   : > { %v734_v44 = vsel %vm731_vm9, %v725_v41, %v1239_v40  ;;  %v735_v45 = vsel %vm731_vm9, %v726_v42, %v1240_v39  ;;  %v746_v48 = vpack.c.bf16 %v739_v53, %v738_v43 }
  0xcf   : > { %v742_v46 = vpack.c.bf16 %v735_v45, %v734_v44 }
  0xd0   : > { %878 = vmatmul.mubr.bf16.gmra.mrb[4].mxu1 %v746_v48 }
  0xd1   : > { %862 = vmatmul.mubr.bf16.gmra.mrb[4].mxu0 %v742_v46 }
 0x187   : > { %v871_v49 = vpop.f32.mrb[0].mxu1 }
 0x188   : > { %v855_v50 = vpop.f32.mrb[0].mxu0  ;;  %v872_v51 = vadd.f32 %v1015_v47, %v871_v49  ;;  %v873_v52 = vpop.f32.mrb[1].mxu1 }
 0x189   : > { %v856_v54 = vadd.f32 %v1015_v47, %v855_v50  ;;  %v857_v7 = vpop.f32.mrb[1].mxu0  ;;  %v874_v13 = vpop.f32.mrb[2].mxu1 }
 0x18a   : > { %v890_v3 = vmax.f32 %v872_v51, 0.0  ;;  %v858_v4 = vpop.f32.mrb[2].mxu0  ;;  %v875_v12 = vadd.f32 %v1015_v47, %v874_v13  ;;  %v876_v55 = vpop.f32.mrb[3].mxu1 }
 0x18b   : > { %v886_v57 = vmax.f32 %v856_v54, 0.0  ;;  %v859_v60 = vadd.f32 %v1015_v47, %v858_v4  ;;  %v860_v1 = vpop.f32.mrb[3].mxu0 }
 0x18c   : > { %v905_v61 = vmul.f32 %v1029_v6, %v890_v3  ;;  %v891_v9 = vmax.f32 %v875_v12, 0.0 }
 0x18d   : > { %v901_v62 = vmul.f32 %v1029_v6, %v886_v57  ;;  %v887_v22 = vmax.f32 %v859_v60, 0.0 }
 0x18e   : > { %v920_v21 = vadd.f32 %v1030_v58, %v905_v61  ;;  %v906_v63 = vmul.f32 %v1029_v6, %v891_v9 }
 0x18f   : > { %v916_v8 = vadd.f32 %v1030_v58, %v901_v62  ;;  %v902_v0 = vmul.f32 %v1029_v6, %v887_v22 }
 0x190   : > { %928 = vst.msk [vmem:[%s1754_s11 + $0x20] sm:$0xff] %vm686_vm4, %v920_v21  ;;  %v921_v28 = vadd.f32 %v1030_v58, %v906_v63 }
 0x191   : > { %924 = vst.msk [vmem:[%s1754_s11] sm:$0xff] %vm686_vm4, %v916_v8  ;;  %v917_v2 = vadd.f32 %v1030_v58, %v902_v0 }
 0x192   : > { %929 = vst.msk [vmem:[%s1754_s11 + $0x28] sm:$0xff] %vm686_vm4, %v921_v28 }
 0x193   : > { %925 = vst.msk [vmem:[%s1754_s11 + $0x8] sm:$0xff] %vm686_vm4, %v917_v2 }
 0x1a3   : > { %v879_v10 = vpop.f32.mrb[4].mxu1 }
 0x1a4   : > { %v863_v23 = vpop.f32.mrb[4].mxu0  ;;  %v880_v11 = vadd.f32 %v1015_v47, %v879_v10  ;;  %v881_v14 = vpop.f32.mrb[5].mxu1 }
 0x1a5   : > { %v864_v56 = vadd.f32 %v1015_v47, %v863_v23  ;;  %v865_v15 = vpop.f32.mrb[5].mxu0  ;;  %v882_v16 = vpop.f32.mrb[6].mxu1 }
 0x1a6   : > { %v892_v17 = vmax.f32 %v880_v11, 0.0  ;;  %v866_v18 = vpop.f32.mrb[6].mxu0  ;;  %v883_v19 = vadd.f32 %v1015_v47, %v882_v16  ;;  %v884_v20 = vpop.f32.mrb[7].mxu1 }
 0x1a7   : > { %v888_v24 = vmax.f32 %v864_v56, 0.0  ;;  %v867_v25 = vadd.f32 %v1015_v47, %v866_v18  ;;  %v868_v27 = vpop.f32.mrb[7].mxu0 }
 0x1a8   : > { %v907_v30 = vmul.f32 %v1029_v6, %v892_v17  ;;  %v893_v31 = vmax.f32 %v883_v19, 0.0 }
 0x1a9   : > { %v903_v32 = vmul.f32 %v1029_v6, %v888_v24  ;;  %v889_v33 = vmax.f32 %v867_v25, 0.0 }
 0x1aa   : > { %v922_v34 = vadd.f32 %v1030_v58, %v907_v30  ;;  %v908_v59 = vmul.f32 %v1029_v6, %v893_v31 }
 0x1ab   : > { %v918_v29 = vadd.f32 %v1030_v58, %v903_v32  ;;  %v904_v35 = vmul.f32 %v1029_v6, %v889_v33 }
 0x1ac   : > { %930 = vst.msk [vmem:[%s1754_s11 + $0x30] sm:$0xff] %vm686_vm4, %v922_v34  ;;  %v923_v26 = vadd.f32 %v1030_v58, %v908_v59 }
 0x1ad   : > { %926 = vst.msk [vmem:[%s1754_s11 + $0x10] sm:$0xff] %vm686_vm4, %v918_v29  ;;  %v919_v5 = vadd.f32 %v1030_v58, %v904_v35 }
 0x1ae   : > { %931 = vst.msk [vmem:[%s1754_s11 + $0x38] sm:$0xff] %vm686_vm4, %v923_v26 }
 0x1af   : > { %927 = vst.msk [vmem:[%s1754_s11 + $0x18] sm:$0xff] %vm686_vm4, %v919_v5 }
 0x1b0   : > { %1268 = shalt.err (!%p1265_p3)
}
 0x1b1   : > { %s1269_s30 = scalar_lea.hbm %s1771_s16, 1024  ;;  %s1273_s8 = scalar_lea.hbm %s1829_s5, 2048 }
 0x1b2   : > { %p1270_p4 = scmp.ne.s32.totalorder %s1771_s16, %s1269_s30  ;;  %p1274_p9 = scmp.lt.u32.totalorder %s1771_s16, %s1829_s5 }
 0x1b3   : > { %p1275_p10 = scmp.lt.u32.totalorder %s1273_s8, %s1269_s30  ;;  %p1277_p12 = scmp.lt.u32.totalorder %s1269_s30, %s1771_s16 }
 0x1b4   : > { %p1271_p7 = pnand %p1270_p4, %p1399_p5 }
 0x1b5   : > { %p1276_p11 = por %p1275_p10, %p1274_p9 }
 0x1b6   : > { %p1272_p8 = pneg %p1271_p7 }
 0x1b7   : > { %p1278_p13 = por %p1277_p12, %p1276_p11 }
 0x1b9   : > { %p1279_p0 = pnand %p1278_p13, %p1272_p8 }
 0x1bb   : > { %1282 = shalt.err (!%p1279_p0)
}
 0x1bc   : > { %s1329_s11 = smov 128   ;;  %s1330_s12 = smov 8  }
 0x1bd   : > { %1056 = dma.vmem_to_hbm [thread:$0]  (%p1399_p5), %s1773_s13, 1024, %s1771_s16, %s1783_s22, %s1329_s11, %s1329_s11, %s1330_s12  }
 0x1be PF: > { %p1062_p1 = scmp.ge.s32.totalorder %s1317_s21, 2  ;;  %s961_s14 = sand.u32 1, %s1305_s18  }
 0x1bf   : > { %s962_s15 = scalar_lea.sflag [#allocation4], %s961_s14 }
 0x1c0   : > { %p1059_p2 = pnand %p1062_p1, %p1403_p6 }
 0x1c2   : > { %1300 = dma.done.wait (!%p1059_p2), %s962_s15, 1024  }
 0x1c3   : > { %1302 = vsyncadd (!%p1059_p2), %s962_s15, 4294966272  ;;  %p15_p3 = scmp.ge.s32.totalorder %s1386_s24, 4   ;;  %s1832_s18 = smov %s1309_s19 }
 0x1c4   : > { %s1833_s19 = smov %s1313_s20  ;;  %s1834_s20 = smov %s1397_s27 }
 0x1c5   : > { %s1835_s21 = smov %s1386_s24  ;;  %17 = sbr.rel (!%p15_p3) target bundleno = 3 (0x3), region = 77 }
 0x1cc   :  { %967 = vsyncpa [#allocation4], 1 }
 0x1cd   :  { %969 = vsyncpa [#allocation4 + $0x1], 1 }

// kernel: resnet_se_no_head.5
= control target key start
LH: loop header
LB: loop body
LE: loop exit
PB: predicated region body
PF: predicated region fallthrough
CT: control target
= control target key end

     0   :  { %s3985_s19 = smov 0   ;;  %s5426_s0 = inlined_call_operand.vmem [shape: f32[2,8,16,8], index: 0, kind: input, shape index: {}]   ;;  %s5427_s1 = inlined_call_operand.vmem [shape: bf16[72,8], index: 1, kind: input, shape index: {}]   ;;  %s5428_s2 = inlined_call_operand.vmem [shape: f32[1,8], index: 2, kind: input, shape index: {}]   ;;  %s5429_s3 = inlined_call_operand.vmem [shape: f32[1,8], index: 3, kind: input, shape index: {}]   ;;  %s5430_s4 = inlined_call_operand.vmem [shape: bf16[72,8], index: 4, kind: input, shape index: {}]   ;;  %s5431_s5 = inlined_call_operand.vmem [shape: f32[1,8], index: 5, kind: input, shape index: {}]   ;;  %s5432_s6 = inlined_call_operand.vmem [shape: f32[1,8], index: 6, kind: input, shape index: {}]   ;;  %s5433_s7 = inlined_call_operand.vmem [shape: f32[8,1], index: 7, kind: input, shape index: {}]   ;;  %s5434_s8 = inlined_call_operand.<no memory space> [shape: f32[1,1], index: 8, kind: input, shape index: {}]   ;;  %s5435_s9 = inlined_call_operand.vmem [shape: f32[1,8], index: 9, kind: input, shape index: {}]   ;;  %s5436_s10 = inlined_call_operand.vmem [shape: f32[1,8], index: 10, kind: input, shape index: {}]   ;;  %s5437_s11 = inlined_call_operand.vmem [shape: f32[2,8,16,8], index: 11, kind: output, shape index: {}]  }
   0x1   :  { %v16_v0 = vstv %s5434_s8 }
   0x2   :  { %17 = vst [vmem:[#allocation4] sm:$0x1] %v16_v0 }
   0x3 LB: > { %s3091_s20 = sadd.s32 4294967295, %s3910_s19   ;;  %p3095_p0 = scmp.ge.s32.totalorder %s3910_s19, 1  ;;  %s3910_s19 = sphi %s3985_s19, %s23_s19  }
   0x4   : > { %p339_p1 = scmp.lt.s32.totalorder %s3910_s19, 3 }
   0x6   : > { %p340_p2 = pnand %p3095_p0, %p339_p1 }
   0x7   : > { %vm406_vm0 = vcmask (!%p340_p2), 64512   ;;  %vm409_vm1 = vcmask (!%p340_p2), 58368   ;;  %v3912_v1 = vmov (!%p340_p2), 0.0   ;;  %p379_p3 = scmp.lt.s32.totalorder (!%p340_p2), %s3091_s20, 1  ;;  %vm650_vm2 = vcmask (!%p340_p2), 1045504   ;;  %s3913_s24 = smov (!%p340_p2), 16  }
   0x8   : > { %343 = sbr.rel (%p340_p2) target bundleno = 1392 (0x570), region = 64  ;;  %407 = vst.msk [vmem:[#allocation2] sm:$0xff] (!%p340_p2), %vm406_vm0, %v3912_v1  ;;  %408 = vst.msk [vmem:[#allocation2 + $0x8] sm:$0xff] (!%p340_p2), %vm406_vm0, %v3912_v1  ;;  %vm561_vm3 = vcmask (!%p340_p2), 1046528   ;;  %s3914_s25 = smov (!%p340_p2), 8   ;;  %vm1430_vm4 = vcmask (!%p340_p2), 1043456  }
   0x9   : > { %410 = vst.msk [vmem:[#allocation2 + $0x10] sm:$0x3] (!%p340_p2), %vm409_vm1, %v3912_v1  ;;  %413 = vst.msk [vmem:[#allocation2 + $0x28] sm:$0x3] (!%p340_p2), %vm409_vm1, %v3912_v1  ;;  %s3915_s26 = smov (!%p340_p2), 24   ;;  %s3916_s27 = smov (!%p340_p2), 32  }
   0xa   : > { %411 = vst.msk [vmem:[#allocation2 + $0x18] sm:$0xff] (!%p340_p2), %vm406_vm0, %v3912_v1  ;;  %412 = vst.msk [vmem:[#allocation2 + $0x20] sm:$0xff] (!%p340_p2), %vm406_vm0, %v3912_v1  ;;  %s3917_s13 = smov (!%p340_p2), 40   ;;  %s3918_s16 = smov (!%p340_p2), 48   ;;  %vm1251_vm5 = vcmask (!%p340_p2), 130048   ;;  %vm1268_vm6 = vcmask (!%p340_p2), 195584  }
   0xb   : > { %414 = vst.msk [vmem:[#allocation2 + $0x30] sm:$0xff] (!%p340_p2), %vm406_vm0, %v3912_v1  ;;  %415 = vst.msk [vmem:[#allocation2 + $0x38] sm:$0xff] (!%p340_p2), %vm406_vm0, %v3912_v1  ;;  %s3919_s21 = smov (!%p340_p2), 56   ;;  %s3920_s22 = smov (!%p340_p2), 64   ;;  %vm1285_vm7 = vcmask (!%p340_p2), 261120   ;;  %vm1302_vm8 = vcmask (!%p340_p2), 326656  }
   0xc   : > { %416 = vst.msk [vmem:[#allocation2 + $0x40] sm:$0x3] (!%p340_p2), %vm409_vm1, %v3912_v1  ;;  %419 = vst.msk [vmem:[#allocation2 + $0x58] sm:$0x3] (!%p340_p2), %vm409_vm1, %v3912_v1  ;;  %vm1319_vm9 = vcmask (!%p340_p2), 392192   ;;  %vm1336_vm10 = vcmask (!%p340_p2), 457728  }
   0xd   : > { %417 = vst.msk [vmem:[#allocation2 + $0x48] sm:$0xff] (!%p340_p2), %vm406_vm0, %v3912_v1  ;;  %418 = vst.msk [vmem:[#allocation2 + $0x50] sm:$0xff] (!%p340_p2), %vm406_vm0, %v3912_v1  ;;  %vm1353_vm11 = vcmask (!%p340_p2), 523264   ;;  %vm1405_vm12 = vcmask (!%p340_p2), 588800   ;;  %vm3921_vm13 = vmmov (!%p340_p2), 0   ;;  %vm2872_vm14 = vcmask (!%p340_p2), 1040384  }
   0xe   : > { %420 = vst.msk [vmem:[#allocation2 + $0x60] sm:$0xff] (!%p340_p2), %vm406_vm0, %v3912_v1  ;;  %421 = vst.msk [vmem:[#allocation2 + $0x68] sm:$0xff] (!%p340_p2), %vm406_vm0, %v3912_v1  ;;  %vm2868_vm15 = vcmask (!%p340_p2), 7168  }
   0xf   : > { %422 = vst.msk [vmem:[#allocation2 + $0x70] sm:$0x3] %vm409_vm1, %v3912_v1  ;;  %425 = vst.msk [vmem:[#allocation2 + $0x88] sm:$0x3] %vm409_vm1, %v3912_v1  ;;  %s5439_s20 = smov (!%p379_p3, %s3091_s20), 1  ;;  %v4130_v5 = vld [vmem:[#allocation2] sm:$0xff] }
  0x10   : > { %423 = vst.msk [vmem:[#allocation2 + $0x78] sm:$0xff] %vm406_vm0, %v3912_v1  ;;  %424 = vst.msk [vmem:[#allocation2 + $0x80] sm:$0xff] %vm406_vm0, %v3912_v1  ;;  %s3136_s8 = sshll.u32 %s5439_s20, 7  ;;  %v4132_v6 = vld [vmem:[#allocation2 + $0x8] sm:$0xff]  ;;  %v466_v7 = vld [vmem:[#allocation2 + $0x10] sm:$0x3] }
  0x11   : > { %426 = vst.msk [vmem:[#allocation2 + $0x90] sm:$0xff] %vm406_vm0, %v3912_v1  ;;  %427 = vst.msk [vmem:[#allocation2 + $0x98] sm:$0xff] %vm406_vm0, %v3912_v1  ;;  %s4125_s23 = scalar_lea.vmem %s5426_s0, %s3136_s8  ;;  %v651_v8 = vrot.slane %v4130_v5, 2  ;;  %v652_v9 = vrot.slane %v4132_v6, 2  ;;  %v654_v10 = vrot.slane %v466_v7, 2  ;;  %v562_v11 = vrot.slane %v4130_v5, 1  ;;  %s5389_s14 = scalar_lea.vmem %s5437_s11, %s3136_s8 }
  0x12   : > { %428 = vst.msk [vmem:[#allocation2 + $0xa0] sm:$0x3] %vm409_vm1, %v3912_v1  ;;  %431 = vst.msk [vmem:[#allocation2 + $0xb8] sm:$0x3] %vm409_vm1, %v3912_v1  ;;  %v392_v2 = vld [vmem:[%s4125_s23 + $0x10] sm:$0xff]  ;;  %v393_v3 = vld [vmem:[%s4125_s23 + $0x18] sm:$0xff] }
  0x13   : > { %429 = vst.msk [vmem:[#allocation2 + $0xa8] sm:$0xff] %vm406_vm0, %v3912_v1  ;;  %430 = vst.msk [vmem:[#allocation2 + $0xb0] sm:$0xff] %vm406_vm0, %v3912_v1  ;;  %v390_v4 = vld [vmem:[%s4125_s23] sm:$0xff]  ;;  %v391_v12 = vld [vmem:[%s4125_s23 + $0x8] sm:$0xff]  ;;  %v563_v14 = vrot.slane %v4132_v6, 1  ;;  %v565_v15 = vrot.slane %v466_v7, 1  ;;  %v653_v19 = vsel %vm650_vm2, %v651_v8, %v652_v9  ;;  %v655_v20 = vsel %vm650_vm2, %v652_v9, %v654_v10 }
  0x14   : > { %432 = vst.msk [vmem:[#allocation2 + $0xc0] sm:$0xff] %vm406_vm0, %v3912_v1  ;;  %433 = vst.msk [vmem:[#allocation2 + $0xc8] sm:$0xff] %vm406_vm0, %v3912_v1  ;;  %v394_v13 = vld [vmem:[%s4125_s23 + $0x20] sm:$0xff]  ;;  %v395_v16 = vld [vmem:[%s4125_s23 + $0x28] sm:$0xff]  ;;  %v3255_v24 = vpack.i.bf16 %v655_v20, %v653_v19 }
  0x15   : > { %434 = vst.msk [vmem:[#allocation2 + $0xd0] sm:$0x3] %vm409_vm1, %v3912_v1  ;;  %437 = vst.msk [vmem:[#allocation2 + $0xe8] sm:$0x3] %vm409_vm1, %v3912_v1  ;;  %v396_v17 = vld [vmem:[%s4125_s23 + $0x30] sm:$0xff]  ;;  %v397_v18 = vld [vmem:[%s4125_s23 + $0x38] sm:$0xff]  ;;  %v564_v25 = vsel %vm561_vm3, %v562_v11, %v563_v14  ;;  %v566_v26 = vsel %vm561_vm3, %v563_v14, %v565_v15 }
  0x16   : > { %435 = vst.msk [vmem:[#allocation2 + $0xd8] sm:$0xff] %vm406_vm0, %v3912_v1  ;;  %436 = vst.msk [vmem:[#allocation2 + $0xe0] sm:$0xff] %vm406_vm0, %v3912_v1  ;;  %v398_v21 = vld [vmem:[%s4125_s23 + $0x40] sm:$0xff]  ;;  %v399_v22 = vld [vmem:[%s4125_s23 + $0x48] sm:$0xff]  ;;  %v3250_v30 = vpack.i.bf16 %v566_v26, %v564_v25  ;;  %3256 = vrot.lane.b32.xlu1 %v3255_v24, %s3913_s24 }
  0x17   : > { %1593 = vst.msk [vmem:[#allocation3] sm:$0xff] %vm406_vm0, %v3912_v1  ;;  %1594 = vst.msk [vmem:[#allocation3 + $0x8] sm:$0xff] %vm406_vm0, %v3912_v1  ;;  %v400_v23 = vld [vmem:[%s4125_s23 + $0x50] sm:$0xff]  ;;  %v401_v27 = vld [vmem:[%s4125_s23 + $0x58] sm:$0xff] }
  0x18   : > { %1595 = vst.msk [vmem:[#allocation3 + $0x10] sm:$0x3] %vm409_vm1, %v3912_v1  ;;  %1598 = vst.msk [vmem:[#allocation3 + $0x28] sm:$0x3] %vm409_vm1, %v3912_v1  ;;  %v402_v28 = vld [vmem:[%s4125_s23 + $0x60] sm:$0xff]  ;;  %v403_v29 = vld [vmem:[%s4125_s23 + $0x68] sm:$0xff]  ;;  %3251 = vrot.lane.b32.xlu0 %v3250_v30, %s3914_s25 }
  0x19   : > { %1596 = vst.msk [vmem:[#allocation3 + $0x18] sm:$0xff] %vm406_vm0, %v3912_v1  ;;  %1597 = vst.msk [vmem:[#allocation3 + $0x20] sm:$0xff] %vm406_vm0, %v3912_v1  ;;  %v404_v31 = vld [vmem:[%s4125_s23 + $0x70] sm:$0xff]  ;;  %v405_v32 = vld [vmem:[%s4125_s23 + $0x78] sm:$0xff] }
  0x1a   : > { %1599 = vst.msk [vmem:[#allocation3 + $0x30] sm:$0xff] %vm406_vm0, %v3912_v1  ;;  %1600 = vst.msk [vmem:[#allocation3 + $0x38] sm:$0xff] %vm406_vm0, %v3912_v1  ;;  %v3890_v20 = vld [vmem:[%s5427_s1] sm:$0xff]  }
  0x1b   : > { %1601 = vst.msk [vmem:[#allocation3 + $0x40] sm:$0x3] %vm409_vm1, %v3912_v1  ;;  %1604 = vst.msk [vmem:[#allocation3 + $0x58] sm:$0x3] %vm409_vm1, %v3912_v1  ;;  %3168 = vmatprep.subr.bf16.mxu0 %v3890_v20 }
  0x1c   : > { %1602 = vst.msk [vmem:[#allocation3 + $0x48] sm:$0xff] %vm406_vm0, %v3912_v1  ;;  %1603 = vst.msk [vmem:[#allocation3 + $0x50] sm:$0xff] %vm406_vm0, %v3912_v1  ;;  %3169 = vmatpush3.bf16.msra.mxu0 %v3890_v20 }
  0x1d   : > { %1605 = vst.msk [vmem:[#allocation3 + $0x60] sm:$0xff] %vm406_vm0, %v3912_v1  ;;  %1606 = vst.msk [vmem:[#allocation3 + $0x68] sm:$0xff] %vm406_vm0, %v3912_v1 }
  0x1e   : > { %1607 = vst.msk [vmem:[#allocation3 + $0x70] sm:$0x3] %vm409_vm1, %v3912_v1  ;;  %1610 = vst.msk [vmem:[#allocation3 + $0x88] sm:$0x3] %vm409_vm1, %v3912_v1 }
  0x1f   : > { %1608 = vst.msk [vmem:[#allocation3 + $0x78] sm:$0xff] %vm406_vm0, %v3912_v1  ;;  %1609 = vst.msk [vmem:[#allocation3 + $0x80] sm:$0xff] %vm406_vm0, %v3912_v1 }
  0x20   : > { %1611 = vst.msk [vmem:[#allocation3 + $0x90] sm:$0xff] %vm406_vm0, %v3912_v1  ;;  %1612 = vst.msk [vmem:[#allocation3 + $0x98] sm:$0xff] %vm406_vm0, %v3912_v1 }
  0x21   : > { %1613 = vst.msk [vmem:[#allocation3 + $0xa0] sm:$0x3] %vm409_vm1, %v3912_v1  ;;  %1616 = vst.msk [vmem:[#allocation3 + $0xb8] sm:$0x3] %vm409_vm1, %v3912_v1 }
  0x22   : > { %1614 = vst.msk [vmem:[#allocation3 + $0xa8] sm:$0xff] %vm406_vm0, %v3912_v1  ;;  %1615 = vst.msk [vmem:[#allocation3 + $0xb0] sm:$0xff] %vm406_vm0, %v3912_v1 }
  0x23   : > { %1617 = vst.msk [vmem:[#allocation3 + $0xc0] sm:$0xff] %vm406_vm0, %v3912_v1  ;;  %1618 = vst.msk [vmem:[#allocation3 + $0xc8] sm:$0xff] %vm406_vm0, %v3912_v1 }
  0x24   : > { %1619 = vst.msk [vmem:[#allocation3 + $0xd0] sm:$0x3] %vm409_vm1, %v3912_v1  ;;  %1622 = vst.msk [vmem:[#allocation3 + $0xe8] sm:$0x3] %vm409_vm1, %v3912_v1 }
  0x25   : > { %1620 = vst.msk [vmem:[#allocation3 + $0xd8] sm:$0xff] %vm406_vm0, %v3912_v1  ;;  %1621 = vst.msk [vmem:[#allocation3 + $0xe0] sm:$0xff] %vm406_vm0, %v3912_v1 }
  0x26   : > { %441 = vst.msk [vmem:[#allocation2 + $0x31] sm:$0xff] %vm406_vm0, %v392_v2  ;;  %442 = vst.msk [vmem:[#allocation2 + $0x39] sm:$0xff] %vm406_vm0, %v393_v3 }
  0x27   : > { %439 = vst.msk [vmem:[#allocation2 + $0x19] sm:$0xff] %vm406_vm0, %v390_v4  ;;  %440 = vst.msk [vmem:[#allocation2 + $0x21] sm:$0xff] %vm406_vm0, %v391_v12 }
  0x28   : > { %443 = vst.msk [vmem:[#allocation2 + $0x49] sm:$0xff] %vm406_vm0, %v394_v13  ;;  %444 = vst.msk [vmem:[#allocation2 + $0x51] sm:$0xff] %vm406_vm0, %v395_v16 }
  0x29   : > { %445 = vst.msk [vmem:[#allocation2 + $0x61] sm:$0xff] %vm406_vm0, %v396_v17  ;;  %446 = vst.msk [vmem:[#allocation2 + $0x69] sm:$0xff] %vm406_vm0, %v397_v18 }
  0x2a   : > { %447 = vst.msk [vmem:[#allocation2 + $0x79] sm:$0xff] %vm406_vm0, %v398_v21  ;;  %448 = vst.msk [vmem:[#allocation2 + $0x81] sm:$0xff] %vm406_vm0, %v399_v22  ;;  %v3891_v21 = vld [vmem:[%s5427_s1 + $0x8] sm:$0xff]  }
  0x2b   : > { %449 = vst.msk [vmem:[#allocation2 + $0x91] sm:$0xff] %vm406_vm0, %v400_v23  ;;  %450 = vst.msk [vmem:[#allocation2 + $0x99] sm:$0xff] %vm406_vm0, %v401_v27  ;;  %3170 = vmatprep.subr.bf16.mxu0 %v3891_v21 }
  0x2c   : > { %451 = vst.msk [vmem:[#allocation2 + $0xa9] sm:$0xff] %vm406_vm0, %v402_v28  ;;  %452 = vst.msk [vmem:[#allocation2 + $0xb1] sm:$0xff] %vm406_vm0, %v403_v29  ;;  %v3892_v29 = vld [vmem:[%s5427_s1 + $0x10] sm:$0xff]   ;;  %3171 = vmatpush3.bf16.msra.mxu0 %v3891_v21 }
  0x2d   : > { %453 = vst.msk [vmem:[#allocation2 + $0xc1] sm:$0xff] %vm406_vm0, %v404_v31  ;;  %454 = vst.msk [vmem:[#allocation2 + $0xc9] sm:$0xff] %vm406_vm0, %v405_v32  ;;  %v4173_v33 = vld [vmem:[#allocation2 + $0x30] sm:$0xff]  ;;  %v4175_v34 = vld [vmem:[#allocation2 + $0x38] sm:$0xff]  ;;  %3172 = vmatprep.subr.bf16.mxu0 %v3892_v29 }
  0x2e   : > { %v4177_v35 = vld [vmem:[#allocation2 + $0x18] sm:$0xff]  ;;  %v4180_v36 = vrot.slane %v4175_v34, 1  ;;  %v4183_v37 = vrot.slane %v4175_v34, 2  ;;  %v4187_v38 = vpack.i.bf16 %v4175_v34, %v4173_v33  ;;  %v816_v39 = vrot.slane %v4173_v33, 1  ;;  %v493_v40 = vld [vmem:[#allocation2 + $0x40] sm:$0x3] }
  0x2f   : > { %v904_v41 = vrot.slane %v4173_v33, 2  ;;  %v4191_v42 = vld [vmem:[#allocation2 + $0x20] sm:$0xff]  ;;  %v811_v43 = vrot.slane %v4177_v35, 1  ;;  %v899_v44 = vrot.slane %v4177_v35, 2  ;;  %v469_v45 = vld [vmem:[#allocation2 + $0x28] sm:$0x3] }
  0x30   : > { %3266 = vrot.lane.b32.xlu1 %v4187_v38, %s3915_s26  ;;  %v812_v46 = vrot.slane %v4191_v42, 1  ;;  %v900_v47 = vrot.slane %v4191_v42, 2  ;;  %v3260_v48 = vpack.i.bf16 %v4191_v42, %v4177_v35  ;;  %v659_v49 = vrot.slane %v469_v45, 2  ;;  %v490_v50 = vld [vmem:[#allocation2 + $0x28] sm:$0x3]  ;;  %v4225_v10 = vld [vmem:[#allocation2 + $0x50] sm:$0xff]  ;;  %3173 = vmatpush3.bf16.msra.mxu0 %v3892_v29 }
  0x31   : > { %v570_v51 = vrot.slane %v469_v45, 1  ;;  %v4203_v52 = vsel %vm561_vm3, %v816_v39, %v4180_v36  ;;  %v819_v53 = vrot.slane %v493_v40, 1  ;;  %v814_v54 = vrot.slane %v490_v50, 1  ;;  %v4223_v9 = vld [vmem:[#allocation2 + $0x48] sm:$0xff]  ;;  %v518_v11 = vld [vmem:[#allocation2 + $0x58] sm:$0x3] }
  0x32   : > { %3261 = vrot.lane.b32.xlu0 %v3260_v48, %s3915_s26  ;;  %v658_v55 = vsel %vm650_vm2, %v899_v44, %v900_v47  ;;  %v660_v56 = vsel %vm650_vm2, %v900_v47, %v659_v49  ;;  %v569_v57 = vsel %vm561_vm3, %v811_v43, %v812_v46  ;;  %v907_v0 = vrot.slane %v493_v40, 2  ;;  %v515_v12 = vld [vmem:[#allocation2 + $0x40] sm:$0x3]  ;;  %v475_v23 = vld [vmem:[#allocation2 + $0x58] sm:$0x3] }
  0x33   : > { %v3275_v58 = vpack.i.bf16 %v660_v56, %v658_v55  ;;  %v571_v59 = vsel %vm561_vm3, %v812_v46, %v570_v51  ;;  %v820_v60 = vsel %vm561_vm3, %v4180_v36, %v819_v53  ;;  %v815_v61 = vsel %vm561_vm3, %v812_v46, %v814_v54  ;;  %v472_v19 = vld [vmem:[#allocation2 + $0x40] sm:$0x3]  ;;  %v4288_v56 = vld [vmem:[#allocation2 + $0x68] sm:$0xff]  ;;  %v521_v21 = vld [vmem:[#allocation2 + $0x70] sm:$0x3] }
  0x34   : > { %v3270_v62 = vpack.i.bf16 %v571_v59, %v569_v57  ;;  %v3285_v63 = vpack.i.bf16 %v820_v60, %v4203_v52  ;;  %v902_v2 = vrot.slane %v490_v50, 2  ;;  %v3280_v3 = vpack.i.bf16 %v815_v61, %v569_v57  ;;  %v499_v57 = vld [vmem:[#allocation2 + $0x70] sm:$0x3]  ;;  %v524_v20 = vld [vmem:[#allocation2 + $0x88] sm:$0x3] }
  0x35   : > { %3276 = vrot.lane.b32.xlu1 %v3275_v58, %s3913_s24  ;;  %v4218_v4 = vsel %vm650_vm2, %v904_v41, %v4183_v37  ;;  %v908_v7 = vsel %vm650_vm2, %v4183_v37, %v907_v0  ;;  %v4231_v15 = vrot.slane %v4225_v10, 1  ;;  %v1064_v16 = vrot.slane %v4223_v9, 1  ;;  %v496_v58 = vld [vmem:[#allocation2 + $0x58] sm:$0x3]  ;;  %v3894_v29 = vld [vmem:[%s5427_s1 + $0x20] ss:$0 sps:$4 sm:$0xff]  }
  0x36   : > { %3271 = vrot.lane.b32.xlu0 %v3270_v62, %s3914_s25  ;;  %v903_v8 = vsel %vm650_vm2, %v900_v47, %v902_v2  ;;  %v3300_v13 = vpack.i.bf16 %v908_v7, %v4218_v4  ;;  %v1067_v17 = vrot.slane %v518_v11, 1  ;;  %v1062_v18 = vrot.slane %v515_v12, 1 }
  0x37   : > { %v3290_v14 = vpack.i.bf16 %v903_v8, %v658_v55  ;;  %v4243_v22 = vpack.i.bf16 %v4225_v10, %v4223_v9  ;;  %v4248_v24 = vsel %vm561_vm3, %v1064_v16, %v4231_v15  ;;  %v575_v26 = vrot.slane %v472_v19, 1  ;;  %v4286_v55 = vld [vmem:[#allocation2 + $0x60] sm:$0xff] }
  0x38   : > { %v1068_v25 = vsel %vm561_vm3, %v4231_v15, %v1067_v17  ;;  %v1063_v27 = vsel %vm561_vm3, %v4180_v36, %v1062_v18  ;;  %v1150_v28 = vrot.slane %v515_v12, 2  ;;  %v580_v39 = vrot.slane %v475_v23, 1 }
  0x39   : > { %3286 = vrot.lane.b32.xlu1 %v3285_v63, %s3916_s27  ;;  %v3315_v30 = vpack.i.bf16 %v1068_v25, %v4248_v24  ;;  %v3310_v31 = vpack.i.bf16 %v1063_v27, %v4203_v52  ;;  %v576_v32 = vsel %vm561_vm3, %v4180_v36, %v575_v26  ;;  %v1153_v40 = vrot.slane %v4225_v10, 2 }
  0x3a   : > { %3281 = vrot.lane.b32.xlu0 %v3280_v3, %s3916_s27  ;;  %v1152_v41 = vrot.slane %v4223_v9, 2  ;;  %v1151_v43 = vsel %vm650_vm2, %v4183_v37, %v1150_v28  ;;  %v1155_v44 = vrot.slane %v518_v11, 2  ;;  %v3325_v36 = vpack.i.bf16 %v576_v32, %v4203_v52  ;;  %v478_v28 = vld [vmem:[#allocation2 + $0x70] sm:$0x3] }
  0x3b   : > { %v3320_v45 = vpack.i.bf16 %v1151_v43, %v4218_v4  ;;  %v581_v46 = vsel %vm561_vm3, %v4231_v15, %v580_v39  ;;  %v669_v47 = vrot.slane %v475_v23, 2  ;;  %v664_v50 = vrot.slane %v472_v19, 2  ;;  %v4318_v19 = vld [vmem:[#allocation2 + $0x78] sm:$0xff]  ;;  %v481_v43 = vld [vmem:[#allocation2 + $0x88] sm:$0x3] }
  0x3c   : > { %v1154_v48 = vsel %vm650_vm2, %v1152_v41, %v1153_v40  ;;  %v1156_v49 = vsel %vm650_vm2, %v1153_v40, %v1155_v44  ;;  %v3335_v51 = vpack.i.bf16 %v581_v46, %v4248_v24  ;;  %v827_v61 = vrot.slane %v4288_v56, 1 }
  0x3d   : > { %3301 = vrot.lane.b32.xlu1 %v3300_v13, %s3917_s13  ;;  %v3330_v52 = vpack.i.bf16 %v1156_v49, %v1154_v48  ;;  %v670_v53 = vsel %vm650_vm2, %v1153_v40, %v669_v47  ;;  %v665_v54 = vsel %vm650_vm2, %v4183_v37, %v664_v50  ;;  %v826_v62 = vrot.slane %v4286_v55, 1 }
  0x3e   : > { %3291 = vrot.lane.b32.xlu0 %v3290_v14, %s3917_s13  ;;  %v3345_v59 = vpack.i.bf16 %v670_v53, %v1154_v48  ;;  %v3340_v60 = vpack.i.bf16 %v665_v54, %v4218_v4  ;;  %v829_v63 = vrot.slane %v499_v57, 1  ;;  %v824_v37 = vrot.slane %v496_v58, 1 }
  0x3f   : > { %v4297_v0 = vrot.slane %v4288_v56, 2  ;;  %v3355_v2 = vpack.i.bf16 %v4288_v56, %v4286_v55  ;;  %v914_v3 = vrot.slane %v4286_v55, 2  ;;  %v828_v4 = vsel %vm561_vm3, %v826_v62, %v827_v61 }
  0x40   : > { %v830_v7 = vsel %vm561_vm3, %v827_v61, %v829_v63  ;;  %v917_v8 = vrot.slane %v499_v57, 2  ;;  %v825_v11 = vsel %vm561_vm3, %v4231_v15, %v824_v37  ;;  %v912_v12 = vrot.slane %v496_v58, 2  ;;  %v4320_v15 = vld [vmem:[#allocation2 + $0x80] sm:$0xff]  ;;  %v4367_v37 = vld [vmem:[#allocation2 + $0x90] sm:$0xff] }
  0x41   : > { %3306 = vrot.lane.b32.xlu1 %v4243_v22, %s3918_s16  ;;  %v3365_v13 = vpack.i.bf16 %v830_v7, %v828_v4  ;;  %v3360_v14 = vpack.i.bf16 %v825_v11, %v4248_v24  ;;  %v4313_v16 = vsel %vm650_vm2, %v914_v3, %v4297_v0  ;;  %v4326_v24 = vrot.slane %v4320_v15, 1  ;;  %v505_v3 = vld [vmem:[#allocation2 + $0xa0] sm:$0x3] }
  0x42   : > { %3296 = vrot.lane.b32.xlu0 %v4187_v38, %s3918_s16  ;;  %v3893_v38 = vld [vmem:[%s5427_s1 + $0x18] sm:$0xff]   ;;  %v918_v17 = vsel %vm650_vm2, %v4297_v0, %v917_v8  ;;  %v913_v18 = vsel %vm650_vm2, %v1153_v40, %v912_v12  ;;  %v1074_v25 = vrot.slane %v4318_v19, 1  ;;  %v1077_v26 = vrot.slane %v524_v20, 1 }
  0x43   : > { %3174 = vmatprep.subr.bf16.mxu0 %v3893_v38  ;;  %v3370_v23 = vpack.i.bf16 %v913_v18, %v1154_v48  ;;  %v1072_v27 = vrot.slane %v521_v21, 1  ;;  %v585_v39 = vrot.slane %v478_v28, 1  ;;  %v1160_v41 = vrot.slane %v521_v21, 2 }
  0x44   : > { %3175 = vmatpush3.bf16.msra.mxu0 %v3893_v38  ;;  %v1078_v32 = vsel %vm561_vm3, %v4326_v24, %v1077_v26  ;;  %v1432_v44 = vsel %vm1430_vm4, %v3894_v29, 0  ;;  %v590_v46 = vrot.slane %v481_v43, 1  ;;  %v1163_v47 = vrot.slane %v4320_v15, 2 }
  0x45   : > { %3316 = vrot.lane.b32.xlu1 %v3315_v30, %s3919_s21  ;;  %v3385_v30 = vpack.i.bf16 %v4320_v15, %v4318_v19  ;;  %v1073_v40 = vsel %vm561_vm3, %v827_v61, %v1072_v27  ;;  %3230 = vmatprep.subr.msk.bf16.mxu0 %vm1430_vm4, %v3894_v29  ;;  %v1162_v48 = vrot.slane %v4318_v19, 2  ;;  %v1161_v49 = vsel %vm650_vm2, %v4297_v0, %v1160_v41 }
  0x46   : > { %3311 = vrot.lane.b32.xlu0 %v3310_v31, %s3919_s21  ;;  %v4338_v31 = vsel %vm561_vm3, %v1074_v25, %v4326_v24  ;;  %v1165_v50 = vrot.slane %v524_v20, 2  ;;  %v591_v53 = vsel %vm561_vm3, %v4326_v24, %v590_v46  ;;  %v679_v54 = vrot.slane %v481_v43, 2 }
  0x47   : > { %v3395_v38 = vpack.i.bf16 %v1078_v32, %v4338_v31  ;;  %v1164_v57 = vsel %vm650_vm2, %v1162_v48, %v1163_v47  ;;  %v836_v12 = vrot.slane %v4367_v37, 1  ;;  %v924_v18 = vrot.slane %v4367_v37, 2  ;;  %v4398_v32 = vld [vmem:[#allocation2 + $0xa8] sm:$0xff] }
  0x48   : > { %3177 = vmatpush3.bf16.msra.mxu0 %v1432_v44  ;;  %v1166_v58 = vsel %vm650_vm2, %v1163_v47, %v1165_v50  ;;  %v680_v62 = vsel %vm650_vm2, %v1163_v47, %v679_v54  ;;  %v927_v21 = vrot.slane %v505_v3, 2  ;;  %v1084_v43 = vrot.slane %v4398_v32, 1 }
  0x49   : > { %3326 = vrot.lane.b32.xlu1 %v3325_v36, %s3914_s25  ;;  %v3390_v36 = vpack.i.bf16 %v1073_v40, %v828_v4  ;;  %3220 = vmatprep.subr.mxu0 %v3912_v1  ;;  %v3425_v7 = vpack.i.bf16 %v680_v62, %v1164_v57  ;;  %v527_v40 = vld [vmem:[#allocation2 + $0xa0] sm:$0x3] }
  0x4a   : > { %3321 = vrot.lane.b32.xlu0 %v3320_v45, %s3920_s22  ;;  %v586_v45 = vsel %vm561_vm3, %v827_v61, %v585_v39  ;;  %v3410_v61 = vpack.i.bf16 %v1166_v58, %v1164_v57  ;;  %v530_v39 = vld [vmem:[#allocation2 + $0xb8] sm:$0x3]  ;;  %v1170_v50 = vrot.slane %v527_v40, 2 }
  0x4b   : > { %v1087_v44 = vrot.slane %v530_v39, 1 }
  0x4d   : > { %3336 = vrot.lane.b32.xlu1 %v3335_v51, %s3914_s25  ;;  %v3405_v51 = vpack.i.bf16 %v586_v45, %v828_v4  ;;  %v502_v4 = vld [vmem:[#allocation2 + $0x88] sm:$0x3] }
  0x4e   : > { %3331 = vrot.lane.b32.xlu0 %v3330_v52, %s3920_s22  ;;  %v3400_v52 = vpack.i.bf16 %v1161_v49, %v4313_v16 }
  0x51   : > { %3346 = vrot.lane.b32.xlu1 %v3345_v59, %s3913_s24  ;;  %v674_v59 = vrot.slane %v478_v28, 2 }
  0x52   : > { %3341 = vrot.lane.b32.xlu0 %v3340_v60, %s3913_s24  ;;  %v3415_v60 = vpack.i.bf16 %v591_v53, %v4338_v31 }
  0x53   : > { %v675_v63 = vsel %vm650_vm2, %v4297_v0, %v674_v59  ;;  %v1172_v59 = vrot.slane %v4398_v32, 2 }
  0x54   : > { %v3420_v8 = vpack.i.bf16 %v675_v63, %v4313_v16 }
  0x55   : > { %3356 = vrot.lane.b32.xlu1 %v3355_v2, %s3915_s26 }
  0x56   : > { %3351 = vrot.lane.b32.xlu0 %v4243_v22, %s3915_s26  ;;  %v3375_v22 = vpack.i.bf16 %v918_v17, %v4313_v16 }
  0x59   : > { %3366 = vrot.lane.b32.xlu1 %v3365_v13, %s3916_s27  ;;  %v839_v13 = vrot.slane %v505_v3, 1 }
  0x5a   : > { %3361 = vrot.lane.b32.xlu0 %v3360_v14, %s3916_s27  ;;  %v834_v14 = vrot.slane %v502_v4, 1 }
  0x5d   : > { %3376 = vrot.lane.b32.xlu1 %v3375_v22, %s3917_s13  ;;  %v835_v22 = vsel %vm561_vm3, %v4326_v24, %v834_v14  ;;  %v4400_v24 = vld [vmem:[#allocation2 + $0xb0] sm:$0xff] }
  0x5e   : > { %3371 = vrot.lane.b32.xlu0 %v3370_v23, %s3917_s13  ;;  %v922_v23 = vrot.slane %v502_v4, 2  ;;  %v3440_v26 = vpack.i.bf16 %v835_v22, %v4338_v31  ;;  %v1085_v41 = vrot.slane %v4400_v24, 1  ;;  %v3465_v45 = vpack.i.bf16 %v4400_v24, %v4398_v32 }
  0x5f   : > { %v1173_v58 = vrot.slane %v4400_v24, 2 }
  0x60   : > { %v923_v29 = vsel %vm650_vm2, %v1163_v47, %v922_v23  ;;  %v4412_v46 = vsel %vm561_vm3, %v1084_v43, %v1085_v41  ;;  %v1088_v47 = vsel %vm561_vm3, %v1085_v41, %v1087_v44 }
  0x61   : > { %3386 = vrot.lane.b32.xlu1 %v3385_v30, %s3918_s16  ;;  %v3450_v31 = vpack.i.bf16 %v923_v29, %v1164_v57 }
  0x62   : > { %3381 = vrot.lane.b32.xlu0 %v3355_v2, %s3918_s16  ;;  %v4369_v2 = vld [vmem:[#allocation2 + $0x98] sm:$0xff] }
  0x63   : > { %v837_v11 = vrot.slane %v4369_v2, 1  ;;  %v4378_v0 = vrot.slane %v4369_v2, 2  ;;  %v3435_v17 = vpack.i.bf16 %v4369_v2, %v4367_v37 }
  0x65   : > { %3396 = vrot.lane.b32.xlu1 %v3395_v38, %s3919_s21  ;;  %v838_v16 = vsel %vm561_vm3, %v836_v12, %v837_v11  ;;  %v840_v20 = vsel %vm561_vm3, %v837_v11, %v839_v13  ;;  %v4393_v27 = vsel %vm650_vm2, %v924_v18, %v4378_v0  ;;  %v928_v28 = vsel %vm650_vm2, %v4378_v0, %v927_v21  ;;  %v509_v18 = vld [vmem:[#allocation2 + $0xc0] sm:$0xff]  ;;  %v508_v21 = vld [vmem:[#allocation2 + $0xb8] sm:$0x3] }
  0x66   : > { %3391 = vrot.lane.b32.xlu0 %v3390_v36, %s3919_s21  ;;  %v3445_v25 = vpack.i.bf16 %v840_v20, %v838_v16  ;;  %v1082_v38 = vrot.slane %v527_v40, 1  ;;  %v484_v36 = vld [vmem:[#allocation2 + $0xa0] sm:$0x3]  ;;  %v511_v20 = vld [vmem:[#allocation2 + $0xd0] sm:$0x3]  ;;  %v844_v29 = vrot.slane %v508_v21, 1 }
  0x67   : > { %v595_v48 = vrot.slane %v484_v36, 1  ;;  %v937_v43 = vrot.slane %v511_v20, 2 }
  0x68   : > { %v1083_v49 = vsel %vm561_vm3, %v837_v11, %v1082_v38  ;;  %v845_v44 = vsel %vm561_vm3, %v1085_v41, %v844_v29  ;;  %v932_v38 = vrot.slane %v508_v21, 2 }
  0x69   : > { %3406 = vrot.lane.b32.xlu1 %v3405_v51, %s3914_s25  ;;  %v487_v51 = vld [vmem:[#allocation2 + $0xb8] sm:$0x3]  ;;  %v3470_v53 = vpack.i.bf16 %v1083_v49, %v838_v16  ;;  %v596_v54 = vsel %vm561_vm3, %v837_v11, %v595_v48  ;;  %v684_v11 = vrot.slane %v484_v36, 2  ;;  %v3520_v36 = vpack.i.bf16 %v845_v44, %v4412_v46 }
  0x6a   : > { %3401 = vrot.lane.b32.xlu0 %v3400_v52, %s3920_s22  ;;  %v3475_v52 = vpack.i.bf16 %v1088_v47, %v4412_v46  ;;  %v600_v57 = vrot.slane %v487_v51, 1  ;;  %v3485_v62 = vpack.i.bf16 %v596_v54, %v838_v16  ;;  %v689_v4 = vrot.slane %v487_v51, 2  ;;  %v510_v16 = vld [vmem:[#allocation2 + $0xc8] sm:$0xff]  ;;  %v535_v51 = vld [vmem:[#allocation2 + $0xe0] sm:$0xff] }
  0x6b   : > { %v3515_v40 = vpack.i.bf16 %v510_v16, %v509_v18  ;;  %v933_v49 = vsel %vm650_vm2, %v1173_v58, %v932_v38 }
  0x6c   : > { %v601_v3 = vsel %vm561_vm3, %v1085_v41, %v600_v57  ;;  %v690_v14 = vsel %vm650_vm2, %v1173_v58, %v689_v4  ;;  %v1095_v57 = vrot.slane %v535_v51, 1 }
  0x6d   : > { %3416 = vrot.lane.b32.xlu1 %v3415_v60, %s3914_s25  ;;  %v1171_v60 = vsel %vm650_vm2, %v4378_v0, %v1170_v50  ;;  %v3495_v12 = vpack.i.bf16 %v601_v3, %v4412_v46  ;;  %v534_v50 = vld [vmem:[#allocation2 + $0xd8] sm:$0xff] }
  0x6e   : > { %3411 = vrot.lane.b32.xlu0 %v3410_v61, %s3920_s22  ;;  %v1175_v61 = vrot.slane %v530_v39, 2  ;;  %v3480_v63 = vpack.i.bf16 %v1171_v60, %v4393_v27  ;;  %v935_v39 = vrot.slane %v510_v16, 2  ;;  %v3545_v60 = vpack.i.bf16 %v535_v51, %v534_v50 }
  0x70   : > { %v938_v48 = vsel %vm650_vm2, %v935_v39, %v937_v43 }
  0x71   : > { %3426 = vrot.lane.b32.xlu1 %v3425_v7, %s3913_s24  ;;  %v1174_v7 = vsel %vm650_vm2, %v1172_v59, %v1173_v58 }
  0x72   : > { %3421 = vrot.lane.b32.xlu0 %v3420_v8, %s3913_s24  ;;  %v1176_v8 = vsel %vm650_vm2, %v1173_v58, %v1175_v61  ;;  %v3505_v22 = vpack.i.bf16 %v690_v14, %v1174_v7  ;;  %v3530_v54 = vpack.i.bf16 %v933_v49, %v1174_v7  ;;  %v1182_v61 = vrot.slane %v534_v50, 2 }
  0x73   : > { %v3490_v13 = vpack.i.bf16 %v1176_v8, %v1174_v7 }
  0x75   : > { %3436 = vrot.lane.b32.xlu1 %v3435_v17, %s3915_s26 }
  0x76   : > { %3431 = vrot.lane.b32.xlu0 %v3385_v30, %s3915_s26  ;;  %v3455_v30 = vpack.i.bf16 %v928_v28, %v4393_v27  ;;  %v849_v28 = vrot.slane %v511_v20, 1 }
  0x79   : > { %3446 = vrot.lane.b32.xlu1 %v3445_v25, %s3916_s27  ;;  %v847_v25 = vrot.slane %v510_v16, 1 }
  0x7a   : > { %3441 = vrot.lane.b32.xlu0 %v3440_v26, %s3916_s27  ;;  %v846_v26 = vrot.slane %v509_v18, 1 }
  0x7d   : > { %3456 = vrot.lane.b32.xlu1 %v3455_v30, %s3917_s13  ;;  %v848_v30 = vsel %vm561_vm3, %v846_v26, %v847_v25 }
  0x7e   : > { %3451 = vrot.lane.b32.xlu0 %v3450_v31, %s3917_s13  ;;  %v850_v31 = vsel %vm561_vm3, %v847_v25, %v849_v28 }
  0x81   : > { %3466 = vrot.lane.b32.xlu1 %v3465_v45, %s3918_s16 }
  0x82   : > { %3461 = vrot.lane.b32.xlu0 %v3435_v17, %s3918_s16  ;;  %v685_v17 = vsel %vm650_vm2, %v4378_v0, %v684_v11  ;;  %v934_v0 = vrot.slane %v509_v18, 2 }
  0x83   : > { %v3500_v23 = vpack.i.bf16 %v685_v17, %v4393_v27  ;;  %v3525_v27 = vpack.i.bf16 %v850_v31, %v848_v30 }
  0x84   : > { %v936_v47 = vsel %vm650_vm2, %v934_v0, %v935_v39 }
  0x85   : > { %3476 = vrot.lane.b32.xlu1 %v3475_v52, %s3919_s21  ;;  %v536_v52 = vld [vmem:[#allocation2 + $0xe8] sm:$0x3]  ;;  %v3535_v41 = vpack.i.bf16 %v938_v48, %v936_v47 }
  0x86   : > { %3471 = vrot.lane.b32.xlu0 %v3470_v53, %s3919_s21  ;;  %v533_v53 = vld [vmem:[#allocation2 + $0xd0] sm:$0x3]  ;;  %v1097_v59 = vrot.slane %v536_v52, 1  ;;  %v1185_v4 = vrot.slane %v536_v52, 2 }
  0x87   : > { %v1092_v46 = vrot.slane %v533_v53, 1  ;;  %v1180_v11 = vrot.slane %v533_v53, 2 }
  0x88   : > { %v3257_v58 = vpop.permute.xlu1 %3256  ;;  %v1098_v3 = vsel %vm561_vm3, %v1095_v57, %v1097_v59 }
  0x89   : > { %3486 = vrot.lane.b32.xlu1 %v3485_v62, %s3914_s25  ;;  %v1183_v62 = vrot.slane %v535_v51, 2  ;;  %v1093_v7 = vsel %vm561_vm3, %v847_v25, %v1092_v46  ;;  %v1181_v16 = vsel %vm650_vm2, %v935_v39, %v1180_v11  ;;  %v3259_v43 = vunpack.i.h.bf16 %v3257_v58 }
  0x8a   : > { %3481 = vrot.lane.b32.xlu0 %v3480_v63, %s3920_s22  ;;  %v3252_v8 = vpop.permute.xlu0 %3251  ;;  %v3550_v14 = vpack.i.bf16 %v1093_v7, %v848_v30  ;;  %v3258_v44 = vunpack.i.l.bf16 %v3257_v58 }
  0x8b   : > { %v1184_v17 = vsel %vm650_vm2, %v1182_v61, %v1183_v62  ;;  %v1186_v18 = vsel %vm650_vm2, %v1183_v62, %v1185_v4  ;;  %v3254_v29 = vunpack.i.h.bf16 %v3252_v8 }
  0x8c   : > { %v3565_v21 = vpack.i.bf16 %v1186_v18, %v1184_v17 }
  0x8d   : > { %3496 = vrot.lane.b32.xlu1 %v3495_v12, %s3914_s25  ;;  %v1236_v38 = vsel %vm406_vm0, %v4132_v6, %v3254_v29 }
  0x8e   : > { %3491 = vrot.lane.b32.xlu0 %v3490_v13, %s3920_s22 }
  0x91   : > { %3506 = vrot.lane.b32.xlu1 %v3505_v22, %s3913_s24  ;;  %v3560_v22 = vpack.i.bf16 %v1181_v16, %v936_v47 }
  0x92   : > { %3501 = vrot.lane.b32.xlu0 %v3500_v23, %s3913_s24 }
  0x95   : > { %3516 = vrot.lane.b32.xlu1 %v3515_v40, %s3915_s26 }
  0x96   : > { %3511 = vrot.lane.b32.xlu0 %v3465_v45, %s3915_s26  ;;  %v1094_v45 = vrot.slane %v534_v50, 1 }
  0x98   : > { %v1096_v63 = vsel %vm561_vm3, %v1094_v45, %v1095_v57 }
  0x99   : > { %3526 = vrot.lane.b32.xlu1 %v3525_v27, %s3916_s27  ;;  %v3555_v12 = vpack.i.bf16 %v1098_v3, %v1096_v63 }
  0x9a   : > { %3521 = vrot.lane.b32.xlu0 %v3520_v36, %s3916_s27 }
  0x9d   : > { %3536 = vrot.lane.b32.xlu1 %v3535_v41, %s3917_s13 }
  0x9e   : > { %3531 = vrot.lane.b32.xlu0 %v3530_v54, %s3917_s13  ;;  %v1253_v54 = vsel %vm1251_vm5, %v1236_v38, %v3259_v43 }
  0xa1   : > { %3546 = vrot.lane.b32.xlu1 %v3545_v60, %s3918_s16 }
  0xa2   : > { %3541 = vrot.lane.b32.xlu0 %v3515_v40, %s3918_s16  ;;  %v4459_v13 = vpop.permute.xlu1 %3266  ;;  %v3253_v40 = vunpack.i.l.bf16 %v3252_v8 }
  0xa3   : > { %v3269_v6 = vunpack.i.h.bf16 %v4459_v13 }
  0xa4   : > { %v3262_v20 = vpop.permute.xlu0 %3261  ;;  %v1235_v27 = vsel %vm406_vm0, %v4130_v5, %v3253_v40  ;;  %v3268_v5 = vunpack.i.l.bf16 %v4459_v13 }
  0xa5   : > { %3556 = vrot.lane.b32.xlu1 %v3555_v12, %s3919_s21  ;;  %v3264_v49 = vunpack.i.h.bf16 %v3262_v20  ;;  %v3263_v50 = vunpack.i.l.bf16 %v3262_v20  ;;  %v1252_v41 = vsel %vm1251_vm5, %v1235_v27, %v3258_v44 }
  0xa6   : > { %3551 = vrot.lane.b32.xlu0 %v3550_v14, %s3919_s21 }
  0xa7   : > { %v3277_v23 = vpop.permute.xlu1 %3276  ;;  %v1270_v46 = vsel %vm1268_vm6, %v1253_v54, %v3264_v49  ;;  %v1269_v60 = vsel %vm1268_vm6, %v1252_v41, %v3263_v50 }
  0xa8   : > { %v3272_v25 = vpop.permute.xlu0 %3271  ;;  %v3279_v36 = vunpack.i.h.bf16 %v3277_v23  ;;  %v3278_v47 = vunpack.i.l.bf16 %v3277_v23 }
  0xa9   : > { %3566 = vrot.lane.b32.xlu1 %v3565_v21, %s3920_s22  ;;  %v3274_v39 = vunpack.i.h.bf16 %v3272_v25  ;;  %v3273_v30 = vunpack.i.l.bf16 %v3272_v25 }
  0xaa   : > { %3561 = vrot.lane.b32.xlu0 %v3560_v22, %s3920_s22 }
  0xab   : > { %v4468_v26 = vpop.permute.xlu1 %3286  ;;  %v1238_v51 = vsel %vm406_vm0, %v4191_v42, %v3274_v39  ;;  %v1237_v52 = vsel %vm406_vm0, %v4177_v35, %v3273_v30 }
  0xac   : > { %v3282_v28 = vpop.permute.xlu0 %3281  ;;  %v1255_v57 = vsel %vm1251_vm5, %v1238_v51, %v3279_v36  ;;  %v1254_v42 = vsel %vm1251_vm5, %v1237_v52, %v3278_v47  ;;  %v3289_v63 = vunpack.i.h.bf16 %v4468_v26  ;;  %v3288_v3 = vunpack.i.l.bf16 %v4468_v26 }
  0xad   : > { %v3284_v45 = vunpack.i.h.bf16 %v3282_v28  ;;  %v3283_v59 = vunpack.i.l.bf16 %v3282_v28  ;;  %v1271_v7 = vsel %vm1268_vm6, %v1254_v42, %v3268_v5  ;;  %v1272_v11 = vsel %vm1268_vm6, %v1255_v57, %v3269_v6 }
  0xae   : > { %v1288_v44 = vsel %vm1285_vm7, %v1271_v7, %v3288_v3  ;;  %v1289_v38 = vsel %vm1285_vm7, %v1272_v11, %v3289_v63 }
  0xaf   : > { %v4470_v0 = vpop.permute.xlu1 %3301  ;;  %v1287_v14 = vsel %vm1285_vm7, %v1270_v46, %v3284_v45  ;;  %v1286_v17 = vsel %vm1285_vm7, %v1269_v60, %v3283_v59 }
  0xb0   : > { %v3292_v31 = vpop.permute.xlu0 %3291  ;;  %v3304_v18 = vunpack.i.h.bf16 %v4470_v0  ;;  %v3303_v16 = vunpack.i.l.bf16 %v4470_v0 }
  0xb1   : > { %v3294_v61 = vunpack.i.h.bf16 %v3292_v31  ;;  %v3293_v58 = vunpack.i.l.bf16 %v3292_v31 }
  0xb2   : > { %v1306_v49 = vsel %vm1302_vm8, %v1289_v38, %v3304_v18 }
  0xb3   : > { %v4476_v48 = vpop.permute.xlu1 %3306  ;;  %v1303_v21 = vsel %vm1302_vm8, %v1286_v17, %v3293_v58  ;;  %v1304_v22 = vsel %vm1302_vm8, %v1287_v14, %v3294_v61 }
  0xb4   : > { %v3297_v53 = vpop.permute.xlu0 %3296  ;;  %v3309_v23 = vunpack.i.h.bf16 %v4476_v48  ;;  %v3308_v25 = vunpack.i.l.bf16 %v4476_v48  ;;  %v1305_v48 = vsel %vm1302_vm8, %v1288_v44, %v3303_v16 }
  0xb5   : > { %v3299_v4 = vunpack.i.h.bf16 %v3297_v53  ;;  %v3298_v8 = vunpack.i.l.bf16 %v3297_v53 }
  0xb6   : > { %v1322_v52 = vsel %vm1319_vm9, %v1305_v48, %v3308_v25  ;;  %v1323_v53 = vsel %vm1319_vm9, %v1306_v49, %v3309_v23 }
  0xb7   : > { %v3317_v35 = vpop.permute.xlu1 %3316  ;;  %v1320_v40 = vsel %vm1319_vm9, %v1303_v21, %v3298_v8  ;;  %v1321_v39 = vsel %vm1319_vm9, %v1304_v22, %v3299_v4 }
  0xb8   : > { %v3312_v62 = vpop.permute.xlu0 %3311  ;;  %v3319_v30 = vunpack.i.h.bf16 %v3317_v35  ;;  %v3318_v31 = vunpack.i.l.bf16 %v3317_v35 }
  0xb9   : > { %v3314_v12 = vunpack.i.h.bf16 %v3312_v62  ;;  %v3313_v13 = vunpack.i.l.bf16 %v3312_v62 }
  0xba   : > { %v1339_v41 = vsel %vm1336_vm10, %v1322_v52, %v3318_v31  ;;  %v1340_v54 = vsel %vm1336_vm10, %v1323_v53, %v3319_v30 }
  0xbb   : > { %v3327_v20 = vpop.permute.xlu1 %3326  ;;  %v1337_v0 = vsel %vm1336_vm10, %v1320_v40, %v3313_v13  ;;  %v1338_v43 = vsel %vm1336_vm10, %v1321_v39, %v3314_v12 }
  0xbc   : > { %v3322_v26 = vpop.permute.xlu0 %3321  ;;  %v3329_v8 = vunpack.i.h.bf16 %v3327_v20  ;;  %v3328_v7 = vunpack.i.l.bf16 %v3327_v20 }
  0xbd   : > { %v3324_v28 = vunpack.i.h.bf16 %v3322_v26  ;;  %v3323_v29 = vunpack.i.l.bf16 %v3322_v26 }
  0xbe   : > { %v1239_v20 = vsel %vm406_vm0, %v4173_v33, %v3328_v7 }
  0xbf   : > { %v3337_v27 = vpop.permute.xlu1 %3336  ;;  %v1354_v36 = vsel %vm1353_vm11, %v1337_v0, %v3323_v29  ;;  %v1355_v47 = vsel %vm1353_vm11, %v1338_v43, %v3324_v28  ;;  %v1240_v28 = vsel %vm406_vm0, %v4175_v34, %v3329_v8 }
  0xc0   : > { %v3332_v50 = vpop.permute.xlu0 %3331  ;;  %v1370_v51 = vpack.c.bf16 %v1355_v47, %v1354_v36  ;;  %v3339_v62 = vunpack.i.h.bf16 %v3337_v27  ;;  %v3338_v63 = vunpack.i.l.bf16 %v3337_v27 }
  0xc1   : > { %v3334_v6 = vunpack.i.h.bf16 %v3332_v50  ;;  %v3333_v5 = vunpack.i.l.bf16 %v3332_v50 }
  0xc2   : > { %3178 = vmatprep.mubr.msk.bf16.mxu0 %vm1405_vm12, %v1370_v51  ;;  %v1242_v13 = vsel %vm406_vm0, %v4225_v10, %v3339_v62  ;;  %v1241_v14 = vsel %vm406_vm0, %v4223_v9, %v3338_v63 }
  0xc3   : > { %v1356_v57 = vsel %vm1353_vm11, %v1339_v41, %v3333_v5  ;;  %v1357_v42 = vsel %vm1353_vm11, %v1340_v54, %v3334_v6  ;;  %v3347_v45 = vpop.permute.xlu1 %3346 }
  0xc4   : > { %v3342_v59 = vpop.permute.xlu0 %3341  ;;  %v1371_v35 = vpack.c.bf16 %v1357_v42, %v1356_v57  ;;  %v3349_v11 = vunpack.i.h.bf16 %v3347_v45  ;;  %v3348_v12 = vunpack.i.l.bf16 %v3347_v45 }
  0xc5   : > { %v3344_v17 = vunpack.i.h.bf16 %v3342_v59  ;;  %v3343_v18 = vunpack.i.l.bf16 %v3342_v59 }
  0xc6   : > { %3179 = vmatmul.mubr.msk.bf16.vlgmr.msra.gmra.mrb[0].mxu0 %vm1405_vm12, %v1371_v35  ;;  %v1258_v29 = vsel %vm1251_vm5, %v1241_v14, %v3348_v12  ;;  %v1259_v10 = vsel %vm1251_vm5, %v1242_v13, %v3349_v11 }
  0xc7   : > { %v3357_v46 = vpop.permute.xlu1 %3356  ;;  %v1257_v9 = vsel %vm1251_vm5, %v1240_v28, %v3344_v17  ;;  %v1256_v40 = vsel %vm1251_vm5, %v1239_v20, %v3343_v18 }
  0xc8   : > { %v3352_v60 = vpop.permute.xlu0 %3351  ;;  %v3359_v21 = vunpack.i.h.bf16 %v3357_v46  ;;  %v3358_v22 = vunpack.i.l.bf16 %v3357_v46 }
  0xc9   : > { %v3354_v25 = vunpack.i.h.bf16 %v3352_v60  ;;  %v3353_v26 = vunpack.i.l.bf16 %v3352_v60 }
  0xca   : > { %v1275_v0 = vsel %vm1268_vm6, %v1258_v29, %v3358_v22  ;;  %v1276_v43 = vsel %vm1268_vm6, %v1259_v10, %v3359_v21 }
  0xcb   : > { %v4520_v61 = vpop.permute.xlu1 %3366  ;;  %v1273_v33 = vsel %vm1268_vm6, %v1256_v40, %v3353_v26  ;;  %v1274_v27 = vsel %vm1268_vm6, %v1257_v9, %v3354_v25 }
  0xcc   : > { %v3362_v58 = vpop.permute.xlu0 %3361  ;;  %v3369_v48 = vunpack.i.h.bf16 %v4520_v61  ;;  %v3368_v49 = vunpack.i.l.bf16 %v4520_v61 }
  0xcd   : > { %v3364_v39 = vunpack.i.h.bf16 %v3362_v58  ;;  %v3363_v30 = vunpack.i.l.bf16 %v3362_v58 }
  0xce   : > { %v1293_v8 = vsel %vm1285_vm7, %v1276_v43, %v3369_v48 }
  0xcf   : > { %v4522_v3 = vpop.permute.xlu1 %3376  ;;  %v1290_v52 = vsel %vm1285_vm7, %v1273_v33, %v3363_v30  ;;  %v1291_v53 = vsel %vm1285_vm7, %v1274_v27, %v3364_v39 }
  0xd0   : > { %v3372_v4 = vpop.permute.xlu0 %3371  ;;  %v3379_v6 = vunpack.i.h.bf16 %v4522_v3  ;;  %v3378_v5 = vunpack.i.l.bf16 %v4522_v3 }
  0xd1   : > { %v3374_v44 = vunpack.i.h.bf16 %v3372_v4  ;;  %v3373_v34 = vunpack.i.l.bf16 %v3372_v4  ;;  %v1292_v4 = vsel %vm1285_vm7, %v1275_v0, %v3368_v49 }
  0xd2   : > { %v1309_v13 = vsel %vm1302_vm8, %v1292_v4, %v3378_v5  ;;  %v1310_v14 = vsel %vm1302_vm8, %v1293_v8, %v3379_v6 }
  0xd3   : > { %v3387_v16 = vpop.permute.xlu1 %3386  ;;  %v1307_v54 = vsel %vm1302_vm8, %v1290_v52, %v3373_v34  ;;  %v1308_v57 = vsel %vm1302_vm8, %v1291_v53, %v3374_v44 }
  0xd4   : > { %v3382_v23 = vpop.permute.xlu0 %3381  ;;  %v3389_v42 = vunpack.i.h.bf16 %v3387_v16  ;;  %v3388_v45 = vunpack.i.l.bf16 %v3387_v16 }
  0xd5   : > { %v3384_v36 = vunpack.i.h.bf16 %v3382_v23  ;;  %v3383_v47 = vunpack.i.l.bf16 %v3382_v23 }
  0xd6   : > { %v1326_v16 = vsel %vm1319_vm9, %v1309_v13, %v3388_v45  ;;  %v1327_v21 = vsel %vm1319_vm9, %v1310_v14, %v3389_v42 }
  0xd7   : > { %v3397_v31 = vpop.permute.xlu1 %3396  ;;  %v1324_v35 = vsel %vm1319_vm9, %v1307_v54, %v3383_v47  ;;  %v1325_v46 = vsel %vm1319_vm9, %v1308_v57, %v3384_v36 }
  0xd8   : > { %v3392_v38 = vpop.permute.xlu0 %3391  ;;  %v3399_v58 = vunpack.i.h.bf16 %v3397_v31  ;;  %v3398_v62 = vunpack.i.l.bf16 %v3397_v31 }
  0xd9   : > { %v3394_v50 = vunpack.i.h.bf16 %v3392_v38  ;;  %v3393_v51 = vunpack.i.l.bf16 %v3392_v38 }
  0xda   : > { %v1343_v25 = vsel %vm1336_vm10, %v1326_v16, %v3398_v62  ;;  %v1344_v26 = vsel %vm1336_vm10, %v1327_v21, %v3399_v58 }
  0xdb   : > { %v3407_v41 = vpop.permute.xlu1 %3406  ;;  %v1341_v63 = vsel %vm1336_vm10, %v1324_v35, %v3393_v51  ;;  %v1342_v3 = vsel %vm1336_vm10, %v1325_v46, %v3394_v50 }
  0xdc   : > { %v3402_v59 = vpop.permute.xlu0 %3401  ;;  %v3409_v38 = vunpack.i.h.bf16 %v3407_v41  ;;  %v3408_v33 = vunpack.i.l.bf16 %v3407_v41 }
  0xdd   : > { %v3404_v60 = vunpack.i.h.bf16 %v3402_v59  ;;  %v3403_v61 = vunpack.i.l.bf16 %v3402_v59 }
  0xde   : > { %v1244_v57 = vsel %vm406_vm0, %v4288_v56, %v3409_v38  ;;  %v1243_v41 = vsel %vm406_vm0, %v4286_v55, %v3408_v33 }
  0xdf   : > { %v1358_v7 = vsel %vm1353_vm11, %v1341_v63, %v3403_v61  ;;  %v1359_v11 = vsel %vm1353_vm11, %v1342_v3, %v3404_v60  ;;  %v3417_v12 = vpop.permute.xlu1 %3416 }
  0xe0   : > { %v1372_v17 = vpack.c.bf16 %v1359_v11, %v1358_v7  ;;  %v3412_v18 = vpop.permute.xlu0 %3411  ;;  %v3419_v0 = vunpack.i.h.bf16 %v3417_v12  ;;  %v3418_v43 = vunpack.i.l.bf16 %v3417_v12 }
  0xe1   : > { %v3414_v22 = vunpack.i.h.bf16 %v3412_v18  ;;  %v3413_v23 = vunpack.i.l.bf16 %v3412_v18 }
  0xe2   : > { %3182 = vmatprep.mubr.msk.bf16.mxu0 %vm1405_vm12, %v1372_v17  ;;  %v1246_v47 = vsel %vm406_vm0, %v4320_v15, %v3419_v0  ;;  %v1245_v48 = vsel %vm406_vm0, %v4318_v19, %v3418_v43 }
  0xe3   : > { %v1361_v28 = vsel %vm1353_vm11, %v1344_v26, %v3414_v22  ;;  %v1360_v20 = vsel %vm1353_vm11, %v1343_v25, %v3413_v23  ;;  %v3427_v29 = vpop.permute.xlu1 %3426 }
  0xe4   : > { %v1373_v10 = vpack.c.bf16 %v1361_v28, %v1360_v20  ;;  %v3422_v9 = vpop.permute.xlu0 %3421  ;;  %v3429_v27 = vunpack.i.h.bf16 %v3427_v29  ;;  %v3428_v36 = vunpack.i.l.bf16 %v3427_v29 }
  0xe5   : > { %v3424_v49 = vunpack.i.h.bf16 %v3422_v9  ;;  %v3423_v50 = vunpack.i.l.bf16 %v3422_v9 }
  0xe6   : > { %3183 = vmatmul.mubr.msk.bf16.gmra.mrb[4].mxu0 %vm1405_vm12, %v1373_v10  ;;  %v1262_v42 = vsel %vm1251_vm5, %v1245_v48, %v3428_v36  ;;  %v1263_v15 = vsel %vm1251_vm5, %v1246_v47, %v3429_v27 }
  0xe7   : > { %v3437_v40 = vpop.permute.xlu1 %3436  ;;  %v1261_v19 = vsel %vm1251_vm5, %v1244_v57, %v3424_v49  ;;  %v1260_v45 = vsel %vm1251_vm5, %v1243_v41, %v3423_v50 }
  0xe8   : > { %v3432_v39 = vpop.permute.xlu0 %3431  ;;  %v3439_v52 = vunpack.i.h.bf16 %v3437_v40  ;;  %v3438_v53 = vunpack.i.l.bf16 %v3437_v40 }
  0xe9   : > { %v3434_v5 = vunpack.i.h.bf16 %v3432_v39  ;;  %v3433_v54 = vunpack.i.l.bf16 %v3432_v39 }
  0xea   : > { %v1279_v60 = vsel %vm1268_vm6, %v1262_v42, %v3438_v53  ;;  %v1280_v61 = vsel %vm1268_vm6, %v1263_v15, %v3439_v52 }
  0xeb   : > { %v4566_v30 = vpop.permute.xlu1 %3446  ;;  %v1277_v55 = vsel %vm1268_vm6, %v1260_v45, %v3433_v54  ;;  %v1278_v63 = vsel %vm1268_vm6, %v1261_v19, %v3434_v5 }
  0xec   : > { %v3442_v31 = vpop.permute.xlu0 %3441  ;;  %v3449_v8 = vunpack.i.h.bf16 %v4566_v30  ;;  %v3448_v7 = vunpack.i.l.bf16 %v4566_v30 }
  0xed   : > { %v3444_v59 = vunpack.i.h.bf16 %v3442_v31  ;;  %v3443_v35 = vunpack.i.l.bf16 %v3442_v31 }
  0xee   : > { %v1296_v31 = vsel %vm1285_vm7, %v1279_v60, %v3448_v7  ;;  %v1297_v0 = vsel %vm1285_vm7, %v1280_v61, %v3449_v8 }
  0xef   : > { %v4568_v44 = vpop.permute.xlu1 %3456  ;;  %v1294_v13 = vsel %vm1285_vm7, %v1277_v55, %v3443_v35  ;;  %v1295_v14 = vsel %vm1285_vm7, %v1278_v63, %v3444_v59 }
  0xf0   : > { %v3452_v34 = vpop.permute.xlu0 %3451  ;;  %v3459_v17 = vunpack.i.h.bf16 %v4568_v44  ;;  %v3458_v18 = vunpack.i.l.bf16 %v4568_v44 }
  0xf1   : > { %v3454_v58 = vunpack.i.h.bf16 %v3452_v34  ;;  %v3453_v56 = vunpack.i.l.bf16 %v3452_v34 }
  0xf2   : > { %v1313_v38 = vsel %vm1302_vm8, %v1296_v31, %v3458_v18  ;;  %v1314_v33 = vsel %vm1302_vm8, %v1297_v0, %v3459_v17 }
  0xf3   : > { %v3467_v51 = vpop.permute.xlu1 %3466  ;;  %v1311_v21 = vsel %vm1302_vm8, %v1294_v13, %v3453_v56  ;;  %v1312_v22 = vsel %vm1302_vm8, %v1295_v14, %v3454_v58 }
  0xf4   : > { %v3462_v6 = vpop.permute.xlu0 %3461  ;;  %v3469_v23 = vunpack.i.h.bf16 %v3467_v51  ;;  %v3468_v25 = vunpack.i.l.bf16 %v3467_v51 }
  0xf5   : > { %v3464_v3 = vunpack.i.h.bf16 %v3462_v6  ;;  %v3463_v4 = vunpack.i.l.bf16 %v3462_v6 }
  0xf6   : > { %v1330_v47 = vsel %vm1319_vm9, %v1313_v38, %v3468_v25  ;;  %v1331_v48 = vsel %vm1319_vm9, %v1314_v33, %v3469_v23 }
  0xf7   : > { %v3477_v46 = vpop.permute.xlu1 %3476  ;;  %v1328_v28 = vsel %vm1319_vm9, %v1311_v21, %v3463_v4  ;;  %v1329_v20 = vsel %vm1319_vm9, %v1312_v22, %v3464_v3 }
  0xf8   : > { %v3472_v62 = vpop.permute.xlu0 %3471  ;;  %v3479_v9 = vunpack.i.h.bf16 %v3477_v46  ;;  %v3478_v40 = vunpack.i.l.bf16 %v3477_v46 }
  0xf9   : > { %v3474_v11 = vunpack.i.h.bf16 %v3472_v62  ;;  %v3473_v12 = vunpack.i.l.bf16 %v3472_v62 }
  0xfa   : > { %v1347_v51 = vsel %vm1336_vm10, %v1330_v47, %v3478_v40  ;;  %v1348_v52 = vsel %vm1336_vm10, %v1331_v48, %v3479_v9 }
  0xfb   : > { %v3487_v16 = vpop.permute.xlu1 %3486  ;;  %v1345_v39 = vsel %vm1336_vm10, %v1328_v28, %v3473_v12  ;;  %v1346_v30 = vsel %vm1336_vm10, %v1329_v20, %v3474_v11 }
  0xfc   : > { %v3482_v26 = vpop.permute.xlu0 %3481  ;;  %v3489_v35 = vunpack.i.h.bf16 %v3487_v16  ;;  %v3488_v46 = vunpack.i.l.bf16 %v3487_v16 }
  0xfd   : > { %v3484_v29 = vunpack.i.h.bf16 %v3482_v26  ;;  %v3483_v10 = vunpack.i.l.bf16 %v3482_v26 }
  0xfe   : > { %v1248_v12 = vsel %vm406_vm0, %v4369_v2, %v3489_v35  ;;  %v1247_v13 = vsel %vm406_vm0, %v4367_v37, %v3488_v46 }
  0xff   : > { %v1362_v43 = vsel %vm1353_vm11, %v1345_v39, %v3483_v10  ;;  %v1363_v44 = vsel %vm1353_vm11, %v1346_v30, %v3484_v29  ;;  %v3497_v34 = vpop.permute.xlu1 %3496 }
 0x100   : > { %v1374_v27 = vpack.c.bf16 %v1363_v44, %v1362_v43  ;;  %v3492_v36 = vpop.permute.xlu0 %3491  ;;  %v3499_v19 = vunpack.i.h.bf16 %v3497_v34  ;;  %v3498_v45 = vunpack.i.l.bf16 %v3497_v34 }
 0x101   : > { %v3494_v49 = vunpack.i.h.bf16 %v3492_v36  ;;  %v3493_v50 = vunpack.i.l.bf16 %v3492_v36 }
 0x102   : > { %3186 = vmatprep.mubr.msk.bf16.mxu0 %vm1405_vm12, %v1374_v27  ;;  %v1250_v56 = vsel %vm406_vm0, %v4400_v24, %v3499_v19  ;;  %v1249_v62 = vsel %vm406_vm0, %v4398_v32, %v3498_v45 }
 0x103   : > { %v1365_v53 = vsel %vm1353_vm11, %v1348_v52, %v3494_v49  ;;  %v1364_v6 = vsel %vm1353_vm11, %v1347_v51, %v3493_v50  ;;  %v3507_v5 = vpop.permute.xlu1 %3506 }
 0x104   : > { %v1375_v54 = vpack.c.bf16 %v1365_v53, %v1364_v6  ;;  %v3502_v57 = vpop.permute.xlu0 %3501  ;;  %v3509_v60 = vunpack.i.h.bf16 %v3507_v5  ;;  %v3508_v61 = vunpack.i.l.bf16 %v3507_v5 }
 0x105   : > { %v3504_v55 = vunpack.i.h.bf16 %v3502_v57  ;;  %v3503_v63 = vunpack.i.l.bf16 %v3502_v57 }
 0x106   : > { %3187 = vmatmul.mubr.msk.bf16.gmra.mrb[8].mxu0 %vm1405_vm12, %v1375_v54  ;;  %v1266_v14 = vsel %vm1251_vm5, %v1249_v62, %v3508_v61  ;;  %v1267_v24 = vsel %vm1251_vm5, %v1250_v56, %v3509_v60  ;;  %v4646_v56 = vld [vmem:[#allocation3] sm:$0xff]  ;;  %v4648_v62 = vld [vmem:[#allocation3 + $0x8] sm:$0xff] }
 0x107   : > { %v3517_v41 = vpop.permute.xlu1 %3516  ;;  %v1265_v32 = vsel %vm1251_vm5, %v1248_v12, %v3504_v55  ;;  %v1264_v18 = vsel %vm1251_vm5, %v1247_v13, %v3503_v63  ;;  %v1651_v55 = vld [vmem:[#allocation3 + $0x10] sm:$0x3] }
 0x108   : > { %v3512_v42 = vpop.permute.xlu0 %3511  ;;  %v3519_v4 = vunpack.i.h.bf16 %v3517_v41  ;;  %v3518_v8 = vunpack.i.l.bf16 %v3517_v41  ;;  %v1749_v12 = vrot.slane %v1651_v55, 1 }
 0x109   : > { %v3514_v7 = vunpack.i.h.bf16 %v3512_v42  ;;  %v3513_v11 = vunpack.i.l.bf16 %v3512_v42 }
 0x10a   : > { %v1283_v23 = vsel %vm1268_vm6, %v1266_v14, %v3518_v8  ;;  %v1284_v25 = vsel %vm1268_vm6, %v1267_v24, %v3519_v4  ;;  %v1746_v8 = vrot.slane %v4646_v56, 1 }
 0x10b   : > { %v3527_v15 = vpop.permute.xlu1 %3526  ;;  %v1281_v37 = vsel %vm1268_vm6, %v1264_v18, %v3513_v11  ;;  %v1282_v28 = vsel %vm1268_vm6, %v1265_v32, %v3514_v7  ;;  %v1747_v11 = vrot.slane %v4648_v62, 1  ;;  %v4660_v32 = vld [vmem:[#allocation3 + $0xe0] sm:$0xff]  ;;  %v1834_v18 = vrot.slane %v4646_v56, 2 }
 0x10c   : > { %v3522_v59 = vpop.permute.xlu0 %3521  ;;  %v3529_v16 = vunpack.i.h.bf16 %v3527_v15  ;;  %v3528_v21 = vunpack.i.l.bf16 %v3527_v15 }
 0x10d   : > { %v3524_v2 = vunpack.i.h.bf16 %v3522_v59  ;;  %v3523_v26 = vunpack.i.l.bf16 %v3522_v59  ;;  %v1748_v13 = vsel %vm561_vm3, %v1746_v8, %v1747_v11  ;;  %v1750_v14 = vsel %vm561_vm3, %v1747_v11, %v1749_v12 }
 0x10e   : > { %v1300_v31 = vsel %vm1285_vm7, %v1283_v23, %v3528_v21  ;;  %v1301_v0 = vsel %vm1285_vm7, %v1284_v25, %v3529_v16  ;;  %v3570_v24 = vpack.i.bf16 %v1750_v14, %v1748_v13  ;;  %v1835_v16 = vrot.slane %v4648_v62, 2 }
 0x10f   : > { %v3537_v58 = vpop.permute.xlu1 %3536  ;;  %v1298_v38 = vsel %vm1285_vm7, %v1281_v37, %v3523_v26  ;;  %v1299_v33 = vsel %vm1285_vm7, %v1282_v28, %v3524_v2  ;;  %v1837_v21 = vrot.slane %v1651_v55, 2  ;;  %v4674_v37 = vld [vmem:[%s5428_s2] ss:$0 sm:$0xff]  ;;  %v2366_v12 = vrot.slane %v4660_v32, 2 }
 0x110   : > { %v3532_v3 = vpop.permute.xlu0 %3531  ;;  %v3539_v20 = vunpack.i.h.bf16 %v3537_v58  ;;  %v3538_v29 = vunpack.i.l.bf16 %v3537_v58  ;;  %3571 = vrot.lane.b32.xlu0 %v3570_v24, %s3914_s25  ;;  %v1836_v23 = vsel %vm650_vm2, %v1834_v18, %v1835_v16 }
 0x111   : > { %v3534_v10 = vunpack.i.h.bf16 %v3532_v3  ;;  %v3533_v9 = vunpack.i.l.bf16 %v3532_v3  ;;  %v1838_v25 = vsel %vm650_vm2, %v1835_v16, %v1837_v21 }
 0x112   : > { %v1317_v47 = vsel %vm1302_vm8, %v1300_v31, %v3538_v29  ;;  %v1318_v48 = vsel %vm1302_vm8, %v1301_v0, %v3539_v20  ;;  %v3575_v2 = vpack.i.bf16 %v1838_v25, %v1836_v23  ;;  %v4679_v29 = vld [vmem:[%s5429_s3] ss:$0 sm:$0xff] }
 0x113   : > { %v3547_v17 = vpop.permute.xlu1 %3546  ;;  %v1315_v51 = vsel %vm1302_vm8, %v1298_v38, %v3533_v9  ;;  %v1316_v52 = vsel %vm1302_vm8, %v1299_v33, %v3534_v10 }
 0x114   : > { %v3542_v22 = vpop.permute.xlu0 %3541  ;;  %v3549_v40 = vunpack.i.h.bf16 %v3547_v17  ;;  %v3548_v39 = vunpack.i.l.bf16 %v3547_v17  ;;  %v4658_v17 = vld [vmem:[#allocation3 + $0xd8] sm:$0xff]  ;;  %3576 = vrot.lane.b32.xlu0 %v3575_v2, %s3913_s24 }
 0x115   : > { %v3544_v43 = vunpack.i.h.bf16 %v3542_v22  ;;  %v3543_v44 = vunpack.i.l.bf16 %v3542_v22  ;;  %v3580_v22 = vpack.i.bf16 %v4660_v32, %v4658_v17  ;;  %v2365_v13 = vrot.slane %v4658_v17, 2 }
 0x116   : > { %v1334_v53 = vsel %vm1319_vm9, %v1317_v47, %v3548_v39  ;;  %v1335_v6 = vsel %vm1319_vm9, %v1318_v48, %v3549_v40  ;;  %v2277_v47 = vrot.slane %v4658_v17, 1 }
 0x117   : > { %v3557_v30 = vpop.permute.xlu1 %3556  ;;  %v1332_v54 = vsel %vm1319_vm9, %v1315_v51, %v3543_v44  ;;  %v1333_v57 = vsel %vm1319_vm9, %v1316_v52, %v3544_v43  ;;  %3581 = vrot.lane.b32.xlu1 %v3580_v22, %s3918_s16 }
 0x118   : > { %v3552_v34 = vpop.permute.xlu0 %3551  ;;  %v3559_v27 = vunpack.i.h.bf16 %v3557_v30  ;;  %v3558_v36 = vunpack.i.l.bf16 %v3557_v30 }
 0x119   : > { %v3554_v49 = vunpack.i.h.bf16 %v3552_v34  ;;  %v3553_v50 = vunpack.i.l.bf16 %v3552_v34 }
 0x11a   : > { %v1351_v19 = vsel %vm1336_vm10, %v1334_v53, %v3558_v36  ;;  %v1352_v45 = vsel %vm1336_vm10, %v1335_v6, %v3559_v27  ;;  %v2278_v36 = vrot.slane %v4660_v32, 1 }
 0x11b   : > { %v3567_v5 = vpop.permute.xlu1 %3566  ;;  %v1349_v46 = vsel %vm1336_vm10, %v1332_v54, %v3553_v50  ;;  %v1350_v60 = vsel %vm1336_vm10, %v1333_v57, %v3554_v49 }
 0x11c   : > { %v3569_v41 = vunpack.i.h.bf16 %v3567_v5  ;;  %v3568_v42 = vunpack.i.l.bf16 %v3567_v5  ;;  %v3562_v15 = vpop.permute.xlu0 %3561  ;;  %v4698_v49 = vsel %vm561_vm3, %v2277_v47, %v2278_v36 }
 0x11d   : > { %v3564_v59 = vunpack.i.h.bf16 %v3562_v15  ;;  %v3563_v35 = vunpack.i.l.bf16 %v3562_v15  ;;  %v1721_v15 = vld [vmem:[#allocation3 + $0xe8] sm:$0x3] }
 0x11e   : > { %v1368_v61 = vsel %vm1353_vm11, %v1351_v19, %v3568_v42  ;;  %v1369_v58 = vsel %vm1353_vm11, %v1352_v45, %v3569_v41 }
 0x11f   : > { %v1377_v63 = vpack.c.bf16 %v1369_v58, %v1368_v61  ;;  %v1366_v3 = vsel %vm1353_vm11, %v1349_v46, %v3563_v35  ;;  %v1367_v4 = vsel %vm1353_vm11, %v1350_v60, %v3564_v59 }
 0x120   : > { %v1376_v7 = vpack.c.bf16 %v1367_v4, %v1366_v3  ;;  %v2280_v3 = vrot.slane %v1721_v15, 1 }
 0x122   : > { %3190 = vmatprep.mubr.msk.bf16.mxu0 %vm1405_vm12, %v1376_v7  ;;  %v4730_v2 = vsel %vm561_vm3, %v2278_v36, %v2280_v3 }
 0x123   : > { %3191 = vmatmul.mubr.msk.bf16.gmra.mrb[12].mxu0 %vm1405_vm12, %v1377_v63  ;;  %v3865_v32 = vpack.i.bf16 %v4730_v2, %v4698_v49 }
 0x124   : > { %3222 = vmatprep.mubr.msk.f32.mxu0 %vm3921_vm13, %v3912_v1 }
 0x199   : > { %v3180_v26 = vpop.f32.mrb[0].mxu0 }
 0x19a   : > { %v1533_v28 = vmax.f32 %v3180_v26, 0.0  ;;  %v1468_v20 = vpop.f32.mrb[1].mxu0  ;;  %v2368_v26 = vrot.slane %v1721_v15, 2 }
 0x19b   : > { %v1531_v10 = vmax.f32 %v1468_v20, 0.0  ;;  %v3181_v9 = vpop.f32.mrb[2].mxu0 }
 0x19c   : > { %v1556_v40 = vmul.f32 %v4674_v37, %v1533_v28  ;;  %v1534_v39 = vmax.f32 %v3181_v9, 0.0  ;;  %v1471_v30 = vpop.f32.mrb[3].mxu0 }
 0x19d   : > { %v1554_v31 = vmul.f32 %v4674_v37, %v1531_v10  ;;  %v1532_v0 = vmax.f32 %v1471_v30, 0.0  ;;  %v4739_v10 = vsel %vm650_vm2, %v2365_v13, %v2366_v12  ;;  %v4743_v30 = vsel %vm650_vm2, %v2366_v12, %v2368_v26 }
 0x19e   : > { %v1579_v43 = vadd.f32 %v4679_v29, %v1556_v40  ;;  %v1557_v44 = vmul.f32 %v4674_v37, %v1534_v39 }
 0x19f   : > { %v1577_v34 = vadd.f32 %v4679_v29, %v1554_v31  ;;  %v1555_v38 = vmul.f32 %v4674_v37, %v1532_v0 }
 0x1a0   : > { %1626 = vst.msk [vmem:[#allocation3 + $0x31] sm:$0xff] %vm406_vm0, %v1579_v43  ;;  %v1580_v33 = vadd.f32 %v4679_v29, %v1557_v44  ;;  %v3885_v44 = vpack.i.bf16 %v4743_v30, %v4739_v10 }
 0x1a1   : > { %1624 = vst.msk [vmem:[#allocation3 + $0x19] sm:$0xff] %vm406_vm0, %v1577_v34  ;;  %v1578_v27 = vadd.f32 %v4679_v29, %v1555_v38 }
 0x1a2   : > { %1627 = vst.msk [vmem:[#allocation3 + $0x39] sm:$0xff] %vm406_vm0, %v1580_v33 }
 0x1a3   : > { %1625 = vst.msk [vmem:[#allocation3 + $0x21] sm:$0xff] %vm406_vm0, %v1578_v27 }
 0x1a7   : > { %v4695_v48 = vld [vmem:[#allocation3 + $0x30] sm:$0xff] }
 0x1a8   : > { %v2242_v51 = vrot.slane %v4695_v48, 1  ;;  %v2330_v19 = vrot.slane %v4695_v48, 2  ;;  %v4714_v61 = vld [vmem:[#allocation3 + $0x18] sm:$0xff] }
 0x1a9   : > { %v4700_v50 = vld [vmem:[#allocation3 + $0x38] sm:$0xff]  ;;  %v1678_v52 = vld [vmem:[#allocation3 + $0x40] sm:$0x3]  ;;  %v1994_v14 = vrot.slane %v4714_v61, 1  ;;  %v2082_v34 = vrot.slane %v4714_v61, 2 }
 0x1aa   : > { %v3590_v53 = vpack.i.bf16 %v4700_v50, %v4695_v48  ;;  %v2243_v6 = vrot.slane %v4700_v50, 1  ;;  %v2331_v5 = vrot.slane %v4700_v50, 2  ;;  %v2002_v54 = vrot.slane %v1678_v52, 1  ;;  %v1700_v57 = vld [vmem:[#allocation3 + $0x40] sm:$0x3] }
 0x1ab   : > { %v4707_v41 = vld [vmem:[#allocation3 + $0x20] sm:$0xff]  ;;  %v2090_v42 = vrot.slane %v1678_v52, 2  ;;  %v2245_v35 = vrot.slane %v1700_v57, 1  ;;  %v2333_v7 = vrot.slane %v1700_v57, 2  ;;  %v1654_v11 = vld [vmem:[#allocation3 + $0x28] sm:$0x3] }
 0x1ac   : > { %3591 = vrot.lane.b32.xlu0 %v3590_v53, %s3918_s16  ;;  %3586 = vrot.lane.b32.xlu1 %v3590_v53, %s3915_s26  ;;  %v2001_v45 = vsel %vm561_vm3, %v2242_v51, %v2243_v6  ;;  %v2003_v59 = vsel %vm561_vm3, %v2243_v6, %v2002_v54  ;;  %v1657_v46 = vld [vmem:[#allocation3 + $0x40] sm:$0x3]  ;;  %v3595_v58 = vpack.i.bf16 %v4707_v41, %v4714_v61  ;;  %v1995_v24 = vrot.slane %v4707_v41, 1  ;;  %v1675_v17 = vld [vmem:[#allocation3 + $0x28] sm:$0x3] }
 0x1ad   : > { %v3600_v60 = vpack.i.bf16 %v2003_v59, %v2001_v45  ;;  %v2089_v55 = vsel %vm650_vm2, %v2330_v19, %v2331_v5  ;;  %v2091_v63 = vsel %vm650_vm2, %v2331_v5, %v2090_v42  ;;  %v2246_v4 = vsel %vm561_vm3, %v2243_v6, %v2245_v35 }
 0x1ae   : > { %v1759_v8 = vrot.slane %v1657_v46, 1  ;;  %v3605_v18 = vpack.i.bf16 %v2091_v63, %v2089_v55  ;;  %v3610_v16 = vpack.i.bf16 %v2246_v4, %v2001_v45  ;;  %v1847_v21 = vrot.slane %v1657_v46, 2 }
 0x1af   : > { %v2334_v23 = vsel %vm650_vm2, %v2331_v5, %v2333_v7  ;;  %v1754_v25 = vrot.slane %v1654_v11, 1  ;;  %v2083_v28 = vrot.slane %v4707_v41, 2  ;;  %v1753_v20 = vsel %vm561_vm3, %v1994_v14, %v1995_v24  ;;  %v3895_v7 = vld [vmem:[%s5430_s4] sm:$0xff]  }
 0x1b0   : > { %3601 = vrot.lane.b32.xlu1 %v3600_v60, %s3916_s27  ;;  %3596 = vrot.lane.b32.xlu0 %v3595_v58, %s3915_s26  ;;  %v1760_v22 = vsel %vm561_vm3, %v2243_v6, %v1759_v8  ;;  %v3615_v40 = vpack.i.bf16 %v2334_v23, %v2089_v55  ;;  %v1848_v39 = vsel %vm650_vm2, %v2331_v5, %v1847_v21  ;;  %v1997_v0 = vrot.slane %v1675_v17, 1 }
 0x1b1   : > { %v3620_v9 = vpack.i.bf16 %v1760_v22, %v2001_v45  ;;  %v1755_v31 = vsel %vm561_vm3, %v1995_v24, %v1754_v25  ;;  %v1842_v43 = vrot.slane %v1654_v11, 2  ;;  %v3625_v36 = vpack.i.bf16 %v1848_v39, %v2089_v55  ;;  %3194 = vmatprep.subr.bf16.mxu1 %v3895_v7  ;;  %v3896_v11 = vld [vmem:[%s5430_s4 + $0x8] sm:$0xff]   ;;  %v3897_v25 = vld [vmem:[%s5430_s4 + $0x10] sm:$0xff]  }
 0x1b2   : > { %v3630_v47 = vpack.i.bf16 %v1755_v31, %v1753_v20  ;;  %v1841_v51 = vsel %vm650_vm2, %v2082_v34, %v2083_v28  ;;  %v1998_v6 = vsel %vm561_vm3, %v1995_v24, %v1997_v0  ;;  %v2085_v54 = vrot.slane %v1675_v17, 2  ;;  %3195 = vmatpush3.bf16.msra.mxu1 %v3895_v7 }
 0x1b3   : > { %v1843_v5 = vsel %vm650_vm2, %v2083_v28, %v1842_v43  ;;  %v3640_v46 = vpack.i.bf16 %v1998_v6, %v1753_v20  ;;  %3196 = vmatprep.subr.bf16.mxu1 %v3896_v11 }
 0x1b4   : > { %3606 = vrot.lane.b32.xlu1 %v3605_v18, %s3917_s13  ;;  %3611 = vrot.lane.b32.xlu0 %v3610_v16, %s3919_s21  ;;  %v3635_v60 = vpack.i.bf16 %v1843_v5, %v1841_v51  ;;  %v2086_v63 = vsel %vm650_vm2, %v2083_v28, %v2085_v54 }
 0x1b5   : > { %v3645_v8 = vpack.i.bf16 %v2086_v63, %v1841_v51  ;;  %v3898_v51 = vld [vmem:[%s5430_s4 + $0x18] sm:$0xff]  }
 0x1b6   : > { %3197 = vmatpush3.bf16.msra.mxu1 %v3896_v11 }
 0x1b7   : > { %3198 = vmatprep.subr.bf16.mxu1 %v3897_v25 }
 0x1b8   : > { %3621 = vrot.lane.b32.xlu1 %v3620_v9, %s3914_s25  ;;  %3616 = vrot.lane.b32.xlu0 %v3615_v40, %s3920_s22 }
 0x1b9   : > { %v3184_v38 = vpop.f32.mrb[4].mxu0 }
 0x1ba   : > { %v1537_v33 = vmax.f32 %v3184_v38, 0.0  ;;  %v1484_v27 = vpop.f32.mrb[5].mxu0  ;;  %3199 = vmatpush3.bf16.msra.mxu1 %v3897_v25 }
 0x1bb   : > { %v1535_v52 = vmax.f32 %v1484_v27, 0.0  ;;  %v3185_v53 = vpop.f32.mrb[6].mxu0  ;;  %3200 = vmatprep.subr.bf16.mxu1 %v3898_v51 }
 0x1bc   : > { %v1560_v57 = vmul.f32 %v4674_v37, %v1537_v33  ;;  %v1538_v42 = vmax.f32 %v3185_v53, 0.0  ;;  %3626 = vrot.lane.b32.xlu0 %v3625_v36, %s3913_s24  ;;  %3631 = vrot.lane.b32.xlu1 %v3630_v47, %s3914_s25  ;;  %v1487_v15 = vpop.f32.mrb[7].mxu0 }
 0x1bd   : > { %v1558_v19 = vmul.f32 %v4674_v37, %v1535_v52  ;;  %v1536_v45 = vmax.f32 %v1487_v15, 0.0 }
 0x1be   : > { %v1583_v59 = vadd.f32 %v4679_v29, %v1560_v57  ;;  %v1561_v35 = vmul.f32 %v4674_v37, %v1538_v42  ;;  %3201 = vmatpush3.bf16.msra.mxu1 %v3898_v51 }
 0x1bf   : > { %v1581_v58 = vadd.f32 %v4679_v29, %v1558_v19  ;;  %v1559_v55 = vmul.f32 %v4674_v37, %v1536_v45 }
 0x1c0   : > { %1630 = vst.msk [vmem:[#allocation3 + $0x61] sm:$0xff] %vm406_vm0, %v1583_v59  ;;  %v1584_v3 = vadd.f32 %v4679_v29, %v1561_v35  ;;  %3641 = vrot.lane.b32.xlu0 %v3640_v46, %s3916_s27  ;;  %3636 = vrot.lane.b32.xlu1 %v3635_v60, %s3913_s24  ;;  %v3899_v60 = vld [vmem:[%s5430_s4 + $0x20] ss:$0 sps:$4 sm:$0xff]  }
 0x1c1   : > { %1628 = vst.msk [vmem:[#allocation3 + $0x49] sm:$0xff] %vm406_vm0, %v1581_v58  ;;  %v1582_v4 = vadd.f32 %v4679_v29, %v1559_v55  ;;  %3231 = vmatprep.subr.msk.bf16.mxu1 %vm1430_vm4, %v3899_v60  ;;  %v2606_v7 = vsel %vm1430_vm4, %v3899_v60, 0 }
 0x1c2   : > { %1631 = vst.msk [vmem:[#allocation3 + $0x69] sm:$0xff] %vm406_vm0, %v1584_v3  ;;  %3203 = vmatpush3.bf16.msra.mxu1 %v2606_v7 }
 0x1c3   : > { %1629 = vst.msk [vmem:[#allocation3 + $0x51] sm:$0xff] %vm406_vm0, %v1582_v4  ;;  %3225 = vmatprep.subr.mxu1 %v3912_v1 }
 0x1c4   : > { %3646 = vrot.lane.b32.xlu0 %v3645_v8, %s3917_s13 }
 0x1c7   : > { %v4778_v12 = vld [vmem:[#allocation3 + $0x60] sm:$0xff] }
 0x1c8   : > { %v2252_v17 = vrot.slane %v4778_v12, 1  ;;  %v4794_v28 = vld [vmem:[#allocation3 + $0x48] sm:$0xff]  ;;  %v2340_v34 = vrot.slane %v4778_v12, 2 }
 0x1c9   : > { %v4780_v13 = vld [vmem:[#allocation3 + $0x68] sm:$0xff]  ;;  %v1684_v14 = vld [vmem:[#allocation3 + $0x70] sm:$0x3]  ;;  %v2247_v59 = vrot.slane %v4794_v28, 1  ;;  %v2335_v35 = vrot.slane %v4794_v28, 2 }
 0x1ca   : > { %v3655_v24 = vpack.i.bf16 %v4780_v13, %v4778_v12  ;;  %v2253_v18 = vrot.slane %v4780_v13, 1  ;;  %v2012_v16 = vrot.slane %v1684_v14, 1  ;;  %v1706_v21 = vld [vmem:[#allocation3 + $0x70] sm:$0x3]  ;;  %v2341_v26 = vrot.slane %v4780_v13, 2 }
 0x1cb   : > { %v4785_v22 = vld [vmem:[#allocation3 + $0x50] sm:$0xff]  ;;  %v2255_v23 = vrot.slane %v1706_v21, 1  ;;  %v2100_v39 = vrot.slane %v1684_v14, 2  ;;  %v2343_v0 = vrot.slane %v1706_v21, 2  ;;  %v1703_v6 = vld [vmem:[#allocation3 + $0x58] sm:$0x3] }
 0x1cc   : > { %3656 = vrot.lane.b32.xlu0 %v3655_v24, %s3918_s16  ;;  %3651 = vrot.lane.b32.xlu1 %v3655_v24, %s3915_s26  ;;  %v3660_v20 = vpack.i.bf16 %v4785_v22, %v4794_v28  ;;  %v2011_v9 = vsel %vm561_vm3, %v2252_v17, %v2253_v18  ;;  %v2013_v40 = vsel %vm561_vm3, %v2253_v18, %v2012_v16  ;;  %v1663_v43 = vld [vmem:[#allocation3 + $0x70] sm:$0x3]  ;;  %v2248_v5 = vrot.slane %v4785_v22, 1  ;;  %v1681_v58 = vld [vmem:[#allocation3 + $0x58] sm:$0x3] }
 0x1cd   : > { %v2256_v31 = vsel %vm561_vm3, %v2253_v18, %v2255_v23  ;;  %v3670_v38 = vpack.i.bf16 %v2013_v40, %v2011_v9  ;;  %v2099_v27 = vsel %vm650_vm2, %v2340_v34, %v2341_v26  ;;  %v2101_v36 = vsel %vm650_vm2, %v2341_v26, %v2100_v39  ;;  %v1660_v55 = vld [vmem:[#allocation3 + $0x58] sm:$0x3] }
 0x1ce   : > { %v3680_v33 = vpack.i.bf16 %v2256_v31, %v2011_v9  ;;  %v1769_v47 = vrot.slane %v1663_v43, 1  ;;  %v2344_v52 = vsel %vm650_vm2, %v2341_v26, %v2343_v0  ;;  %v1857_v53 = vrot.slane %v1663_v43, 2 }
 0x1cf   : > { %v2336_v54 = vrot.slane %v4785_v22, 2  ;;  %v3675_v57 = vpack.i.bf16 %v2101_v36, %v2099_v27  ;;  %v3685_v42 = vpack.i.bf16 %v2344_v52, %v2099_v27  ;;  %v2250_v19 = vrot.slane %v1703_v6, 1 }
 0x1d0   : > { %3661 = vrot.lane.b32.xlu1 %v3660_v20, %s3918_s16  ;;  %3666 = vrot.lane.b32.xlu0 %v3660_v20, %s3915_s26  ;;  %v1770_v15 = vsel %vm561_vm3, %v2253_v18, %v1769_v47  ;;  %v2338_v45 = vrot.slane %v1703_v6, 2  ;;  %v1858_v46 = vsel %vm650_vm2, %v2341_v26, %v1857_v53  ;;  %v2249_v4 = vsel %vm561_vm3, %v2247_v59, %v2248_v5 }
 0x1d1   : > { %v3690_v3 = vpack.i.bf16 %v1770_v15, %v2011_v9  ;;  %v2337_v8 = vsel %vm650_vm2, %v2335_v35, %v2336_v54  ;;  %v3695_v24 = vpack.i.bf16 %v1858_v46, %v2099_v27  ;;  %v2251_v18 = vsel %vm561_vm3, %v2248_v5, %v2250_v19 }
 0x1d2   : > { %v2339_v16 = vsel %vm650_vm2, %v2336_v54, %v2338_v45  ;;  %v2007_v25 = vrot.slane %v1681_v58, 1  ;;  %v1764_v17 = vrot.slane %v1660_v55, 1  ;;  %v3700_v31 = vpack.i.bf16 %v2251_v18, %v2249_v4 }
 0x1d3   : > { %v3705_v0 = vpack.i.bf16 %v2339_v16, %v2337_v8 }
 0x1d4   : > { %3671 = vrot.lane.b32.xlu1 %v3670_v38, %s3916_s27  ;;  %3681 = vrot.lane.b32.xlu0 %v3680_v33, %s3919_s21  ;;  %v2095_v38 = vrot.slane %v1681_v58, 2  ;;  %v1852_v33 = vrot.slane %v1660_v55, 2  ;;  %v2008_v47 = vsel %vm561_vm3, %v2248_v5, %v2007_v25  ;;  %v1765_v51 = vsel %vm561_vm3, %v2248_v5, %v1764_v17 }
 0x1d5   : > { %v3720_v6 = vpack.i.bf16 %v2008_v47, %v2249_v4 }
 0x1d6   : > { %v2096_v5 = vsel %vm650_vm2, %v2336_v54, %v2095_v38 }
 0x1d7   : > { %v3725_v15 = vpack.i.bf16 %v2096_v5, %v2337_v8 }
 0x1d8   : > { %3676 = vrot.lane.b32.xlu1 %v3675_v57, %s3917_s13  ;;  %3686 = vrot.lane.b32.xlu0 %v3685_v42, %s3920_s22  ;;  %v3710_v57 = vpack.i.bf16 %v1765_v51, %v2249_v4  ;;  %v1853_v42 = vsel %vm650_vm2, %v2336_v54, %v1852_v33 }
 0x1d9   : > { %v3188_v63 = vpop.f32.mrb[8].mxu0  ;;  %v3715_v19 = vpack.i.bf16 %v1853_v42, %v2337_v8 }
 0x1da   : > { %v1541_v11 = vmax.f32 %v3188_v63, 0.0  ;;  %v1500_v14 = vpop.f32.mrb[9].mxu0 }
 0x1db   : > { %v1539_v21 = vmax.f32 %v1500_v14, 0.0  ;;  %v3189_v23 = vpop.f32.mrb[10].mxu0 }
 0x1dc   : > { %v1564_v26 = vmul.f32 %v4674_v37, %v1541_v11  ;;  %v1542_v20 = vmax.f32 %v3189_v23, 0.0  ;;  %3691 = vrot.lane.b32.xlu1 %v3690_v3, %s3914_s25  ;;  %3696 = vrot.lane.b32.xlu0 %v3695_v24, %s3913_s24  ;;  %v1503_v9 = vpop.f32.mrb[11].mxu0 }
 0x1dd   : > { %v1562_v40 = vmul.f32 %v4674_v37, %v1539_v21  ;;  %v1540_v39 = vmax.f32 %v1503_v9, 0.0 }
 0x1de   : > { %v1587_v43 = vadd.f32 %v4679_v29, %v1564_v26  ;;  %v1565_v34 = vmul.f32 %v4674_v37, %v1542_v20 }
 0x1df   : > { %v1585_v27 = vadd.f32 %v4679_v29, %v1562_v40  ;;  %v1563_v36 = vmul.f32 %v4674_v37, %v1540_v39 }
 0x1e0   : > { %1634 = vst.msk [vmem:[#allocation3 + $0x91] sm:$0xff] %vm406_vm0, %v1587_v43  ;;  %v1588_v52 = vadd.f32 %v4679_v29, %v1565_v34  ;;  %3701 = vrot.lane.b32.xlu1 %v3700_v31, %s3919_s21  ;;  %3706 = vrot.lane.b32.xlu0 %v3705_v0, %s3920_s22 }
 0x1e1   : > { %1632 = vst.msk [vmem:[#allocation3 + $0x79] sm:$0xff] %vm406_vm0, %v1585_v27  ;;  %v1586_v53 = vadd.f32 %v4679_v29, %v1563_v36 }
 0x1e2   : > { %1635 = vst.msk [vmem:[#allocation3 + $0x99] sm:$0xff] %vm406_vm0, %v1588_v52 }
 0x1e3   : > { %1633 = vst.msk [vmem:[#allocation3 + $0x81] sm:$0xff] %vm406_vm0, %v1586_v53 }
 0x1e4   : > { %3721 = vrot.lane.b32.xlu0 %v3720_v6, %s3916_s27  ;;  %3711 = vrot.lane.b32.xlu1 %v3710_v57, %s3914_s25 }
 0x1e7   : > { %v4854_v45 = vld [vmem:[#allocation3 + $0x90] sm:$0xff] }
 0x1e8   : > { %3726 = vrot.lane.b32.xlu0 %v3725_v15, %s3917_s13  ;;  %3716 = vrot.lane.b32.xlu1 %v3715_v19, %s3913_s24  ;;  %v2262_v3 = vrot.slane %v4854_v45, 1  ;;  %v4866_v4 = vld [vmem:[#allocation3 + $0x78] sm:$0xff]  ;;  %v2350_v23 = vrot.slane %v4854_v45, 2 }
 0x1e9   : > { %v4856_v59 = vld [vmem:[#allocation3 + $0x98] sm:$0xff]  ;;  %v1690_v35 = vld [vmem:[#allocation3 + $0xa0] sm:$0x3]  ;;  %v2257_v34 = vrot.slane %v4866_v4, 1  ;;  %v2345_v38 = vrot.slane %v4866_v4, 2 }
 0x1ea   : > { %v3735_v46 = vpack.i.bf16 %v4856_v59, %v4854_v45  ;;  %v2263_v54 = vrot.slane %v4856_v59, 1  ;;  %v2022_v60 = vrot.slane %v1690_v35, 1  ;;  %v1712_v58 = vld [vmem:[#allocation3 + $0xa0] sm:$0x3]  ;;  %v2351_v8 = vrot.slane %v4856_v59, 2 }
 0x1eb   : > { %v4861_v55 = vld [vmem:[#allocation3 + $0x80] sm:$0xff]  ;;  %v2265_v63 = vrot.slane %v1712_v58, 1  ;;  %v2110_v18 = vrot.slane %v1690_v35, 2  ;;  %v2353_v16 = vrot.slane %v1712_v58, 2  ;;  %v1709_v9 = vld [vmem:[#allocation3 + $0x88] sm:$0x3] }
 0x1ec   : > { %3736 = vrot.lane.b32.xlu0 %v3735_v46, %s3918_s16  ;;  %3731 = vrot.lane.b32.xlu1 %v3735_v46, %s3915_s26  ;;  %v3740_v7 = vpack.i.bf16 %v4861_v55, %v4866_v4  ;;  %v2021_v11 = vsel %vm561_vm3, %v2262_v3, %v2263_v54  ;;  %v2023_v14 = vsel %vm561_vm3, %v2263_v54, %v2022_v60  ;;  %v1669_v21 = vld [vmem:[#allocation3 + $0xa0] sm:$0x3]  ;;  %v2258_v0 = vrot.slane %v4861_v55, 1  ;;  %v1687_v35 = vld [vmem:[#allocation3 + $0x88] sm:$0x3] }
 0x1ed   : > { %v2266_v24 = vsel %vm561_vm3, %v2263_v54, %v2265_v63  ;;  %v3750_v25 = vpack.i.bf16 %v2023_v14, %v2021_v11  ;;  %v2109_v26 = vsel %vm650_vm2, %v2350_v23, %v2351_v8  ;;  %v1779_v20 = vrot.slane %v1669_v21, 1  ;;  %v1666_v46 = vld [vmem:[#allocation3 + $0x88] sm:$0x3] }
 0x1ee   : > { %v3760_v17 = vpack.i.bf16 %v2266_v24, %v2021_v11  ;;  %v2111_v40 = vsel %vm650_vm2, %v2351_v8, %v2110_v18  ;;  %v2354_v39 = vsel %vm650_vm2, %v2351_v8, %v2353_v16  ;;  %v1867_v31 = vrot.slane %v1669_v21, 2 }
 0x1ef   : > { %v2346_v43 = vrot.slane %v4861_v55, 2  ;;  %v2260_v33 = vrot.slane %v1709_v9, 1  ;;  %v3755_v36 = vpack.i.bf16 %v2111_v40, %v2109_v26  ;;  %v3765_v47 = vpack.i.bf16 %v2354_v39, %v2109_v26 }
 0x1f0   : > { %3741 = vrot.lane.b32.xlu1 %v3740_v7, %s3918_s16  ;;  %3746 = vrot.lane.b32.xlu0 %v3740_v7, %s3915_s26  ;;  %v1780_v51 = vsel %vm561_vm3, %v2263_v54, %v1779_v20  ;;  %v2348_v52 = vrot.slane %v1709_v9, 2  ;;  %v1868_v57 = vsel %vm650_vm2, %v2351_v8, %v1867_v31  ;;  %v2259_v15 = vsel %vm561_vm3, %v2257_v34, %v2258_v0 }
 0x1f1   : > { %v2347_v19 = vsel %vm650_vm2, %v2345_v38, %v2346_v43  ;;  %v3770_v63 = vpack.i.bf16 %v1780_v51, %v2021_v11  ;;  %v2261_v3 = vsel %vm561_vm3, %v2258_v0, %v2260_v33  ;;  %v3775_v14 = vpack.i.bf16 %v1868_v57, %v2109_v26 }
 0x1f2   : > { %v2349_v24 = vsel %vm650_vm2, %v2346_v43, %v2348_v52  ;;  %v2017_v21 = vrot.slane %v1687_v35, 1  ;;  %v1774_v23 = vrot.slane %v1666_v46, 1  ;;  %v3780_v20 = vpack.i.bf16 %v2261_v3, %v2259_v15 }
 0x1f3   : > { %v3785_v9 = vpack.i.bf16 %v2349_v24, %v2347_v19  ;;  %v2105_v39 = vrot.slane %v1687_v35, 2  ;;  %v1862_v31 = vrot.slane %v1666_v46, 2 }
 0x1f4   : > { %3751 = vrot.lane.b32.xlu1 %v3750_v25, %s3916_s27  ;;  %3761 = vrot.lane.b32.xlu0 %v3760_v17, %s3919_s21  ;;  %v2018_v40 = vsel %vm561_vm3, %v2258_v0, %v2017_v21 }
 0x1f5   : > { %v3800_v34 = vpack.i.bf16 %v2018_v40, %v2259_v15  ;;  %v1863_v33 = vsel %vm650_vm2, %v2346_v43, %v1862_v31 }
 0x1f6   : > { %v3192_v27 = vpop.f32.mrb[12].mxu0 }
 0x1f7   : > { %v1545_v53 = vmax.f32 %v3192_v27, 0.0  ;;  %v1516_v6 = vpop.f32.mrb[13].mxu0 }
 0x1f8   : > { %v1543_v5 = vmax.f32 %v1516_v6, 0.0  ;;  %3756 = vrot.lane.b32.xlu1 %v3755_v36, %s3917_s13  ;;  %3766 = vrot.lane.b32.xlu0 %v3765_v47, %s3920_s22  ;;  %v3193_v42 = vpop.f32.mrb[14].mxu0 }
 0x1f9   : > { %v1568_v60 = vmul.f32 %v4674_v37, %v1545_v53  ;;  %v1546_v54 = vmax.f32 %v3193_v42, 0.0  ;;  %v1519_v58 = vpop.f32.mrb[15].mxu0 }
 0x1fa   : > { %v1566_v8 = vmul.f32 %v4674_v37, %v1543_v5  ;;  %v1544_v7 = vmax.f32 %v1519_v58, 0.0 }
 0x1fb   : > { %v1591_v18 = vadd.f32 %v4679_v29, %v1568_v60  ;;  %v1569_v16 = vmul.f32 %v4674_v37, %v1546_v54 }
 0x1fc   : > { %v1589_v25 = vadd.f32 %v4679_v29, %v1566_v8  ;;  %v1567_v17 = vmul.f32 %v4674_v37, %v1544_v7  ;;  %3771 = vrot.lane.b32.xlu1 %v3770_v63, %s3914_s25  ;;  %3776 = vrot.lane.b32.xlu0 %v3775_v14, %s3913_s24  ;;  %v1775_v37 = vsel %vm561_vm3, %v2258_v0, %v1774_v23  ;;  %v3572_v23 = vpop.permute.xlu0 %3571 }
 0x1fd   : > { %1638 = vst.msk [vmem:[#allocation3 + $0xc1] sm:$0xff] %vm406_vm0, %v1591_v18  ;;  %v1592_v11 = vadd.f32 %v4679_v29, %v1569_v16  ;;  %v3790_v38 = vpack.i.bf16 %v1775_v37, %v2259_v15  ;;  %v3795_v0 = vpack.i.bf16 %v1863_v33, %v2347_v19 }
 0x1fe   : > { %1636 = vst.msk [vmem:[#allocation3 + $0xa9] sm:$0xff] %vm406_vm0, %v1589_v25  ;;  %v1590_v26 = vadd.f32 %v4679_v29, %v1567_v17  ;;  %v2106_v29 = vsel %vm650_vm2, %v2346_v43, %v2105_v39 }
 0x1ff   : > { %1639 = vst.msk [vmem:[#allocation3 + $0xc9] sm:$0xff] %vm406_vm0, %v1592_v11  ;;  %v3805_v27 = vpack.i.bf16 %v2106_v29, %v2347_v19 }
 0x200   : > { %1637 = vst.msk [vmem:[#allocation3 + $0xb1] sm:$0xff] %vm406_vm0, %v1590_v26  ;;  %3781 = vrot.lane.b32.xlu1 %v3780_v20, %s3919_s21  ;;  %3786 = vrot.lane.b32.xlu0 %v3785_v9, %s3920_s22 }
 0x204   : > { %3801 = vrot.lane.b32.xlu0 %v3800_v34, %s3916_s27  ;;  %3791 = vrot.lane.b32.xlu1 %v3790_v38, %s3914_s25  ;;  %v1716_v52 = vld [vmem:[#allocation3 + $0xc0] sm:$0xff] }
 0x205   : > { %v2272_v42 = vrot.slane %v1716_v52, 1  ;;  %v4925_v35 = vld [vmem:[#allocation3 + $0xa8] sm:$0xff]  ;;  %v2360_v7 = vrot.slane %v1716_v52, 2 }
 0x206   : > { %v1717_v36 = vld [vmem:[#allocation3 + $0xc8] sm:$0xff]  ;;  %v1696_v47 = vld [vmem:[#allocation3 + $0xd0] sm:$0x3]  ;;  %v2355_v14 = vrot.slane %v4925_v35, 2  ;;  %v2267_v40 = vrot.slane %v4925_v35, 1 }
 0x207   : > { %v4918_v51 = vld [vmem:[#allocation3 + $0xd0] sm:$0x3]  ;;  %v3815_v53 = vpack.i.bf16 %v1717_v36, %v1716_v52  ;;  %v2273_v6 = vrot.slane %v1717_v36, 1  ;;  %v2032_v57 = vrot.slane %v1696_v47, 1  ;;  %v1715_v15 = vld [vmem:[#allocation3 + $0xb8] sm:$0x3] }
 0x208   : > { %3806 = vrot.lane.b32.xlu0 %v3805_v27, %s3917_s13  ;;  %3796 = vrot.lane.b32.xlu1 %v3795_v0, %s3913_s24  ;;  %v4920_v5 = vld [vmem:[#allocation3 + $0xb0] sm:$0xff]  ;;  %v2275_v43 = vrot.slane %v4918_v51, 1  ;;  %v2361_v19 = vrot.slane %v1717_v36, 2  ;;  %v2120_v3 = vrot.slane %v1696_v47, 2  ;;  %v2358_v8 = vrot.slane %v1715_v15, 2  ;;  %v4949_v0 = vpop.permute.xlu1 %3581  ;;  %v3577_v36 = vpop.permute.xlu0 %3576 }
 0x209   : > { %v3820_v46 = vpack.i.bf16 %v4920_v5, %v4925_v35  ;;  %v2356_v60 = vrot.slane %v4920_v5, 2  ;;  %v2031_v54 = vsel %vm561_vm3, %v2272_v42, %v2273_v6  ;;  %v2033_v58 = vsel %vm561_vm3, %v2273_v6, %v2032_v57  ;;  %v1693_v24 = vld [vmem:[#allocation3 + $0xb8] sm:$0x3] }
 0x20a   : > { %v2276_v63 = vsel %vm561_vm3, %v2273_v6, %v2275_v43  ;;  %v2268_v18 = vrot.slane %v4920_v5, 1  ;;  %v3830_v16 = vpack.i.bf16 %v2033_v58, %v2031_v54  ;;  %v2119_v25 = vsel %vm650_vm2, %v2360_v7, %v2361_v19  ;;  %v1672_v37 = vld [vmem:[#allocation3 + $0xb8] sm:$0x3] }
 0x20b   : > { %v3840_v21 = vpack.i.bf16 %v2276_v63, %v2031_v54  ;;  %v2357_v17 = vsel %vm650_vm2, %v2355_v14, %v2356_v60  ;;  %v2121_v11 = vsel %vm650_vm2, %v2361_v19, %v2120_v3  ;;  %v2359_v26 = vsel %vm650_vm2, %v2356_v60, %v2358_v8 }
 0x20c   : > { %3816 = vrot.lane.b32.xlu0 %v3815_v53, %s3918_s16  ;;  %3811 = vrot.lane.b32.xlu1 %v3815_v53, %s3915_s26  ;;  %v2270_v20 = vrot.slane %v1715_v15, 1  ;;  %v2027_v9 = vrot.slane %v1693_v24, 1  ;;  %v3835_v39 = vpack.i.bf16 %v2121_v11, %v2119_v25  ;;  %v3850_v31 = vpack.i.bf16 %v2359_v26, %v2357_v17 }
 0x20d   : > { %v2269_v34 = vsel %vm561_vm3, %v2267_v40, %v2268_v18  ;;  %v2115_v33 = vrot.slane %v1693_v24, 2  ;;  %v1784_v27 = vrot.slane %v1672_v37, 1  ;;  %v2363_v57 = vrot.slane %v4918_v51, 2 }
 0x20e   : > { %v2271_v38 = vsel %vm561_vm3, %v2268_v18, %v2270_v20  ;;  %v2028_v29 = vsel %vm561_vm3, %v2268_v18, %v2027_v9  ;;  %v1872_v43 = vrot.slane %v1672_v37, 2 }
 0x20f   : > { %v3845_v47 = vpack.i.bf16 %v2271_v38, %v2269_v34  ;;  %v3870_v52 = vpack.i.bf16 %v2028_v29, %v2269_v34  ;;  %v2116_v53 = vsel %vm650_vm2, %v2356_v60, %v2115_v33  ;;  %v1785_v6 = vsel %vm561_vm3, %v2268_v18, %v1784_v27 }
 0x210   : > { %3821 = vrot.lane.b32.xlu1 %v3820_v46, %s3918_s16  ;;  %3826 = vrot.lane.b32.xlu0 %v3820_v46, %s3915_s26  ;;  %v3875_v46 = vpack.i.bf16 %v2116_v53, %v2357_v17  ;;  %v3855_v54 = vpack.i.bf16 %v1785_v6, %v2269_v34  ;;  %v2364_v58 = vsel %vm650_vm2, %v2361_v19, %v2363_v57  ;;  %v3573_v18 = vunpack.i.l.bf16 %v3572_v23 }
 0x211   : > { %v1873_v63 = vsel %vm650_vm2, %v2356_v60, %v1872_v43  ;;  %v3880_v8 = vpack.i.bf16 %v2364_v58, %v2119_v25  ;;  %v3574_v60 = vunpack.i.h.bf16 %v3572_v23  ;;  %v3579_v25 = vunpack.i.h.bf16 %v3577_v36 }
 0x212   : > { %v3860_v7 = vpack.i.bf16 %v1873_v63, %v2357_v17  ;;  %v3578_v17 = vunpack.i.l.bf16 %v3577_v36  ;;  %v2418_v49 = vsel %vm406_vm0, %v4646_v56, %v3573_v18 }
 0x213   : > { %v2419_v11 = vsel %vm406_vm0, %v4648_v62, %v3574_v60 }
 0x214   : > { %3831 = vrot.lane.b32.xlu1 %v3830_v16, %s3916_s27  ;;  %3841 = vrot.lane.b32.xlu0 %v3840_v21, %s3919_s21  ;;  %v2434_v10 = vsel %vm1251_vm5, %v2418_v49, %v3578_v17  ;;  %v2435_v30 = vsel %vm1251_vm5, %v2419_v11, %v3579_v25 }
 0x218   : > { %3836 = vrot.lane.b32.xlu1 %v3835_v39, %s3917_s13  ;;  %3851 = vrot.lane.b32.xlu0 %v3850_v31, %s3920_s22 }
 0x21c   : > { %3846 = vrot.lane.b32.xlu1 %v3845_v47, %s3919_s21  ;;  %3871 = vrot.lane.b32.xlu0 %v3870_v52, %s3916_s27 }
 0x21e   : > { %v3592_v42 = vpop.permute.xlu0 %3591  ;;  %v4956_v15 = vpop.permute.xlu1 %3586 }
 0x21f   : > { %v3594_v31 = vunpack.i.h.bf16 %v3592_v42  ;;  %v3593_v34 = vunpack.i.l.bf16 %v3592_v42 }
 0x220   : > { %3876 = vrot.lane.b32.xlu0 %v3875_v46, %s3917_s13  ;;  %3856 = vrot.lane.b32.xlu1 %v3855_v54, %s3914_s25 }
 0x222   : > { %v4962_v3 = vpop.permute.xlu1 %3601  ;;  %v3597_v51 = vpop.permute.xlu0 %3596 }
 0x223   : > { %v3598_v26 = vunpack.i.l.bf16 %v3597_v51 }
 0x224   : > { %3881 = vrot.lane.b32.xlu0 %v3880_v8, %s3920_s22  ;;  %3861 = vrot.lane.b32.xlu1 %v3860_v7, %s3913_s24 }
 0x225   : > { %v2450_v37 = vsel %vm1268_vm6, %v2434_v10, %v3598_v26  ;;  %v3589_v26 = vunpack.i.h.bf16 %v4956_v15  ;;  %v3588_v10 = vunpack.i.l.bf16 %v4956_v15 }
 0x226   : > { %v3612_v14 = vpop.permute.xlu0 %3611  ;;  %v4966_v24 = vpop.permute.xlu1 %3606 }
 0x227   : > { %v3614_v29 = vunpack.i.h.bf16 %v3612_v14  ;;  %v3613_v33 = vunpack.i.l.bf16 %v3612_v14 }
 0x228   : > { %3866 = vrot.lane.b32.xlu1 %v3865_v32, %s3919_s21  ;;  %v3599_v32 = vunpack.i.h.bf16 %v3597_v51 }
 0x22a   : > { %v3617_v19 = vpop.permute.xlu0 %3616  ;;  %v4976_v16 = vpop.permute.xlu1 %3621  ;;  %v2451_v40 = vsel %vm1268_vm6, %v2435_v30, %v3599_v32 }
 0x22b   : > { %v3619_v47 = vunpack.i.h.bf16 %v3617_v19  ;;  %v3618_v52 = vunpack.i.l.bf16 %v3617_v19 }
 0x22c   : > { %3886 = vrot.lane.b32.xlu1 %v3885_v44, %s3920_s22 }
 0x22e   : > { %v4978_v21 = vpop.permute.xlu0 %3626  ;;  %v3632_v44 = vpop.permute.xlu1 %3631 }
 0x22f   : > { %v3634_v14 = vunpack.i.h.bf16 %v3632_v44  ;;  %v3633_v19 = vunpack.i.l.bf16 %v3632_v44 }
 0x231   : > { %v2421_v11 = vsel %vm406_vm0, %v4707_v41, %v3634_v14  ;;  %v2420_v49 = vsel %vm406_vm0, %v4714_v61, %v3633_v19  ;;  %v3604_v41 = vunpack.i.h.bf16 %v4962_v3  ;;  %v3603_v61 = vunpack.i.l.bf16 %v4962_v3 }
 0x232   : > { %v3642_v2 = vpop.permute.xlu0 %3641  ;;  %v3637_v53 = vpop.permute.xlu1 %3636 }
 0x233   : > { %v3644_v23 = vunpack.i.h.bf16 %v3642_v2  ;;  %v3643_v20 = vunpack.i.l.bf16 %v3642_v2  ;;  %v3639_v60 = vunpack.i.h.bf16 %v3637_v53  ;;  %v3638_v18 = vunpack.i.l.bf16 %v3637_v53 }
 0x235   : > { %v2467_v56 = vsel %vm1285_vm7, %v2451_v40, %v3644_v23  ;;  %v2466_v38 = vsel %vm1285_vm7, %v2450_v37, %v3643_v20  ;;  %v2436_v2 = vsel %vm1251_vm5, %v2420_v49, %v3638_v18  ;;  %v2437_v32 = vsel %vm1251_vm5, %v2421_v11, %v3639_v60 }
 0x236   : > { %v3647_v9 = vpop.permute.xlu0 %3646  ;;  %v2452_v23 = vsel %vm1268_vm6, %v2436_v2, %v3588_v10  ;;  %v2453_v20 = vsel %vm1268_vm6, %v2437_v32, %v3589_v26 }
 0x237   : > { %v3649_v39 = vunpack.i.h.bf16 %v3647_v9  ;;  %v3648_v62 = vunpack.i.l.bf16 %v3647_v9  ;;  %v2468_v37 = vsel %vm1285_vm7, %v2452_v23, %v3603_v61  ;;  %v2469_v15 = vsel %vm1285_vm7, %v2453_v20, %v3604_v41 }
 0x239   : > { %v2482_v27 = vsel %vm1302_vm8, %v2466_v38, %v3648_v62  ;;  %v2483_v36 = vsel %vm1302_vm8, %v2467_v56, %v3649_v39  ;;  %v3609_v39 = vunpack.i.h.bf16 %v4966_v24  ;;  %v3608_v62 = vunpack.i.l.bf16 %v4966_v24 }
 0x23a   : > { %v2498_v6 = vsel %vm1319_vm9, %v2482_v27, %v3593_v34  ;;  %v2499_v57 = vsel %vm1319_vm9, %v2483_v36, %v3594_v31  ;;  %v3623_v24 = vunpack.i.l.bf16 %v4976_v16 }
 0x23b   : > { %v2514_v43 = vsel %vm1336_vm10, %v2498_v6, %v3613_v33  ;;  %v2515_v42 = vsel %vm1336_vm10, %v2499_v57, %v3614_v29  ;;  %v2484_v56 = vsel %vm1302_vm8, %v2468_v37, %v3608_v62  ;;  %v2485_v38 = vsel %vm1302_vm8, %v2469_v15, %v3609_v39 }
 0x23c   : > { %v2530_v46 = vsel %vm1353_vm11, %v2514_v43, %v3618_v52  ;;  %v2531_v54 = vsel %vm1353_vm11, %v2515_v42, %v3619_v47  ;;  %v3624_v6 = vunpack.i.h.bf16 %v4976_v16  ;;  %v3629_v42 = vunpack.i.h.bf16 %v4978_v21 }
 0x23d   : > { %v2546_v58 = vpack.c.bf16 %v2531_v54, %v2530_v46  ;;  %v3628_v46 = vunpack.i.l.bf16 %v4978_v21  ;;  %v2422_v2 = vsel %vm406_vm0, %v4695_v48, %v3623_v24 }
 0x23e   : > { %v4998_v63 = vpop.permute.xlu0 %3656  ;;  %v5000_v51 = vpop.permute.xlu1 %3651  ;;  %v2423_v16 = vsel %vm406_vm0, %v4700_v50, %v3624_v6 }
 0x23f   : > { %3204 = vmatprep.mubr.msk.bf16.mxu1 %vm1405_vm12, %v2546_v58  ;;  %v2439_v21 = vsel %vm1251_vm5, %v2423_v16, %v3629_v42  ;;  %v2438_v32 = vsel %vm1251_vm5, %v2422_v2, %v3628_v46  ;;  %v3659_v61 = vunpack.i.h.bf16 %v4998_v63  ;;  %v3658_v50 = vunpack.i.l.bf16 %v4998_v63 }
 0x242   : > { %v3662_v8 = vpop.permute.xlu1 %3661  ;;  %v3667_v7 = vpop.permute.xlu0 %3666 }
 0x243   : > { %v3664_v31 = vunpack.i.h.bf16 %v3662_v8  ;;  %v3663_v34 = vunpack.i.l.bf16 %v3662_v8  ;;  %v3669_v19 = vunpack.i.h.bf16 %v3667_v7  ;;  %v3668_v60 = vunpack.i.l.bf16 %v3667_v7 }
 0x245   : > { %v2501_v52 = vsel %vm1319_vm9, %v2485_v38, %v3664_v31  ;;  %v2500_v53 = vsel %vm1319_vm9, %v2484_v56, %v3663_v34  ;;  %v2455_v23 = vsel %vm1268_vm6, %v2439_v21, %v3669_v19  ;;  %v2454_v7 = vsel %vm1268_vm6, %v2438_v32, %v3668_v60 }
 0x246   : > { %v5003_v25 = vpop.permute.xlu1 %3671  ;;  %v5005_v17 = vpop.permute.xlu0 %3681  ;;  %v3653_v19 = vunpack.i.l.bf16 %v5000_v51 }
 0x247   : > { %v3684_v62 = vunpack.i.h.bf16 %v5005_v17  ;;  %v3683_v31 = vunpack.i.l.bf16 %v5005_v17 }
 0x24a   : > { %v5015_v30 = vpop.permute.xlu1 %3676  ;;  %v5017_v44 = vpop.permute.xlu0 %3686 }
 0x24b   : > { %v3689_v63 = vunpack.i.h.bf16 %v5017_v44  ;;  %v3679_v32 = vunpack.i.h.bf16 %v5015_v30 }
 0x24e   : > { %v5023_v9 = vpop.permute.xlu1 %3691  ;;  %v5025_v40 = vpop.permute.xlu0 %3696 }
 0x252   : > { %v3702_v29 = vpop.permute.xlu1 %3701  ;;  %v3707_v3 = vpop.permute.xlu0 %3706 }
 0x253   : > { %v3704_v33 = vunpack.i.h.bf16 %v3702_v29  ;;  %v3703_v27 = vunpack.i.l.bf16 %v3702_v29  ;;  %v3709_v36 = vunpack.i.h.bf16 %v3707_v3  ;;  %v3708_v47 = vunpack.i.l.bf16 %v3707_v3 }
 0x254   : > { %v3688_v3 = vunpack.i.l.bf16 %v5017_v44 }
 0x255   : > { %v2517_v57 = vsel %vm1336_vm10, %v2501_v52, %v3704_v33  ;;  %v2516_v43 = vsel %vm1336_vm10, %v2500_v53, %v3703_v27 }
 0x256   : > { %v2533_v54 = vsel %vm1353_vm11, %v2517_v57, %v3709_v36  ;;  %v2532_v58 = vsel %vm1353_vm11, %v2516_v43, %v3708_v47  ;;  %v3722_v8 = vpop.permute.xlu0 %3721  ;;  %v3712_v14 = vpop.permute.xlu1 %3711 }
 0x257   : > { %v2547_v18 = vpack.c.bf16 %v2533_v54, %v2532_v58  ;;  %v3724_v11 = vunpack.i.h.bf16 %v3722_v8  ;;  %v3723_v49 = vunpack.i.l.bf16 %v3722_v8  ;;  %v3714_v6 = vunpack.i.h.bf16 %v3712_v14 }
 0x258   : > { %v3713_v24 = vunpack.i.l.bf16 %v3712_v14  ;;  %v3654_v14 = vunpack.i.h.bf16 %v5000_v51 }
 0x259   : > { %3205 = vmatmul.mubr.msk.bf16.vlgmr.msra.gmra.mrb[0].mxu1 %vm1405_vm12, %v2547_v18  ;;  %v2471_v48 = vsel %vm1285_vm7, %v2455_v23, %v3724_v11  ;;  %v2470_v37 = vsel %vm1285_vm7, %v2454_v7, %v3723_v49  ;;  %v2425_v46 = vsel %vm406_vm0, %v4785_v22, %v3714_v6  ;;  %v3674_v22 = vunpack.i.h.bf16 %v5003_v25 }
 0x25a   : > { %v3727_v26 = vpop.permute.xlu0 %3726  ;;  %v3717_v10 = vpop.permute.xlu1 %3716  ;;  %v2424_v54 = vsel %vm406_vm0, %v4794_v28, %v3713_v24  ;;  %v3673_v28 = vunpack.i.l.bf16 %v5003_v25  ;;  %v3694_v7 = vunpack.i.h.bf16 %v5023_v9 }
 0x25b   : > { %v3729_v20 = vunpack.i.h.bf16 %v3727_v26  ;;  %v3728_v41 = vunpack.i.l.bf16 %v3727_v26  ;;  %v3719_v57 = vunpack.i.h.bf16 %v3717_v10  ;;  %v3718_v43 = vunpack.i.l.bf16 %v3717_v10 }
 0x25c   : > { %v3678_v26 = vunpack.i.l.bf16 %v5015_v30 }
 0x25d   : > { %v2486_v15 = vsel %vm1302_vm8, %v2470_v37, %v3728_v41  ;;  %v2487_v39 = vsel %vm1302_vm8, %v2471_v48, %v3729_v20  ;;  %v2440_v58 = vsel %vm1251_vm5, %v2424_v54, %v3718_v43  ;;  %v2441_v8 = vsel %vm1251_vm5, %v2425_v46, %v3719_v57 }
 0x25e   : > { %v2502_v34 = vsel %vm1319_vm9, %v2486_v15, %v3658_v50  ;;  %v2503_v56 = vsel %vm1319_vm9, %v2487_v39, %v3659_v61  ;;  %v5062_v38 = vpop.permute.xlu0 %3736  ;;  %v5064_v29 = vpop.permute.xlu1 %3731  ;;  %v2456_v11 = vsel %vm1268_vm6, %v2440_v58, %v3653_v19  ;;  %v2457_v49 = vsel %vm1268_vm6, %v2441_v8, %v3654_v14 }
 0x25f   : > { %v2518_v33 = vsel %vm1336_vm10, %v2502_v34, %v3683_v31  ;;  %v2519_v27 = vsel %vm1336_vm10, %v2503_v56, %v3684_v62  ;;  %v2472_v21 = vsel %vm1285_vm7, %v2456_v11, %v3673_v28  ;;  %v2473_v51 = vsel %vm1285_vm7, %v2457_v49, %v3674_v22 }
 0x260   : > { %v2534_v36 = vsel %vm1353_vm11, %v2518_v33, %v3688_v3  ;;  %v2535_v17 = vsel %vm1353_vm11, %v2519_v27, %v3689_v63  ;;  %v3693_v20 = vunpack.i.l.bf16 %v5023_v9  ;;  %v2488_v25 = vsel %vm1302_vm8, %v2472_v21, %v3678_v26 }
 0x261   : > { %v2548_v53 = vpack.c.bf16 %v2535_v17, %v2534_v36  ;;  %v2489_v41 = vsel %vm1302_vm8, %v2473_v51, %v3679_v32  ;;  %v3699_v31 = vunpack.i.h.bf16 %v5025_v40  ;;  %v2427_v56 = vsel %vm406_vm0, %v4780_v13, %v3694_v7 }
 0x262   : > { %v3742_v47 = vpop.permute.xlu1 %3741  ;;  %v5072_v52 = vpop.permute.xlu0 %3746  ;;  %v3698_v63 = vunpack.i.l.bf16 %v5025_v40  ;;  %v2426_v17 = vsel %vm406_vm0, %v4778_v12, %v3693_v20  ;;  %v3739_v14 = vunpack.i.h.bf16 %v5062_v38 }
 0x263   : > { %3208 = vmatprep.mubr.msk.bf16.mxu1 %vm1405_vm12, %v2548_v53  ;;  %v3744_v10 = vunpack.i.h.bf16 %v3742_v47  ;;  %v3743_v23 = vunpack.i.l.bf16 %v3742_v47  ;;  %v3749_v47 = vunpack.i.h.bf16 %v5072_v52  ;;  %v3748_v53 = vunpack.i.l.bf16 %v5072_v52 }
 0x264   : > { %v2443_v13 = vsel %vm1251_vm5, %v2427_v56, %v3699_v31  ;;  %v2442_v40 = vsel %vm1251_vm5, %v2426_v17, %v3698_v63  ;;  %v3738_v52 = vunpack.i.l.bf16 %v5062_v38 }
 0x265   : > { %v2505_v62 = vsel %vm1319_vm9, %v2489_v41, %v3744_v10  ;;  %v2504_v30 = vsel %vm1319_vm9, %v2488_v25, %v3743_v23  ;;  %v2459_v54 = vsel %vm1268_vm6, %v2443_v13, %v3749_v47  ;;  %v2458_v58 = vsel %vm1268_vm6, %v2442_v40, %v3748_v53 }
 0x266   : > { %v5075_v42 = vpop.permute.xlu1 %3751  ;;  %v5077_v44 = vpop.permute.xlu0 %3761 }
 0x267   : > { %v3764_v28 = vunpack.i.h.bf16 %v5077_v44  ;;  %v3763_v21 = vunpack.i.l.bf16 %v5077_v44 }
 0x26a   : > { %v5087_v60 = vpop.permute.xlu1 %3756  ;;  %v5089_v18 = vpop.permute.xlu0 %3766 }
 0x26b   : > { %v3769_v38 = vunpack.i.h.bf16 %v5089_v18  ;;  %v3768_v23 = vunpack.i.l.bf16 %v5089_v18  ;;  %v3759_v40 = vunpack.i.h.bf16 %v5087_v60 }
 0x26e   : > { %v5095_v16 = vpop.permute.xlu1 %3771  ;;  %v5097_v2 = vpop.permute.xlu0 %3776 }
 0x26f   : > { %v3774_v56 = vunpack.i.h.bf16 %v5095_v16  ;;  %v3779_v17 = vunpack.i.h.bf16 %v5097_v2 }
 0x272   : > { %v3782_v61 = vpop.permute.xlu1 %3781  ;;  %v3787_v50 = vpop.permute.xlu0 %3786 }
 0x273   : > { %v3784_v48 = vunpack.i.h.bf16 %v3782_v61  ;;  %v3783_v37 = vunpack.i.l.bf16 %v3782_v61  ;;  %v3789_v15 = vunpack.i.h.bf16 %v3787_v50  ;;  %v3788_v39 = vunpack.i.l.bf16 %v3787_v50 }
 0x275   : > { %v2521_v34 = vsel %vm1336_vm10, %v2505_v62, %v3784_v48  ;;  %v2520_v9 = vsel %vm1336_vm10, %v2504_v30, %v3783_v37 }
 0x276   : > { %v2537_v3 = vsel %vm1353_vm11, %v2521_v34, %v3789_v15  ;;  %v2536_v33 = vsel %vm1353_vm11, %v2520_v9, %v3788_v39  ;;  %v3802_v27 = vpop.permute.xlu0 %3801  ;;  %v3792_v36 = vpop.permute.xlu1 %3791  ;;  %v3734_v34 = vunpack.i.h.bf16 %v5064_v29  ;;  %v3733_v9 = vunpack.i.l.bf16 %v5064_v29 }
 0x277   : > { %v2549_v6 = vpack.c.bf16 %v2537_v3, %v2536_v33  ;;  %v3804_v24 = vunpack.i.h.bf16 %v3802_v27  ;;  %v3803_v57 = vunpack.i.l.bf16 %v3802_v27  ;;  %v3794_v7 = vunpack.i.h.bf16 %v3792_v36 }
 0x278   : > { %v3793_v20 = vunpack.i.l.bf16 %v3792_v36  ;;  %v3754_v33 = vunpack.i.h.bf16 %v5075_v42  ;;  %v3753_v27 = vunpack.i.l.bf16 %v5075_v42  ;;  %v3773_v36 = vunpack.i.l.bf16 %v5095_v16 }
 0x279   : > { %3209 = vmatmul.mubr.msk.bf16.gmra.mrb[4].mxu1 %vm1405_vm12, %v2549_v6  ;;  %v2475_v19 = vsel %vm1285_vm7, %v2459_v54, %v3804_v24  ;;  %v2474_v11 = vsel %vm1285_vm7, %v2458_v58, %v3803_v57  ;;  %v2429_v62 = vsel %vm406_vm0, %v4861_v55, %v3794_v7  ;;  %v2431_v29 = vsel %vm406_vm0, %v4856_v59, %v3774_v56 }
 0x27a   : > { %v3807_v43 = vpop.permute.xlu0 %3806  ;;  %v3797_v46 = vpop.permute.xlu1 %3796  ;;  %v2428_v18 = vsel %vm406_vm0, %v4866_v4, %v3793_v20  ;;  %v3758_v42 = vunpack.i.l.bf16 %v5087_v60  ;;  %v3584_v16 = vunpack.i.h.bf16 %v4949_v0  ;;  %v2447_v59 = vsel %vm1251_vm5, %v2431_v29, %v3779_v17 }
 0x27b   : > { %v3809_v12 = vunpack.i.h.bf16 %v3807_v43  ;;  %v3808_v8 = vunpack.i.l.bf16 %v3807_v43  ;;  %v3799_v61 = vunpack.i.h.bf16 %v3797_v46  ;;  %v3798_v44 = vunpack.i.l.bf16 %v3797_v46 }
 0x27c   : > { %v2430_v43 = vsel %vm406_vm0, %v4854_v45, %v3773_v36  ;;  %v3778_v46 = vunpack.i.l.bf16 %v5097_v2 }
 0x27d   : > { %v2490_v49 = vsel %vm1302_vm8, %v2474_v11, %v3808_v8  ;;  %v2491_v22 = vsel %vm1302_vm8, %v2475_v19, %v3809_v12  ;;  %v2444_v30 = vsel %vm1251_vm5, %v2428_v18, %v3798_v44  ;;  %v2445_v31 = vsel %vm1251_vm5, %v2429_v62, %v3799_v61 }
 0x27e   : > { %v2506_v51 = vsel %vm1319_vm9, %v2490_v49, %v3738_v52  ;;  %v2507_v32 = vsel %vm1319_vm9, %v2491_v22, %v3739_v14  ;;  %v5136_v26 = vpop.permute.xlu0 %3816  ;;  %v5138_v10 = vpop.permute.xlu1 %3811  ;;  %v2460_v55 = vsel %vm1268_vm6, %v2444_v30, %v3733_v9  ;;  %v2461_v4 = vsel %vm1268_vm6, %v2445_v31, %v3734_v34 }
 0x27f   : > { %v2522_v25 = vsel %vm1336_vm10, %v2506_v51, %v3763_v21  ;;  %v2523_v41 = vsel %vm1336_vm10, %v2507_v32, %v3764_v28  ;;  %v2476_v6 = vsel %vm1285_vm7, %v2460_v55, %v3753_v27  ;;  %v2477_v24 = vsel %vm1285_vm7, %v2461_v4, %v3754_v33 }
 0x280   : > { %v2538_v50 = vsel %vm1353_vm11, %v2522_v25, %v3768_v23  ;;  %v2539_v48 = vsel %vm1353_vm11, %v2523_v41, %v3769_v38  ;;  %v2492_v54 = vsel %vm1302_vm8, %v2476_v6, %v3758_v42  ;;  %v2493_v58 = vsel %vm1302_vm8, %v2477_v24, %v3759_v40 }
 0x281   : > { %v2550_v39 = vpack.c.bf16 %v2539_v48, %v2538_v50  ;;  %v2446_v2 = vsel %vm1251_vm5, %v2430_v43, %v3778_v46  ;;  %v3819_v51 = vunpack.i.h.bf16 %v5136_v26  ;;  %v3818_v23 = vunpack.i.l.bf16 %v5136_v26 }
 0x282   : > { %v3822_v37 = vpop.permute.xlu1 %3821  ;;  %v3827_v15 = vpop.permute.xlu0 %3826  ;;  %v3583_v9 = vunpack.i.l.bf16 %v4949_v0  ;;  %v3814_v56 = vunpack.i.h.bf16 %v5138_v10  ;;  %v2790_v0 = vld [vmem:[%s5433_s7] sm:$0xff] }
 0x283   : > { %3212 = vmatprep.mubr.msk.bf16.mxu1 %vm1405_vm12, %v2550_v39  ;;  %v3824_v57 = vunpack.i.h.bf16 %v3822_v37  ;;  %v3823_v13 = vunpack.i.l.bf16 %v3822_v37  ;;  %v3829_v12 = vunpack.i.h.bf16 %v3827_v15  ;;  %v3828_v8 = vunpack.i.l.bf16 %v3827_v15  ;;  %3221 = vmatpush3.msra.mxu0 %v2790_v0 }
 0x285   : > { %v2509_v19 = vsel %vm1319_vm9, %v2493_v58, %v3824_v57  ;;  %v2508_v60 = vsel %vm1319_vm9, %v2492_v54, %v3823_v13  ;;  %v2463_v7 = vsel %vm1268_vm6, %v2447_v59, %v3829_v12  ;;  %v2462_v44 = vsel %vm1268_vm6, %v2446_v2, %v3828_v8 }
 0x286   : > { %v5156_v63 = vpop.permute.xlu1 %3831  ;;  %v5158_v3 = vpop.permute.xlu0 %3841 }
 0x287   : > { %v3844_v50 = vunpack.i.h.bf16 %v5158_v3  ;;  %v3843_v15 = vunpack.i.l.bf16 %v5158_v3  ;;  %v3834_v6 = vunpack.i.h.bf16 %v5156_v63  ;;  %v3833_v59 = vunpack.i.l.bf16 %v5156_v63 }
 0x28a   : > { %v5168_v47 = vpop.permute.xlu1 %3836  ;;  %v3852_v53 = vpop.permute.xlu0 %3851 }
 0x28b   : > { %v3854_v22 = vunpack.i.h.bf16 %v3852_v53  ;;  %v3853_v45 = vunpack.i.l.bf16 %v3852_v53  ;;  %v3813_v53 = vunpack.i.l.bf16 %v5138_v10  ;;  %v3839_v12 = vunpack.i.h.bf16 %v5168_v47 }
 0x28c   : > { %v3838_v8 = vunpack.i.l.bf16 %v5168_v47 }
 0x28e   : > { %v3847_v14 = vpop.permute.xlu1 %3846  ;;  %v3872_v52 = vpop.permute.xlu0 %3871 }
 0x28f   : > { %v3849_v11 = vunpack.i.h.bf16 %v3847_v14  ;;  %v3848_v49 = vunpack.i.l.bf16 %v3847_v14  ;;  %v3874_v28 = vunpack.i.h.bf16 %v3872_v52  ;;  %v3873_v21 = vunpack.i.l.bf16 %v3872_v52 }
 0x291   : > { %v2525_v32 = vsel %vm1336_vm10, %v2509_v19, %v3849_v11  ;;  %v2524_v38 = vsel %vm1336_vm10, %v2508_v60, %v3848_v49  ;;  %v2479_v39 = vsel %vm1285_vm7, %v2463_v7, %v3874_v28  ;;  %v2478_v26 = vsel %vm1285_vm7, %v2462_v44, %v3873_v21 }
 0x292   : > { %v3877_v20 = vpop.permute.xlu0 %3876  ;;  %v3857_v25 = vpop.permute.xlu1 %3856  ;;  %v2540_v41 = vsel %vm1353_vm11, %v2524_v38, %v3853_v45  ;;  %v2541_v61 = vsel %vm1353_vm11, %v2525_v32, %v3854_v22 }
 0x293   : > { %v3879_v48 = vunpack.i.h.bf16 %v3877_v20  ;;  %v3878_v37 = vunpack.i.l.bf16 %v3877_v20  ;;  %v2551_v62 = vpack.c.bf16 %v2541_v61, %v2540_v41  ;;  %v3859_v31 = vunpack.i.h.bf16 %v3857_v25  ;;  %v5245_v41 = vld [vmem:[%s5431_s5] ss:$0 sm:$0xff] }
 0x294   : > { %v3858_v34 = vunpack.i.l.bf16 %v3857_v25 }
 0x295   : > { %v2494_v18 = vsel %vm1302_vm8, %v2478_v26, %v3878_v37  ;;  %v2495_v30 = vsel %vm1302_vm8, %v2479_v39, %v3879_v48  ;;  %3213 = vmatmul.mubr.msk.bf16.gmra.mrb[8].mxu1 %vm1405_vm12, %v2551_v62  ;;  %v2433_v13 = vsel %vm406_vm0, %v4920_v5, %v3859_v31 }
 0x296   : > { %v2510_v55 = vsel %vm1319_vm9, %v2494_v18, %v3818_v23  ;;  %v2511_v4 = vsel %vm1319_vm9, %v2495_v30, %v3819_v51  ;;  %v3882_v3 = vpop.permute.xlu0 %3881  ;;  %v3862_v33 = vpop.permute.xlu1 %3861  ;;  %v2432_v40 = vsel %vm406_vm0, %v4925_v35, %v3858_v34 }
 0x297   : > { %v3884_v27 = vunpack.i.h.bf16 %v3882_v3  ;;  %v3883_v36 = vunpack.i.l.bf16 %v3882_v3  ;;  %v2526_v17 = vsel %vm1336_vm10, %v2510_v55, %v3843_v15  ;;  %v2527_v29 = vsel %vm1336_vm10, %v2511_v4, %v3844_v50  ;;  %v5252_v15 = vld [vmem:[%s5432_s6] ss:$0 sm:$0xff] }
 0x298   : > { %v3864_v24 = vunpack.i.h.bf16 %v3862_v33  ;;  %v3863_v57 = vunpack.i.l.bf16 %v3862_v33 }
 0x299   : > { %v2542_v42 = vsel %vm1353_vm11, %v2526_v17, %v3883_v36  ;;  %v2543_v43 = vsel %vm1353_vm11, %v2527_v29, %v3884_v27 }
 0x29a   : > { %v2552_v46 = vpack.c.bf16 %v2543_v43, %v2542_v42  ;;  %v2448_v54 = vsel %vm1251_vm5, %v2432_v40, %v3863_v57  ;;  %v2449_v10 = vsel %vm1251_vm5, %v2433_v13, %v3864_v24  ;;  %v3867_v58 = vpop.permute.xlu1 %3866 }
 0x29b   : > { %v2464_v5 = vsel %vm1268_vm6, %v2448_v54, %v3813_v53  ;;  %v2465_v35 = vsel %vm1268_vm6, %v2449_v10, %v3814_v56  ;;  %v3869_v19 = vunpack.i.h.bf16 %v3867_v58  ;;  %v3868_v63 = vunpack.i.l.bf16 %v3867_v58 }
 0x29c   : > { %v2480_v14 = vsel %vm1285_vm7, %v2464_v5, %v3833_v59  ;;  %v2481_v52 = vsel %vm1285_vm7, %v2465_v35, %v3834_v6  ;;  %3216 = vmatprep.mubr.msk.bf16.mxu1 %vm1405_vm12, %v2552_v46 }
 0x29d   : > { %v2496_v60 = vsel %vm1302_vm8, %v2480_v14, %v3838_v8  ;;  %v2497_v11 = vsel %vm1302_vm8, %v2481_v52, %v3839_v12 }
 0x29e   : > { %v2512_v49 = vsel %vm1319_vm9, %v2496_v60, %v3583_v9  ;;  %v2513_v47 = vsel %vm1319_vm9, %v2497_v11, %v3584_v16  ;;  %v3887_v22 = vpop.permute.xlu1 %3886  ;;  %v2866_v16 = vld [vmem:[%s5435_s9] sm:$0x1] }
 0x29f   : > { %v3889_v45 = vunpack.i.h.bf16 %v3887_v22  ;;  %v3888_v28 = vunpack.i.l.bf16 %v3887_v22  ;;  %v2528_v21 = vsel %vm1336_vm10, %v2512_v49, %v3868_v63  ;;  %v2529_v2 = vsel %vm1336_vm10, %v2513_v47, %v3869_v19  ;;  %3226 = vmatpush3.msk.msra.mxu1 %vm2872_vm14, %v2866_v16 }
 0x2a1   : > { %v2544_v51 = vsel %vm1353_vm11, %v2528_v21, %v3888_v28  ;;  %v2545_v32 = vsel %vm1353_vm11, %v2529_v2, %v3889_v45 }
 0x2a2   : > { %v2553_v38 = vpack.c.bf16 %v2545_v32, %v2544_v51 }
 0x2a4   : > { %3217 = vmatmul.mubr.msk.bf16.gmra.mrb[12].mxu1 %vm1405_vm12, %v2553_v38 }
 0x2a5   : > { %3227 = vmatprep.mubr.msk.f32.mxu1 %vm3921_vm13, %v3912_v1 }
 0x32c   : > { %v3206_v23 = vpop.f32.mrb[0].mxu1 }
 0x32d   : > { %v2642_v7 = vpop.f32.mrb[1].mxu1  ;;  %v2714_v26 = vmul.f32 %v3206_v23, %v5245_v41 }
 0x32e   : > { %v3207_v20 = vpop.f32.mrb[2].mxu1  ;;  %v2712_v48 = vmul.f32 %v5245_v41, %v2642_v7 }
 0x32f   : > { %v2645_v25 = vpop.f32.mrb[3].mxu1  ;;  %v5264_v30 = vadd.f32 %v5252_v15, %v2714_v26  ;;  %v2715_v34 = vmul.f32 %v3207_v20, %v5245_v41 }
 0x330   : > { %v2713_v44 = vmul.f32 %v5245_v41, %v2645_v25  ;;  %v5259_v62 = vadd.f32 %v5252_v15, %v2712_v48 }
 0x331   : > { %v2754_v55 = vsel %vm406_vm0, %v5264_v30, 0.0  ;;  %v5273_v4 = vadd.f32 %v5252_v15, %v2715_v34 }
 0x332   : > { %v5255_v39 = vadd.f32 %v5252_v15, %v2713_v44  ;;  %v2751_v31 = vsel %vm406_vm0, %v5259_v62, 0.0 }
 0x333   : > { %v2756_v36 = vsel %vm406_vm0, %v5273_v4, 0.0 }
 0x334   : > { %v2752_v18 = vsel %vm406_vm0, %v5255_v39, 0.0 }
 0x335   : > { %v2753_v56 = vadd.f32 %v2752_v18, %v2751_v31 }
 0x337   : > { %v2755_v27 = vadd.f32 %v2754_v55, %v2753_v56 }
 0x339   : > { %v2757_v53 = vadd.f32 %v2756_v36, %v2755_v27 }
 0x34c   : > { %v3210_v61 = vpop.f32.mrb[4].mxu1 }
 0x34d   : > { %v2658_v50 = vpop.f32.mrb[5].mxu1  ;;  %v2718_v6 = vmul.f32 %v3210_v61, %v5245_v41 }
 0x34e   : > { %v3211_v1 = vpop.f32.mrb[6].mxu1  ;;  %v2716_v9 = vmul.f32 %v5245_v41, %v2658_v50 }
 0x34f   : > { %v2661_v37 = vpop.f32.mrb[7].mxu1  ;;  %v5290_v13 = vadd.f32 %v5252_v15, %v2718_v6  ;;  %v2719_v40 = vmul.f32 %v3211_v1, %v5245_v41  ;;  %v2791_v6 = vld [vmem:[#allocation4] sm:$0x1] }
 0x350   : > { %v5276_v3 = vadd.f32 %v5252_v15, %v2716_v9  ;;  %v2717_v33 = vmul.f32 %v5245_v41, %v2661_v37 }
 0x351   : > { %v2762_v43 = vsel %vm406_vm0, %v5290_v13, 0.0  ;;  %v5296_v59 = vadd.f32 %v5252_v15, %v2719_v40 }
 0x352   : > { %v2758_v17 = vsel %vm406_vm0, %v5276_v3, 0.0  ;;  %v5284_v29 = vadd.f32 %v5252_v15, %v2717_v33 }
 0x353   : > { %v2759_v24 = vadd.f32 %v2758_v17, %v2757_v53  ;;  %v2764_v5 = vsel %vm406_vm0, %v5296_v59, 0.0 }
 0x354   : > { %v2760_v57 = vsel %vm406_vm0, %v5284_v29, 0.0 }
 0x355   : > { %v2761_v42 = vadd.f32 %v2760_v57, %v2759_v24 }
 0x357   : > { %v2763_v54 = vadd.f32 %v2762_v43, %v2761_v42  ;;  %v2867_v43 = vld [vmem:[%s5436_s10] sm:$0x1] }
 0x359   : > { %v2765_v52 = vadd.f32 %v2764_v5, %v2763_v54  ;;  %v2968_v5 = vlaneseq }
 0x368   : > { %v3214_v46 = vpop.f32.mrb[8].mxu1 }
 0x369   : > { %v2674_v10 = vpop.f32.mrb[9].mxu1  ;;  %v2722_v19 = vmul.f32 %v3214_v46, %v5245_v41 }
 0x36a   : > { %v2720_v58 = vmul.f32 %v5245_v41, %v2674_v10  ;;  %v3215_v12 = vpop.f32.mrb[10].mxu1 }
 0x36b   : > { %v2677_v8 = vpop.f32.mrb[11].mxu1  ;;  %v5314_v47 = vadd.f32 %v5252_v15, %v2722_v19  ;;  %v2723_v22 = vmul.f32 %v3215_v12, %v5245_v41 }
 0x36c   : > { %v5302_v35 = vadd.f32 %v5252_v15, %v2720_v58  ;;  %v2721_v14 = vmul.f32 %v5245_v41, %v2677_v8 }
 0x36d   : > { %v2770_v28 = vsel %vm406_vm0, %v5314_v47, 0.0  ;;  %v5320_v21 = vadd.f32 %v5252_v15, %v2723_v22  ;;  %v2954_v22 = vld [vmem:[%s4125_s23 + $0x10] sm:$0xff] }
 0x36e   : > { %v2766_v63 = vsel %vm406_vm0, %v5302_v35, 0.0  ;;  %v5309_v60 = vadd.f32 %v5252_v15, %v2721_v14  ;;  %v2969_v14 = vshrl.u32 %v2968_v5, 7 }
 0x36f   : > { %v2767_v11 = vadd.f32 %v2766_v63, %v2765_v52  ;;  %v2772_v7 = vsel %vm406_vm0, %v5320_v21, 0.0 }
 0x370   : > { %v2768_v49 = vsel %vm406_vm0, %v5309_v60, 0.0  ;;  %v2970_v52 = vsub.s32 0, %v2969_v14 }
 0x371   : > { %v2769_v45 = vadd.f32 %v2768_v49, %v2767_v11  ;;  %v2952_v11 = vld [vmem:[%s4125_s23] sm:$0xff]  ;;  %v2953_v49 = vld [vmem:[%s4125_s23 + $0x8] sm:$0xff] }
 0x373   : > { %v2771_v51 = vadd.f32 %v2770_v28, %v2769_v45  ;;  %v2955_v45 = vld [vmem:[%s4125_s23 + $0x18] sm:$0xff] }
 0x375   : > { %v2773_v44 = vadd.f32 %v2772_v7, %v2771_v51 }
 0x377   : > { %v3218_v2 = vpop.f32.mrb[12].mxu1 }
 0x378   : > { %v2690_v32 = vpop.f32.mrb[13].mxu1  ;;  %v2726_v38 = vmul.f32 %v3218_v2, %v5245_v41 }
 0x379   : > { %v2724_v0 = vmul.f32 %v5245_v41, %v2690_v32  ;;  %v3219_v16 = vpop.f32.mrb[14].mxu1 }
 0x37a   : > { %v2693_v23 = vpop.f32.mrb[15].mxu1  ;;  %v2727_v25 = vmul.f32 %v3219_v16, %v5245_v41  ;;  %v5332_v50 = vadd.f32 %v5252_v15, %v2726_v38  ;;  %v2956_v38 = vld [vmem:[%s4125_s23 + $0x20] sm:$0xff]  ;;  %v2958_v16 = vld [vmem:[%s4125_s23 + $0x30] sm:$0xff] }
 0x37b   : > { %v5327_v20 = vadd.f32 %v5252_v15, %v2724_v0  ;;  %v2725_v61 = vmul.f32 %v5245_v41, %v2693_v23  ;;  %v2957_v0 = vld [vmem:[%s4125_s23 + $0x28] sm:$0xff] }
 0x37c   : > { %v5340_v26 = vadd.f32 %v5252_v15, %v2727_v25  ;;  %v2778_v41 = vsel %vm406_vm0, %v5332_v50, 0.0 }
 0x37d   : > { %v2774_v1 = vsel %vm406_vm0, %v5327_v20, 0.0  ;;  %v5337_v48 = vadd.f32 %v5252_v15, %v2725_v61  ;;  %v2961_v61 = vld [vmem:[%s4125_s23 + $0x48] sm:$0xff] }
 0x37e   : > { %v2775_v37 = vadd.f32 %v2774_v1, %v2773_v44  ;;  %v2780_v9 = vsel %vm406_vm0, %v5340_v26, 0.0 }
 0x37f   : > { %v2776_v18 = vsel %vm406_vm0, %v5337_v48, 0.0 }
 0x380   : > { %v2777_v31 = vadd.f32 %v2776_v18, %v2775_v37  ;;  %v2962_v37 = vld [vmem:[%s4125_s23 + $0x50] sm:$0xff]  ;;  %v2964_v18 = vld [vmem:[%s4125_s23 + $0x60] sm:$0xff] }
 0x382   : > { %v2779_v34 = vadd.f32 %v2778_v41, %v2777_v31 }
 0x384   : > { %v2781_v56 = vadd.f32 %v2780_v9, %v2779_v34  ;;  %v2965_v34 = vld [vmem:[%s4125_s23 + $0x68] sm:$0xff]  ;;  %v2967_v9 = vld [vmem:[%s4125_s23 + $0x78] sm:$0xff] }
 0x386   : > { %v2782_v55 = vrot.slane %v2781_v56, 4 }
 0x388   : > { %v2783_v33 = vadd.f32 %v2782_v55, %v2781_v56 }
 0x38a   : > { %v2784_v27 = vrot.slane %v2783_v33, 2 }
 0x38c   : > { %v2785_v36 = vadd.f32 %v2784_v27, %v2783_v33 }
 0x38e   : > { %v2786_v17 = vrot.slane %v2785_v36, 1 }
 0x390   : > { %v2787_v53 = vadd.f32 %v2786_v17, %v2785_v36 }
 0x392   : > { %v2789_v15 = vmul.f32 0.0078125, %v2787_v53 }
 0x394   : > { %3223 = vmatmul.mubr.msk.f32.vlgmr.msra.gmra.mrb[16].mxu0 %vm406_vm0, %v2789_v15 }
 0x467   : > { %v2861_v24 = vpop.f32.mrb[16].mxu0 }
 0x468   : > { %v2862_v57 = vadd.f32 %v2861_v24, %v2791_v6  ;;  %v3224_v40 = vpop.f32.mrb[17].mxu0 }
 0x46a   : > { %v2865_v42 = vmax.f32 %v2862_v57, 0.0 }
 0x46c   : > { %3228 = vmatmul.mubr.msk.f32.vlgmr.msra.gmra.mrb[16].mxu1 %vm2868_vm15, %v2865_v42 }
 0x53f   : > { %v2942_v46 = vpop.f32.mrb[16].mxu1 }
 0x540   : > { %v2943_v54 = vadd.f32 %v2942_v46, %v2867_v43  ;;  %v3229_v10 = vpop.f32.mrb[17].mxu1 }
 0x542   : > { %v3133_v58 = vmul.f32 -1.442695, %v2943_v54 }
 0x544   : > { %3900 = vpow2.f32 %v3133_v58 }
 0x54e   : > { %v3901_v12 = vpop.eup %3900 }
 0x54f   : > { %v2949_v8 = vadd.f32 1.0, %v3901_v12 }
 0x551   : > { %3902 = vrcp.f32 %v2949_v8 }
 0x55b   : > { %v3903_v19 = vpop.eup %3902 }
 0x55c   : > { %v2971_v63 = vrot.slane %v3903_v19, %v2970_v52 }
 0x55e   : > { %v2972_v28 = vmul.f32 %v2971_v63, %v5259_v62  ;;  %v2973_v2 = vmul.f32 %v2971_v63, %v5255_v39  ;;  %v2974_v51 = vmul.f32 %v2971_v63, %v5264_v30  ;;  %v2975_v32 = vmul.f32 %v2971_v63, %v5273_v4  ;;  %v2959_v39 = vld [vmem:[%s4125_s23 + $0x38] sm:$0xff]  ;;  %v2960_v30 = vld [vmem:[%s4125_s23 + $0x40] sm:$0xff] }
 0x55f   : > { %v2976_v23 = vmul.f32 %v2971_v63, %v5276_v3  ;;  %v2977_v7 = vmul.f32 %v2971_v63, %v5284_v29  ;;  %v2978_v25 = vmul.f32 %v2971_v63, %v5290_v13  ;;  %v2979_v62 = vmul.f32 %v2971_v63, %v5296_v59  ;;  %v2963_v29 = vld [vmem:[%s4125_s23 + $0x58] sm:$0xff] }
 0x560   : > { %v2980_v4 = vmul.f32 %v2971_v63, %v5302_v35  ;;  %v2981_v44 = vmul.f32 %v2971_v63, %v5309_v60  ;;  %v2982_v1 = vmul.f32 %v2971_v63, %v5314_v47  ;;  %v2983_v3 = vmul.f32 %v2971_v63, %v5320_v21  ;;  %v2966_v35 = vld [vmem:[%s4125_s23 + $0x70] sm:$0xff] }
 0x561   : > { %v2984_v13 = vmul.f32 %v2971_v63, %v5327_v20  ;;  %v2985_v59 = vmul.f32 %v2971_v63, %v5337_v48  ;;  %v2986_v31 = vmul.f32 %v2971_v63, %v5332_v50  ;;  %v2987_v41 = vmul.f32 %v2971_v63, %v5340_v26 }
 0x562   : > { %v2988_v60 = vadd.f32 %v2972_v28, %v2952_v11  ;;  %v2989_v56 = vadd.f32 %v2973_v2, %v2953_v49  ;;  %v2990_v47 = vadd.f32 %v2974_v51, %v2954_v22  ;;  %v2991_v55 = vadd.f32 %v2975_v32, %v2955_v45 }
 0x563   : > { %v2992_v21 = vadd.f32 %v2976_v23, %v2956_v38  ;;  %v2993_v33 = vadd.f32 %v2977_v7, %v2957_v0  ;;  %v2994_v27 = vadd.f32 %v2978_v25, %v2958_v16  ;;  %v2995_v36 = vadd.f32 %v2979_v62, %v2959_v39 }
 0x564   : > { %v2996_v17 = vadd.f32 %v2980_v4, %v2960_v30  ;;  %v2997_v20 = vadd.f32 %v2981_v44, %v2961_v61  ;;  %v2998_v53 = vadd.f32 %v2982_v1, %v2962_v37  ;;  %v2999_v48 = vadd.f32 %v2983_v3, %v2963_v29 }
 0x565   : > { %v3000_v50 = vadd.f32 %v2984_v13, %v2964_v18  ;;  %v3001_v26 = vadd.f32 %v2985_v59, %v2965_v34  ;;  %v3002_v15 = vadd.f32 %v2986_v31, %v2966_v35  ;;  %v3003_v6 = vadd.f32 %v2987_v41, %v2967_v9 }
 0x566   : > { %v3004_v24 = vmax.f32 %v2988_v60, 0.0  ;;  %v3005_v57 = vmax.f32 %v2989_v56, 0.0  ;;  %v3006_v40 = vmax.f32 %v2990_v47, 0.0  ;;  %v3007_v42 = vmax.f32 %v2991_v55, 0.0 }
 0x567   : > { %v3008_v43 = vmax.f32 %v2992_v21, 0.0  ;;  %v3009_v46 = vmax.f32 %v2993_v33, 0.0  ;;  %v3010_v54 = vmax.f32 %v2994_v27, 0.0  ;;  %v3011_v10 = vmax.f32 %v2995_v36, 0.0 }
 0x568   : > { %v3012_v58 = vmax.f32 %v2996_v17, 0.0  ;;  %v3013_v12 = vmax.f32 %v2997_v20, 0.0  ;;  %v3014_v8 = vmax.f32 %v2998_v53, 0.0  ;;  %v3015_v5 = vmax.f32 %v2999_v48, 0.0  ;;  %3020 = vst.msk [vmem:[%s5389_s14] sm:$0xff] %vm406_vm0, %v3004_v24  ;;  %3021 = vst.msk [vmem:[%s5389_s14 + $0x8] sm:$0xff] %vm406_vm0, %v3005_v57 }
 0x569   : > { %3022 = vst.msk [vmem:[%s5389_s14 + $0x10] sm:$0xff] %vm406_vm0, %v3006_v40  ;;  %3023 = vst.msk [vmem:[%s5389_s14 + $0x18] sm:$0xff] %vm406_vm0, %v3007_v42  ;;  %v3016_v14 = vmax.f32 %v3000_v50, 0.0  ;;  %v3017_v52 = vmax.f32 %v3001_v26, 0.0  ;;  %v3018_v19 = vmax.f32 %v3002_v15, 0.0  ;;  %v3019_v63 = vmax.f32 %v3003_v6, 0.0 }
 0x56a   : > { %3024 = vst.msk [vmem:[%s5389_s14 + $0x20] sm:$0xff] %vm406_vm0, %v3008_v43  ;;  %3025 = vst.msk [vmem:[%s5389_s14 + $0x28] sm:$0xff] %vm406_vm0, %v3009_v46 }
 0x56b   : > { %3026 = vst.msk [vmem:[%s5389_s14 + $0x30] sm:$0xff] %vm406_vm0, %v3010_v54  ;;  %3027 = vst.msk [vmem:[%s5389_s14 + $0x38] sm:$0xff] %vm406_vm0, %v3011_v10 }
 0x56c   : > { %3028 = vst.msk [vmem:[%s5389_s14 + $0x40] sm:$0xff] %vm406_vm0, %v3012_v58  ;;  %3029 = vst.msk [vmem:[%s5389_s14 + $0x48] sm:$0xff] %vm406_vm0, %v3013_v12 }
 0x56d   : > { %3030 = vst.msk [vmem:[%s5389_s14 + $0x50] sm:$0xff] %vm406_vm0, %v3014_v8  ;;  %3031 = vst.msk [vmem:[%s5389_s14 + $0x58] sm:$0xff] %vm406_vm0, %v3015_v5 }
 0x56e   : > { %3032 = vst.msk [vmem:[%s5389_s14 + $0x60] sm:$0xff] %vm406_vm0, %v3016_v14  ;;  %3033 = vst.msk [vmem:[%s5389_s14 + $0x68] sm:$0xff] %vm406_vm0, %v3017_v52 }
 0x56f   : > { %3034 = vst.msk [vmem:[%s5389_s14 + $0x70] sm:$0xff] %vm406_vm0, %v3018_v19  ;;  %3035 = vst.msk [vmem:[%s5389_s14 + $0x78] sm:$0xff] %vm406_vm0, %v3019_v63 }
 0x570 PF: > { %s23_s19 = sadd.s32 1, %s3910_s19  }
 0x571   : > { %p20_p4 = scmp.ge.s32.totalorder %s23_s19, 4  }
 0x573   :  { %22 = sbr.rel (!%p20_p4) target bundleno = 3 (0x3), region = 98 }

// kernel: resnet_se_no_head.6
= control target key start
LH: loop header
LB: loop body
LE: loop exit
PB: predicated region body
PF: predicated region fallthrough
CT: control target
= control target key end

     0   :  { %s4235_s29 = smov 0   ;;  %s5770_s0 = inlined_call_operand.vmem [shape: f32[2,8,16,8], index: 0, kind: input, shape index: {}]   ;;  %s5771_s1 = inlined_call_operand.vmem [shape: bf16[72,16], index: 1, kind: input, shape index: {}]   ;;  %s5772_s2 = inlined_call_operand.vmem [shape: f32[1,16], index: 2, kind: input, shape index: {}]   ;;  %s5773_s3 = inlined_call_operand.vmem [shape: f32[1,16], index: 3, kind: input, shape index: {}]   ;;  %s5774_s4 = inlined_call_operand.vmem [shape: bf16[144,16], index: 4, kind: input, shape index: {}]   ;;  %s5775_s5 = inlined_call_operand.vmem [shape: f32[1,16], index: 5, kind: input, shape index: {}]   ;;  %s5776_s6 = inlined_call_operand.vmem [shape: f32[1,16], index: 6, kind: input, shape index: {}]   ;;  %s5777_s7 = inlined_call_operand.vmem [shape: f32[16,2], index: 7, kind: input, shape index: {}]   ;;  %s5778_s8 = inlined_call_operand.vmem [shape: f32[1,2], index: 8, kind: input, shape index: {}]   ;;  %s5779_s9 = inlined_call_operand.vmem [shape: f32[2,16], index: 9, kind: input, shape index: {}]   ;;  %s5780_s10 = inlined_call_operand.vmem [shape: f32[1,16], index: 10, kind: input, shape index: {}]   ;;  %s5781_s11 = inlined_call_operand.vmem [shape: bf16[8,16], index: 11, kind: input, shape index: {}]   ;;  %s5782_s12 = inlined_call_operand.vmem [shape: f32[1,16], index: 12, kind: input, shape index: {}]   ;;  %s5783_s13 = inlined_call_operand.vmem [shape: f32[1,16], index: 13, kind: input, shape index: {}]   ;;  %s5784_s14 = inlined_call_operand.vmem [shape: f32[2,8,16,16], index: 14, kind: output, shape index: {}]  }
   0x1 LB: > { %s3347_s30 = sadd.s32 4294967295, %s4143_s29   ;;  %p3351_p0 = scmp.ge.s32.totalorder %s4143_s29, 1  ;;  %s4143_s29 = sphi %s4235_s29, %s24_s29  }
   0x2   : > { %p412_p1 = scmp.lt.s32.totalorder %s4143_s29, 3 }
   0x4   : > { %p413_p2 = pnand %p3351_p0, %p412_p1 }
   0x5   : > { %vm485_vm0 = vcmask (!%p413_p2), 64512   ;;  %vm488_vm1 = vcmask (!%p413_p2), 58368   ;;  %v5785_v0 = vmov (!%p413_p2), 0.0   ;;  %p458_p3 = scmp.lt.s32.totalorder (!%p413_p2), %s3347_s30, 1  ;;  %vm1330_vm2 = vcmask (!%p413_p2), 130048   ;;  %s4146_s19 = smov (!%p413_p2), 16  }
   0x6   : > { %416 = sbr.rel (%p413_p2) target bundleno = 1374 (0x55e), region = 76  ;;  %486 = vst.msk [vmem:[#allocation2] sm:$0xff] (!%p413_p2), %vm485_vm0, %v5785_v0  ;;  %487 = vst.msk [vmem:[#allocation2 + $0x8] sm:$0xff] (!%p413_p2), %vm485_vm0, %v5785_v0  ;;  %vm729_vm3 = vcmask (!%p413_p2), 1045504   ;;  %vm640_vm4 = vcmask (!%p413_p2), 1046528   ;;  %s4147_s20 = smov (!%p413_p2), 8  }
   0x7   : > { %489 = vst.msk [vmem:[#allocation2 + $0x10] sm:$0x3] (!%p413_p2), %vm488_vm1, %v5785_v0  ;;  %492 = vst.msk [vmem:[#allocation2 + $0x28] sm:$0x3] (!%p413_p2), %vm488_vm1, %v5785_v0  ;;  %v4119_v40 = vld [vmem:[%s5771_s1] sm:$0xff] (!%p413_p2)   ;;  %s4148_s23 = smov (!%p413_p2), 24  }
   0x8   : > { %490 = vst.msk [vmem:[#allocation2 + $0x18] sm:$0xff] (!%p413_p2), %vm485_vm0, %v5785_v0  ;;  %491 = vst.msk [vmem:[#allocation2 + $0x20] sm:$0xff] (!%p413_p2), %vm485_vm0, %v5785_v0  ;;  %3435 = vmatprep.subr.bf16.mxu0 (!%p413_p2), %v4119_v40  ;;  %s4149_s24 = smov (!%p413_p2), 32   ;;  %s4150_s27 = smov (!%p413_p2), 40   ;;  %vm1509_vm5 = vcmask (!%p413_p2), 1043456   ;;  %vm1347_vm6 = vcmask (!%p413_p2), 195584  }
   0x9   : > { %493 = vst.msk [vmem:[#allocation2 + $0x30] sm:$0xff] (!%p413_p2), %vm485_vm0, %v5785_v0  ;;  %494 = vst.msk [vmem:[#allocation2 + $0x38] sm:$0xff] (!%p413_p2), %vm485_vm0, %v5785_v0  ;;  %3436 = vmatpush3.bf16.msra.mxu0 (!%p413_p2), %v4119_v40  ;;  %s4151_s22 = smov (!%p413_p2), 48   ;;  %s4152_s25 = smov (!%p413_p2), 56   ;;  %vm1364_vm7 = vcmask (!%p413_p2), 261120   ;;  %vm1381_vm8 = vcmask (!%p413_p2), 326656  }
   0xa   : > { %495 = vst.msk [vmem:[#allocation2 + $0x40] sm:$0x3] (!%p413_p2), %vm488_vm1, %v5785_v0  ;;  %498 = vst.msk [vmem:[#allocation2 + $0x58] sm:$0x3] (!%p413_p2), %vm488_vm1, %v5785_v0  ;;  %s4153_s26 = smov (!%p413_p2), 64   ;;  %vm1398_vm9 = vcmask (!%p413_p2), 392192  }
   0xb   : > { %496 = vst.msk [vmem:[#allocation2 + $0x48] sm:$0xff] (!%p413_p2), %vm485_vm0, %v5785_v0  ;;  %497 = vst.msk [vmem:[#allocation2 + $0x50] sm:$0xff] (!%p413_p2), %vm485_vm0, %v5785_v0  ;;  %vm1415_vm10 = vcmask (!%p413_p2), 457728   ;;  %vm1432_vm11 = vcmask (!%p413_p2), 523264   ;;  %vm1484_vm12 = vcmask (!%p413_p2), 588800   ;;  %vm1674_vm13 = vcmask (!%p413_p2), 123904  }
   0xc   : > { %499 = vst.msk [vmem:[#allocation2 + $0x60] sm:$0xff] (!%p413_p2), %vm485_vm0, %v5785_v0  ;;  %500 = vst.msk [vmem:[#allocation2 + $0x68] sm:$0xff] (!%p413_p2), %vm485_vm0, %v5785_v0  ;;  %s4156_s17 = smov (!%p413_p2), 112   ;;  %s4157_s28 = smov (!%p413_p2), 80   ;;  %vm2539_vm14 = vcmask (!%p413_p2), 654336   ;;  %vm2556_vm15 = vcmask (!%p413_p2), 785408  }
   0xd   : > { %501 = vst.msk [vmem:[#allocation2 + $0x70] sm:$0x3] %vm488_vm1, %v5785_v0  ;;  %504 = vst.msk [vmem:[#allocation2 + $0x88] sm:$0x3] %vm488_vm1, %v5785_v0  ;;  %s5789_s30 = smov (!%p458_p3, %s3347_s30), 1  ;;  %v4360_v4 = vld [vmem:[#allocation2] sm:$0xff] }
   0xe   : > { %502 = vst.msk [vmem:[#allocation2 + $0x78] sm:$0xff] %vm485_vm0, %v5785_v0  ;;  %503 = vst.msk [vmem:[#allocation2 + $0x80] sm:$0xff] %vm485_vm0, %v5785_v0  ;;  %s3406_s15 = sshll.u32 %s5789_s30, 7  ;;  %v4362_v5 = vld [vmem:[#allocation2 + $0x8] sm:$0xff]  ;;  %v545_v6 = vld [vmem:[#allocation2 + $0x10] sm:$0x3] }
   0xf   : > { %505 = vst.msk [vmem:[#allocation2 + $0x90] sm:$0xff] %vm485_vm0, %v5785_v0  ;;  %506 = vst.msk [vmem:[#allocation2 + $0x98] sm:$0xff] %vm485_vm0, %v5785_v0  ;;  %s4315_s18 = scalar_lea.vmem %s5770_s0, %s3406_s15  ;;  %v730_v7 = vrot.slane %v4360_v4, 2  ;;  %v731_v8 = vrot.slane %v4362_v5, 2  ;;  %v733_v9 = vrot.slane %v545_v6, 2  ;;  %v641_v10 = vrot.slane %v4360_v4, 1 }
  0x10   : > { %507 = vst.msk [vmem:[#allocation2 + $0xa0] sm:$0x3] %vm488_vm1, %v5785_v0  ;;  %510 = vst.msk [vmem:[#allocation2 + $0xb8] sm:$0x3] %vm488_vm1, %v5785_v0  ;;  %v471_v1 = vld [vmem:[%s4315_s18 + $0x10] sm:$0xff]  ;;  %v472_v2 = vld [vmem:[%s4315_s18 + $0x18] sm:$0xff] }
  0x11   : > { %508 = vst.msk [vmem:[#allocation2 + $0xa8] sm:$0xff] %vm485_vm0, %v5785_v0  ;;  %509 = vst.msk [vmem:[#allocation2 + $0xb0] sm:$0xff] %vm485_vm0, %v5785_v0  ;;  %v469_v3 = vld [vmem:[%s4315_s18] sm:$0xff]  ;;  %v470_v11 = vld [vmem:[%s4315_s18 + $0x8] sm:$0xff]  ;;  %v642_v13 = vrot.slane %v4362_v5, 1  ;;  %v644_v14 = vrot.slane %v545_v6, 1  ;;  %v732_v18 = vsel %vm729_vm3, %v730_v7, %v731_v8  ;;  %v734_v19 = vsel %vm729_vm3, %v731_v8, %v733_v9 }
  0x12   : > { %511 = vst.msk [vmem:[#allocation2 + $0xc0] sm:$0xff] %vm485_vm0, %v5785_v0  ;;  %512 = vst.msk [vmem:[#allocation2 + $0xc8] sm:$0xff] %vm485_vm0, %v5785_v0  ;;  %v473_v12 = vld [vmem:[%s4315_s18 + $0x20] sm:$0xff]  ;;  %v474_v15 = vld [vmem:[%s4315_s18 + $0x28] sm:$0xff]  ;;  %v3524_v23 = vpack.i.bf16 %v734_v19, %v732_v18 }
  0x13   : > { %513 = vst.msk [vmem:[#allocation2 + $0xd0] sm:$0x3] %vm488_vm1, %v5785_v0  ;;  %516 = vst.msk [vmem:[#allocation2 + $0xe8] sm:$0x3] %vm488_vm1, %v5785_v0  ;;  %v475_v16 = vld [vmem:[%s4315_s18 + $0x30] sm:$0xff]  ;;  %v476_v17 = vld [vmem:[%s4315_s18 + $0x38] sm:$0xff]  ;;  %v643_v24 = vsel %vm640_vm4, %v641_v10, %v642_v13  ;;  %v645_v25 = vsel %vm640_vm4, %v642_v13, %v644_v14 }
  0x14   : > { %514 = vst.msk [vmem:[#allocation2 + $0xd8] sm:$0xff] %vm485_vm0, %v5785_v0  ;;  %515 = vst.msk [vmem:[#allocation2 + $0xe0] sm:$0xff] %vm485_vm0, %v5785_v0  ;;  %v477_v20 = vld [vmem:[%s4315_s18 + $0x40] sm:$0xff]  ;;  %v478_v21 = vld [vmem:[%s4315_s18 + $0x48] sm:$0xff]  ;;  %v3519_v29 = vpack.i.bf16 %v645_v25, %v643_v24  ;;  %3525 = vrot.lane.b32.xlu1 %v3524_v23, %s4146_s19  ;;  %vm2573_vm1 = vcmask 916480  }
  0x15   : > { %1672 = vst.msk [vmem:[#allocation3] sm:$0xff] %vm1330_vm2, %v5785_v0  ;;  %1673 = vst.msk [vmem:[#allocation3 + $0x8] sm:$0xff] %vm1330_vm2, %v5785_v0  ;;  %v479_v22 = vld [vmem:[%s4315_s18 + $0x50] sm:$0xff]  ;;  %v480_v26 = vld [vmem:[%s4315_s18 + $0x58] sm:$0xff] }
  0x16   : > { %1676 = vst.msk [vmem:[#allocation3 + $0x18] sm:$0xff] %vm1330_vm2, %v5785_v0  ;;  %1677 = vst.msk [vmem:[#allocation3 + $0x20] sm:$0xff] %vm1330_vm2, %v5785_v0  ;;  %v481_v27 = vld [vmem:[%s4315_s18 + $0x60] sm:$0xff]  ;;  %v482_v28 = vld [vmem:[%s4315_s18 + $0x68] sm:$0xff]  ;;  %3520 = vrot.lane.b32.xlu0 %v3519_v29, %s4147_s20 }
  0x17   : > { %1679 = vst.msk [vmem:[#allocation3 + $0x30] sm:$0xff] %vm1330_vm2, %v5785_v0  ;;  %1680 = vst.msk [vmem:[#allocation3 + $0x38] sm:$0xff] %vm1330_vm2, %v5785_v0  ;;  %v483_v30 = vld [vmem:[%s4315_s18 + $0x70] sm:$0xff]  ;;  %v484_v31 = vld [vmem:[%s4315_s18 + $0x78] sm:$0xff] }
  0x18   : > { %1682 = vst.msk [vmem:[#allocation3 + $0x48] sm:$0xff] %vm1330_vm2, %v5785_v0  ;;  %1683 = vst.msk [vmem:[#allocation3 + $0x50] sm:$0xff] %vm1330_vm2, %v5785_v0  ;;  %v4120_v19 = vld [vmem:[%s5771_s1 + $0x8] sm:$0xff]   ;;  %v4121_v24 = vld [vmem:[%s5771_s1 + $0x10] sm:$0xff]  }
  0x19   : > { %1685 = vst.msk [vmem:[#allocation3 + $0x60] sm:$0xff] %vm1330_vm2, %v5785_v0  ;;  %1686 = vst.msk [vmem:[#allocation3 + $0x68] sm:$0xff] %vm1330_vm2, %v5785_v0  ;;  %3437 = vmatprep.subr.bf16.mxu0 %v4120_v19 }
  0x1a   : > { %1688 = vst.msk [vmem:[#allocation3 + $0x78] sm:$0xff] %vm1330_vm2, %v5785_v0  ;;  %1689 = vst.msk [vmem:[#allocation3 + $0x80] sm:$0xff] %vm1330_vm2, %v5785_v0  ;;  %3438 = vmatpush3.bf16.msra.mxu0 %v4120_v19 }
  0x1b   : > { %1691 = vst.msk [vmem:[#allocation3 + $0x90] sm:$0xff] %vm1330_vm2, %v5785_v0  ;;  %1692 = vst.msk [vmem:[#allocation3 + $0x98] sm:$0xff] %vm1330_vm2, %v5785_v0  ;;  %3439 = vmatprep.subr.bf16.mxu0 %v4121_v24 }
  0x1c   : > { %1694 = vst.msk [vmem:[#allocation3 + $0xa8] sm:$0xff] %vm1330_vm2, %v5785_v0  ;;  %1695 = vst.msk [vmem:[#allocation3 + $0xb0] sm:$0xff] %vm1330_vm2, %v5785_v0 }
  0x1d   : > { %1697 = vst.msk [vmem:[#allocation3 + $0xc0] sm:$0xff] %vm1330_vm2, %v5785_v0  ;;  %1698 = vst.msk [vmem:[#allocation3 + $0xc8] sm:$0xff] %vm1330_vm2, %v5785_v0 }
  0x1e   : > { %1700 = vst.msk [vmem:[#allocation3 + $0xd8] sm:$0xff] %vm1330_vm2, %v5785_v0  ;;  %1701 = vst.msk [vmem:[#allocation3 + $0xe0] sm:$0xff] %vm1330_vm2, %v5785_v0  ;;  %3440 = vmatpush3.bf16.msra.mxu0 %v4121_v24 }
  0x1f   : > { %520 = vst.msk [vmem:[#allocation2 + $0x31] sm:$0xff] %vm485_vm0, %v471_v1  ;;  %521 = vst.msk [vmem:[#allocation2 + $0x39] sm:$0xff] %vm485_vm0, %v472_v2 }
  0x20   : > { %518 = vst.msk [vmem:[#allocation2 + $0x19] sm:$0xff] %vm485_vm0, %v469_v3  ;;  %519 = vst.msk [vmem:[#allocation2 + $0x21] sm:$0xff] %vm485_vm0, %v470_v11 }
  0x21   : > { %522 = vst.msk [vmem:[#allocation2 + $0x49] sm:$0xff] %vm485_vm0, %v473_v12  ;;  %523 = vst.msk [vmem:[#allocation2 + $0x51] sm:$0xff] %vm485_vm0, %v474_v15 }
  0x22   : > { %524 = vst.msk [vmem:[#allocation2 + $0x61] sm:$0xff] %vm485_vm0, %v475_v16  ;;  %525 = vst.msk [vmem:[#allocation2 + $0x69] sm:$0xff] %vm485_vm0, %v476_v17 }
  0x23   : > { %526 = vst.msk [vmem:[#allocation2 + $0x79] sm:$0xff] %vm485_vm0, %v477_v20  ;;  %527 = vst.msk [vmem:[#allocation2 + $0x81] sm:$0xff] %vm485_vm0, %v478_v21 }
  0x24   : > { %528 = vst.msk [vmem:[#allocation2 + $0x91] sm:$0xff] %vm485_vm0, %v479_v22  ;;  %529 = vst.msk [vmem:[#allocation2 + $0x99] sm:$0xff] %vm485_vm0, %v480_v26 }
  0x25   : > { %530 = vst.msk [vmem:[#allocation2 + $0xa9] sm:$0xff] %vm485_vm0, %v481_v27  ;;  %531 = vst.msk [vmem:[#allocation2 + $0xb1] sm:$0xff] %vm485_vm0, %v482_v28 }
  0x26   : > { %532 = vst.msk [vmem:[#allocation2 + $0xc1] sm:$0xff] %vm485_vm0, %v483_v30  ;;  %533 = vst.msk [vmem:[#allocation2 + $0xc9] sm:$0xff] %vm485_vm0, %v484_v31  ;;  %v4403_v32 = vld [vmem:[#allocation2 + $0x30] sm:$0xff]  ;;  %v4405_v33 = vld [vmem:[#allocation2 + $0x38] sm:$0xff] }
  0x27   : > { %v4407_v34 = vld [vmem:[#allocation2 + $0x18] sm:$0xff]  ;;  %v4410_v35 = vrot.slane %v4405_v33, 1  ;;  %v4413_v36 = vrot.slane %v4405_v33, 2  ;;  %v4417_v37 = vpack.i.bf16 %v4405_v33, %v4403_v32  ;;  %v895_v38 = vrot.slane %v4403_v32, 1  ;;  %v572_v39 = vld [vmem:[#allocation2 + $0x40] sm:$0x3] }
  0x28   : > { %v983_v41 = vrot.slane %v4403_v32, 2  ;;  %v4424_v42 = vld [vmem:[#allocation2 + $0x20] sm:$0xff]  ;;  %v890_v43 = vrot.slane %v4407_v34, 1  ;;  %v978_v44 = vrot.slane %v4407_v34, 2  ;;  %v548_v45 = vld [vmem:[#allocation2 + $0x28] sm:$0x3] }
  0x29   : > { %3535 = vrot.lane.b32.xlu1 %v4417_v37, %s4148_s23  ;;  %v891_v46 = vrot.slane %v4424_v42, 1  ;;  %v979_v47 = vrot.slane %v4424_v42, 2  ;;  %v3529_v48 = vpack.i.bf16 %v4424_v42, %v4407_v34  ;;  %v738_v49 = vrot.slane %v548_v45, 2  ;;  %v569_v50 = vld [vmem:[#allocation2 + $0x28] sm:$0x3]  ;;  %v4458_v10 = vld [vmem:[#allocation2 + $0x50] sm:$0xff] }
  0x2a   : > { %v649_v51 = vrot.slane %v548_v45, 1  ;;  %v4436_v52 = vsel %vm640_vm4, %v895_v38, %v4410_v35  ;;  %v898_v53 = vrot.slane %v572_v39, 1  ;;  %v893_v54 = vrot.slane %v569_v50, 1  ;;  %v4456_v9 = vld [vmem:[#allocation2 + $0x48] sm:$0xff]  ;;  %v597_v11 = vld [vmem:[#allocation2 + $0x58] sm:$0x3] }
  0x2b   : > { %3530 = vrot.lane.b32.xlu0 %v3529_v48, %s4148_s23  ;;  %v737_v55 = vsel %vm729_vm3, %v978_v44, %v979_v47  ;;  %v739_v56 = vsel %vm729_vm3, %v979_v47, %v738_v49  ;;  %v648_v57 = vsel %vm640_vm4, %v890_v43, %v891_v46  ;;  %v986_v1 = vrot.slane %v572_v39, 2  ;;  %v594_v12 = vld [vmem:[#allocation2 + $0x40] sm:$0x3]  ;;  %v554_v22 = vld [vmem:[#allocation2 + $0x58] sm:$0x3] }
  0x2c   : > { %v3544_v58 = vpack.i.bf16 %v739_v56, %v737_v55  ;;  %v650_v59 = vsel %vm640_vm4, %v891_v46, %v649_v51  ;;  %v899_v60 = vsel %vm640_vm4, %v4410_v35, %v898_v53  ;;  %v894_v61 = vsel %vm640_vm4, %v891_v46, %v893_v54  ;;  %v551_v23 = vld [vmem:[#allocation2 + $0x40] sm:$0x3]  ;;  %v4122_v31 = vld [vmem:[%s5771_s1 + $0x18] sm:$0xff]   ;;  %v603_v19 = vld [vmem:[#allocation2 + $0x88] sm:$0x3] }
  0x2d   : > { %v3539_v62 = vpack.i.bf16 %v650_v59, %v648_v57  ;;  %v3554_v63 = vpack.i.bf16 %v899_v60, %v4436_v52  ;;  %v981_v2 = vrot.slane %v569_v50, 2  ;;  %v3549_v3 = vpack.i.bf16 %v894_v61, %v648_v57  ;;  %3441 = vmatprep.subr.bf16.mxu0 %v4122_v31  ;;  %v4524_v56 = vld [vmem:[#allocation2 + $0x60] sm:$0xff]  ;;  %v578_v57 = vld [vmem:[#allocation2 + $0x70] sm:$0x3]  ;;  %1681 = vst.msk [vmem:[#allocation3 + $0x40] sm:$0x3] %vm1674_vm13, %v5785_v0 }
  0x2e   : > { %3545 = vrot.lane.b32.xlu1 %v3544_v58, %s4146_s19  ;;  %v4451_v6 = vsel %vm729_vm3, %v983_v41, %v4413_v36  ;;  %v987_v7 = vsel %vm729_vm3, %v4413_v36, %v986_v1  ;;  %v4464_v15 = vrot.slane %v4458_v10, 1  ;;  %v1143_v16 = vrot.slane %v4456_v9, 1  ;;  %3442 = vmatpush3.bf16.msra.mxu0 %v4122_v31  ;;  %v575_v58 = vld [vmem:[#allocation2 + $0x58] sm:$0x3]  ;;  %1675 = vst.msk [vmem:[#allocation3 + $0x10] sm:$0x3] %vm1674_vm13, %v5785_v0 }
  0x2f   : > { %3540 = vrot.lane.b32.xlu0 %v3539_v62, %s4147_s20  ;;  %v982_v8 = vsel %vm729_vm3, %v979_v47, %v981_v2  ;;  %v3569_v13 = vpack.i.bf16 %v987_v7, %v4451_v6  ;;  %v1146_v17 = vrot.slane %v597_v11, 1  ;;  %v1141_v18 = vrot.slane %v594_v12, 1  ;;  %1678 = vst.msk [vmem:[#allocation3 + $0x28] sm:$0x3] %vm1674_vm13, %v5785_v0  ;;  %1684 = vst.msk [vmem:[#allocation3 + $0x58] sm:$0x3] %vm1674_vm13, %v5785_v0 }
  0x30   : > { %v3559_v14 = vpack.i.bf16 %v982_v8, %v737_v55  ;;  %v4472_v20 = vrot.slane %v4458_v10, 2  ;;  %v4476_v21 = vpack.i.bf16 %v4458_v10, %v4456_v9  ;;  %v1231_v25 = vrot.slane %v4456_v9, 2  ;;  %1687 = vst.msk [vmem:[#allocation3 + $0x70] sm:$0x3] %vm1674_vm13, %v5785_v0  ;;  %1690 = vst.msk [vmem:[#allocation3 + $0x88] sm:$0x3] %vm1674_vm13, %v5785_v0 }
  0x31   : > { %v4485_v26 = vsel %vm640_vm4, %v1143_v16, %v4464_v15  ;;  %v1147_v27 = vsel %vm640_vm4, %v4464_v15, %v1146_v17  ;;  %v1234_v28 = vrot.slane %v597_v11, 2  ;;  %v1142_v29 = vsel %vm640_vm4, %v4410_v35, %v1141_v18  ;;  %v4565_v17 = vld [vmem:[#allocation2 + $0x78] sm:$0xff]  ;;  %v4567_v18 = vld [vmem:[#allocation2 + $0x80] sm:$0xff]  ;;  %1693 = vst.msk [vmem:[#allocation3 + $0xa0] sm:$0x3] %vm1674_vm13, %v5785_v0 }
  0x32   : > { %3555 = vrot.lane.b32.xlu1 %v3554_v63, %s4149_s24  ;;  %v1229_v30 = vrot.slane %v594_v12, 2  ;;  %v3584_v38 = vpack.i.bf16 %v1147_v27, %v4485_v26  ;;  %v659_v39 = vrot.slane %v554_v22, 1  ;;  %v654_v40 = vrot.slane %v551_v23, 1  ;;  %v4123_v27 = vld [vmem:[%s5771_s1 + $0x20] ss:$0 sps:$4 sm:$0xff]  }
  0x33   : > { %3550 = vrot.lane.b32.xlu0 %v3549_v3, %s4149_s24  ;;  %v3579_v41 = vpack.i.bf16 %v1142_v29, %v4436_v52  ;;  %v4502_v43 = vsel %vm729_vm3, %v1231_v25, %v4472_v20  ;;  %v1235_v44 = vsel %vm729_vm3, %v4472_v20, %v1234_v28  ;;  %v748_v48 = vrot.slane %v554_v22, 2  ;;  %v600_v22 = vld [vmem:[#allocation2 + $0x70] sm:$0x3]  ;;  %3494 = vmatprep.subr.msk.bf16.mxu0 %vm1509_vm5, %v4123_v27 }
  0x34   : > { %v1230_v45 = vsel %vm729_vm3, %v4413_v36, %v1229_v30  ;;  %v3594_v46 = vpack.i.bf16 %v1235_v44, %v4502_v43  ;;  %v660_v47 = vsel %vm640_vm4, %v4464_v15, %v659_v39  ;;  %v655_v49 = vsel %vm640_vm4, %v4410_v35, %v654_v40  ;;  %v4526_v35 = vld [vmem:[#allocation2 + $0x68] sm:$0xff]  ;;  %v557_v44 = vld [vmem:[#allocation2 + $0x70] sm:$0x3]  ;;  %1696 = vst.msk [vmem:[#allocation3 + $0xb8] sm:$0x3] %vm1674_vm13, %v5785_v0 }
  0x35   : > { %v743_v50 = vrot.slane %v551_v23, 2  ;;  %v3604_v51 = vpack.i.bf16 %v660_v47, %v4485_v26  ;;  %v3599_v53 = vpack.i.bf16 %v655_v49, %v4436_v52  ;;  %v749_v54 = vsel %vm729_vm3, %v4472_v20, %v748_v48  ;;  %1699 = vst.msk [vmem:[#allocation3 + $0xd0] sm:$0x3] %vm1674_vm13, %v5785_v0  ;;  %1702 = vst.msk [vmem:[#allocation3 + $0xe8] sm:$0x3] %vm1674_vm13, %v5785_v0 }
  0x36   : > { %3570 = vrot.lane.b32.xlu1 %v3569_v13, %s4150_s27  ;;  %v3614_v59 = vpack.i.bf16 %v749_v54, %v4502_v43  ;;  %v4533_v60 = vrot.slane %v4526_v35, 1  ;;  %v905_v61 = vrot.slane %v4524_v56, 1  ;;  %v903_v62 = vrot.slane %v575_v58, 1 }
  0x37   : > { %3560 = vrot.lane.b32.xlu0 %v3559_v14, %s4150_s27  ;;  %v744_v55 = vsel %vm729_vm3, %v4413_v36, %v743_v50  ;;  %v908_v36 = vrot.slane %v578_v57, 1  ;;  %v4538_v63 = vrot.slane %v4526_v35, 2  ;;  %v3624_v1 = vpack.i.bf16 %v4526_v35, %v4524_v56 }
  0x38   : > { %v3609_v52 = vpack.i.bf16 %v744_v55, %v4451_v6  ;;  %v993_v2 = vrot.slane %v4524_v56, 2  ;;  %v4546_v3 = vsel %vm640_vm4, %v905_v61, %v4533_v60  ;;  %v996_v7 = vrot.slane %v578_v57, 2 }
  0x39   : > { %v904_v8 = vsel %vm640_vm4, %v4464_v15, %v903_v62  ;;  %v991_v11 = vrot.slane %v575_v58, 2  ;;  %v4574_v24 = vrot.slane %v4567_v18, 1  ;;  %v1153_v25 = vrot.slane %v4565_v17, 1 }
  0x3a   : > { %3575 = vrot.lane.b32.xlu1 %v4476_v21, %s4151_s22  ;;  %v3629_v13 = vpack.i.bf16 %v904_v8, %v4485_v26  ;;  %v4559_v14 = vsel %vm729_vm3, %v993_v2, %v4538_v63  ;;  %v997_v16 = vsel %vm729_vm3, %v4538_v63, %v996_v7  ;;  %v1151_v26 = vrot.slane %v600_v22, 1  ;;  %v4628_v2 = vld [vmem:[#allocation2 + $0x98] sm:$0xff] }
  0x3b   : > { %3565 = vrot.lane.b32.xlu0 %v4417_v37, %s4151_s22  ;;  %v3589_v37 = vpack.i.bf16 %v1230_v45, %v4451_v6  ;;  %v909_v6 = vsel %vm640_vm4, %v4533_v60, %v908_v36  ;;  %v992_v15 = vsel %vm729_vm3, %v4472_v20, %v991_v11  ;;  %v1156_v20 = vrot.slane %v603_v19, 1 }
  0x3c   : > { %v3634_v12 = vpack.i.bf16 %v909_v6, %v4546_v3  ;;  %v3639_v23 = vpack.i.bf16 %v992_v15, %v4502_v43  ;;  %v4582_v28 = vrot.slane %v4567_v18, 2  ;;  %v3654_v29 = vpack.i.bf16 %v4567_v18, %v4565_v17  ;;  %v560_v43 = vld [vmem:[#allocation2 + $0x88] sm:$0x3] }
  0x3d   : > { %v1241_v30 = vrot.slane %v4565_v17, 2  ;;  %v4590_v31 = vsel %vm640_vm4, %v1153_v25, %v4574_v24  ;;  %v1244_v39 = vrot.slane %v603_v19, 2  ;;  %v1152_v40 = vsel %vm640_vm4, %v4533_v60, %v1151_v26  ;;  %v581_v6 = vld [vmem:[#allocation2 + $0x88] sm:$0x3] }
  0x3e   : > { %3585 = vrot.lane.b32.xlu1 %v3584_v38, %s4152_s25  ;;  %v1157_v38 = vsel %vm640_vm4, %v4574_v24, %v1156_v20  ;;  %v1511_v45 = vsel %vm1509_vm5, %v4123_v27, 0  ;;  %v669_v49 = vrot.slane %v560_v43, 1  ;;  %v758_v57 = vrot.slane %v560_v43, 2 }
  0x3f   : > { %3580 = vrot.lane.b32.xlu0 %v3579_v41, %s4152_s25  ;;  %v1239_v41 = vrot.slane %v600_v22, 2  ;;  %3444 = vmatpush3.bf16.msra.mxu0 %v1511_v45  ;;  %v4604_v47 = vsel %vm729_vm3, %v1241_v30, %v4582_v28  ;;  %v1245_v48 = vsel %vm729_vm3, %v4582_v28, %v1244_v39  ;;  %v916_v8 = vrot.slane %v4628_v2, 1  ;;  %v609_v39 = vld [vmem:[#allocation2 + $0xb8] sm:$0x3] }
  0x40   : > { %v670_v55 = vsel %vm640_vm4, %v4574_v24, %v669_v49  ;;  %v759_v36 = vsel %vm729_vm3, %v4582_v28, %v758_v57  ;;  %v1254_v49 = vrot.slane %v609_v39, 2 }
  0x41   : > { %v1240_v50 = vsel %vm729_vm3, %v4538_v63, %v1239_v41  ;;  %v3694_v7 = vpack.i.bf16 %v759_v36, %v4604_v47 }
  0x42   : > { %3595 = vrot.lane.b32.xlu1 %v3594_v46, %s4153_s26  ;;  %v3664_v46 = vpack.i.bf16 %v1157_v38, %v4590_v31  ;;  %v3669_v54 = vpack.i.bf16 %v1240_v50, %v4559_v14  ;;  %v4664_v38 = vld [vmem:[#allocation2 + $0xb0] sm:$0xff] }
  0x43   : > { %3590 = vrot.lane.b32.xlu0 %v3589_v37, %s4153_s26  ;;  %v3659_v37 = vpack.i.bf16 %v1152_v40, %v4546_v3  ;;  %v606_v40 = vld [vmem:[#allocation2 + $0xa0] sm:$0x3]  ;;  %v1164_v41 = vrot.slane %v4664_v38, 1  ;;  %v4674_v45 = vrot.slane %v4664_v38, 2 }
  0x46   : > { %3605 = vrot.lane.b32.xlu1 %v3604_v51, %s4147_s20  ;;  %v664_v51 = vrot.slane %v557_v44, 1 }
  0x47   : > { %3600 = vrot.lane.b32.xlu0 %v3599_v53, %s4147_s20  ;;  %v3674_v53 = vpack.i.bf16 %v1245_v48, %v4604_v47 }
  0x48   : > { %v665_v58 = vsel %vm640_vm4, %v4533_v60, %v664_v51  ;;  %v584_v60 = vld [vmem:[#allocation2 + $0xa0] sm:$0x3]  ;;  %v1249_v51 = vrot.slane %v606_v40, 2 }
  0x49   : > { %v3679_v61 = vpack.i.bf16 %v665_v58, %v4546_v3  ;;  %v1006_v22 = vrot.slane %v584_v60, 2 }
  0x4a   : > { %3615 = vrot.lane.b32.xlu1 %v3614_v59, %s4146_s19  ;;  %v753_v59 = vrot.slane %v557_v44, 2  ;;  %v1166_v44 = vrot.slane %v609_v39, 1 }
  0x4b   : > { %3610 = vrot.lane.b32.xlu0 %v3609_v52, %s4146_s19  ;;  %v3684_v52 = vpack.i.bf16 %v670_v55, %v4590_v31 }
  0x4c   : > { %v754_v62 = vsel %vm729_vm3, %v4538_v63, %v753_v59  ;;  %v913_v63 = vrot.slane %v581_v6, 1  ;;  %v1167_v48 = vsel %vm640_vm4, %v1164_v41, %v1166_v44  ;;  %v1255_v59 = vsel %vm729_vm3, %v4674_v45, %v1254_v49 }
  0x4d   : > { %v3689_v3 = vpack.i.bf16 %v754_v62, %v4559_v14 }
  0x4e   : > { %3625 = vrot.lane.b32.xlu1 %v3624_v1, %s4148_s23 }
  0x4f   : > { %3620 = vrot.lane.b32.xlu0 %v4476_v21, %s4148_s23  ;;  %v3644_v21 = vpack.i.bf16 %v997_v16, %v4559_v14 }
  0x52   : > { %3635 = vrot.lane.b32.xlu1 %v3634_v12, %s4149_s24  ;;  %v918_v12 = vrot.slane %v584_v60, 1 }
  0x53   : > { %3630 = vrot.lane.b32.xlu0 %v3629_v13, %s4149_s24  ;;  %v4638_v13 = vrot.slane %v4628_v2, 2 }
  0x54   : > { %v919_v19 = vsel %vm640_vm4, %v916_v8, %v918_v12 }
  0x55   : > { %v1007_v27 = vsel %vm729_vm3, %v4638_v13, %v1006_v22  ;;  %v589_v22 = vld [vmem:[#allocation2 + $0xc8] sm:$0xff] }
  0x56   : > { %3645 = vrot.lane.b32.xlu1 %v3644_v21, %s4150_s27  ;;  %v914_v21 = vsel %vm640_vm4, %v4574_v24, %v913_v63  ;;  %v4662_v24 = vld [vmem:[#allocation2 + $0xa8] sm:$0xff]  ;;  %v1014_v39 = vrot.slane %v589_v22, 2 }
  0x57   : > { %3640 = vrot.lane.b32.xlu0 %v3639_v23, %s4150_s27  ;;  %v1001_v23 = vrot.slane %v581_v6, 2  ;;  %v3709_v20 = vpack.i.bf16 %v914_v21, %v4590_v31  ;;  %v1163_v43 = vrot.slane %v4662_v24, 1  ;;  %v590_v21 = vld [vmem:[#allocation2 + $0xd0] sm:$0x3] }
  0x59   : > { %v1002_v30 = vsel %vm729_vm3, %v4582_v28, %v1001_v23  ;;  %v1161_v28 = vrot.slane %v606_v40, 1  ;;  %v587_v23 = vld [vmem:[#allocation2 + $0xb8] sm:$0x3] }
  0x5a   : > { %3655 = vrot.lane.b32.xlu1 %v3654_v29, %s4151_s22  ;;  %v3719_v31 = vpack.i.bf16 %v1002_v30, %v4604_v47  ;;  %v4681_v47 = vsel %vm640_vm4, %v1163_v43, %v1164_v41  ;;  %v923_v30 = vrot.slane %v587_v23, 1  ;;  %v1016_v43 = vrot.slane %v590_v21, 2 }
  0x5b   : > { %3650 = vrot.lane.b32.xlu0 %v3624_v1, %s4151_s22  ;;  %v4626_v1 = vld [vmem:[#allocation2 + $0x90] sm:$0xff]  ;;  %v1162_v50 = vsel %vm640_vm4, %v916_v8, %v1161_v28  ;;  %v3744_v55 = vpack.i.bf16 %v1167_v48, %v4681_v47  ;;  %v1011_v28 = vrot.slane %v587_v23, 2 }
  0x5c   : > { %v915_v11 = vrot.slane %v4626_v1, 1  ;;  %v3704_v16 = vpack.i.bf16 %v4628_v2, %v4626_v1  ;;  %v1003_v15 = vrot.slane %v4626_v1, 2  ;;  %v924_v44 = vsel %vm640_vm4, %v1164_v41, %v923_v30 }
  0x5d   : > { %v1017_v49 = vsel %vm729_vm3, %v1014_v39, %v1016_v43 }
  0x5e   : > { %3665 = vrot.lane.b32.xlu1 %v3664_v46, %s4152_s25  ;;  %v4645_v14 = vsel %vm640_vm4, %v915_v11, %v916_v8  ;;  %v4656_v26 = vsel %vm729_vm3, %v1003_v15, %v4638_v13  ;;  %v3734_v46 = vpack.i.bf16 %v4664_v38, %v4662_v24 }
  0x5f   : > { %3660 = vrot.lane.b32.xlu0 %v3659_v37, %s4152_s25  ;;  %v3714_v25 = vpack.i.bf16 %v919_v19, %v4645_v14  ;;  %v1251_v37 = vrot.slane %v4662_v24, 2  ;;  %v3739_v57 = vpack.i.bf16 %v1162_v50, %v4645_v14  ;;  %v588_v19 = vld [vmem:[#allocation2 + $0xc0] sm:$0xff]  ;;  %v1012_v50 = vsel %vm729_vm3, %v4674_v45, %v1011_v28 }
  0x60   : > { %v1013_v40 = vrot.slane %v588_v19, 2 }
  0x61   : > { %v4691_v58 = vsel %vm729_vm3, %v1251_v37, %v4674_v45  ;;  %v3789_v37 = vpack.i.bf16 %v924_v44, %v4681_v47 }
  0x62   : > { %3675 = vrot.lane.b32.xlu1 %v3674_v53, %s4153_s26  ;;  %v566_v53 = vld [vmem:[#allocation2 + $0xb8] sm:$0x3]  ;;  %v3754_v62 = vpack.i.bf16 %v1255_v59, %v4691_v58  ;;  %v1015_v48 = vsel %vm729_vm3, %v1013_v40, %v1014_v39 }
  0x63   : > { %3670 = vrot.lane.b32.xlu0 %v3669_v54, %s4153_s26  ;;  %v563_v54 = vld [vmem:[#allocation2 + $0xa0] sm:$0x3] }
  0x64   : > { %v674_v36 = vrot.slane %v563_v54, 1  ;;  %v763_v11 = vrot.slane %v563_v54, 2  ;;  %v615_v54 = vld [vmem:[#allocation2 + $0xe8] sm:$0x3] }
  0x65   : > { %v1176_v59 = vrot.slane %v615_v54, 1 }
  0x66   : > { %3685 = vrot.lane.b32.xlu1 %v3684_v52, %s4147_s20  ;;  %v679_v52 = vrot.slane %v566_v53, 1  ;;  %v764_v15 = vsel %vm729_vm3, %v4638_v13, %v763_v11 }
  0x67   : > { %3680 = vrot.lane.b32.xlu0 %v3679_v61, %s4147_s20  ;;  %v1250_v61 = vsel %vm729_vm3, %v4638_v13, %v1249_v51  ;;  %v3784_v13 = vpack.i.bf16 %v589_v22, %v588_v19  ;;  %v613_v51 = vld [vmem:[#allocation2 + $0xd8] sm:$0xff] }
  0x68   : > { %v3749_v60 = vpack.i.bf16 %v1250_v61, %v4656_v26  ;;  %v680_v6 = vsel %vm640_vm4, %v1164_v41, %v679_v52  ;;  %v3804_v41 = vpack.i.bf16 %v1017_v49, %v1015_v48 }
  0x69   : > { %v3764_v12 = vpack.i.bf16 %v680_v6, %v4681_v47  ;;  %v1173_v47 = vrot.slane %v613_v51, 1 }
  0x6a   : > { %3695 = vrot.lane.b32.xlu1 %v3694_v7, %s4146_s19  ;;  %v768_v7 = vrot.slane %v566_v53, 2  ;;  %v614_v53 = vld [vmem:[#allocation2 + $0xe0] sm:$0xff] }
  0x6b   : > { %3690 = vrot.lane.b32.xlu0 %v3689_v3, %s4146_s19  ;;  %v675_v3 = vsel %vm640_vm4, %v916_v8, %v674_v36  ;;  %v3814_v61 = vpack.i.bf16 %v614_v53, %v613_v51  ;;  %v1261_v36 = vrot.slane %v613_v51, 2 }
  0x6c   : > { %v3759_v63 = vpack.i.bf16 %v675_v3, %v4645_v14  ;;  %v925_v14 = vrot.slane %v588_v19, 1 }
  0x6e   : > { %3705 = vrot.lane.b32.xlu1 %v3704_v16, %s4148_s23 }
  0x6f   : > { %3700 = vrot.lane.b32.xlu0 %v3654_v29, %s4148_s23  ;;  %v3724_v29 = vpack.i.bf16 %v1007_v27, %v4656_v26  ;;  %v928_v27 = vrot.slane %v590_v21, 1 }
  0x72   : > { %3715 = vrot.lane.b32.xlu1 %v3714_v25, %s4149_s24  ;;  %v3769_v25 = vpack.i.bf16 %v764_v15, %v4656_v26 }
  0x73   : > { %3710 = vrot.lane.b32.xlu0 %v3709_v20, %s4149_s24  ;;  %v926_v20 = vrot.slane %v589_v22, 1 }
  0x76   : > { %3725 = vrot.lane.b32.xlu1 %v3724_v29, %s4150_s27  ;;  %v927_v29 = vsel %vm640_vm4, %v925_v14, %v926_v20 }
  0x77   : > { %3720 = vrot.lane.b32.xlu0 %v3719_v31, %s4150_s27  ;;  %v929_v31 = vsel %vm640_vm4, %v926_v20, %v928_v27 }
  0x78   : > { %v3794_v26 = vpack.i.bf16 %v929_v31, %v927_v29 }
  0x7a   : > { %3735 = vrot.lane.b32.xlu1 %v3734_v46, %s4151_s22 }
  0x7b   : > { %3730 = vrot.lane.b32.xlu0 %v3704_v16, %s4151_s22  ;;  %v769_v16 = vsel %vm729_vm3, %v4674_v45, %v768_v7  ;;  %v1264_v7 = vrot.slane %v615_v54, 2 }
  0x7c   : > { %v3774_v8 = vpack.i.bf16 %v769_v16, %v4691_v58 }
  0x7e   : > { %3745 = vrot.lane.b32.xlu1 %v3744_v55, %s4152_s25  ;;  %v612_v55 = vld [vmem:[#allocation2 + $0xd0] sm:$0x3] }
  0x7f   : > { %3740 = vrot.lane.b32.xlu0 %v3739_v57, %s4152_s25  ;;  %v1174_v57 = vrot.slane %v614_v53, 1  ;;  %v1171_v52 = vrot.slane %v612_v55, 1  ;;  %v1259_v11 = vrot.slane %v612_v55, 2 }
  0x81   : > { %v1177_v6 = vsel %vm640_vm4, %v1174_v57, %v1176_v59  ;;  %v1260_v22 = vsel %vm729_vm3, %v1014_v39, %v1259_v11 }
  0x82   : > { %3755 = vrot.lane.b32.xlu1 %v3754_v62, %s4153_s26  ;;  %v1262_v62 = vrot.slane %v614_v53, 2 }
  0x83   : > { %3750 = vrot.lane.b32.xlu0 %v3749_v60, %s4153_s26  ;;  %v1175_v60 = vsel %vm640_vm4, %v1173_v47, %v1174_v57 }
  0x84   : > { %v1263_v15 = vsel %vm729_vm3, %v1261_v36, %v1262_v62  ;;  %v1265_v19 = vsel %vm729_vm3, %v1262_v62, %v1264_v7 }
  0x85   : > { %v3834_v23 = vpack.i.bf16 %v1265_v19, %v1263_v15 }
  0x86   : > { %3765 = vrot.lane.b32.xlu1 %v3764_v12, %s4147_s20  ;;  %v3526_v45 = vpop.permute.xlu1 %3525  ;;  %v3824_v12 = vpack.i.bf16 %v1177_v6, %v1175_v60 }
  0x87   : > { %3760 = vrot.lane.b32.xlu0 %v3759_v63, %s4147_s20  ;;  %s4155_s20 = smov 96  }
  0x88   : > { %v3521_v3 = vpop.permute.xlu0 %3520 }
  0x89   : > { %v3523_v40 = vunpack.i.h.bf16 %v3521_v3 }
  0x8a   : > { %3775 = vrot.lane.b32.xlu1 %v3774_v8, %s4146_s19  ;;  %v3829_v8 = vpack.i.bf16 %v1260_v22, %v1015_v48 }
  0x8b   : > { %3770 = vrot.lane.b32.xlu0 %v3769_v25, %s4146_s19  ;;  %v1315_v49 = vsel %vm485_vm0, %v4362_v5, %v3523_v40 }
  0x8e   : > { %3785 = vrot.lane.b32.xlu1 %v3784_v13, %s4148_s23 }
  0x8f   : > { %3780 = vrot.lane.b32.xlu0 %v3734_v46, %s4148_s23  ;;  %v3799_v46 = vpack.i.bf16 %v1012_v50, %v4691_v58  ;;  %v1172_v58 = vsel %vm640_vm4, %v926_v20, %v1171_v52 }
  0x90   : > { %v3819_v16 = vpack.i.bf16 %v1172_v58, %v927_v29  ;;  %v3522_v29 = vunpack.i.l.bf16 %v3521_v3 }
  0x92   : > { %3795 = vrot.lane.b32.xlu1 %v3794_v26, %s4149_s24  ;;  %v3528_v26 = vunpack.i.h.bf16 %v3526_v45  ;;  %v1314_v50 = vsel %vm485_vm0, %v4360_v4, %v3522_v29 }
  0x93   : > { %3790 = vrot.lane.b32.xlu0 %v3789_v37, %s4149_s24  ;;  %v3527_v37 = vunpack.i.l.bf16 %v3526_v45 }
  0x94   : > { %v1332_v5 = vsel %vm1330_vm2, %v1315_v49, %v3528_v26 }
  0x96   : > { %3805 = vrot.lane.b32.xlu1 %v3804_v41, %s4150_s27 }
  0x97   : > { %3800 = vrot.lane.b32.xlu0 %v3799_v46, %s4150_s27  ;;  %v1331_v46 = vsel %vm1330_vm2, %v1314_v50, %v3527_v37 }
  0x9a   : > { %3815 = vrot.lane.b32.xlu1 %v3814_v61, %s4151_s22 }
  0x9b   : > { %3810 = vrot.lane.b32.xlu0 %v3784_v13, %s4151_s22  ;;  %v3536_v63 = vpop.permute.xlu1 %3535 }
  0x9c   : > { %v3538_v54 = vunpack.i.h.bf16 %v3536_v63  ;;  %v3537_v55 = vunpack.i.l.bf16 %v3536_v63 }
  0x9d   : > { %v3531_v21 = vpop.permute.xlu0 %3530 }
  0x9e   : > { %3825 = vrot.lane.b32.xlu1 %v3824_v12, %s4152_s25  ;;  %v3533_v51 = vunpack.i.h.bf16 %v3531_v21  ;;  %v3532_v53 = vunpack.i.l.bf16 %v3531_v21 }
  0x9f   : > { %3820 = vrot.lane.b32.xlu0 %v3819_v16, %s4152_s25 }
  0xa0   : > { %v3546_v25 = vpop.permute.xlu1 %3545  ;;  %v1349_v45 = vsel %vm1347_vm6, %v1332_v5, %v3533_v51  ;;  %v1348_v62 = vsel %vm1347_vm6, %v1331_v46, %v3532_v53 }
  0xa1   : > { %v3541_v20 = vpop.permute.xlu0 %3540  ;;  %v3548_v39 = vunpack.i.h.bf16 %v3546_v25  ;;  %v3547_v31 = vunpack.i.l.bf16 %v3546_v25 }
  0xa2   : > { %3835 = vrot.lane.b32.xlu1 %v3834_v23, %s4153_s26  ;;  %v3543_v14 = vunpack.i.h.bf16 %v3541_v20  ;;  %v3542_v27 = vunpack.i.l.bf16 %v3541_v20 }
  0xa3   : > { %3830 = vrot.lane.b32.xlu0 %v3829_v8, %s4153_s26 }
  0xa4   : > { %v3556_v30 = vpop.permute.xlu1 %3555  ;;  %v1317_v43 = vsel %vm485_vm0, %v4424_v42, %v3543_v14  ;;  %v1316_v44 = vsel %vm485_vm0, %v4407_v34, %v3542_v27 }
  0xa5   : > { %v3551_v13 = vpop.permute.xlu0 %3550  ;;  %v1334_v42 = vsel %vm1330_vm2, %v1317_v43, %v3548_v39  ;;  %v1333_v34 = vsel %vm1330_vm2, %v1316_v44, %v3547_v31  ;;  %v3558_v57 = vunpack.i.h.bf16 %v3556_v30  ;;  %v3557_v47 = vunpack.i.l.bf16 %v3556_v30 }
  0xa6   : > { %v1350_v59 = vsel %vm1347_vm6, %v1333_v34, %v3537_v55  ;;  %v1351_v52 = vsel %vm1347_vm6, %v1334_v42, %v3538_v54  ;;  %v3553_v61 = vunpack.i.h.bf16 %v3551_v13  ;;  %v3552_v36 = vunpack.i.l.bf16 %v3551_v13 }
  0xa7   : > { %v1367_v63 = vsel %vm1364_vm7, %v1350_v59, %v3557_v47  ;;  %v1368_v16 = vsel %vm1364_vm7, %v1351_v52, %v3558_v57 }
  0xa8   : > { %v3571_v28 = vpop.permute.xlu1 %3570  ;;  %v1366_v21 = vsel %vm1364_vm7, %v1349_v45, %v3553_v61  ;;  %v1365_v23 = vsel %vm1364_vm7, %v1348_v62, %v3552_v36 }
  0xa9   : > { %v3561_v48 = vpop.permute.xlu0 %3560  ;;  %v3573_v60 = vunpack.i.h.bf16 %v3571_v28  ;;  %v3572_v6 = vunpack.i.l.bf16 %v3571_v28 }
  0xaa   : > { %v3563_v7 = vunpack.i.h.bf16 %v3561_v48  ;;  %v3562_v3 = vunpack.i.l.bf16 %v3561_v48 }
  0xab   : > { %v1384_v20 = vsel %vm1381_vm8, %v1367_v63, %v3572_v6  ;;  %v1385_v14 = vsel %vm1381_vm8, %v1368_v16, %v3573_v60 }
  0xac   : > { %v3576_v41 = vpop.permute.xlu1 %3575  ;;  %v1382_v13 = vsel %vm1381_vm8, %v1365_v23, %v3562_v3  ;;  %v1383_v40 = vsel %vm1381_vm8, %v1366_v21, %v3563_v7 }
  0xad   : > { %v3566_v4 = vpop.permute.xlu0 %3565  ;;  %v3578_v58 = vunpack.i.h.bf16 %v3576_v41  ;;  %v3577_v11 = vunpack.i.l.bf16 %v3576_v41 }
  0xae   : > { %v3568_v15 = vunpack.i.h.bf16 %v3566_v4  ;;  %v3567_v19 = vunpack.i.l.bf16 %v3566_v4 }
  0xaf   : > { %v1401_v29 = vsel %vm1398_vm9, %v1384_v20, %v3577_v11  ;;  %v1402_v39 = vsel %vm1398_vm9, %v1385_v14, %v3578_v58 }
  0xb0   : > { %v3586_v12 = vpop.permute.xlu1 %3585  ;;  %v1399_v26 = vsel %vm1398_vm9, %v1382_v13, %v3567_v19  ;;  %v1400_v37 = vsel %vm1398_vm9, %v1383_v40, %v3568_v15 }
  0xb1   : > { %v3581_v22 = vpop.permute.xlu0 %3580  ;;  %v3588_v8 = vunpack.i.h.bf16 %v3586_v12  ;;  %v3587_v25 = vunpack.i.l.bf16 %v3586_v12 }
  0xb2   : > { %v3583_v27 = vunpack.i.h.bf16 %v3581_v22  ;;  %v3582_v30 = vunpack.i.l.bf16 %v3581_v22 }
  0xb3   : > { %v1418_v48 = vsel %vm1415_vm10, %v1401_v29, %v3587_v25  ;;  %v1419_v49 = vsel %vm1415_vm10, %v1402_v39, %v3588_v8 }
  0xb4   : > { %v3596_v31 = vpop.permute.xlu1 %3595  ;;  %v1416_v34 = vsel %vm1415_vm10, %v1399_v26, %v3582_v30  ;;  %v1417_v54 = vsel %vm1415_vm10, %v1400_v37, %v3583_v27 }
  0xb5   : > { %v3598_v43 = vunpack.i.h.bf16 %v3596_v31  ;;  %v3597_v44 = vunpack.i.l.bf16 %v3596_v31  ;;  %v3591_v28 = vpop.permute.xlu0 %3590 }
  0xb6   : > { %v3593_v50 = vunpack.i.h.bf16 %v3591_v28  ;;  %v3592_v51 = vunpack.i.l.bf16 %v3591_v28 }
  0xb7   : > { %v1435_v53 = vsel %vm1432_vm11, %v1418_v48, %v3597_v44  ;;  %v1436_v42 = vsel %vm1432_vm11, %v1419_v49, %v3598_v43 }
  0xb8   : > { %v3606_v55 = vpop.permute.xlu1 %3605  ;;  %v1433_v41 = vsel %vm1432_vm11, %v1416_v34, %v3592_v51  ;;  %v1434_v46 = vsel %vm1432_vm11, %v1417_v54, %v3593_v50  ;;  %v1450_v5 = vpack.c.bf16 %v1436_v42, %v1435_v53 }
  0xb9   : > { %v3601_v57 = vpop.permute.xlu0 %3600  ;;  %v1449_v47 = vpack.c.bf16 %v1434_v46, %v1433_v41  ;;  %v3608_v62 = vunpack.i.h.bf16 %v3606_v55  ;;  %v3607_v60 = vunpack.i.l.bf16 %v3606_v55 }
  0xba   : > { %v3603_v6 = vunpack.i.h.bf16 %v3601_v57  ;;  %v3602_v7 = vunpack.i.l.bf16 %v3601_v57 }
  0xbb   : > { %3445 = vmatprep.mubr.msk.bf16.mxu0 %vm1484_vm12, %v1449_v47  ;;  %v1321_v22 = vsel %vm485_vm0, %v4458_v10, %v3608_v62  ;;  %v1320_v21 = vsel %vm485_vm0, %v4456_v9, %v3607_v60 }
  0xbc   : > { %3446 = vmatmul.mubr.msk.bf16.vlgmr.msra.gmra.mrb[0].mxu0 %vm1484_vm12, %v1450_v5  ;;  %v3616_v4 = vpop.permute.xlu1 %3615  ;;  %v1319_v25 = vsel %vm485_vm0, %v4405_v33, %v3603_v6  ;;  %v1318_v20 = vsel %vm485_vm0, %v4403_v32, %v3602_v7 }
  0xbd   : > { %v3611_v59 = vpop.permute.xlu0 %3610  ;;  %v3618_v3 = vunpack.i.h.bf16 %v3616_v4  ;;  %v3617_v58 = vunpack.i.l.bf16 %v3616_v4 }
  0xbe   : > { %v3613_v12 = vunpack.i.h.bf16 %v3611_v59  ;;  %v3612_v63 = vunpack.i.l.bf16 %v3611_v59 }
  0xbf   : > { %v1337_v14 = vsel %vm1330_vm2, %v1320_v21, %v3617_v58  ;;  %v1338_v27 = vsel %vm1330_vm2, %v1321_v22, %v3618_v3 }
  0xc0   : > { %v3626_v52 = vpop.permute.xlu1 %3625  ;;  %v1335_v13 = vsel %vm1330_vm2, %v1318_v20, %v3612_v63  ;;  %v1336_v10 = vsel %vm1330_vm2, %v1319_v25, %v3613_v12 }
  0xc1   : > { %v3621_v61 = vpop.permute.xlu0 %3620  ;;  %v3628_v15 = vunpack.i.h.bf16 %v3626_v52  ;;  %v3627_v19 = vunpack.i.l.bf16 %v3626_v52 }
  0xc2   : > { %v3623_v23 = vunpack.i.h.bf16 %v3621_v61  ;;  %v3622_v8 = vunpack.i.l.bf16 %v3621_v61 }
  0xc3   : > { %v1354_v39 = vsel %vm1347_vm6, %v1337_v14, %v3627_v19  ;;  %v1355_v31 = vsel %vm1347_vm6, %v1338_v27, %v3628_v15 }
  0xc4   : > { %v3636_v36 = vpop.permute.xlu1 %3635  ;;  %v1352_v32 = vsel %vm1347_vm6, %v1335_v13, %v3622_v8  ;;  %v1353_v44 = vsel %vm1347_vm6, %v1336_v10, %v3623_v23 }
  0xc5   : > { %v3631_v45 = vpop.permute.xlu0 %3630  ;;  %v3638_v40 = vunpack.i.h.bf16 %v3636_v36  ;;  %v3637_v29 = vunpack.i.l.bf16 %v3636_v36 }
  0xc6   : > { %v3633_v33 = vunpack.i.h.bf16 %v3631_v45  ;;  %v3632_v43 = vunpack.i.l.bf16 %v3631_v45 }
  0xc7   : > { %v1371_v53 = vsel %vm1364_vm7, %v1354_v39, %v3637_v29  ;;  %v1372_v42 = vsel %vm1364_vm7, %v1355_v31, %v3638_v40 }
  0xc8   : > { %v3646_v11 = vpop.permute.xlu1 %3645  ;;  %v1369_v41 = vsel %vm1364_vm7, %v1352_v32, %v3632_v43  ;;  %v1370_v46 = vsel %vm1364_vm7, %v1353_v44, %v3633_v33 }
  0xc9   : > { %v3641_v16 = vpop.permute.xlu0 %3640  ;;  %v3648_v28 = vunpack.i.h.bf16 %v3646_v11  ;;  %v3647_v26 = vunpack.i.l.bf16 %v3646_v11 }
  0xca   : > { %v3643_v37 = vunpack.i.h.bf16 %v3641_v16  ;;  %v3642_v48 = vunpack.i.l.bf16 %v3641_v16 }
  0xcb   : > { %v1388_v47 = vsel %vm1381_vm8, %v1371_v53, %v3647_v26  ;;  %v1389_v4 = vsel %vm1381_vm8, %v1372_v42, %v3648_v28 }
  0xcc   : > { %v3656_v30 = vpop.permute.xlu1 %3655  ;;  %v1386_v61 = vsel %vm1381_vm8, %v1369_v41, %v3642_v48  ;;  %v1387_v36 = vsel %vm1381_vm8, %v1370_v46, %v3643_v37 }
  0xcd   : > { %v3651_v9 = vpop.permute.xlu0 %3650  ;;  %v3658_v49 = vunpack.i.h.bf16 %v3656_v30  ;;  %v3657_v50 = vunpack.i.l.bf16 %v3656_v30 }
  0xce   : > { %v3653_v34 = vunpack.i.h.bf16 %v3651_v9  ;;  %v3652_v54 = vunpack.i.l.bf16 %v3651_v9 }
  0xcf   : > { %v1405_v45 = vsel %vm1398_vm9, %v1388_v47, %v3657_v50  ;;  %v1406_v62 = vsel %vm1398_vm9, %v1389_v4, %v3658_v49 }
  0xd0   : > { %v3666_v51 = vpop.permute.xlu1 %3665  ;;  %v1403_v6 = vsel %vm1398_vm9, %v1386_v61, %v3652_v54  ;;  %v1404_v7 = vsel %vm1398_vm9, %v1387_v36, %v3653_v34 }
  0xd1   : > { %v3661_v55 = vpop.permute.xlu0 %3660  ;;  %v3668_v5 = vunpack.i.h.bf16 %v3666_v51  ;;  %v3667_v57 = vunpack.i.l.bf16 %v3666_v51 }
  0xd2   : > { %v3663_v59 = vunpack.i.h.bf16 %v3661_v55  ;;  %v3662_v52 = vunpack.i.l.bf16 %v3661_v55 }
  0xd3   : > { %v1422_v12 = vsel %vm1415_vm10, %v1405_v45, %v3667_v57  ;;  %v1423_v63 = vsel %vm1415_vm10, %v1406_v62, %v3668_v5 }
  0xd4   : > { %v3676_v60 = vpop.permute.xlu1 %3675  ;;  %v1420_v19 = vsel %vm1415_vm10, %v1403_v6, %v3662_v52  ;;  %v1421_v22 = vsel %vm1415_vm10, %v1404_v7, %v3663_v59 }
  0xd5   : > { %v3678_v3 = vunpack.i.h.bf16 %v3676_v60  ;;  %v3677_v58 = vunpack.i.l.bf16 %v3676_v60  ;;  %v3671_v11 = vpop.permute.xlu0 %3670 }
  0xd6   : > { %v3673_v16 = vunpack.i.h.bf16 %v3671_v11  ;;  %v3672_v15 = vunpack.i.l.bf16 %v3671_v11 }
  0xd7   : > { %v1439_v21 = vsel %vm1432_vm11, %v1422_v12, %v3677_v58  ;;  %v1440_v23 = vsel %vm1432_vm11, %v1423_v63, %v3678_v3 }
  0xd8   : > { %v1452_v8 = vpack.c.bf16 %v1440_v23, %v1439_v21  ;;  %v1437_v25 = vsel %vm1432_vm11, %v1420_v19, %v3672_v15  ;;  %v1438_v20 = vsel %vm1432_vm11, %v1421_v22, %v3673_v16  ;;  %v3686_v14 = vpop.permute.xlu1 %3685 }
  0xd9   : > { %v1451_v27 = vpack.c.bf16 %v1438_v20, %v1437_v25  ;;  %v3681_v30 = vpop.permute.xlu0 %3680  ;;  %v3688_v31 = vunpack.i.h.bf16 %v3686_v14  ;;  %v3687_v33 = vunpack.i.l.bf16 %v3686_v14 }
  0xda   : > { %v3683_v43 = vunpack.i.h.bf16 %v3681_v30  ;;  %v3682_v32 = vunpack.i.l.bf16 %v3681_v30 }
  0xdb   : > { %3449 = vmatprep.mubr.msk.bf16.mxu0 %vm1484_vm12, %v1451_v27  ;;  %v1325_v53 = vsel %vm485_vm0, %v4567_v18, %v3688_v31  ;;  %v1324_v42 = vsel %vm485_vm0, %v4565_v17, %v3687_v33 }
  0xdc   : > { %3450 = vmatmul.mubr.msk.bf16.gmra.mrb[4].mxu0 %vm1484_vm12, %v1452_v8  ;;  %v3696_v13 = vpop.permute.xlu1 %3695  ;;  %v1323_v55 = vsel %vm485_vm0, %v4526_v35, %v3683_v43  ;;  %v1322_v41 = vsel %vm485_vm0, %v4524_v56, %v3682_v32 }
  0xdd   : > { %v3691_v10 = vpop.permute.xlu0 %3690  ;;  %v3698_v44 = vunpack.i.h.bf16 %v3696_v13  ;;  %v3697_v28 = vunpack.i.l.bf16 %v3696_v13 }
  0xde   : > { %v3693_v37 = vunpack.i.h.bf16 %v3691_v10  ;;  %v3692_v48 = vunpack.i.l.bf16 %v3691_v10 }
  0xdf   : > { %v1341_v46 = vsel %vm1330_vm2, %v1324_v42, %v3697_v28  ;;  %v1342_v5 = vsel %vm1330_vm2, %v1325_v53, %v3698_v44 }
  0xe0   : > { %v3706_v40 = vpop.permute.xlu1 %3705  ;;  %v1339_v47 = vsel %vm1330_vm2, %v1322_v41, %v3692_v48  ;;  %v1340_v18 = vsel %vm1330_vm2, %v1323_v55, %v3693_v37 }
  0xe1   : > { %v3701_v29 = vpop.permute.xlu0 %3700  ;;  %v3708_v50 = vunpack.i.h.bf16 %v3706_v40  ;;  %v3707_v51 = vunpack.i.l.bf16 %v3706_v40 }
  0xe2   : > { %v3703_v34 = vunpack.i.h.bf16 %v3701_v29  ;;  %v3702_v54 = vunpack.i.l.bf16 %v3701_v29 }
  0xe3   : > { %v1358_v52 = vsel %vm1347_vm6, %v1341_v46, %v3707_v51  ;;  %v1359_v61 = vsel %vm1347_vm6, %v1342_v5, %v3708_v50 }
  0xe4   : > { %v3716_v9 = vpop.permute.xlu1 %3715  ;;  %v1356_v56 = vsel %vm1347_vm6, %v1339_v47, %v3702_v54  ;;  %v1357_v45 = vsel %vm1347_vm6, %v1340_v18, %v3703_v34 }
  0xe5   : > { %v3711_v39 = vpop.permute.xlu0 %3710  ;;  %v3718_v4 = vunpack.i.h.bf16 %v3716_v9  ;;  %v3717_v59 = vunpack.i.l.bf16 %v3716_v9 }
  0xe6   : > { %v3713_v35 = vunpack.i.h.bf16 %v3711_v39  ;;  %v3712_v36 = vunpack.i.l.bf16 %v3711_v39 }
  0xe7   : > { %v1375_v12 = vsel %vm1364_vm7, %v1358_v52, %v3717_v59  ;;  %v1376_v63 = vsel %vm1364_vm7, %v1359_v61, %v3718_v4 }
  0xe8   : > { %v3726_v26 = vpop.permute.xlu1 %3725  ;;  %v1373_v22 = vsel %vm1364_vm7, %v1356_v56, %v3712_v36  ;;  %v1374_v21 = vsel %vm1364_vm7, %v1357_v45, %v3713_v35 }
  0xe9   : > { %v3721_v49 = vpop.permute.xlu0 %3720  ;;  %v3728_v62 = vunpack.i.h.bf16 %v3726_v26  ;;  %v3727_v60 = vunpack.i.l.bf16 %v3726_v26 }
  0xea   : > { %v3723_v6 = vunpack.i.h.bf16 %v3721_v49  ;;  %v3722_v7 = vunpack.i.l.bf16 %v3721_v49 }
  0xeb   : > { %v1392_v25 = vsel %vm1381_vm8, %v1375_v12, %v3727_v60  ;;  %v1393_v20 = vsel %vm1381_vm8, %v1376_v63, %v3728_v62 }
  0xec   : > { %v3736_v57 = vpop.permute.xlu1 %3735  ;;  %v1390_v30 = vsel %vm1381_vm8, %v1373_v22, %v3722_v7  ;;  %v1391_v13 = vsel %vm1381_vm8, %v1374_v21, %v3723_v6 }
  0xed   : > { %v3731_v17 = vpop.permute.xlu0 %3730  ;;  %v3738_v3 = vunpack.i.h.bf16 %v3736_v57  ;;  %v3737_v58 = vunpack.i.l.bf16 %v3736_v57 }
  0xee   : > { %v3733_v16 = vunpack.i.h.bf16 %v3731_v17  ;;  %v3732_v15 = vunpack.i.l.bf16 %v3731_v17 }
  0xef   : > { %v1409_v10 = vsel %vm1398_vm9, %v1392_v25, %v3737_v58  ;;  %v1410_v40 = vsel %vm1398_vm9, %v1393_v20, %v3738_v3 }
  0xf0   : > { %v3746_v11 = vpop.permute.xlu1 %3745  ;;  %v1407_v9 = vsel %vm1398_vm9, %v1390_v30, %v3732_v15  ;;  %v1408_v39 = vsel %vm1398_vm9, %v1391_v13, %v3733_v16 }
  0xf1   : > { %v3741_v19 = vpop.permute.xlu0 %3740  ;;  %v3748_v23 = vunpack.i.h.bf16 %v3746_v11  ;;  %v3747_v8 = vunpack.i.l.bf16 %v3746_v11 }
  0xf2   : > { %v3743_v14 = vunpack.i.h.bf16 %v3741_v19  ;;  %v3742_v27 = vunpack.i.l.bf16 %v3741_v19 }
  0xf3   : > { %v1426_v32 = vsel %vm1415_vm10, %v1409_v10, %v3747_v8  ;;  %v1427_v44 = vsel %vm1415_vm10, %v1410_v40, %v3748_v23 }
  0xf4   : > { %v3756_v29 = vpop.permute.xlu1 %3755  ;;  %v1424_v37 = vsel %vm1415_vm10, %v1407_v9, %v3742_v27  ;;  %v1425_v48 = vsel %vm1415_vm10, %v1408_v39, %v3743_v14 }
  0xf5   : > { %v3758_v31 = vunpack.i.h.bf16 %v3756_v29  ;;  %v3757_v33 = vunpack.i.l.bf16 %v3756_v29  ;;  %v3751_v43 = vpop.permute.xlu0 %3750 }
  0xf6   : > { %v3753_v28 = vunpack.i.h.bf16 %v3751_v43  ;;  %v3752_v26 = vunpack.i.l.bf16 %v3751_v43 }
  0xf7   : > { %v1443_v49 = vsel %vm1432_vm11, %v1426_v32, %v3757_v33  ;;  %v1444_v50 = vsel %vm1432_vm11, %v1427_v44, %v3758_v31 }
  0xf8   : > { %v1454_v51 = vpack.c.bf16 %v1444_v50, %v1443_v49  ;;  %v1441_v53 = vsel %vm1432_vm11, %v1424_v37, %v3752_v26  ;;  %v1442_v42 = vsel %vm1432_vm11, %v1425_v48, %v3753_v28  ;;  %v3766_v34 = vpop.permute.xlu1 %3765 }
  0xf9   : > { %v1453_v54 = vpack.c.bf16 %v1442_v42, %v1441_v53  ;;  %v3761_v55 = vpop.permute.xlu0 %3760  ;;  %v3768_v4 = vunpack.i.h.bf16 %v3766_v34  ;;  %v3767_v59 = vunpack.i.l.bf16 %v3766_v34 }
  0xfa   : > { %v3762_v17 = vunpack.i.l.bf16 %v3761_v55  ;;  %v3763_v52 = vunpack.i.h.bf16 %v3761_v55 }
  0xfb   : > { %3453 = vmatprep.mubr.msk.bf16.mxu0 %vm1484_vm12, %v1453_v54  ;;  %v1329_v3 = vsel %vm485_vm0, %v4664_v38, %v3768_v4  ;;  %v1328_v58 = vsel %vm485_vm0, %v4662_v24, %v3767_v59 }
  0xfc   : > { %3454 = vmatmul.mubr.msk.bf16.gmra.mrb[8].mxu0 %vm1484_vm12, %v1454_v51  ;;  %v3776_v41 = vpop.permute.xlu1 %3775  ;;  %v1326_v11 = vsel %vm485_vm0, %v4626_v1, %v3762_v17  ;;  %v1327_v63 = vsel %vm485_vm0, %v4628_v2, %v3763_v52 }
  0xfd   : > { %v3771_v46 = vpop.permute.xlu0 %3770  ;;  %v3778_v61 = vunpack.i.h.bf16 %v3776_v41  ;;  %v3777_v35 = vunpack.i.l.bf16 %v3776_v41 }
  0xfe   : > { %v3772_v36 = vunpack.i.l.bf16 %v3771_v46  ;;  %v3773_v45 = vunpack.i.h.bf16 %v3771_v46 }
  0xff   : > { %v1345_v16 = vsel %vm1330_vm2, %v1328_v58, %v3777_v35  ;;  %v1346_v15 = vsel %vm1330_vm2, %v1329_v3, %v3778_v61 }
 0x100   : > { %v3786_v5 = vpop.permute.xlu1 %3785  ;;  %v1343_v19 = vsel %vm1330_vm2, %v1326_v11, %v3772_v36  ;;  %v1344_v21 = vsel %vm1330_vm2, %v1327_v63, %v3773_v45 }
 0x101   : > { %v3781_v57 = vpop.permute.xlu0 %3780  ;;  %v3787_v62 = vunpack.i.l.bf16 %v3786_v5  ;;  %v3788_v6 = vunpack.i.h.bf16 %v3786_v5 }
 0x102   : > { %v3782_v7 = vunpack.i.l.bf16 %v3781_v57  ;;  %v3783_v12 = vunpack.i.h.bf16 %v3781_v57 }
 0x103   : > { %v1362_v38 = vsel %vm1347_vm6, %v1345_v16, %v3787_v62  ;;  %v1363_v1 = vsel %vm1347_vm6, %v1346_v15, %v3788_v6  ;;  %v4906_v6 = vld [vmem:[#allocation3 + $0x8] sm:$0xff] }
 0x104   : > { %v3796_v47 = vpop.permute.xlu1 %3795  ;;  %v1360_v25 = vsel %vm1347_vm6, %v1343_v19, %v3782_v7  ;;  %v1361_v14 = vsel %vm1347_vm6, %v1344_v21, %v3783_v12  ;;  %v1740_v7 = vld [vmem:[#allocation3 + $0x10] sm:$0x3]  ;;  %v1924_v11 = vrot.slane %v4906_v6, 2  ;;  %v1836_v16 = vrot.slane %v4906_v6, 1 }
 0x105   : > { %v3791_v18 = vpop.permute.xlu0 %3790  ;;  %v3798_v23 = vunpack.i.h.bf16 %v3796_v47  ;;  %v3797_v24 = vunpack.i.l.bf16 %v3796_v47  ;;  %v1926_v12 = vrot.slane %v1740_v7, 2  ;;  %v1838_v15 = vrot.slane %v1740_v7, 1  ;;  %v4130_v7 = vld [vmem:[%s5774_s4 + $0x30] sm:$0xff]  }
 0x106   : > { %v3793_v20 = vunpack.i.h.bf16 %v3791_v18  ;;  %v3792_v2 = vunpack.i.l.bf16 %v3791_v18  ;;  %vm2945_vm6 = vcmask 15360  }
 0x107   : > { %v1379_v39 = vsel %vm1364_vm7, %v1362_v38, %v3797_v24  ;;  %v1380_v31 = vsel %vm1364_vm7, %v1363_v1, %v3798_v23  ;;  %v1839_v23 = vsel %vm640_vm4, %v1836_v16, %v1838_v15  ;;  %v4154_v1 = vmov 0  }
 0x108   : > { %v3806_v56 = vpop.permute.xlu1 %3805  ;;  %v1377_v44 = vsel %vm1364_vm7, %v1360_v25, %v3792_v2  ;;  %v1378_v28 = vsel %vm1364_vm7, %v1361_v14, %v3793_v20  ;;  %2684 = vmatprep.subr.bf16.mxu1 %v4154_v1  ;;  %v4125_v25 = vld [vmem:[%s5774_s4 + $0x8] sm:$0xff]   ;;  %v4932_v2 = vld [vmem:[%s5772_s2] ss:$0 sm:$0xff]  ;;  %v4126_v14 = vld [vmem:[%s5774_s4 + $0x10] sm:$0xff]  }
 0x109   : > { %v3801_v60 = vpop.permute.xlu0 %3800  ;;  %v3808_v27 = vunpack.i.h.bf16 %v3806_v56  ;;  %v3807_v30 = vunpack.i.l.bf16 %v3806_v56 }
 0x10a   : > { %v3803_v13 = vunpack.i.h.bf16 %v3801_v60  ;;  %v3802_v10 = vunpack.i.l.bf16 %v3801_v60  ;;  %v4904_v60 = vld [vmem:[#allocation3] sm:$0xff] }
 0x10b   : > { %v1396_v48 = vsel %vm1381_vm8, %v1379_v39, %v3807_v30  ;;  %v1397_v49 = vsel %vm1381_vm8, %v1380_v31, %v3808_v27  ;;  %v1923_v58 = vrot.slane %v4904_v60, 2  ;;  %v1835_v63 = vrot.slane %v4904_v60, 1 }
 0x10c   : > { %v3816_v22 = vpop.permute.xlu1 %3815  ;;  %v1394_v53 = vsel %vm1381_vm8, %v1377_v44, %v3802_v10  ;;  %v1395_v42 = vsel %vm1381_vm8, %v1378_v28, %v3803_v13  ;;  %v4940_v13 = vld [vmem:[%s5773_s3] ss:$0 sm:$0xff] }
 0x10d   : > { %v3811_v8 = vpop.permute.xlu0 %3810  ;;  %v3818_v40 = vunpack.i.h.bf16 %v3816_v22  ;;  %v3817_v29 = vunpack.i.l.bf16 %v3816_v22  ;;  %v1925_v19 = vsel %vm729_vm3, %v1923_v58, %v1924_v11  ;;  %v1927_v22 = vsel %vm729_vm3, %v1924_v11, %v1926_v12 }
 0x10e   : > { %v3813_v33 = vunpack.i.h.bf16 %v3811_v8  ;;  %v3812_v43 = vunpack.i.l.bf16 %v3811_v8  ;;  %v3844_v21 = vpack.i.bf16 %v1927_v22, %v1925_v19  ;;  %v1837_v38 = vsel %vm640_vm4, %v1835_v63, %v1836_v16  ;;  %v4124_v8 = vld [vmem:[%s5774_s4] sm:$0xff]   ;;  %v4131_v19 = vld [vmem:[%s5774_s4 + $0x38] sm:$0xff]  }
 0x10f   : > { %v1413_v34 = vsel %vm1398_vm9, %v1396_v48, %v3817_v29  ;;  %v1414_v54 = vsel %vm1398_vm9, %v1397_v49, %v3818_v40  ;;  %v3839_v24 = vpack.i.bf16 %v1839_v23, %v1837_v38  ;;  %2685 = vmatpush1.bf16.msra.mxu1 %v4124_v8  ;;  %v4127_v48 = vld [vmem:[%s5774_s4 + $0x18] sm:$0xff]   ;;  %v4128_v49 = vld [vmem:[%s5774_s4 + $0x20] sm:$0xff]  }
 0x110   : > { %v3826_v9 = vpop.permute.xlu1 %3825  ;;  %v1411_v41 = vsel %vm1398_vm9, %v1394_v53, %v3812_v43  ;;  %v1412_v46 = vsel %vm1398_vm9, %v1395_v42, %v3813_v33  ;;  %3845 = vrot.lane.b32.xlu1 %v3844_v21, %s4149_s24  ;;  %2686 = vmatprep.subr.bf16.mxu1 %v4154_v1 }
 0x111   : > { %v3821_v32 = vpop.permute.xlu0 %3820  ;;  %v3828_v26 = vunpack.i.h.bf16 %v3826_v9  ;;  %v3827_v37 = vunpack.i.l.bf16 %v3826_v9  ;;  %3840 = vrot.lane.b32.xlu0 %v3839_v24, %s4146_s19 }
 0x112   : > { %v3823_v50 = vunpack.i.h.bf16 %v3821_v32  ;;  %v3822_v51 = vunpack.i.l.bf16 %v3821_v32 }
 0x113   : > { %v1430_v18 = vsel %vm1415_vm10, %v1413_v34, %v3827_v37  ;;  %v1431_v4 = vsel %vm1415_vm10, %v1414_v54, %v3828_v26  ;;  %2687 = vmatpush1.bf16.msra.mxu1 %v4125_v25 }
 0x114   : > { %v3836_v55 = vpop.permute.xlu1 %3835  ;;  %v1428_v52 = vsel %vm1415_vm10, %v1411_v41, %v3822_v51  ;;  %v1429_v61 = vsel %vm1415_vm10, %v1412_v46, %v3823_v50  ;;  %2688 = vmatprep.subr.bf16.mxu1 %v4154_v1  ;;  %v4129_v51 = vld [vmem:[%s5774_s4 + $0x28] sm:$0xff]  }
 0x115   : > { %v3838_v5 = vunpack.i.h.bf16 %v3836_v55  ;;  %v3837_v57 = vunpack.i.l.bf16 %v3836_v55  ;;  %v3831_v47 = vpop.permute.xlu0 %3830 }
 0x116   : > { %v3833_v59 = vunpack.i.h.bf16 %v3831_v47  ;;  %v3832_v17 = vunpack.i.l.bf16 %v3831_v47 }
 0x117   : > { %v1447_v35 = vsel %vm1432_vm11, %v1430_v18, %v3837_v57  ;;  %v1448_v36 = vsel %vm1432_vm11, %v1431_v4, %v3838_v5  ;;  %2689 = vmatpush1.bf16.msra.mxu1 %v4126_v14 }
 0x118   : > { %v1456_v56 = vpack.c.bf16 %v1448_v36, %v1447_v35  ;;  %v1445_v45 = vsel %vm1432_vm11, %v1428_v52, %v3832_v17  ;;  %v1446_v62 = vsel %vm1432_vm11, %v1429_v61, %v3833_v59  ;;  %2690 = vmatprep.subr.bf16.mxu1 %v4154_v1 }
 0x119   : > { %v1455_v3 = vpack.c.bf16 %v1446_v62, %v1445_v45 }
 0x11b   : > { %3457 = vmatprep.mubr.msk.bf16.mxu0 %vm1484_vm12, %v1455_v3  ;;  %2691 = vmatpush1.bf16.msra.mxu1 %v4127_v48 }
 0x11c   : > { %3458 = vmatmul.mubr.msk.bf16.gmra.mrb[12].mxu0 %vm1484_vm12, %v1456_v56  ;;  %2692 = vmatprep.subr.bf16.mxu1 %v4154_v1 }
 0x11f   : > { %2693 = vmatpush1.bf16.msra.mxu1 %v4128_v49 }
 0x120   : > { %2694 = vmatprep.subr.bf16.mxu1 %v4154_v1 }
 0x123   : > { %2695 = vmatpush1.bf16.msra.mxu1 %v4129_v51 }
 0x124   : > { %2696 = vmatprep.subr.bf16.mxu1 %v4154_v1 }
 0x127   : > { %2697 = vmatpush1.bf16.msra.mxu1 %v4130_v7 }
 0x128   : > { %2698 = vmatprep.subr.bf16.mxu1 %v4154_v1 }
 0x12b   : > { %2699 = vmatpush1.bf16.msra.mxu1 %v4131_v19 }
 0x12c   : > { %2700 = vmatprep.subr.bf16.mxu1 %v4154_v1 }
 0x18f   : > { %v3447_v20 = vpop.f32.mrb[0].mxu0 }
 0x190   : > { %v1612_v27 = vmax.f32 %v3447_v20, 0.0  ;;  %v1547_v30 = vpop.f32.mrb[1].mxu0 }
 0x191   : > { %v1610_v10 = vmax.f32 %v1547_v30, 0.0  ;;  %v3448_v40 = vpop.f32.mrb[2].mxu0 }
 0x192   : > { %v1635_v29 = vmul.f32 %v4932_v2, %v1612_v27  ;;  %v1613_v9 = vmax.f32 %v3448_v40, 0.0  ;;  %v1550_v39 = vpop.f32.mrb[3].mxu0 }
 0x193   : > { %v1633_v31 = vmul.f32 %v4932_v2, %v1610_v10  ;;  %v1611_v33 = vmax.f32 %v1550_v39, 0.0  ;;  %v4132_v39 = vld [vmem:[%s5774_s4 + $0x40] sm:$0xff]  }
 0x194   : > { %v1658_v43 = vadd.f32 %v4940_v13, %v1635_v29  ;;  %v1636_v32 = vmul.f32 %v4932_v2, %v1613_v9  ;;  %2701 = vmatpush1.bf16.msra.mxu1 %v4132_v39 }
 0x195   : > { %v1656_v44 = vadd.f32 %v4940_v13, %v1633_v31  ;;  %v1634_v28 = vmul.f32 %v4932_v2, %v1611_v33 }
 0x196   : > { %1706 = vst.msk [vmem:[#allocation3 + $0x31] sm:$0xff] %vm1330_vm2, %v1658_v43  ;;  %v1659_v26 = vadd.f32 %v4940_v13, %v1636_v32 }
 0x197   : > { %1704 = vst.msk [vmem:[#allocation3 + $0x19] sm:$0xff] %vm1330_vm2, %v1656_v44  ;;  %v1657_v37 = vadd.f32 %v4940_v13, %v1634_v28 }
 0x198   : > { %1707 = vst.msk [vmem:[#allocation3 + $0x39] sm:$0xff] %vm1330_vm2, %v1659_v26 }
 0x199   : > { %1705 = vst.msk [vmem:[#allocation3 + $0x21] sm:$0xff] %vm1330_vm2, %v1657_v37 }
 0x19d   : > { %v4962_v50 = vld [vmem:[#allocation3 + $0x30] sm:$0xff] }
 0x19e   : > { %v2331_v42 = vrot.slane %v4962_v50, 1  ;;  %v4970_v34 = vld [vmem:[#allocation3 + $0x18] sm:$0xff]  ;;  %v2419_v55 = vrot.slane %v4962_v50, 2 }
 0x19f   : > { %v4967_v53 = vld [vmem:[#allocation3 + $0x38] sm:$0xff]  ;;  %v1789_v54 = vld [vmem:[#allocation3 + $0x40] sm:$0x3]  ;;  %v2083_v14 = vrot.slane %v4970_v34, 1  ;;  %v2171_v27 = vrot.slane %v4970_v34, 2 }
 0x1a0   : > { %v3849_v41 = vpack.i.bf16 %v4967_v53, %v4962_v50  ;;  %v2332_v46 = vrot.slane %v4967_v53, 1  ;;  %v4977_v5 = vld [vmem:[#allocation3 + $0x20] sm:$0xff]  ;;  %v2334_v57 = vrot.slane %v1789_v54, 1  ;;  %v2420_v47 = vrot.slane %v4967_v53, 2  ;;  %v1764_v16 = vld [vmem:[#allocation3 + $0x28] sm:$0x3] }
 0x1a1   : > { %v1767_v18 = vld [vmem:[#allocation3 + $0x40] sm:$0x3]  ;;  %v3859_v4 = vpack.i.bf16 %v4977_v5, %v4970_v34  ;;  %v2422_v59 = vrot.slane %v1789_v54, 2  ;;  %v2084_v22 = vrot.slane %v4977_v5, 1  ;;  %v2086_v23 = vrot.slane %v1764_v16, 1 }
 0x1a2   : > { %3850 = vrot.lane.b32.xlu1 %v3849_v41, %s4155_s20  ;;  %v2421_v17 = vsel %vm729_vm3, %v2419_v55, %v2420_v47  ;;  %v2333_v52 = vsel %vm640_vm4, %v2331_v42, %v2332_v46  ;;  %v2335_v61 = vsel %vm640_vm4, %v2332_v46, %v2334_v57  ;;  %v2179_v35 = vrot.slane %v1767_v18, 2  ;;  %v1746_v36 = vld [vmem:[#allocation3 + $0x40] sm:$0x3]  ;;  %v1743_v20 = vld [vmem:[#allocation3 + $0x28] sm:$0x3] }
 0x1a3   : > { %3860 = vrot.lane.b32.xlu0 %v3859_v4, %s4151_s22  ;;  %v2423_v56 = vsel %vm729_vm3, %v2420_v47, %v2422_v59  ;;  %v2091_v45 = vrot.slane %v1767_v18, 1  ;;  %v3864_v3 = vpack.i.bf16 %v2335_v61, %v2333_v52  ;;  %v1936_v11 = vrot.slane %v1746_v36, 2 }
 0x1a4   : > { %v2591_v62 = vpack.c.bf16 %v2423_v56, %v2421_v17  ;;  %v2180_v58 = vsel %vm729_vm3, %v2420_v47, %v2179_v35  ;;  %v1848_v63 = vrot.slane %v1746_v36, 1  ;;  %v2172_v24 = vrot.slane %v4977_v5, 2 }
 0x1a5   : > { %v2092_v12 = vsel %vm640_vm4, %v2332_v46, %v2091_v45  ;;  %v3874_v15 = vpack.i.bf16 %v2180_v58, %v2421_v17  ;;  %v1937_v38 = vsel %vm729_vm3, %v2420_v47, %v1936_v11  ;;  %v2174_v25 = vrot.slane %v1764_v16, 2 }
 0x1a6   : > { %3380 = vmatprep.mubr.msk.bf16.mxu1 %vm1330_vm2, %v2591_v62  ;;  %3855 = vrot.lane.b32.xlu1 %v3849_v41, %s4151_s22  ;;  %v3869_v21 = vpack.i.bf16 %v2092_v12, %v2333_v52  ;;  %v1849_v8 = vsel %vm640_vm4, %v2332_v46, %v1848_v63  ;;  %v3884_v30 = vpack.i.bf16 %v1937_v38, %v2421_v17  ;;  %v1843_v9 = vrot.slane %v1743_v20, 1 }
 0x1a7   : > { %3865 = vrot.lane.b32.xlu0 %v3864_v3, %s4156_s17  ;;  %v3879_v10 = vpack.i.bf16 %v1849_v8, %v2333_v52  ;;  %v2085_v40 = vsel %vm640_vm4, %v2083_v14, %v2084_v22  ;;  %v2087_v29 = vsel %vm640_vm4, %v2084_v22, %v2086_v23  ;;  %v2173_v31 = vsel %vm729_vm3, %v2171_v27, %v2172_v24 }
 0x1a8   : > { %v2175_v33 = vsel %vm729_vm3, %v2172_v24, %v2174_v25  ;;  %v1931_v43 = vrot.slane %v1743_v20, 2  ;;  %v3889_v28 = vpack.i.bf16 %v2087_v29, %v2085_v40  ;;  %v1844_v49 = vsel %vm640_vm4, %v2084_v22, %v1843_v9 }
 0x1a9   : > { %v3894_v48 = vpack.i.bf16 %v2175_v33, %v2173_v31  ;;  %v3899_v18 = vpack.i.bf16 %v1844_v49, %v2085_v40 }
 0x1aa   : > { %3875 = vrot.lane.b32.xlu1 %v3874_v15, %s4157_s28  ;;  %v1932_v55 = vsel %vm729_vm3, %v2172_v24, %v1931_v43 }
 0x1ab   : > { %3870 = vrot.lane.b32.xlu0 %v3869_v21, %s4153_s26  ;;  %v3904_v17 = vpack.i.bf16 %v1932_v55, %v2173_v31 }
 0x1ae   : > { %3885 = vrot.lane.b32.xlu1 %v3884_v30, %s4149_s24 }
 0x1af   : > { %3880 = vrot.lane.b32.xlu0 %v3879_v10, %s4146_s19  ;;  %v3451_v1 = vpop.f32.mrb[4].mxu0 }
 0x1b0   : > { %v1616_v32 = vmax.f32 %v3451_v1, 0.0  ;;  %v1563_v44 = vpop.f32.mrb[5].mxu0 }
 0x1b1   : > { %v1614_v26 = vmax.f32 %v1563_v44, 0.0  ;;  %v3452_v37 = vpop.f32.mrb[6].mxu0 }
 0x1b2   : > { %v1639_v51 = vmul.f32 %v4932_v2, %v1616_v32  ;;  %v1617_v42 = vmax.f32 %v3452_v37, 0.0  ;;  %3890 = vrot.lane.b32.xlu1 %v3889_v28, %s4153_s26  ;;  %v1566_v54 = vpop.f32.mrb[7].mxu0 }
 0x1b3   : > { %v1637_v41 = vmul.f32 %v4932_v2, %v1614_v26  ;;  %v1615_v46 = vmax.f32 %v1566_v54, 0.0  ;;  %3895 = vrot.lane.b32.xlu0 %v3894_v48, %s4157_s28 }
 0x1b4   : > { %v1662_v57 = vadd.f32 %v4940_v13, %v1639_v51  ;;  %v1640_v47 = vmul.f32 %v4932_v2, %v1617_v42 }
 0x1b5   : > { %v1660_v4 = vadd.f32 %v4940_v13, %v1637_v41  ;;  %v1638_v59 = vmul.f32 %v4932_v2, %v1615_v46 }
 0x1b6   : > { %1710 = vst.msk [vmem:[#allocation3 + $0x61] sm:$0xff] %vm1330_vm2, %v1662_v57  ;;  %v1663_v52 = vadd.f32 %v4940_v13, %v1640_v47  ;;  %3900 = vrot.lane.b32.xlu1 %v3899_v18, %s4146_s19 }
 0x1b7   : > { %1708 = vst.msk [vmem:[#allocation3 + $0x49] sm:$0xff] %vm1330_vm2, %v1660_v4  ;;  %v1661_v61 = vadd.f32 %v4940_v13, %v1638_v59  ;;  %3905 = vrot.lane.b32.xlu0 %v3904_v17, %s4149_s24 }
 0x1b8   : > { %1711 = vst.msk [vmem:[#allocation3 + $0x69] sm:$0xff] %vm1330_vm2, %v1663_v52 }
 0x1b9   : > { %1709 = vst.msk [vmem:[#allocation3 + $0x51] sm:$0xff] %vm1330_vm2, %v1661_v61 }
 0x1bd   : > { %v5037_v35 = vld [vmem:[#allocation3 + $0x60] sm:$0xff] }
 0x1be   : > { %v5044_v7 = vld [vmem:[#allocation3 + $0x48] sm:$0xff]  ;;  %v2429_v15 = vrot.slane %v5037_v35, 2  ;;  %v2341_v21 = vrot.slane %v5037_v35, 1 }
 0x1bf   : > { %v5039_v36 = vld [vmem:[#allocation3 + $0x68] sm:$0xff]  ;;  %v1773_v56 = vld [vmem:[#allocation3 + $0x70] sm:$0x3]  ;;  %v2424_v30 = vrot.slane %v5044_v7, 2  ;;  %v2336_v26 = vrot.slane %v5044_v7, 1 }
 0x1c0   : > { %v3909_v45 = vpack.i.bf16 %v5039_v36, %v5037_v35  ;;  %v2430_v62 = vrot.slane %v5039_v36, 2  ;;  %v5046_v3 = vld [vmem:[#allocation3 + $0x50] sm:$0xff]  ;;  %v2189_v58 = vrot.slane %v1773_v56, 2  ;;  %v2342_v12 = vrot.slane %v5039_v36, 1  ;;  %v1792_v22 = vld [vmem:[#allocation3 + $0x58] sm:$0x3] }
 0x1c1   : > { %v1795_v11 = vld [vmem:[#allocation3 + $0x70] sm:$0x3]  ;;  %v3919_v63 = vpack.i.bf16 %v5046_v3, %v5044_v7  ;;  %v5056_v38 = vrot.slane %v5046_v3, 2  ;;  %v2427_v14 = vrot.slane %v1792_v22, 2  ;;  %v2101_v27 = vrot.slane %v1773_v56, 1 }
 0x1c2   : > { %v2344_v16 = vrot.slane %v1795_v11, 1  ;;  %3910 = vrot.lane.b32.xlu1 %v3909_v45, %s4155_s20  ;;  %v1752_v19 = vld [vmem:[#allocation3 + $0x70] sm:$0x3]  ;;  %v5059_v23 = vsel %vm729_vm3, %v2429_v15, %v2430_v62  ;;  %v2190_v24 = vsel %vm729_vm3, %v2430_v62, %v2189_v58  ;;  %v2343_v8 = vsel %vm640_vm4, %v2341_v21, %v2342_v12  ;;  %v1770_v44 = vld [vmem:[#allocation3 + $0x58] sm:$0x3] }
 0x1c3   : > { %3920 = vrot.lane.b32.xlu0 %v3919_v63, %s4155_s20  ;;  %v1946_v20 = vrot.slane %v1752_v19, 2  ;;  %v2432_v10 = vrot.slane %v1795_v11, 2  ;;  %v2337_v40 = vrot.slane %v5046_v3, 1  ;;  %v3939_v29 = vpack.i.bf16 %v2190_v24, %v5059_v23  ;;  %v1749_v57 = vld [vmem:[#allocation3 + $0x58] sm:$0x3] }
 0x1c4   : > { %v2345_v25 = vsel %vm640_vm4, %v2342_v12, %v2344_v16  ;;  %v2339_v31 = vrot.slane %v1792_v22, 1  ;;  %v5072_v33 = vsel %vm729_vm3, %v2424_v30, %v5056_v38  ;;  %v5076_v43 = vsel %vm729_vm3, %v5056_v38, %v2427_v14 }
 0x1c5   : > { %v3929_v9 = vpack.i.bf16 %v2345_v25, %v2343_v8  ;;  %v1947_v39 = vsel %vm729_vm3, %v2430_v62, %v1946_v20  ;;  %v2102_v1 = vsel %vm640_vm4, %v2342_v12, %v2101_v27  ;;  %v1858_v32 = vrot.slane %v1752_v19, 1 }
 0x1c6   : > { %3915 = vrot.lane.b32.xlu1 %v3909_v45, %s4151_s22  ;;  %v2593_v28 = vpack.c.bf16 %v5076_v43, %v5072_v33  ;;  %v5085_v37 = vsel %vm729_vm3, %v2430_v62, %v2432_v10  ;;  %v3949_v48 = vpack.i.bf16 %v1947_v39, %v5059_v23  ;;  %v3934_v51 = vpack.i.bf16 %v2102_v1, %v2343_v8 }
 0x1c7   : > { %3925 = vrot.lane.b32.xlu0 %v3919_v63, %s4151_s22  ;;  %v2595_v49 = vpack.c.bf16 %v5085_v37, %v5059_v23  ;;  %v2338_v42 = vsel %vm640_vm4, %v2336_v26, %v2337_v40  ;;  %v2340_v54 = vsel %vm640_vm4, %v2337_v40, %v2339_v31  ;;  %v2096_v55 = vrot.slane %v1770_v44, 1 }
 0x1c8   : > { %v1859_v41 = vsel %vm640_vm4, %v2342_v12, %v1858_v32  ;;  %v2184_v46 = vrot.slane %v1770_v44, 2  ;;  %v3954_v59 = vpack.i.bf16 %v2340_v54, %v2338_v42  ;;  %v1853_v45 = vrot.slane %v1749_v57, 1 }
 0x1c9   : > { %v3944_v61 = vpack.i.bf16 %v1859_v41, %v2343_v8  ;;  %v2097_v56 = vsel %vm640_vm4, %v2337_v40, %v2096_v55  ;;  %v1941_v63 = vrot.slane %v1749_v57, 2 }
 0x1ca   : > { %3940 = vrot.lane.b32.xlu1 %v3939_v29, %s4157_s28  ;;  %v2185_v12 = vsel %vm729_vm3, %v5056_v38, %v2184_v46  ;;  %v3959_v21 = vpack.i.bf16 %v2097_v56, %v2338_v42  ;;  %v1854_v20 = vsel %vm640_vm4, %v2337_v40, %v1853_v45 }
 0x1cb   : > { %3930 = vrot.lane.b32.xlu0 %v3929_v9, %s4156_s17  ;;  %v3964_v25 = vpack.i.bf16 %v2185_v12, %v5072_v33  ;;  %v1942_v27 = vsel %vm729_vm3, %v5056_v38, %v1941_v63  ;;  %v3969_v10 = vpack.i.bf16 %v1854_v20, %v2338_v42 }
 0x1cc   : > { %v3974_v40 = vpack.i.bf16 %v1942_v27, %v5072_v33 }
 0x1ce   : > { %3950 = vrot.lane.b32.xlu1 %v3949_v48, %s4149_s24 }
 0x1cf   : > { %3935 = vrot.lane.b32.xlu0 %v3934_v51, %s4153_s26  ;;  %v3455_v47 = vpop.f32.mrb[8].mxu0 }
 0x1d0   : > { %v1620_v18 = vmax.f32 %v3455_v47, 0.0  ;;  %v1579_v4 = vpop.f32.mrb[9].mxu0 }
 0x1d1   : > { %v1618_v17 = vmax.f32 %v1579_v4, 0.0  ;;  %v3456_v52 = vpop.f32.mrb[10].mxu0 }
 0x1d2   : > { %v1643_v62 = vmul.f32 %v4932_v2, %v1620_v18  ;;  %v1621_v58 = vmax.f32 %v3456_v52, 0.0  ;;  %3955 = vrot.lane.b32.xlu1 %v3954_v59, %s4156_s17  ;;  %v1582_v11 = vpop.f32.mrb[11].mxu0 }
 0x1d3   : > { %v1641_v16 = vmul.f32 %v4932_v2, %v1618_v17  ;;  %v1619_v15 = vmax.f32 %v1582_v11, 0.0  ;;  %3945 = vrot.lane.b32.xlu0 %v3944_v61, %s4146_s19 }
 0x1d4   : > { %v1666_v19 = vadd.f32 %v4940_v13, %v1643_v62  ;;  %v1644_v22 = vmul.f32 %v4932_v2, %v1621_v58 }
 0x1d5   : > { %v1664_v24 = vadd.f32 %v4940_v13, %v1641_v16  ;;  %v1642_v8 = vmul.f32 %v4932_v2, %v1619_v15 }
 0x1d6   : > { %1714 = vst.msk [vmem:[#allocation3 + $0x91] sm:$0xff] %vm1330_vm2, %v1666_v19  ;;  %v1667_v14 = vadd.f32 %v4940_v13, %v1644_v22  ;;  %3960 = vrot.lane.b32.xlu1 %v3959_v21, %s4153_s26 }
 0x1d7   : > { %1712 = vst.msk [vmem:[#allocation3 + $0x79] sm:$0xff] %vm1330_vm2, %v1664_v24  ;;  %v1665_v30 = vadd.f32 %v4940_v13, %v1642_v8  ;;  %3965 = vrot.lane.b32.xlu0 %v3964_v25, %s4157_s28 }
 0x1d8   : > { %1715 = vst.msk [vmem:[#allocation3 + $0x99] sm:$0xff] %vm1330_vm2, %v1667_v14 }
 0x1d9   : > { %1713 = vst.msk [vmem:[#allocation3 + $0x81] sm:$0xff] %vm1330_vm2, %v1665_v30 }
 0x1da   : > { %3970 = vrot.lane.b32.xlu1 %v3969_v10, %s4146_s19 }
 0x1db   : > { %3975 = vrot.lane.b32.xlu0 %v3974_v40, %s4149_s24 }
 0x1dd   : > { %v5121_v29 = vld [vmem:[#allocation3 + $0x90] sm:$0xff] }
 0x1de   : > { %v5127_v31 = vld [vmem:[#allocation3 + $0x78] sm:$0xff]  ;;  %v2439_v55 = vrot.slane %v5121_v29, 2  ;;  %v2351_v41 = vrot.slane %v5121_v29, 1 }
 0x1df   : > { %v5123_v38 = vld [vmem:[#allocation3 + $0x98] sm:$0xff]  ;;  %v1779_v9 = vld [vmem:[#allocation3 + $0xa0] sm:$0x3]  ;;  %v2434_v56 = vrot.slane %v5127_v31, 2  ;;  %v2346_v21 = vrot.slane %v5127_v31, 1 }
 0x1e0   : > { %v3979_v39 = vpack.i.bf16 %v5123_v38, %v5121_v29  ;;  %v5129_v1 = vld [vmem:[#allocation3 + $0x80] sm:$0xff]  ;;  %v2440_v44 = vrot.slane %v5123_v38, 2  ;;  %v2199_v48 = vrot.slane %v1779_v9, 2  ;;  %v2352_v51 = vrot.slane %v5123_v38, 1  ;;  %v1798_v52 = vld [vmem:[#allocation3 + $0x88] sm:$0x3] }
 0x1e1   : > { %v1801_v32 = vld [vmem:[#allocation3 + $0xa0] sm:$0x3]  ;;  %v3989_v26 = vpack.i.bf16 %v5129_v1, %v5127_v31  ;;  %v2111_v46 = vrot.slane %v1779_v9, 1  ;;  %v5144_v4 = vrot.slane %v5129_v1, 2  ;;  %v2347_v45 = vrot.slane %v5129_v1, 1 }
 0x1e2   : > { %3980 = vrot.lane.b32.xlu1 %v3979_v39, %s4155_s20  ;;  %v2354_v42 = vrot.slane %v1801_v32, 1  ;;  %v1758_v54 = vld [vmem:[#allocation3 + $0xa0] sm:$0x3]  ;;  %v5140_v57 = vsel %vm729_vm3, %v2439_v55, %v2440_v44  ;;  %v2200_v47 = vsel %vm729_vm3, %v2440_v44, %v2199_v48  ;;  %v2353_v59 = vsel %vm640_vm4, %v2351_v41, %v2352_v51  ;;  %v1776_v15 = vld [vmem:[#allocation3 + $0x88] sm:$0x3] }
 0x1e3   : > { %3990 = vrot.lane.b32.xlu0 %v3989_v26, %s4155_s20  ;;  %v1956_v18 = vrot.slane %v1758_v54, 2  ;;  %v2442_v61 = vrot.slane %v1801_v32, 2  ;;  %v4009_v62 = vpack.i.bf16 %v2200_v47, %v5140_v57  ;;  %v2112_v12 = vsel %vm640_vm4, %v2352_v51, %v2111_v46  ;;  %v1755_v32 = vld [vmem:[#allocation3 + $0x88] sm:$0x3] }
 0x1e4   : > { %v2355_v17 = vsel %vm640_vm4, %v2352_v51, %v2354_v42  ;;  %v2349_v63 = vrot.slane %v1798_v52, 1  ;;  %v1868_v16 = vrot.slane %v1758_v54, 1  ;;  %v5158_v19 = vsel %vm729_vm3, %v2434_v56, %v5144_v4 }
 0x1e5   : > { %v3999_v58 = vpack.i.bf16 %v2355_v17, %v2353_v59  ;;  %v1957_v11 = vsel %vm729_vm3, %v2440_v44, %v1956_v18  ;;  %v2437_v22 = vrot.slane %v1798_v52, 2  ;;  %v5163_v24 = vsel %vm729_vm3, %v2440_v44, %v2442_v61 }
 0x1e6   : > { %3985 = vrot.lane.b32.xlu1 %v3979_v39, %s4151_s22  ;;  %v4019_v8 = vpack.i.bf16 %v1957_v11, %v5140_v57  ;;  %v4004_v25 = vpack.i.bf16 %v2112_v12, %v2353_v59  ;;  %v2599_v14 = vpack.c.bf16 %v5163_v24, %v5140_v57  ;;  %v2348_v27 = vsel %vm640_vm4, %v2346_v21, %v2347_v45 }
 0x1e7   : > { %3995 = vrot.lane.b32.xlu0 %v3989_v26, %s4151_s22  ;;  %v5168_v20 = vsel %vm729_vm3, %v5144_v4, %v2437_v22  ;;  %v2350_v30 = vsel %vm640_vm4, %v2347_v45, %v2349_v63  ;;  %v2106_v10 = vrot.slane %v1776_v15, 1  ;;  %v1869_v9 = vsel %vm640_vm4, %v2352_v51, %v1868_v16 }
 0x1e8   : > { %v2597_v40 = vpack.c.bf16 %v5168_v20, %v5158_v19  ;;  %v2194_v39 = vrot.slane %v1776_v15, 2  ;;  %v4024_v42 = vpack.i.bf16 %v2350_v30, %v2348_v27  ;;  %v4014_v41 = vpack.i.bf16 %v1869_v9, %v2353_v59 }
 0x1e9   : > { %v2107_v46 = vsel %vm640_vm4, %v2347_v45, %v2106_v10  ;;  %v1863_v47 = vrot.slane %v1755_v32, 1  ;;  %v1951_v61 = vrot.slane %v1755_v32, 2 }
 0x1ea   : > { %4010 = vrot.lane.b32.xlu1 %v4009_v62, %s4157_s28  ;;  %v2195_v52 = vsel %vm729_vm3, %v5144_v4, %v2194_v39  ;;  %v4029_v11 = vpack.i.bf16 %v2107_v46, %v2348_v27 }
 0x1eb   : > { %4000 = vrot.lane.b32.xlu0 %v3999_v58, %s4156_s17  ;;  %v4034_v16 = vpack.i.bf16 %v2195_v52, %v5158_v19  ;;  %v1864_v15 = vsel %vm640_vm4, %v2347_v45, %v1863_v47  ;;  %v1952_v21 = vsel %vm729_vm3, %v5144_v4, %v1951_v61 }
 0x1ec   : > { %v4044_v45 = vpack.i.bf16 %v1952_v21, %v5158_v19 }
 0x1ee   : > { %4020 = vrot.lane.b32.xlu1 %v4019_v8, %s4149_s24 }
 0x1ef   : > { %4005 = vrot.lane.b32.xlu0 %v4004_v25, %s4153_s26  ;;  %v3459_v44 = vpop.f32.mrb[12].mxu0 }
 0x1f0   : > { %v1624_v26 = vmax.f32 %v3459_v44, 0.0  ;;  %v1595_v48 = vpop.f32.mrb[13].mxu0 }
 0x1f1   : > { %v1622_v54 = vmax.f32 %v1595_v48, 0.0  ;;  %v3460_v55 = vpop.f32.mrb[14].mxu0 }
 0x1f2   : > { %v1647_v18 = vmul.f32 %v4932_v2, %v1624_v26  ;;  %v1625_v17 = vmax.f32 %v3460_v55, 0.0  ;;  %4025 = vrot.lane.b32.xlu1 %v4024_v42, %s4156_s17  ;;  %v1598_v51 = vpop.f32.mrb[15].mxu0 }
 0x1f3   : > { %v1645_v56 = vmul.f32 %v4932_v2, %v1622_v54  ;;  %v1623_v62 = vmax.f32 %v1598_v51, 0.0  ;;  %4015 = vrot.lane.b32.xlu0 %v4014_v41, %s4146_s19 }
 0x1f4   : > { %v1670_v59 = vadd.f32 %v4940_v13, %v1647_v18  ;;  %v1648_v58 = vmul.f32 %v4932_v2, %v1625_v17 }
 0x1f5   : > { %v1668_v12 = vadd.f32 %v4940_v13, %v1645_v56  ;;  %v1646_v63 = vmul.f32 %v4932_v2, %v1623_v62  ;;  %v4039_v2 = vpack.i.bf16 %v1864_v15, %v2348_v27 }
 0x1f6   : > { %1718 = vst.msk [vmem:[#allocation3 + $0xc1] sm:$0xff] %vm1330_vm2, %v1670_v59  ;;  %v1671_v22 = vadd.f32 %v4940_v13, %v1648_v58  ;;  %4030 = vrot.lane.b32.xlu1 %v4029_v11, %s4153_s26 }
 0x1f7   : > { %1716 = vst.msk [vmem:[#allocation3 + $0xa9] sm:$0xff] %vm1330_vm2, %v1668_v12  ;;  %v1669_v8 = vadd.f32 %v4940_v13, %v1646_v63  ;;  %4035 = vrot.lane.b32.xlu0 %v4034_v16, %s4157_s28 }
 0x1f8   : > { %1719 = vst.msk [vmem:[#allocation3 + $0xc9] sm:$0xff] %vm1330_vm2, %v1671_v22 }
 0x1f9   : > { %1717 = vst.msk [vmem:[#allocation3 + $0xb1] sm:$0xff] %vm1330_vm2, %v1669_v8 }
 0x1fa   : > { %4040 = vrot.lane.b32.xlu1 %v4039_v2, %s4146_s19 }
 0x1fb   : > { %4045 = vrot.lane.b32.xlu0 %v4044_v45, %s4149_s24 }
 0x1fd   : > { %v1805_v25 = vld [vmem:[#allocation3 + $0xc0] sm:$0xff] }
 0x1fe   : > { %v5205_v39 = vld [vmem:[#allocation3 + $0xa8] sm:$0xff]  ;;  %v2361_v42 = vrot.slane %v1805_v25, 1  ;;  %v2449_v56 = vrot.slane %v1805_v25, 2 }
 0x1ff   : > { %v1806_v30 = vld [vmem:[#allocation3 + $0xc8] sm:$0xff]  ;;  %v1807_v4 = vld [vmem:[#allocation3 + $0xd0] sm:$0x3]  ;;  %v2356_v55 = vrot.slane %v5205_v39, 1  ;;  %v2444_v47 = vrot.slane %v5205_v39, 2 }
 0x200   : > { %v4049_v10 = vpack.i.bf16 %v1806_v30, %v1805_v25  ;;  %v2362_v9 = vrot.slane %v1806_v30, 1  ;;  %v5207_v13 = vld [vmem:[#allocation3 + $0xb0] sm:$0xff]  ;;  %v1804_v32 = vld [vmem:[#allocation3 + $0xb8] sm:$0x3]  ;;  %v2364_v48 = vrot.slane %v1807_v4, 1  ;;  %v2450_v46 = vrot.slane %v1806_v30, 2 }
 0x201   : > { %v4059_v27 = vpack.i.bf16 %v5207_v13, %v5205_v39  ;;  %v2357_v44 = vrot.slane %v5207_v13, 1  ;;  %v2359_v26 = vrot.slane %v1804_v32, 1  ;;  %v1782_v54 = vld [vmem:[#allocation3 + $0xb8] sm:$0x3]  ;;  %v2445_v41 = vrot.slane %v5207_v13, 2 }
 0x202   : > { %4050 = vrot.lane.b32.xlu1 %v4049_v10, %s4155_s20  ;;  %v2363_v18 = vsel %vm640_vm4, %v2361_v42, %v2362_v9  ;;  %v2365_v52 = vsel %vm640_vm4, %v2362_v9, %v2364_v48  ;;  %v2116_v61 = vrot.slane %v1782_v54, 1  ;;  %v2204_v62 = vrot.slane %v1782_v54, 2  ;;  %v1761_v59 = vld [vmem:[#allocation3 + $0xb8] sm:$0x3]  ;;  %v1785_v58 = vld [vmem:[#allocation3 + $0xd0] sm:$0x3] }
 0x203   : > { %4060 = vrot.lane.b32.xlu0 %v4059_v27, %s4155_s20  ;;  %v2358_v17 = vsel %vm640_vm4, %v2356_v55, %v2357_v44  ;;  %v2360_v51 = vsel %vm640_vm4, %v2357_v44, %v2359_v26  ;;  %v5224_v11 = vsel %vm729_vm3, %v2444_v47, %v2445_v41  ;;  %v2447_v12 = vrot.slane %v1804_v32, 2  ;;  %v1809_v32 = vld [vmem:[#allocation3 + $0xe0] sm:$0xff]  ;;  %v1810_v54 = vld [vmem:[#allocation3 + $0xe8] sm:$0x3] }
 0x204   : > { %v4074_v63 = vpack.i.bf16 %v2360_v51, %v2358_v17  ;;  %v4069_v16 = vpack.i.bf16 %v2365_v52, %v2363_v18  ;;  %v5227_v15 = vsel %vm729_vm3, %v2449_v56, %v2450_v46  ;;  %v2117_v22 = vsel %vm640_vm4, %v2357_v44, %v2116_v61  ;;  %v3846_v52 = vpop.permute.xlu1 %3845 }
 0x205   : > { %v1873_v21 = vrot.slane %v1761_v59, 1  ;;  %v5231_v8 = vsel %vm729_vm3, %v2445_v41, %v2447_v12  ;;  %v2452_v2 = vrot.slane %v1807_v4, 2  ;;  %v2205_v45 = vsel %vm729_vm3, %v2445_v41, %v2204_v62  ;;  %v3841_v62 = vpop.permute.xlu0 %3840 }
 0x206   : > { %4055 = vrot.lane.b32.xlu1 %v4049_v10, %s4151_s22  ;;  %v2121_v25 = vrot.slane %v1785_v58, 1  ;;  %v2601_v30 = vpack.c.bf16 %v5231_v8, %v5224_v11  ;;  %v1808_v10 = vld [vmem:[#allocation3 + $0xd8] sm:$0xff]  ;;  %v4079_v26 = vpack.i.bf16 %v2117_v22, %v2358_v17  ;;  %v2455_v48 = vrot.slane %v1809_v32, 2 }
 0x207   : > { %4065 = vrot.lane.b32.xlu0 %v4059_v27, %s4151_s22  ;;  %v5239_v27 = vsel %vm729_vm3, %v2450_v46, %v2452_v2  ;;  %v2454_v42 = vrot.slane %v1808_v10, 2  ;;  %v4084_v55 = vpack.i.bf16 %v2205_v45, %v5224_v11  ;;  %v1874_v47 = vsel %vm640_vm4, %v2357_v44, %v1873_v21 }
 0x208   : > { %v2603_v4 = vpack.c.bf16 %v5239_v27, %v5227_v15  ;;  %v2209_v51 = vrot.slane %v1785_v58, 2  ;;  %v2122_v61 = vsel %vm640_vm4, %v2362_v9, %v2121_v25  ;;  %v1961_v56 = vrot.slane %v1761_v59, 2 }
 0x209   : > { %v2367_v12 = vrot.slane %v1809_v32, 1  ;;  %v4094_v22 = vpack.i.bf16 %v1874_v47, %v2358_v17  ;;  %v5249_v2 = vsel %vm729_vm3, %v2454_v42, %v2455_v48  ;;  %v2457_v45 = vrot.slane %v1810_v54, 2 }
 0x20a   : > { %4075 = vrot.lane.b32.xlu1 %v4074_v63, %s4156_s17  ;;  %v2366_v63 = vrot.slane %v1808_v10, 1  ;;  %v4089_v0 = vpack.i.bf16 %v2122_v61, %v2363_v18  ;;  %v2210_v44 = vsel %vm729_vm3, %v2450_v46, %v2209_v51  ;;  %v1962_v58 = vsel %vm729_vm3, %v2445_v41, %v1961_v56 }
 0x20b   : > { %4070 = vrot.lane.b32.xlu0 %v4069_v16, %s4156_s17  ;;  %v2369_v16 = vrot.slane %v1810_v54, 1  ;;  %v5255_v9 = vsel %vm729_vm3, %v2455_v48, %v2457_v45  ;;  %v4099_v18 = vpack.i.bf16 %v2210_v44, %v5227_v15  ;;  %v4109_v48 = vpack.i.bf16 %v1809_v32, %v1808_v10 }
 0x20c   : > { %v2368_v59 = vsel %vm640_vm4, %v2366_v63, %v2367_v12  ;;  %v2605_v21 = vpack.c.bf16 %v5255_v9, %v5249_v2  ;;  %v3843_v54 = vunpack.i.h.bf16 %v3841_v62  ;;  %v3848_v61 = vunpack.i.h.bf16 %v3846_v52 }
 0x20d   : > { %v2370_v17 = vsel %vm640_vm4, %v2367_v12, %v2369_v16  ;;  %v3847_v56 = vunpack.i.l.bf16 %v3846_v52  ;;  %vm4159_vm3 = vmmov 0   ;;  %vm2949_vm4 = vcmask 1041408  }
 0x20e   : > { %4080 = vrot.lane.b32.xlu1 %v4079_v26, %s4153_s26  ;;  %v4104_v26 = vpack.i.bf16 %v1962_v58, %v5224_v11  ;;  %v4114_v41 = vpack.i.bf16 %v2370_v17, %v2368_v59  ;;  %v2476_v12 = vsel %vm1330_vm2, %v4906_v6, %v3843_v54 }
 0x20f   : > { %4085 = vrot.lane.b32.xlu0 %v4084_v55, %s4157_s28  ;;  %v3842_v55 = vunpack.i.l.bf16 %v3841_v62  ;;  %v2492_v45 = vsel %vm1364_vm7, %v2476_v12, %v3848_v61 }
 0x211   : > { %v2475_v10 = vsel %vm1330_vm2, %v4904_v60, %v3842_v55 }
 0x212   : > { %4095 = vrot.lane.b32.xlu1 %v4094_v22, %s4146_s19  ;;  %v2491_v62 = vsel %vm1364_vm7, %v2475_v10, %v3847_v56 }
 0x213   : > { %4090 = vrot.lane.b32.xlu0 %v4089_v0, %s4153_s26 }
 0x214   : > { %v3851_v25 = vpop.permute.xlu1 %3850 }
 0x215   : > { %v3861_v46 = vpop.permute.xlu0 %3860 }
 0x216   : > { %4100 = vrot.lane.b32.xlu1 %v4099_v18, %s4157_s28  ;;  %v3863_v16 = vunpack.i.h.bf16 %v3861_v46  ;;  %v3862_v22 = vunpack.i.l.bf16 %v3861_v46  ;;  %s5711_s28 = scalar_lea.vmem %s5784_s14, %s3406_s15 }
 0x217   : > { %4105 = vrot.lane.b32.xlu0 %v4104_v26, %s4149_s24  ;;  %v3853_v26 = vunpack.i.h.bf16 %v3851_v25 }
 0x218   : > { %v5266_v0 = vpop.permute.xlu1 %3855  ;;  %v2508_v6 = vsel %vm1398_vm9, %v2492_v45, %v3863_v16  ;;  %v2507_v60 = vsel %vm1398_vm9, %v2491_v62, %v3862_v22 }
 0x219   : > { %v3866_v42 = vpop.permute.xlu0 %3865 }
 0x21a   : > { %4115 = vrot.lane.b32.xlu1 %v4114_v41, %s4156_s17  ;;  %v3852_v41 = vunpack.i.l.bf16 %v3851_v25  ;;  %v3868_v54 = vunpack.i.h.bf16 %v3866_v42  ;;  %v3867_v55 = vunpack.i.l.bf16 %v3866_v42 }
 0x21b   : > { %4110 = vrot.lane.b32.xlu0 %v4109_v48, %s4155_s20 }
 0x21c   : > { %v5270_v47 = vpop.permute.xlu1 %3875 }
 0x21d   : > { %v5272_v51 = vpop.permute.xlu0 %3870 }
 0x220   : > { %v5278_v32 = vpop.permute.xlu1 %3885 }
 0x221   : > { %v5280_v63 = vpop.permute.xlu0 %3880 }
 0x224   : > { %v3891_v44 = vpop.permute.xlu1 %3890 }
 0x225   : > { %v3893_v58 = vunpack.i.h.bf16 %v3891_v44  ;;  %v3892_v52 = vunpack.i.l.bf16 %v3891_v44  ;;  %v3896_v59 = vpop.permute.xlu0 %3895 }
 0x226   : > { %v3898_v17 = vunpack.i.h.bf16 %v3896_v59  ;;  %v3897_v18 = vunpack.i.l.bf16 %v3896_v59 }
 0x227   : > { %v2524_v46 = vsel %vm1432_vm11, %v2508_v6, %v3893_v58  ;;  %v2523_v48 = vsel %vm1432_vm11, %v2507_v60, %v3892_v52 }
 0x228   : > { %v2540_v61 = vsel %vm2539_vm14, %v2523_v48, %v3897_v18  ;;  %v2541_v56 = vsel %vm2539_vm14, %v2524_v46, %v3898_v17  ;;  %v3901_v25 = vpop.permute.xlu1 %3900  ;;  %v3857_v46 = vunpack.i.l.bf16 %v5266_v0 }
 0x229   : > { %v2557_v12 = vsel %vm2556_vm15, %v2540_v61, %v3852_v41  ;;  %v2558_v10 = vsel %vm2556_vm15, %v2541_v56, %v3853_v26  ;;  %v3906_v42 = vpop.permute.xlu0 %3905  ;;  %v3903_v44 = vunpack.i.h.bf16 %v3901_v25  ;;  %v3902_v58 = vunpack.i.l.bf16 %v3901_v25 }
 0x22a   : > { %v2574_v16 = vsel %vm2573_vm1, %v2557_v12, %v3867_v55  ;;  %v2575_v22 = vsel %vm2573_vm1, %v2558_v10, %v3868_v54  ;;  %v3908_v59 = vunpack.i.h.bf16 %v3906_v42  ;;  %v3907_v6 = vunpack.i.l.bf16 %v3906_v42 }
 0x22b   : > { %v2590_v62 = vpack.c.bf16 %v2575_v22, %v2574_v16  ;;  %v2478_v17 = vsel %vm1330_vm2, %v4977_v5, %v3903_v44  ;;  %v2477_v18 = vsel %vm1330_vm2, %v4970_v34, %v3902_v58  ;;  %v3858_v41 = vunpack.i.h.bf16 %v5266_v0 }
 0x22c   : > { %v2493_v43 = vsel %vm1364_vm7, %v2477_v18, %v3907_v6  ;;  %v3873_v5 = vunpack.i.h.bf16 %v5272_v51  ;;  %v3872_v34 = vunpack.i.l.bf16 %v5272_v51  ;;  %v3883_v61 = vunpack.i.h.bf16 %v5280_v63 }
 0x22d   : > { %2717 = vmatmul.mubr.bf16.vlgmr.msra.gmra.mrb[0].mxu1 %v2590_v62  ;;  %v2509_v54 = vsel %vm1398_vm9, %v2493_v43, %v3857_v46  ;;  %v3882_v56 = vunpack.i.l.bf16 %v5280_v63  ;;  %v3878_v25 = vunpack.i.h.bf16 %v5270_v47  ;;  %v3877_v42 = vunpack.i.l.bf16 %v5270_v47 }
 0x22e   : > { %3381 = vmatprep.mubr.msk.bf16.mxu1 %vm1330_vm2, %v2593_v28  ;;  %v2494_v28 = vsel %vm1364_vm7, %v2478_v17, %v3908_v59  ;;  %v2525_v16 = vsel %vm1432_vm11, %v2509_v54, %v3872_v34  ;;  %v2480_v51 = vsel %vm1330_vm2, %v4967_v53, %v3883_v61  ;;  %v3888_v53 = vunpack.i.h.bf16 %v5278_v32 }
 0x22f   : > { %v2510_v55 = vsel %vm1398_vm9, %v2494_v28, %v3858_v41  ;;  %v2479_v63 = vsel %vm1330_vm2, %v4962_v50, %v3882_v56  ;;  %v2542_v58 = vsel %vm2539_vm14, %v2525_v16, %v3877_v42  ;;  %v3887_v41 = vunpack.i.l.bf16 %v5278_v32 }
 0x230   : > { %v2526_v0 = vsel %vm1432_vm11, %v2510_v55, %v3873_v5  ;;  %v2496_v34 = vsel %vm1364_vm7, %v2480_v51, %v3888_v53 }
 0x231   : > { %v2543_v59 = vsel %vm2539_vm14, %v2526_v0, %v3878_v25  ;;  %v2495_v5 = vsel %vm1364_vm7, %v2479_v63, %v3887_v41 }
 0x234   : > { %v5298_v45 = vpop.permute.xlu1 %3910 }
 0x235   : > { %v3921_v52 = vpop.permute.xlu0 %3920  ;;  %v3913_v32 = vunpack.i.h.bf16 %v5298_v45  ;;  %v3912_v25 = vunpack.i.l.bf16 %v5298_v45 }
 0x236   : > { %v3923_v22 = vunpack.i.h.bf16 %v3921_v52  ;;  %v3922_v62 = vunpack.i.l.bf16 %v3921_v52 }
 0x238   : > { %v5300_v60 = vpop.permute.xlu1 %3915  ;;  %v2560_v52 = vsel %vm2556_vm15, %v2543_v59, %v3923_v22  ;;  %v2559_v43 = vsel %vm2556_vm15, %v2542_v58, %v3922_v62 }
 0x239   : > { %v3926_v33 = vpop.permute.xlu0 %3925 }
 0x23a   : > { %v3928_v47 = vunpack.i.h.bf16 %v3926_v33  ;;  %v3927_v28 = vunpack.i.l.bf16 %v3926_v33 }
 0x23c   : > { %v5308_v26 = vpop.permute.xlu1 %3940  ;;  %v2512_v0 = vsel %vm1398_vm9, %v2496_v34, %v3928_v47  ;;  %v2511_v33 = vsel %vm1398_vm9, %v2495_v5, %v3927_v28  ;;  %v3918_v5 = vunpack.i.h.bf16 %v5300_v60  ;;  %v3917_v34 = vunpack.i.l.bf16 %v5300_v60 }
 0x23d   : > { %v3931_v48 = vpop.permute.xlu0 %3930 }
 0x23e   : > { %v3933_v51 = vunpack.i.h.bf16 %v3931_v48 }
 0x240   : > { %v5318_v12 = vpop.permute.xlu1 %3950 }
 0x241   : > { %v5320_v10 = vpop.permute.xlu0 %3935 }
 0x244   : > { %v3956_v44 = vpop.permute.xlu1 %3955 }
 0x245   : > { %v3958_v6 = vunpack.i.h.bf16 %v3956_v44  ;;  %v3957_v17 = vunpack.i.l.bf16 %v3956_v44  ;;  %v5332_v18 = vpop.permute.xlu0 %3945  ;;  %v3932_v44 = vunpack.i.l.bf16 %v3931_v48 }
 0x247   : > { %v2576_v50 = vsel %vm2573_vm1, %v2559_v43, %v3957_v17  ;;  %v2577_v46 = vsel %vm2573_vm1, %v2560_v52, %v3958_v6 }
 0x248   : > { %v3961_v54 = vpop.permute.xlu1 %3960  ;;  %v2592_v55 = vpack.c.bf16 %v2577_v46, %v2576_v50 }
 0x249   : > { %v3963_v61 = vunpack.i.h.bf16 %v3961_v54  ;;  %v3962_v56 = vunpack.i.l.bf16 %v3961_v54  ;;  %v3966_v16 = vpop.permute.xlu0 %3965 }
 0x24a   : > { %v3968_v22 = vunpack.i.h.bf16 %v3966_v16  ;;  %v3967_v62 = vunpack.i.l.bf16 %v3966_v16  ;;  %2725 = vmatmul.mubr.bf16.gmra.mrb[4].mxu1 %v2592_v55 }
 0x24b   : > { %v2528_v42 = vsel %vm1432_vm11, %v2512_v0, %v3963_v61  ;;  %v2527_v63 = vsel %vm1432_vm11, %v2511_v33, %v3962_v56  ;;  %3382 = vmatprep.mubr.msk.bf16.mxu1 %vm1330_vm2, %v2595_v49  ;;  %v3948_v0 = vunpack.i.h.bf16 %v5332_v18  ;;  %v3947_v33 = vunpack.i.l.bf16 %v5332_v18 }
 0x24c   : > { %v2544_v58 = vsel %vm2539_vm14, %v2527_v63, %v3967_v62  ;;  %v2545_v59 = vsel %vm2539_vm14, %v2528_v42, %v3968_v22  ;;  %v3971_v47 = vpop.permute.xlu1 %3970  ;;  %v3943_v63 = vunpack.i.h.bf16 %v5308_v26 }
 0x24d   : > { %v2561_v6 = vsel %vm2556_vm15, %v2544_v58, %v3912_v25  ;;  %v2562_v17 = vsel %vm2556_vm15, %v2545_v59, %v3913_v32  ;;  %v3976_v28 = vpop.permute.xlu0 %3975  ;;  %v3973_v37 = vunpack.i.h.bf16 %v3971_v47  ;;  %v3972_v49 = vunpack.i.l.bf16 %v3971_v47 }
 0x24e   : > { %v2578_v45 = vsel %vm2573_vm1, %v2561_v6, %v3932_v44  ;;  %v2579_v52 = vsel %vm2573_vm1, %v2562_v17, %v3933_v51  ;;  %v3978_v53 = vunpack.i.h.bf16 %v3976_v28  ;;  %v3977_v41 = vunpack.i.l.bf16 %v3976_v28 }
 0x24f   : > { %v2594_v43 = vpack.c.bf16 %v2579_v52, %v2578_v45  ;;  %v2482_v46 = vsel %vm1330_vm2, %v5046_v3, %v3973_v37  ;;  %v2481_v54 = vsel %vm1330_vm2, %v5044_v7, %v3972_v49  ;;  %v3938_v3 = vunpack.i.h.bf16 %v5320_v10 }
 0x250   : > { %v2497_v19 = vsel %vm1364_vm7, %v2481_v54, %v3977_v41  ;;  %v2498_v20 = vsel %vm1364_vm7, %v2482_v46, %v3978_v53  ;;  %v3937_v7 = vunpack.i.l.bf16 %v5320_v10  ;;  %v3942_v51 = vunpack.i.l.bf16 %v5308_v26 }
 0x251   : > { %v2513_v56 = vsel %vm1398_vm9, %v2497_v19, %v3917_v34  ;;  %v2514_v16 = vsel %vm1398_vm9, %v2498_v20, %v3918_v5  ;;  %v2484_v10 = vsel %vm1330_vm2, %v5039_v36, %v3948_v0  ;;  %v2483_v18 = vsel %vm1330_vm2, %v5037_v35, %v3947_v33 }
 0x252   : > { %2733 = vmatmul.mubr.bf16.gmra.mrb[8].mxu1 %v2594_v43  ;;  %v2529_v32 = vsel %vm1432_vm11, %v2513_v56, %v3937_v7  ;;  %v2530_v60 = vsel %vm1432_vm11, %v2514_v16, %v3938_v3  ;;  %v3953_v36 = vunpack.i.h.bf16 %v5318_v12  ;;  %v3952_v28 = vunpack.i.l.bf16 %v5318_v12 }
 0x253   : > { %3383 = vmatprep.mubr.msk.bf16.mxu1 %vm1330_vm2, %v2597_v40  ;;  %v2546_v58 = vsel %vm2539_vm14, %v2529_v32, %v3942_v51  ;;  %v2547_v59 = vsel %vm2539_vm14, %v2530_v60, %v3943_v63 }
 0x254   : > { %v5362_v23 = vpop.permute.xlu1 %3980  ;;  %v2499_v53 = vsel %vm1364_vm7, %v2483_v18, %v3952_v28  ;;  %v2500_v41 = vsel %vm1364_vm7, %v2484_v10, %v3953_v36 }
 0x255   : > { %v3991_v48 = vpop.permute.xlu0 %3990  ;;  %v3983_v12 = vunpack.i.h.bf16 %v5362_v23  ;;  %v3982_v56 = vunpack.i.l.bf16 %v5362_v23 }
 0x256   : > { %v3993_v25 = vunpack.i.h.bf16 %v3991_v48  ;;  %v3992_v42 = vunpack.i.l.bf16 %v3991_v48 }
 0x258   : > { %v5364_v50 = vpop.permute.xlu1 %3985  ;;  %v2564_v52 = vsel %vm2556_vm15, %v2547_v59, %v3993_v25  ;;  %v2563_v43 = vsel %vm2556_vm15, %v2546_v58, %v3992_v42 }
 0x259   : > { %v3996_v55 = vpop.permute.xlu0 %3995 }
 0x25a   : > { %v3998_v26 = vunpack.i.h.bf16 %v3996_v55  ;;  %v3997_v47 = vunpack.i.l.bf16 %v3996_v55 }
 0x25c   : > { %v5372_v40 = vpop.permute.xlu1 %4010  ;;  %v2516_v20 = vsel %vm1398_vm9, %v2500_v41, %v3998_v26  ;;  %v2515_v55 = vsel %vm1398_vm9, %v2499_v53, %v3997_v47 }
 0x25d   : > { %v4001_v61 = vpop.permute.xlu0 %4000 }
 0x25e   : > { %v4003_v7 = vunpack.i.h.bf16 %v4001_v61  ;;  %v4002_v0 = vunpack.i.l.bf16 %v4001_v61 }
 0x260   : > { %v5382_v22 = vpop.permute.xlu1 %4020 }
 0x261   : > { %v5384_v62 = vpop.permute.xlu0 %4005 }
 0x262   : > { %v4008_v26 = vunpack.i.h.bf16 %v5384_v62  ;;  %v4007_v11 = vunpack.i.l.bf16 %v5384_v62 }
 0x264   : > { %v4026_v44 = vpop.permute.xlu1 %4025 }
 0x265   : > { %v4028_v6 = vunpack.i.h.bf16 %v4026_v44  ;;  %v4027_v17 = vunpack.i.l.bf16 %v4026_v44  ;;  %v5396_v45 = vpop.permute.xlu0 %4015 }
 0x266   : > { %v4018_v8 = vunpack.i.h.bf16 %v5396_v45 }
 0x267   : > { %v2580_v35 = vsel %vm2573_vm1, %v2563_v43, %v4027_v17  ;;  %v2581_v37 = vsel %vm2573_vm1, %v2564_v52, %v4028_v6  ;;  %v3988_v17 = vunpack.i.h.bf16 %v5364_v50  ;;  %v3987_v52 = vunpack.i.l.bf16 %v5364_v50 }
 0x268   : > { %v4031_v49 = vpop.permute.xlu1 %4030  ;;  %v2596_v48 = vpack.c.bf16 %v2581_v37, %v2580_v35  ;;  %v2488_v62 = vsel %vm1330_vm2, %v5123_v38, %v4018_v8  ;;  %v4022_v38 = vunpack.i.l.bf16 %v5382_v22 }
 0x269   : > { %v4033_v46 = vunpack.i.h.bf16 %v4031_v49  ;;  %v4032_v54 = vunpack.i.l.bf16 %v4031_v49  ;;  %v4036_v19 = vpop.permute.xlu0 %4035  ;;  %v4013_v49 = vunpack.i.h.bf16 %v5372_v40 }
 0x26a   : > { %v4038_v5 = vunpack.i.h.bf16 %v4036_v19  ;;  %v4037_v34 = vunpack.i.l.bf16 %v4036_v19  ;;  %2741 = vmatmul.mubr.bf16.gmra.mrb[12].mxu1 %v2596_v48  ;;  %v4012_v48 = vunpack.i.l.bf16 %v5372_v40 }
 0x26b   : > { %v2532_v16 = vsel %vm1432_vm11, %v2516_v20, %v4033_v46  ;;  %v2531_v3 = vsel %vm1432_vm11, %v2515_v55, %v4032_v54  ;;  %3384 = vmatprep.mubr.msk.bf16.mxu1 %vm1330_vm2, %v2599_v14 }
 0x26c   : > { %v2548_v33 = vsel %vm2539_vm14, %v2531_v3, %v4037_v34  ;;  %v2549_v32 = vsel %vm2539_vm14, %v2532_v16, %v4038_v5  ;;  %v4041_v60 = vpop.permute.xlu1 %4040 }
 0x26d   : > { %v4043_v25 = vunpack.i.h.bf16 %v4041_v60  ;;  %v4042_v42 = vunpack.i.l.bf16 %v4041_v60  ;;  %v4046_v63 = vpop.permute.xlu0 %4045  ;;  %v2565_v23 = vsel %vm2556_vm15, %v2548_v33, %v3982_v56  ;;  %v2566_v51 = vsel %vm2556_vm15, %v2549_v32, %v3983_v12 }
 0x26e   : > { %v2582_v10 = vsel %vm2573_vm1, %v2565_v23, %v4002_v0  ;;  %v2583_v57 = vsel %vm2573_vm1, %v2566_v51, %v4003_v7  ;;  %v4048_v14 = vunpack.i.h.bf16 %v4046_v63  ;;  %v4047_v18 = vunpack.i.l.bf16 %v4046_v63 }
 0x26f   : > { %v2598_v24 = vpack.c.bf16 %v2583_v57, %v2582_v10  ;;  %v2486_v61 = vsel %vm1330_vm2, %v5129_v1, %v4043_v25  ;;  %v2485_v44 = vsel %vm1330_vm2, %v5127_v31, %v4042_v42  ;;  %v4023_v12 = vunpack.i.h.bf16 %v5382_v22 }
 0x270   : > { %v2501_v58 = vsel %vm1364_vm7, %v2485_v44, %v4047_v18  ;;  %v2502_v59 = vsel %vm1364_vm7, %v2486_v61, %v4048_v14 }
 0x271   : > { %v2517_v1 = vsel %vm1398_vm9, %v2501_v58, %v3987_v52  ;;  %v2518_v31 = vsel %vm1398_vm9, %v2502_v59, %v3988_v17  ;;  %v2504_v0 = vsel %vm1364_vm7, %v2488_v62, %v4023_v12  ;;  %v2866_v12 = vld [vmem:[%s5777_s7] sm:$0xff] }
 0x272   : > { %2749 = vmatmul.mubr.bf16.gmra.mrb[16].mxu1 %v2598_v24  ;;  %v2533_v28 = vsel %vm1432_vm11, %v2517_v1, %v4007_v11  ;;  %v2534_v50 = vsel %vm1432_vm11, %v2518_v31, %v4008_v26 }
 0x273   : > { %3385 = vmatprep.mubr.msk.bf16.mxu1 %vm1330_vm2, %v2601_v30  ;;  %v4017_v30 = vunpack.i.l.bf16 %v5396_v45  ;;  %v2550_v41 = vsel %vm2539_vm14, %v2533_v28, %v4012_v48  ;;  %v2551_v46 = vsel %vm2539_vm14, %v2534_v50, %v4013_v49 }
 0x274   : > { %v4051_v6 = vpop.permute.xlu1 %4050 }
 0x275   : > { %v4061_v43 = vpop.permute.xlu0 %4060  ;;  %v2487_v53 = vsel %vm1330_vm2, %v5121_v29, %v4017_v30  ;;  %v4053_v22 = vunpack.i.h.bf16 %v4051_v6  ;;  %v4052_v51 = vunpack.i.l.bf16 %v4051_v6 }
 0x276   : > { %v4063_v35 = vunpack.i.h.bf16 %v4061_v43  ;;  %v4062_v37 = vunpack.i.l.bf16 %v4061_v43  ;;  %v2503_v7 = vsel %vm1364_vm7, %v2487_v53, %v4022_v38  ;;  %v2867_v38 = vld [vmem:[%s5777_s7 + $0x8] sm:$0xff] }
 0x278   : > { %v5440_v47 = vpop.permute.xlu1 %4055  ;;  %v2568_v55 = vsel %vm2556_vm15, %v2551_v46, %v4063_v35  ;;  %v2567_v5 = vsel %vm2556_vm15, %v2550_v41, %v4062_v37 }
 0x279   : > { %v4066_v36 = vpop.permute.xlu0 %4065  ;;  %v4058_v31 = vunpack.i.h.bf16 %v5440_v47  ;;  %v4057_v26 = vunpack.i.l.bf16 %v5440_v47 }
 0x27a   : > { %v4068_v34 = vunpack.i.h.bf16 %v4066_v36  ;;  %v4067_v40 = vunpack.i.l.bf16 %v4066_v36 }
 0x27c   : > { %v4076_v45 = vpop.permute.xlu1 %4075  ;;  %v2520_v25 = vsel %vm1398_vm9, %v2504_v0, %v4068_v34  ;;  %v2519_v42 = vsel %vm1398_vm9, %v2503_v7, %v4067_v40  ;;  %v4158_v40 = vmov 0.0|0.0  }
 0x27d   : > { %v4078_v54 = vunpack.i.h.bf16 %v4076_v45  ;;  %v4077_v19 = vunpack.i.l.bf16 %v4076_v45  ;;  %v4071_v20 = vpop.permute.xlu0 %4070  ;;  %3491 = vmatprep.subr.bf16.mxu0 %v4158_v40 }
 0x27e   : > { %v4073_v24 = vunpack.i.h.bf16 %v4071_v20  ;;  %v4072_v14 = vunpack.i.l.bf16 %v4071_v20 }
 0x27f   : > { %v2584_v29 = vsel %vm2573_vm1, %v2567_v5, %v4077_v19  ;;  %v2585_v56 = vsel %vm2573_vm1, %v2568_v55, %v4078_v54 }
 0x280   : > { %v4081_v16 = vpop.permute.xlu1 %4080  ;;  %v2600_v3 = vpack.c.bf16 %v2585_v56, %v2584_v29  ;;  %v3492_v29 = vpack.c.bf16 %v2867_v38, %v2866_v12  ;;  %v5787_v56 = vmov 0.0  }
 0x281   : > { %v4083_v33 = vunpack.i.h.bf16 %v4081_v16  ;;  %v4082_v32 = vunpack.i.l.bf16 %v4081_v16  ;;  %v4086_v60 = vpop.permute.xlu0 %4085  ;;  %3465 = vmatprep.mubr.msk.f32.mxu0 %vm4159_vm3, %v5787_v56 }
 0x282   : > { %v4088_v63 = vunpack.i.h.bf16 %v4086_v60  ;;  %v4087_v23 = vunpack.i.l.bf16 %v4086_v60  ;;  %2757 = vmatmul.mubr.bf16.gmra.mrb[20].mxu1 %v2600_v3  ;;  %3493 = vmatpush3.bf16.msra.mxu0 %v3492_v29 }
 0x283   : > { %v2536_v10 = vsel %vm1432_vm11, %v2520_v25, %v4083_v33  ;;  %v2535_v57 = vsel %vm1432_vm11, %v2519_v42, %v4082_v32  ;;  %3386 = vmatprep.mubr.msk.bf16.mxu1 %vm1330_vm2, %v2603_v4  ;;  %3468 = vmatprep.subr.mxu0 %v5787_v56 }
 0x284   : > { %v2552_v18 = vsel %vm2539_vm14, %v2535_v57, %v4087_v23  ;;  %v2553_v61 = vsel %vm2539_vm14, %v2536_v10, %v4088_v63  ;;  %v4096_v44 = vpop.permute.xlu1 %4095 }
 0x285   : > { %v4091_v58 = vpop.permute.xlu0 %4090  ;;  %v2569_v59 = vsel %vm2556_vm15, %v2552_v18, %v4052_v51  ;;  %v2570_v6 = vsel %vm2556_vm15, %v2553_v61, %v4053_v22  ;;  %v4098_v43 = vunpack.i.h.bf16 %v4096_v44  ;;  %v4097_v15 = vunpack.i.l.bf16 %v4096_v44  ;;  %v5508_v51 = vld [vmem:[%s5775_s5] ss:$0 sm:$0xff] }
 0x286   : > { %v2586_v17 = vsel %vm2573_vm1, %v2569_v59, %v4072_v14  ;;  %v2587_v52 = vsel %vm2573_vm1, %v2570_v6, %v4073_v24  ;;  %v4093_v28 = vunpack.i.h.bf16 %v4091_v58  ;;  %v4092_v50 = vunpack.i.l.bf16 %v4091_v58  ;;  %v5516_v61 = vld [vmem:[%s5776_s6] ss:$0 sm:$0xff] }
 0x287   : > { %v2602_v27 = vpack.c.bf16 %v2587_v52, %v2586_v17  ;;  %v2490_v30 = vsel %vm1330_vm2, %v5207_v13, %v4098_v43  ;;  %v2489_v36 = vsel %vm1330_vm2, %v5205_v39, %v4097_v15 }
 0x288   : > { %v4101_v4 = vpop.permute.xlu1 %4100 }
 0x289   : > { %v4106_v1 = vpop.permute.xlu0 %4105  ;;  %v4103_v35 = vunpack.i.h.bf16 %v4101_v4  ;;  %v4102_v37 = vunpack.i.l.bf16 %v4101_v4 }
 0x28a   : > { %v4108_v11 = vunpack.i.h.bf16 %v4106_v1  ;;  %v4107_v8 = vunpack.i.l.bf16 %v4106_v1  ;;  %2765 = vmatmul.mubr.bf16.gmra.mrb[24].mxu1 %v2602_v27 }
 0x28b   : > { %3387 = vmatprep.mubr.msk.bf16.mxu1 %vm1330_vm2, %v2605_v21 }
 0x28c   : > { %v2505_v47 = vsel %vm1364_vm7, %v2489_v36, %v4107_v8  ;;  %v2506_v49 = vsel %vm1364_vm7, %v2490_v30, %v4108_v11  ;;  %v4116_v48 = vpop.permute.xlu1 %4115 }
 0x28d   : > { %v2521_v62 = vsel %vm1398_vm9, %v2505_v47, %v4057_v26  ;;  %v2522_v13 = vsel %vm1398_vm9, %v2506_v49, %v4058_v31  ;;  %v4111_v53 = vpop.permute.xlu0 %4110  ;;  %v4118_v39 = vunpack.i.h.bf16 %v4116_v48  ;;  %v4117_v45 = vunpack.i.l.bf16 %v4116_v48 }
 0x28e   : > { %v4113_v41 = vunpack.i.h.bf16 %v4111_v53  ;;  %v4112_v46 = vunpack.i.l.bf16 %v4111_v53  ;;  %v2537_v2 = vsel %vm1432_vm11, %v2521_v62, %v4092_v50  ;;  %v2538_v9 = vsel %vm1432_vm11, %v2522_v13, %v4093_v28 }
 0x28f   : > { %v2554_v21 = vsel %vm2539_vm14, %v2537_v2, %v4102_v37  ;;  %v2555_v54 = vsel %vm2539_vm14, %v2538_v9, %v4103_v35 }
 0x290   : > { %v2571_v19 = vsel %vm2556_vm15, %v2554_v21, %v4112_v46  ;;  %v2572_v20 = vsel %vm2556_vm15, %v2555_v54, %v4113_v41 }
 0x291   : > { %v2588_v55 = vsel %vm2573_vm1, %v2571_v19, %v4117_v45  ;;  %v2589_v5 = vsel %vm2573_vm1, %v2572_v20, %v4118_v39 }
 0x292   : > { %v2604_v34 = vpack.c.bf16 %v2589_v5, %v2588_v55 }
 0x294   : > { %2773 = vmatmul.mubr.bf16.gmra.mrb[28].mxu1 %v2604_v34 }
 0x300   : > { %v2718_v16 = vpop.f32.mrb[0].mxu1 }
 0x301   : > { %v2720_v3 = vpop.f32.mrb[1].mxu1  ;;  %v2788_v24 = vmul.f32 %v5508_v51, %v2718_v16 }
 0x302   : > { %v2721_v7 = vpop.f32.mrb[2].mxu1 }
 0x303   : > { %v2723_v0 = vpop.f32.mrb[3].mxu1  ;;  %v2789_v10 = vmul.f32 %v5508_v51, %v2721_v7  ;;  %v5522_v6 = vadd.f32 %v5516_v61, %v2788_v24 }
 0x305   : > { %v5519_v58 = vadd.f32 %v5516_v61, %v2789_v10  ;;  %v2827_v4 = vsel %vm1330_vm2, %v5522_v6, 0.0 }
 0x307   : > { %v2828_v43 = vsel %vm1330_vm2, %v5519_v58, 0.0 }
 0x308   : > { %v2829_v11 = vadd.f32 %v2828_v43, %v2827_v4 }
 0x31d   : > { %v2726_v33 = vpop.f32.mrb[4].mxu1 }
 0x31e   : > { %v2728_v32 = vpop.f32.mrb[5].mxu1  ;;  %v2790_v14 = vmul.f32 %v5508_v51, %v2726_v33 }
 0x31f   : > { %v2729_v60 = vpop.f32.mrb[6].mxu1 }
 0x320   : > { %v2731_v25 = vpop.f32.mrb[7].mxu1  ;;  %v5525_v17 = vadd.f32 %v5516_v61, %v2790_v14  ;;  %v2791_v52 = vmul.f32 %v5508_v51, %v2729_v60 }
 0x322   : > { %v2830_v1 = vsel %vm1330_vm2, %v5525_v17, 0.0  ;;  %v5536_v31 = vadd.f32 %v5516_v61, %v2791_v52 }
 0x323   : > { %v2831_v50 = vadd.f32 %v2830_v1, %v2829_v11 }
 0x324   : > { %v2832_v35 = vsel %vm1330_vm2, %v5536_v31, 0.0 }
 0x325   : > { %v2734_v42 = vpop.f32.mrb[8].mxu1  ;;  %v2833_v48 = vadd.f32 %v2832_v35, %v2831_v50 }
 0x326   : > { %v2736_v63 = vpop.f32.mrb[9].mxu1  ;;  %v2792_v15 = vmul.f32 %v5508_v51, %v2734_v42 }
 0x327   : > { %v2737_v23 = vpop.f32.mrb[10].mxu1 }
 0x328   : > { %v2739_v22 = vpop.f32.mrb[11].mxu1  ;;  %v5539_v30 = vadd.f32 %v5516_v61, %v2792_v15  ;;  %v2793_v36 = vmul.f32 %v5508_v51, %v2737_v23 }
 0x32a   : > { %v2834_v47 = vsel %vm1330_vm2, %v5539_v30, 0.0  ;;  %v5548_v49 = vadd.f32 %v5516_v61, %v2793_v36 }
 0x32b   : > { %v2835_v53 = vadd.f32 %v2834_v47, %v2833_v48 }
 0x32c   : > { %v2836_v39 = vsel %vm1330_vm2, %v5548_v49, 0.0 }
 0x32d   : > { %v2837_v2 = vadd.f32 %v2836_v39, %v2835_v53 }
 0x33d   : > { %v2742_v57 = vpop.f32.mrb[12].mxu1 }
 0x33e   : > { %v2744_v18 = vpop.f32.mrb[13].mxu1  ;;  %v2794_v37 = vmul.f32 %v5508_v51, %v2742_v57 }
 0x33f   : > { %v2745_v44 = vpop.f32.mrb[14].mxu1 }
 0x340   : > { %v2747_v59 = vpop.f32.mrb[15].mxu1  ;;  %v5551_v62 = vadd.f32 %v5516_v61, %v2794_v37  ;;  %v2795_v13 = vmul.f32 %v5508_v51, %v2745_v44 }
 0x342   : > { %v2838_v41 = vsel %vm1330_vm2, %v5551_v62, 0.0  ;;  %v5560_v46 = vadd.f32 %v5516_v61, %v2795_v13 }
 0x343   : > { %v2839_v54 = vadd.f32 %v2838_v41, %v2837_v2  ;;  %v3053_v2 = vld [vmem:[%s5781_s11] sm:$0xf] }
 0x344   : > { %v2840_v20 = vsel %vm1330_vm2, %v5560_v46, 0.0 }
 0x345   : > { %v2750_v27 = vpop.f32.mrb[16].mxu1  ;;  %v2841_v29 = vadd.f32 %v2840_v20, %v2839_v54  ;;  %v3029_v54 = vld [vmem:[%s4315_s18] sm:$0xff] }
 0x346   : > { %v2752_v26 = vpop.f32.mrb[17].mxu1  ;;  %v2796_v45 = vmul.f32 %v5508_v51, %v2750_v27 }
 0x347   : > { %v2753_v8 = vpop.f32.mrb[18].mxu1 }
 0x348   : > { %v2755_v28 = vpop.f32.mrb[19].mxu1  ;;  %v5563_v9 = vadd.f32 %v5516_v61, %v2796_v45  ;;  %v2797_v21 = vmul.f32 %v5508_v51, %v2753_v8 }
 0x34a   : > { %v2842_v40 = vsel %vm1330_vm2, %v5563_v9, 0.0  ;;  %v5572_v12 = vadd.f32 %v5516_v61, %v2797_v21  ;;  %v2868_v21 = vld [vmem:[%s5778_s8] sm:$0x1] }
 0x34b   : > { %v2843_v7 = vadd.f32 %v2842_v40, %v2841_v29  ;;  %v3032_v40 = vld [vmem:[%s4315_s18 + $0x18] sm:$0xff]  ;;  %v3079_v29 = vsel %vm1509_vm5, %v3053_v2, 0 }
 0x34c   : > { %v2844_v0 = vsel %vm1330_vm2, %v5572_v12, 0.0 }
 0x34d   : > { %v2845_v63 = vadd.f32 %v2844_v0, %v2843_v7  ;;  %v3034_v7 = vld [vmem:[%s4315_s18 + $0x28] sm:$0xff] }
 0x355   : > { %v2758_v19 = vpop.f32.mrb[20].mxu1 }
 0x356   : > { %v2798_v55 = vmul.f32 %v5508_v51, %v2758_v19  ;;  %v2760_v5 = vpop.f32.mrb[21].mxu1 }
 0x357   : > { %v2761_v34 = vpop.f32.mrb[22].mxu1 }
 0x358   : > { %v2763_v38 = vpop.f32.mrb[23].mxu1  ;;  %v5575_v16 = vadd.f32 %v5516_v61, %v2798_v55  ;;  %v2799_v3 = vmul.f32 %v5508_v51, %v2761_v34  ;;  %v3031_v34 = vld [vmem:[%s4315_s18 + $0x10] sm:$0xff] }
 0x359   : > { %v3046_v0 = vpack.c.bf16 %v3032_v40, %v3031_v34  ;;  %v5663_v34 = vld [vmem:[%s5783_s13] ss:$0 sm:$0xff] }
 0x35a   : > { %v2846_v32 = vsel %vm1330_vm2, %v5575_v16, 0.0  ;;  %v5583_v60 = vadd.f32 %v5516_v61, %v2799_v3  ;;  %v3033_v3 = vld [vmem:[%s4315_s18 + $0x20] sm:$0xff] }
 0x35b   : > { %v2847_v24 = vadd.f32 %v2846_v32, %v2845_v63  ;;  %v3035_v32 = vld [vmem:[%s4315_s18 + $0x30] sm:$0xff]  ;;  %v3038_v63 = vld [vmem:[%s4315_s18 + $0x48] sm:$0xff] }
 0x35c   : > { %v2848_v14 = vsel %vm1330_vm2, %v5583_v60, 0.0 }
 0x35d   : > { %v2766_v33 = vpop.f32.mrb[24].mxu1  ;;  %v2849_v59 = vadd.f32 %v2848_v14, %v2847_v24  ;;  %v3040_v24 = vld [vmem:[%s4315_s18 + $0x58] sm:$0xff]  ;;  %v3041_v14 = vld [vmem:[%s4315_s18 + $0x60] sm:$0xff] }
 0x35e   : > { %v2800_v25 = vmul.f32 %v5508_v51, %v2766_v33  ;;  %v2768_v42 = vpop.f32.mrb[25].mxu1  ;;  %v3047_v33 = vpack.c.bf16 %v3034_v7, %v3033_v3 }
 0x35f   : > { %v2769_v23 = vpop.f32.mrb[26].mxu1  ;;  %v3037_v42 = vld [vmem:[%s4315_s18 + $0x40] sm:$0xff] }
 0x360   : > { %v5587_v22 = vadd.f32 %v5516_v61, %v2800_v25  ;;  %v2801_v10 = vmul.f32 %v5508_v51, %v2769_v23  ;;  %v2771_v57 = vpop.f32.mrb[27].mxu1  ;;  %v3036_v25 = vld [vmem:[%s4315_s18 + $0x38] sm:$0xff] }
 0x361   : > { %v3048_v23 = vpack.c.bf16 %v3036_v25, %v3035_v32  ;;  %v3039_v57 = vld [vmem:[%s4315_s18 + $0x50] sm:$0xff] }
 0x362   : > { %v2850_v18 = vsel %vm1330_vm2, %v5587_v22, 0.0  ;;  %v5595_v44 = vadd.f32 %v5516_v61, %v2801_v10  ;;  %v3049_v10 = vpack.c.bf16 %v3038_v63, %v3037_v42 }
 0x363   : > { %v2851_v52 = vadd.f32 %v2850_v18, %v2849_v59  ;;  %v3042_v18 = vld [vmem:[%s4315_s18 + $0x68] sm:$0xff]  ;;  %v3050_v59 = vpack.c.bf16 %v3040_v24, %v3039_v57 }
 0x364   : > { %v2852_v15 = vsel %vm1330_vm2, %v5595_v44, 0.0 }
 0x365   : > { %v2853_v36 = vadd.f32 %v2852_v15, %v2851_v52  ;;  %v3051_v52 = vpack.c.bf16 %v3042_v18, %v3041_v14  ;;  %v3044_v15 = vld [vmem:[%s4315_s18 + $0x78] sm:$0xff] }
 0x367   : > { %v2774_v43 = vpop.f32.mrb[28].mxu1 }
 0x368   : > { %v2802_v27 = vmul.f32 %v5508_v51, %v2774_v43  ;;  %v2776_v4 = vpop.f32.mrb[29].mxu1  ;;  %v3043_v43 = vld [vmem:[%s4315_s18 + $0x70] sm:$0xff] }
 0x369   : > { %v2777_v1 = vpop.f32.mrb[30].mxu1  ;;  %v2944_v4 = vld [vmem:[%s5780_s10] sm:$0x1] }
 0x36a   : > { %v5601_v26 = vadd.f32 %v5516_v61, %v2802_v27  ;;  %v2803_v11 = vmul.f32 %v5508_v51, %v2777_v1  ;;  %v2779_v8 = vpop.f32.mrb[31].mxu1  ;;  %v3052_v27 = vpack.c.bf16 %v3044_v15, %v3043_v43 }
 0x36c   : > { %v2854_v28 = vsel %vm1330_vm2, %v5601_v26, 0.0  ;;  %v5607_v50 = vadd.f32 %v5516_v61, %v2803_v11  ;;  %v2943_v61 = vld [vmem:[%s5779_s9] sm:$0x3] }
 0x36d   : > { %v2855_v35 = vadd.f32 %v2854_v28, %v2853_v36 }
 0x36e   : > { %v2856_v37 = vsel %vm1330_vm2, %v5607_v50, 0.0 }
 0x36f   : > { %v2857_v47 = vadd.f32 %v2856_v37, %v2855_v35 }
 0x371   : > { %v2858_v48 = vrot.slane %v2857_v47, 4 }
 0x373   : > { %v2859_v13 = vadd.f32 %v2858_v48, %v2857_v47 }
 0x375   : > { %v2860_v53 = vrot.slane %v2859_v13, 2 }
 0x377   : > { %v2861_v39 = vadd.f32 %v2860_v53, %v2859_v13 }
 0x379   : > { %v2862_v51 = vrot.slane %v2861_v39, 1 }
 0x37b   : > { %v2863_v45 = vadd.f32 %v2862_v51, %v2861_v39 }
 0x37d   : > { %v2865_v41 = vmul.f32 0.0078125, %v2863_v45 }
 0x37f   : > { %3466 = vmatmul.mubr.msk.f32.vlgmr.msra.gmra.mrb[16].mxu0 %vm1330_vm2, %v2865_v41  ;;  %v3224_v41 = vlaneseq }
 0x380   : > { %3470 = vmatprep.mubr.msk.f32.mxu0 %vm4159_vm3, %v5787_v56  ;;  %3469 = vmatpush3.msk.msra.mxu0 %vm2949_vm4, %v2943_v61  ;;  %v3030_v56 = vld [vmem:[%s4315_s18 + $0x8] sm:$0xff]  ;;  %v5655_v61 = vld [vmem:[%s5782_s12] ss:$0 sm:$0xff] }
 0x381   : > { %3495 = vmatprep.subr.msk.bf16.mxu0 %vm1509_vm5, %v3053_v2  ;;  %v3045_v5 = vpack.c.bf16 %v3030_v56, %v3029_v54 }
 0x452   : > { %v2938_v19 = vpop.f32.mrb[16].mxu0 }
 0x453   : > { %v2939_v20 = vadd.f32 %v2938_v19, %v2868_v21  ;;  %v3467_v55 = vpop.f32.mrb[17].mxu0  ;;  %v3225_v21 = vshrl.u32 %v3224_v41, 7 }
 0x455   : > { %v2942_v38 = vmax.f32 %v2939_v20, 0.0  ;;  %v3226_v7 = vsub.s32 0, %v3225_v21 }
 0x457   : > { %3471 = vmatmul.mubr.msk.f32.vlgmr.msra.gmra.mrb[18].mxu0 %vm2945_vm6, %v2942_v38 }
 0x458   : > { %3474 = vmatpush3.bf16.msra.mxu0 %v3079_v29  ;;  %3475 = vmatprep.mubr.msk.bf16.mxu0 %vm485_vm0, %v3045_v5 }
 0x45b   : > { %3476 = vmatmul.mubr.msk.bf16.vlgmr.msra.gmra.mrb[20].mxu0 %vm485_vm0, %v3046_v0 }
 0x45c   : > { %3479 = vmatprep.mubr.msk.bf16.mxu0 %vm485_vm0, %v3047_v33 }
 0x463   : > { %3480 = vmatmul.mubr.msk.bf16.gmra.mrb[24].mxu0 %vm485_vm0, %v3048_v23 }
 0x464   : > { %3483 = vmatprep.mubr.msk.bf16.mxu0 %vm485_vm0, %v3049_v10 }
 0x46b   : > { %3484 = vmatmul.mubr.msk.bf16.gmra.mrb[28].mxu0 %vm485_vm0, %v3050_v59 }
 0x46c   : > { %3487 = vmatprep.mubr.msk.bf16.mxu0 %vm485_vm0, %v3051_v52 }
 0x473   : > { %3488 = vmatmul.mubr.msk.bf16.gmra.mrb[32].mxu0 %vm485_vm0, %v3052_v27 }
 0x52a   : > { %v3019_v1 = vpop.f32.mrb[18].mxu0 }
 0x52b   : > { %v3020_v11 = vadd.f32 %v3019_v1, %v2944_v4  ;;  %v3472_v8 = vpop.f32.mrb[19].mxu0 }
 0x52d   : > { %v3393_v36 = vmul.f32 -1.442695, %v3020_v11 }
 0x52e   : > { %v3477_v28 = vpop.f32.mrb[20].mxu0 }
 0x52f   : > { %4133 = vpow2.f32 %v3393_v36  ;;  %v3115_v35 = vpop.f32.mrb[21].mxu0  ;;  %v3187_v19 = vmul.f32 %v3477_v28, %v5655_v61 }
 0x530   : > { %v3478_v37 = vpop.f32.mrb[22].mxu0  ;;  %v3185_v20 = vmul.f32 %v5655_v61, %v3115_v35 }
 0x531   : > { %v3118_v47 = vpop.f32.mrb[23].mxu0  ;;  %v3188_v55 = vmul.f32 %v3478_v37, %v5655_v61  ;;  %v3210_v63 = vadd.f32 %v5663_v34, %v3187_v19 }
 0x532   : > { %v3186_v40 = vmul.f32 %v5655_v61, %v3118_v47  ;;  %v3208_v23 = vadd.f32 %v5663_v34, %v3185_v20 }
 0x533   : > { %v3211_v10 = vadd.f32 %v5663_v34, %v3188_v55 }
 0x534   : > { %v3209_v24 = vadd.f32 %v5663_v34, %v3186_v40 }
 0x536   : > { %v3481_v48 = vpop.f32.mrb[24].mxu0 }
 0x537   : > { %v3131_v13 = vpop.f32.mrb[25].mxu0  ;;  %v3191_v38 = vmul.f32 %v3481_v48, %v5655_v61 }
 0x538   : > { %v3482_v53 = vpop.f32.mrb[26].mxu0  ;;  %v3189_v29 = vmul.f32 %v5655_v61, %v3131_v13 }
 0x539   : > { %v4134_v39 = vpop.eup %4133  ;;  %v3134_v51 = vpop.f32.mrb[27].mxu0  ;;  %v3192_v3 = vmul.f32 %v3482_v53, %v5655_v61  ;;  %v3214_v14 = vadd.f32 %v5663_v34, %v3191_v38 }
 0x53a   : > { %v3026_v45 = vadd.f32 1.0, %v4134_v39  ;;  %v3190_v0 = vmul.f32 %v5655_v61, %v3134_v51  ;;  %v3212_v18 = vadd.f32 %v5663_v34, %v3189_v29 }
 0x53b   : > { %v3215_v59 = vadd.f32 %v5663_v34, %v3192_v3 }
 0x53c   : > { %4135 = vrcp.f32 %v3026_v45  ;;  %v3213_v15 = vadd.f32 %v5663_v34, %v3190_v0 }
 0x53e   : > { %v3485_v2 = vpop.f32.mrb[28].mxu0 }
 0x53f   : > { %v3147_v54 = vpop.f32.mrb[29].mxu0  ;;  %v3195_v33 = vmul.f32 %v3485_v2, %v5655_v61 }
 0x540   : > { %v3486_v56 = vpop.f32.mrb[30].mxu0  ;;  %v3193_v32 = vmul.f32 %v5655_v61, %v3147_v54 }
 0x541   : > { %v3150_v5 = vpop.f32.mrb[31].mxu0  ;;  %v3196_v25 = vmul.f32 %v3486_v56, %v5655_v61  ;;  %v3218_v27 = vadd.f32 %v5663_v34, %v3195_v33 }
 0x542   : > { %v3194_v42 = vmul.f32 %v5655_v61, %v3150_v5  ;;  %v3216_v4 = vadd.f32 %v5663_v34, %v3193_v32 }
 0x543   : > { %v3219_v11 = vadd.f32 %v5663_v34, %v3196_v25 }
 0x544   : > { %v3217_v8 = vadd.f32 %v5663_v34, %v3194_v42 }
 0x546   : > { %v4136_v57 = vpop.eup %4135  ;;  %v3489_v52 = vpop.f32.mrb[32].mxu0 }
 0x547   : > { %v5681_v43 = vrot.slane %v4136_v57, %v3226_v7  ;;  %v3163_v1 = vpop.f32.mrb[33].mxu0  ;;  %v3199_v36 = vmul.f32 %v3489_v52, %v5655_v61 }
 0x548   : > { %v3197_v28 = vmul.f32 %v5655_v61, %v3163_v1  ;;  %v3490_v35 = vpop.f32.mrb[34].mxu0 }
 0x549   : > { %v3230_v37 = vmul.f32 %v5681_v43, %v5525_v17  ;;  %v3228_v47 = vmul.f32 %v5681_v43, %v5522_v6  ;;  %v3231_v48 = vmul.f32 %v5681_v43, %v5536_v31  ;;  %v3229_v13 = vmul.f32 %v5681_v43, %v5519_v58  ;;  %v3166_v53 = vpop.f32.mrb[35].mxu0 }
 0x54a   : > { %v3234_v39 = vmul.f32 %v5681_v43, %v5551_v62  ;;  %v3232_v51 = vmul.f32 %v5681_v43, %v5539_v30  ;;  %v3235_v45 = vmul.f32 %v5681_v43, %v5560_v46  ;;  %v3233_v17 = vmul.f32 %v5681_v43, %v5548_v49 }
 0x54b   : > { %v3246_v6 = vadd.f32 %v3230_v37, %v3210_v63  ;;  %v3244_v41 = vadd.f32 %v3228_v47, %v3208_v23  ;;  %v3247_v2 = vadd.f32 %v3231_v48, %v3211_v10  ;;  %v3245_v31 = vadd.f32 %v3229_v13, %v3209_v24 }
 0x54c   : > { %v3250_v58 = vadd.f32 %v3234_v39, %v3214_v14  ;;  %v3248_v30 = vadd.f32 %v3232_v51, %v3212_v18  ;;  %v3251_v62 = vadd.f32 %v3235_v45, %v3215_v59  ;;  %v3249_v46 = vadd.f32 %v3233_v17, %v3213_v15 }
 0x54d   : > { %v3262_v21 = vmax.f32 %v3246_v6, 0.0  ;;  %v3260_v49 = vmax.f32 %v3244_v41, 0.0  ;;  %v3263_v54 = vmax.f32 %v3247_v2, 0.0  ;;  %v3261_v56 = vmax.f32 %v3245_v31, 0.0 }
 0x54e   : > { %v3266_v19 = vmax.f32 %v3250_v58, 0.0  ;;  %v3264_v20 = vmax.f32 %v3248_v30, 0.0  ;;  %v3267_v55 = vmax.f32 %v3251_v62, 0.0  ;;  %v3265_v5 = vmax.f32 %v3249_v46, 0.0 }
 0x54f   : > { %3278 = vst.msk [vmem:[%s5711_s28 + $0x10] sm:$0xff] %vm1330_vm2, %v3262_v21  ;;  %3276 = vst.msk [vmem:[%s5711_s28] sm:$0xff] %vm1330_vm2, %v3260_v49  ;;  %v3238_v40 = vmul.f32 %v5681_v43, %v5575_v16  ;;  %v3236_v38 = vmul.f32 %v5681_v43, %v5563_v9  ;;  %v3239_v29 = vmul.f32 %v5681_v43, %v5583_v60 }
 0x550   : > { %3279 = vst.msk [vmem:[%s5711_s28 + $0x18] sm:$0xff] %vm1330_vm2, %v3263_v54  ;;  %3277 = vst.msk [vmem:[%s5711_s28 + $0x8] sm:$0xff] %vm1330_vm2, %v3261_v56  ;;  %v3237_v3 = vmul.f32 %v5681_v43, %v5572_v12  ;;  %v3222_v7 = vadd.f32 %v5663_v34, %v3199_v36  ;;  %v3242_v16 = vmul.f32 %v5681_v43, %v5601_v26 }
 0x551   : > { %3282 = vst.msk [vmem:[%s5711_s28 + $0x30] sm:$0xff] %vm1330_vm2, %v3266_v19  ;;  %3280 = vst.msk [vmem:[%s5711_s28 + $0x20] sm:$0xff] %vm1330_vm2, %v3264_v20  ;;  %v3220_v9 = vadd.f32 %v5663_v34, %v3197_v28  ;;  %v3240_v60 = vmul.f32 %v5681_v43, %v5587_v22  ;;  %v3254_v0 = vadd.f32 %v3238_v40, %v3218_v27 }
 0x552   : > { %3283 = vst.msk [vmem:[%s5711_s28 + $0x38] sm:$0xff] %vm1330_vm2, %v3267_v55  ;;  %3281 = vst.msk [vmem:[%s5711_s28 + $0x28] sm:$0xff] %vm1330_vm2, %v3265_v5  ;;  %v3252_v12 = vadd.f32 %v3236_v38, %v3216_v4  ;;  %v3255_v33 = vadd.f32 %v3239_v29, %v3219_v11  ;;  %v3253_v32 = vadd.f32 %v3237_v3, %v3217_v8 }
 0x553   : > { %v3258_v25 = vadd.f32 %v3242_v16, %v3222_v7  ;;  %v3256_v42 = vadd.f32 %v3240_v60, %v3220_v9  ;;  %v3200_v63 = vmul.f32 %v3490_v35, %v5655_v61  ;;  %v3243_v26 = vmul.f32 %v5681_v43, %v5607_v50 }
 0x554   : > { %v3270_v23 = vmax.f32 %v3254_v0, 0.0  ;;  %v3268_v10 = vmax.f32 %v3252_v12, 0.0  ;;  %v3271_v22 = vmax.f32 %v3255_v33, 0.0  ;;  %v3269_v57 = vmax.f32 %v3253_v32, 0.0 }
 0x555   : > { %v3274_v24 = vmax.f32 %v3258_v25, 0.0  ;;  %v3272_v14 = vmax.f32 %v3256_v42, 0.0  ;;  %v3223_v18 = vadd.f32 %v5663_v34, %v3200_v63  ;;  %v3198_v59 = vmul.f32 %v5655_v61, %v3166_v53 }
 0x556   : > { %3286 = vst.msk [vmem:[%s5711_s28 + $0x50] sm:$0xff] %vm1330_vm2, %v3270_v23  ;;  %3284 = vst.msk [vmem:[%s5711_s28 + $0x40] sm:$0xff] %vm1330_vm2, %v3268_v10  ;;  %v3241_v15 = vmul.f32 %v5681_v43, %v5595_v44 }
 0x557   : > { %3287 = vst.msk [vmem:[%s5711_s28 + $0x58] sm:$0xff] %vm1330_vm2, %v3271_v22  ;;  %3285 = vst.msk [vmem:[%s5711_s28 + $0x48] sm:$0xff] %vm1330_vm2, %v3269_v57  ;;  %v3259_v50 = vadd.f32 %v3243_v26, %v3223_v18  ;;  %v3221_v52 = vadd.f32 %v5663_v34, %v3198_v59 }
 0x558   : > { %3290 = vst.msk [vmem:[%s5711_s28 + $0x70] sm:$0xff] %vm1330_vm2, %v3274_v24  ;;  %3288 = vst.msk [vmem:[%s5711_s28 + $0x60] sm:$0xff] %vm1330_vm2, %v3272_v14 }
 0x559   : > { %v3275_v27 = vmax.f32 %v3259_v50, 0.0  ;;  %v3257_v61 = vadd.f32 %v3241_v15, %v3221_v52 }
 0x55b   : > { %3291 = vst.msk [vmem:[%s5711_s28 + $0x78] sm:$0xff] %vm1330_vm2, %v3275_v27  ;;  %v3273_v4 = vmax.f32 %v3257_v61, 0.0 }
 0x55d   : > { %3289 = vst.msk [vmem:[%s5711_s28 + $0x68] sm:$0xff] %vm1330_vm2, %v3273_v4 }
 0x55e PF: > { %s24_s29 = sadd.s32 1, %s4143_s29  }
 0x55f   : > { %p21_p4 = scmp.ge.s32.totalorder %s24_s29, 4  }
 0x561   :  { %23 = sbr.rel (!%p21_p4) target bundleno = 1 (0x1), region = 110 }

</bundles_post_ra>
